<compile_context>
chip_gen: v7x
topology: tpu7x:2x2x1
jax: 0.10.0
libtpu: 0.0.40
codegen_flags: <defaults>
</compile_context>

<pallas_src>
import functools

import jax
import jax.numpy as jnp
from jax.experimental import pallas as pl
from jax.experimental.pallas import tpu as pltpu


# ---------------------------------------------------------------------------
# Static architecture description (mirrors Generator.make_gen_block chain).
# ---------------------------------------------------------------------------
def generator_layer_specs(z_dim, im_chan, hidden_dim):
    #        (Cin,            Cout,           k, stride, final)
    return (
        (z_dim,           hidden_dim * 4, 3, 2, False),
        (hidden_dim * 4,  hidden_dim * 2, 4, 1, False),
        (hidden_dim * 2,  hidden_dim,     3, 2, False),
        (hidden_dim,      im_chan,        4, 2, True),
    )


def init_generator_params(key, z_dim=16, im_chan=1, hidden_dim=8):
    """Deterministic synthetic parameters with the PyTorch module's shapes."""
    params = []
    for i, (cin, cout, k, _stride, final) in enumerate(
            generator_layer_specs(z_dim, im_chan, hidden_dim)):
        kw, kb = jax.random.split(jax.random.fold_in(key, i))
        p = {"w": 0.1 * jax.random.normal(kw, (cin, cout, k, k), jnp.float32),
             "b": 0.1 * jax.random.normal(kb, (cout,), jnp.float32)}
        if not final:
            p["gamma"] = jnp.ones((cout,), jnp.float32)   # BatchNorm2d defaults
            p["beta"] = jnp.zeros((cout,), jnp.float32)
        params.append(p)
    return params


# ---------------------------------------------------------------------------
# One-time host-side weight preprocessing (exact refactoring, not in-kernel).
# ---------------------------------------------------------------------------
def _convT_as_matrix(weight, H, W, stride):
    """ConvTranspose2d (padding=0) as a dense matrix for NCHW-flattened inputs.

    weight: (Cin, Cout, k, k) — PyTorch ConvTranspose2d layout.
    Returns T of shape (Cin*H*W, Cout*Ho*Wo) with
      T[(cin,h,w),(cout,oh,ow)] = weight[cin, cout, oh - stride*h, ow - stride*w]
    (zero outside the kernel window), plus (Ho, Wo).
    """
    Cin, Cout, k, _ = weight.shape
    Ho = (H - 1) * stride + k
    Wo = (W - 1) * stride + k

    kh = jnp.arange(Ho)[None, :] - stride * jnp.arange(H)[:, None]    # (H, Ho)
    kw = jnp.arange(Wo)[None, :] - stride * jnp.arange(W)[:, None]    # (W, Wo)
    vh = (kh >= 0) & (kh < k)
    vw = (kw >= 0) & (kw < k)
    g = weight[:, :, jnp.clip(kh, 0, k - 1), :]       # (Cin, Cout, H, Ho, k)
    g = g[:, :, :, :, jnp.clip(kw, 0, k - 1)]         # (Cin, Cout, H, Ho, W, Wo)
    mask = vh[:, :, None, None] & vw[None, None, :, :]                # (H, Ho, W, Wo)
    g = jnp.where(mask[None, None], g, 0.0)
    g = jnp.transpose(g, (0, 2, 4, 1, 3, 5))          # (Cin, H, W, Cout, Ho, Wo)
    return g.reshape(Cin * H * W, Cout * Ho * Wo), Ho, Wo


def prepare_generator(params, z_dim, im_chan, hidden_dim):
    """Build the fused-kernel operands.  Returns (flat_arrays, static_meta)."""
    specs = generator_layer_specs(z_dim, im_chan, hidden_dim)
    H = W = 1
    flat, meta = [], []
    for p, (_cin, cout, _k, stride, final) in zip(params, specs):
        T, Ho, Wo = _convT_as_matrix(p["w"], H, W, stride)
        S = Ho * Wo
        D = cout * S
        flat.append(T.astype(jnp.bfloat16))                              # MXU feed
        flat.append(jnp.repeat(p["b"], S).reshape(1, D).astype(jnp.float32))
        if not final:
            flat.append(jnp.repeat(p["gamma"], S).reshape(1, D).astype(jnp.float32))
            flat.append(jnp.repeat(p["beta"], S).reshape(1, D).astype(jnp.float32))
            # Indicator matrices for per-channel pooling / broadcast inside BN.
            pool = (jnp.arange(D)[:, None] // S ==
                    jnp.arange(cout)[None, :]).astype(jnp.float32)       # (D, C)
            flat.append(pool)
            flat.append(pool.T)                                          # (C, D)
        meta.append((int(cout), int(Ho), int(Wo), bool(final)))
        H, W = Ho, Wo
    return tuple(flat), tuple(meta)


# ---------------------------------------------------------------------------
# The single fused Pallas kernel.
# ---------------------------------------------------------------------------
def _make_generator_kernel(layer_meta, batch):
    def kernel(*refs):
        x_ref, param_refs, o_ref = refs[0], refs[1:-1], refs[-1]
        x = x_ref[...].astype(jnp.float32)             # (N, D_in) activation
        idx = 0
        for cout, Ho, Wo, final in layer_meta:
            S = Ho * Wo
            t_ref, b_ref = param_refs[idx], param_refs[idx + 1]
            # ConvTranspose2d == one MXU matmul against the dense bf16 matrix.
            y = jnp.dot(x.astype(jnp.bfloat16), t_ref[...],
                        preferred_element_type=jnp.float32)
            y = y + b_ref[...]                                           # conv bias
            if final:
                # Sigmoid via EUP tanh (no VALU divide): 1/(1+e^-x) = 0.5*(tanh(x/2)+1)
                x = 0.5 * (jnp.tanh(0.5 * y) + 1.0)
                idx += 2
            else:
                g_ref, be_ref = param_refs[idx + 2], param_refs[idx + 3]
                pool_ref, expand_ref = param_refs[idx + 4], param_refs[idx + 5]
                inv_cnt = 1.0 / float(batch * S)
                # BatchNorm2d: training-mode batch stats (biased var, eps=1e-5).
                # Per-channel pool/broadcast via tiny indicator-matrix matmuls.
                colsum = jnp.sum(y, axis=0, keepdims=True)               # (1, D)
                mean = jnp.dot(
                    jnp.dot(colsum, pool_ref[...],
                            preferred_element_type=jnp.float32) * inv_cnt,
                    expand_ref[...], preferred_element_type=jnp.float32)  # (1, D)
                d = y - mean
                sqsum = jnp.sum(d * d, axis=0, keepdims=True)            # (1, D)
                var = jnp.dot(
                    jnp.dot(sqsum, pool_ref[...],
                            preferred_element_type=jnp.float32) * inv_cnt,
                    expand_ref[...], preferred_element_type=jnp.float32)  # (1, D)
                xhat = d * jax.lax.rsqrt(var + 1e-5)                     # EUP rsqrt
                x = jnp.maximum(xhat * g_ref[...] + be_ref[...], 0.0)    # affine + ReLU
                idx += 6
        o_ref[...] = x                                   # (N, 784) lane-dense output
    return kernel


@functools.partial(jax.jit, static_argnames=("layer_meta",))
def generator_forward(noise, flat_params, layer_meta):
    """noise: (N, z_dim) -> (N, im_chan, 28, 28), matching the PyTorch module."""
    N = noise.shape[0]
    c_last, h_last, w_last, _ = layer_meta[-1]
    d_out = c_last * h_last * w_last

    # Advisory cost estimate for XLA scheduling around the custom call.
    flops, idx = 0, 0
    for _c, _h, _w, final in layer_meta:
        t = flat_params[idx]
        flops += 2 * N * t.shape[0] * t.shape[1]
        idx += 2 if final else 6
    transcendentals = N * d_out + sum(c * h * w for c, h, w, f in layer_meta if not f)
    bytes_accessed = int(noise.size) * 4 + N * d_out * 4 + sum(
        int(a.size) * a.dtype.itemsize for a in flat_params)

    vmem_spec = pl.BlockSpec(memory_space=pltpu.MemorySpace.VMEM)
    out_flat = pl.pallas_call(
        _make_generator_kernel(layer_meta, N),
        out_shape=jax.ShapeDtypeStruct((N, d_out), jnp.float32),
        in_specs=[vmem_spec] * (1 + len(flat_params)),
        out_specs=vmem_spec,
        cost_estimate=pl.CostEstimate(flops=int(flops),
                                      transcendentals=int(transcendentals),
                                      bytes_accessed=int(bytes_accessed)),
        compiler_params=pltpu.CompilerParams(vmem_limit_bytes=32 * 1024 * 1024),
    )(noise.astype(jnp.float32), *flat_params)

    # Channel-major flattening == NCHW, so this reshape is free.
    return out_flat.reshape(N, c_last, h_last, w_last)


# ----------------------------------- main ------------------------------------
if __name__ == "__main__":
    Z_DIM, IM_CHAN, HIDDEN, BATCH = 16, 1, 8, 2
    key = jax.random.PRNGKey(0)
    pkey, nkey = jax.random.split(key)

    params = init_generator_params(pkey, z_dim=Z_DIM, im_chan=IM_CHAN,
                                   hidden_dim=HIDDEN)
    flat_params, layer_meta = prepare_generator(params, Z_DIM, IM_CHAN, HIDDEN)

    noise = jax.random.normal(nkey, (BATCH, Z_DIM), jnp.float32)
    out = generator_forward(noise, flat_params, layer_meta=layer_meta)
    out = jax.block_until_ready(out)

    assert out.shape == (BATCH, IM_CHAN, 28, 28), out.shape
    assert bool(jnp.all(jnp.isfinite(out)))
    assert bool(jnp.all((out >= 0.0) & (out <= 1.0)))   # sigmoid output range
    print("KERNEL_OK")
</pallas_src>

<mosaic_0001>
module attributes {stable_mosaic.version = 11 : i64} {
  func.func @kernel(%arg0: memref<2x16xf32, #tpu.memory_space<vmem>>, %arg1: memref<16x288xbf16, #tpu.memory_space<vmem>>, %arg2: memref<1x288xf32, #tpu.memory_space<vmem>>, %arg3: memref<1x288xf32, #tpu.memory_space<vmem>>, %arg4: memref<1x288xf32, #tpu.memory_space<vmem>>, %arg5: memref<288x32xf32, #tpu.memory_space<vmem>>, %arg6: memref<32x288xf32, #tpu.memory_space<vmem>>, %arg7: memref<288x576xbf16, #tpu.memory_space<vmem>>, %arg8: memref<1x576xf32, #tpu.memory_space<vmem>>, %arg9: memref<1x576xf32, #tpu.memory_space<vmem>>, %arg10: memref<1x576xf32, #tpu.memory_space<vmem>>, %arg11: memref<576x16xf32, #tpu.memory_space<vmem>>, %arg12: memref<16x576xf32, #tpu.memory_space<vmem>>, %arg13: memref<576x1352xbf16, #tpu.memory_space<vmem>>, %arg14: memref<1x1352xf32, #tpu.memory_space<vmem>>, %arg15: memref<1x1352xf32, #tpu.memory_space<vmem>>, %arg16: memref<1x1352xf32, #tpu.memory_space<vmem>>, %arg17: memref<1352x8xf32, #tpu.memory_space<vmem>>, %arg18: memref<8x1352xf32, #tpu.memory_space<vmem>>, %arg19: memref<1352x784xbf16, #tpu.memory_space<vmem>>, %arg20: memref<1x784xf32, #tpu.memory_space<vmem>>, %arg21: memref<2x784xf32, #tpu.memory_space<vmem>>) attributes {dimension_semantics = [], scalar_prefetch = 0 : i64, scratch_operands = 0 : i64, tpu.core_type = #tpu.core_type<tc>} {
    %c0 = arith.constant 0 : index
    %c0_0 = arith.constant 0 : index
    %0 = vector.load %arg0[%c0, %c0_0] : memref<2x16xf32, #tpu.memory_space<vmem>>, vector<2x16xf32>
    %1 = arith.truncf %0 : vector<2x16xf32> to vector<2x16xbf16>
    %c0_1 = arith.constant 0 : index
    %c0_2 = arith.constant 0 : index
    %2 = vector.load %arg1[%c0_1, %c0_2] : memref<16x288xbf16, #tpu.memory_space<vmem>>, vector<16x288xbf16>
    %cst = arith.constant dense<0.000000e+00> : vector<2x288xf32>
    %3 = tpu.matmul %1, %2, %cst {dimension_numbers = #tpu.dot_dimension_numbers<[1], [0], [0], [1], [0, 0, 1, 1], [], []>} : vector<2x16xbf16>, vector<16x288xbf16>, vector<2x288xf32> -> vector<2x288xf32>
    %c0_3 = arith.constant 0 : index
    %c0_4 = arith.constant 0 : index
    %4 = vector.load %arg2[%c0_3, %c0_4] : memref<1x288xf32, #tpu.memory_space<vmem>>, vector<1x288xf32>
    %5 = vector.broadcast %4 : vector<1x288xf32> to vector<2x288xf32>
    %6 = arith.addf %3, %5 : vector<2x288xf32>
    %cst_5 = arith.constant dense<0.000000e+00> : vector<288xf32>
    %7 = vector.multi_reduction <add>, %6, %cst_5 [0] : vector<2x288xf32> to vector<288xf32>
    %8 = vector.shape_cast %7 : vector<288xf32> to vector<1x288xf32>
    %c0_6 = arith.constant 0 : index
    %c0_7 = arith.constant 0 : index
    %9 = vector.load %arg5[%c0_6, %c0_7] : memref<288x32xf32, #tpu.memory_space<vmem>>, vector<288x32xf32>
    %cst_8 = arith.constant dense<0.000000e+00> : vector<1x32xf32>
    %10 = tpu.matmul %8, %9, %cst_8 {dimension_numbers = #tpu.dot_dimension_numbers<[1], [0], [0], [1], [0, 0, 1, 1], [], []>} : vector<1x288xf32>, vector<288x32xf32>, vector<1x32xf32> -> vector<1x32xf32>
    %cst_9 = arith.constant 0.055555556 : f32
    %11 = vector.broadcast %cst_9 : f32 to vector<1x32xf32>
    %12 = arith.mulf %10, %11 : vector<1x32xf32>
    %c0_10 = arith.constant 0 : index
    %c0_11 = arith.constant 0 : index
    %13 = vector.load %arg6[%c0_10, %c0_11] : memref<32x288xf32, #tpu.memory_space<vmem>>, vector<32x288xf32>
    %cst_12 = arith.constant dense<0.000000e+00> : vector<1x288xf32>
    %14 = tpu.matmul %12, %13, %cst_12 {dimension_numbers = #tpu.dot_dimension_numbers<[1], [0], [0], [1], [0, 0, 1, 1], [], []>} : vector<1x32xf32>, vector<32x288xf32>, vector<1x288xf32> -> vector<1x288xf32>
    %15 = vector.broadcast %14 : vector<1x288xf32> to vector<2x288xf32>
    %16 = arith.subf %6, %15 : vector<2x288xf32>
    %17 = arith.mulf %16, %16 : vector<2x288xf32>
    %cst_13 = arith.constant dense<0.000000e+00> : vector<288xf32>
    %18 = vector.multi_reduction <add>, %17, %cst_13 [0] : vector<2x288xf32> to vector<288xf32>
    %19 = vector.shape_cast %18 : vector<288xf32> to vector<1x288xf32>
    %c0_14 = arith.constant 0 : index
    %c0_15 = arith.constant 0 : index
    %20 = vector.load %arg5[%c0_14, %c0_15] : memref<288x32xf32, #tpu.memory_space<vmem>>, vector<288x32xf32>
    %cst_16 = arith.constant dense<0.000000e+00> : vector<1x32xf32>
    %21 = tpu.matmul %19, %20, %cst_16 {dimension_numbers = #tpu.dot_dimension_numbers<[1], [0], [0], [1], [0, 0, 1, 1], [], []>} : vector<1x288xf32>, vector<288x32xf32>, vector<1x32xf32> -> vector<1x32xf32>
    %cst_17 = arith.constant 0.055555556 : f32
    %22 = vector.broadcast %cst_17 : f32 to vector<1x32xf32>
    %23 = arith.mulf %21, %22 : vector<1x32xf32>
    %c0_18 = arith.constant 0 : index
    %c0_19 = arith.constant 0 : index
    %24 = vector.load %arg6[%c0_18, %c0_19] : memref<32x288xf32, #tpu.memory_space<vmem>>, vector<32x288xf32>
    %cst_20 = arith.constant dense<0.000000e+00> : vector<1x288xf32>
    %25 = tpu.matmul %23, %24, %cst_20 {dimension_numbers = #tpu.dot_dimension_numbers<[1], [0], [0], [1], [0, 0, 1, 1], [], []>} : vector<1x32xf32>, vector<32x288xf32>, vector<1x288xf32> -> vector<1x288xf32>
    %cst_21 = arith.constant 9.99999974E-6 : f32
    %26 = vector.broadcast %cst_21 : f32 to vector<1x288xf32>
    %27 = arith.addf %25, %26 : vector<1x288xf32>
    %28 = math.rsqrt %27 : vector<1x288xf32>
    %29 = vector.broadcast %28 : vector<1x288xf32> to vector<2x288xf32>
    %30 = arith.mulf %16, %29 : vector<2x288xf32>
    %c0_22 = arith.constant 0 : index
    %c0_23 = arith.constant 0 : index
    %31 = vector.load %arg3[%c0_22, %c0_23] : memref<1x288xf32, #tpu.memory_space<vmem>>, vector<1x288xf32>
    %32 = vector.broadcast %31 : vector<1x288xf32> to vector<2x288xf32>
    %33 = arith.mulf %30, %32 : vector<2x288xf32>
    %c0_24 = arith.constant 0 : index
    %c0_25 = arith.constant 0 : index
    %34 = vector.load %arg4[%c0_24, %c0_25] : memref<1x288xf32, #tpu.memory_space<vmem>>, vector<1x288xf32>
    %35 = vector.broadcast %34 : vector<1x288xf32> to vector<2x288xf32>
    %36 = arith.addf %33, %35 : vector<2x288xf32>
    %cst_26 = arith.constant 0.000000e+00 : f32
    %37 = vector.broadcast %cst_26 : f32 to vector<2x288xf32>
    %38 = arith.maximumf %36, %37 : vector<2x288xf32>
    %39 = arith.truncf %38 : vector<2x288xf32> to vector<2x288xbf16>
    %c0_27 = arith.constant 0 : index
    %c0_28 = arith.constant 0 : index
    %40 = vector.load %arg7[%c0_27, %c0_28] : memref<288x576xbf16, #tpu.memory_space<vmem>>, vector<288x576xbf16>
    %cst_29 = arith.constant dense<0.000000e+00> : vector<2x576xf32>
    %41 = tpu.matmul %39, %40, %cst_29 {dimension_numbers = #tpu.dot_dimension_numbers<[1], [0], [0], [1], [0, 0, 1, 1], [], []>} : vector<2x288xbf16>, vector<288x576xbf16>, vector<2x576xf32> -> vector<2x576xf32>
    %c0_30 = arith.constant 0 : index
    %c0_31 = arith.constant 0 : index
    %42 = vector.load %arg8[%c0_30, %c0_31] : memref<1x576xf32, #tpu.memory_space<vmem>>, vector<1x576xf32>
    %43 = vector.broadcast %42 : vector<1x576xf32> to vector<2x576xf32>
    %44 = arith.addf %41, %43 : vector<2x576xf32>
    %cst_32 = arith.constant dense<0.000000e+00> : vector<576xf32>
    %45 = vector.multi_reduction <add>, %44, %cst_32 [0] : vector<2x576xf32> to vector<576xf32>
    %46 = vector.shape_cast %45 : vector<576xf32> to vector<1x576xf32>
    %c0_33 = arith.constant 0 : index
    %c0_34 = arith.constant 0 : index
    %47 = vector.load %arg11[%c0_33, %c0_34] : memref<576x16xf32, #tpu.memory_space<vmem>>, vector<576x16xf32>
    %cst_35 = arith.constant dense<0.000000e+00> : vector<1x16xf32>
    %48 = tpu.matmul %46, %47, %cst_35 {dimension_numbers = #tpu.dot_dimension_numbers<[1], [0], [0], [1], [0, 0, 1, 1], [], []>} : vector<1x576xf32>, vector<576x16xf32>, vector<1x16xf32> -> vector<1x16xf32>
    %cst_36 = arith.constant 0.013888889 : f32
    %49 = vector.broadcast %cst_36 : f32 to vector<1x16xf32>
    %50 = arith.mulf %48, %49 : vector<1x16xf32>
    %c0_37 = arith.constant 0 : index
    %c0_38 = arith.constant 0 : index
    %51 = vector.load %arg12[%c0_37, %c0_38] : memref<16x576xf32, #tpu.memory_space<vmem>>, vector<16x576xf32>
    %cst_39 = arith.constant dense<0.000000e+00> : vector<1x576xf32>
    %52 = tpu.matmul %50, %51, %cst_39 {dimension_numbers = #tpu.dot_dimension_numbers<[1], [0], [0], [1], [0, 0, 1, 1], [], []>} : vector<1x16xf32>, vector<16x576xf32>, vector<1x576xf32> -> vector<1x576xf32>
    %53 = vector.broadcast %52 : vector<1x576xf32> to vector<2x576xf32>
    %54 = arith.subf %44, %53 : vector<2x576xf32>
    %55 = arith.mulf %54, %54 : vector<2x576xf32>
    %cst_40 = arith.constant dense<0.000000e+00> : vector<576xf32>
    %56 = vector.multi_reduction <add>, %55, %cst_40 [0] : vector<2x576xf32> to vector<576xf32>
    %57 = vector.shape_cast %56 : vector<576xf32> to vector<1x576xf32>
    %c0_41 = arith.constant 0 : index
    %c0_42 = arith.constant 0 : index
    %58 = vector.load %arg11[%c0_41, %c0_42] : memref<576x16xf32, #tpu.memory_space<vmem>>, vector<576x16xf32>
    %cst_43 = arith.constant dense<0.000000e+00> : vector<1x16xf32>
    %59 = tpu.matmul %57, %58, %cst_43 {dimension_numbers = #tpu.dot_dimension_numbers<[1], [0], [0], [1], [0, 0, 1, 1], [], []>} : vector<1x576xf32>, vector<576x16xf32>, vector<1x16xf32> -> vector<1x16xf32>
    %cst_44 = arith.constant 0.013888889 : f32
    %60 = vector.broadcast %cst_44 : f32 to vector<1x16xf32>
    %61 = arith.mulf %59, %60 : vector<1x16xf32>
    %c0_45 = arith.constant 0 : index
    %c0_46 = arith.constant 0 : index
    %62 = vector.load %arg12[%c0_45, %c0_46] : memref<16x576xf32, #tpu.memory_space<vmem>>, vector<16x576xf32>
    %cst_47 = arith.constant dense<0.000000e+00> : vector<1x576xf32>
    %63 = tpu.matmul %61, %62, %cst_47 {dimension_numbers = #tpu.dot_dimension_numbers<[1], [0], [0], [1], [0, 0, 1, 1], [], []>} : vector<1x16xf32>, vector<16x576xf32>, vector<1x576xf32> -> vector<1x576xf32>
    %cst_48 = arith.constant 9.99999974E-6 : f32
    %64 = vector.broadcast %cst_48 : f32 to vector<1x576xf32>
    %65 = arith.addf %63, %64 : vector<1x576xf32>
    %66 = math.rsqrt %65 : vector<1x576xf32>
    %67 = vector.broadcast %66 : vector<1x576xf32> to vector<2x576xf32>
    %68 = arith.mulf %54, %67 : vector<2x576xf32>
    %c0_49 = arith.constant 0 : index
    %c0_50 = arith.constant 0 : index
    %69 = vector.load %arg9[%c0_49, %c0_50] : memref<1x576xf32, #tpu.memory_space<vmem>>, vector<1x576xf32>
    %70 = vector.broadcast %69 : vector<1x576xf32> to vector<2x576xf32>
    %71 = arith.mulf %68, %70 : vector<2x576xf32>
    %c0_51 = arith.constant 0 : index
    %c0_52 = arith.constant 0 : index
    %72 = vector.load %arg10[%c0_51, %c0_52] : memref<1x576xf32, #tpu.memory_space<vmem>>, vector<1x576xf32>
    %73 = vector.broadcast %72 : vector<1x576xf32> to vector<2x576xf32>
    %74 = arith.addf %71, %73 : vector<2x576xf32>
    %cst_53 = arith.constant 0.000000e+00 : f32
    %75 = vector.broadcast %cst_53 : f32 to vector<2x576xf32>
    %76 = arith.maximumf %74, %75 : vector<2x576xf32>
    %77 = arith.truncf %76 : vector<2x576xf32> to vector<2x576xbf16>
    %c0_54 = arith.constant 0 : index
    %c0_55 = arith.constant 0 : index
    %78 = vector.load %arg13[%c0_54, %c0_55] : memref<576x1352xbf16, #tpu.memory_space<vmem>>, vector<576x1352xbf16>
    %cst_56 = arith.constant dense<0.000000e+00> : vector<2x1352xf32>
    %79 = tpu.matmul %77, %78, %cst_56 {dimension_numbers = #tpu.dot_dimension_numbers<[1], [0], [0], [1], [0, 0, 1, 1], [], []>} : vector<2x576xbf16>, vector<576x1352xbf16>, vector<2x1352xf32> -> vector<2x1352xf32>
    %c0_57 = arith.constant 0 : index
    %c0_58 = arith.constant 0 : index
    %80 = vector.load %arg14[%c0_57, %c0_58] : memref<1x1352xf32, #tpu.memory_space<vmem>>, vector<1x1352xf32>
    %81 = vector.broadcast %80 : vector<1x1352xf32> to vector<2x1352xf32>
    %82 = arith.addf %79, %81 : vector<2x1352xf32>
    %cst_59 = arith.constant dense<0.000000e+00> : vector<1352xf32>
    %83 = vector.multi_reduction <add>, %82, %cst_59 [0] : vector<2x1352xf32> to vector<1352xf32>
    %84 = vector.shape_cast %83 : vector<1352xf32> to vector<1x1352xf32>
    %c0_60 = arith.constant 0 : index
    %c0_61 = arith.constant 0 : index
    %85 = vector.load %arg17[%c0_60, %c0_61] : memref<1352x8xf32, #tpu.memory_space<vmem>>, vector<1352x8xf32>
    %cst_62 = arith.constant dense<0.000000e+00> : vector<1x8xf32>
    %86 = tpu.matmul %84, %85, %cst_62 {dimension_numbers = #tpu.dot_dimension_numbers<[1], [0], [0], [1], [0, 0, 1, 1], [], []>} : vector<1x1352xf32>, vector<1352x8xf32>, vector<1x8xf32> -> vector<1x8xf32>
    %cst_63 = arith.constant 2.958580e-03 : f32
    %87 = vector.broadcast %cst_63 : f32 to vector<1x8xf32>
    %88 = arith.mulf %86, %87 : vector<1x8xf32>
    %c0_64 = arith.constant 0 : index
    %c0_65 = arith.constant 0 : index
    %89 = vector.load %arg18[%c0_64, %c0_65] : memref<8x1352xf32, #tpu.memory_space<vmem>>, vector<8x1352xf32>
    %cst_66 = arith.constant dense<0.000000e+00> : vector<1x1352xf32>
    %90 = tpu.matmul %88, %89, %cst_66 {dimension_numbers = #tpu.dot_dimension_numbers<[1], [0], [0], [1], [0, 0, 1, 1], [], []>} : vector<1x8xf32>, vector<8x1352xf32>, vector<1x1352xf32> -> vector<1x1352xf32>
    %91 = vector.broadcast %90 : vector<1x1352xf32> to vector<2x1352xf32>
    %92 = arith.subf %82, %91 : vector<2x1352xf32>
    %93 = arith.mulf %92, %92 : vector<2x1352xf32>
    %cst_67 = arith.constant dense<0.000000e+00> : vector<1352xf32>
    %94 = vector.multi_reduction <add>, %93, %cst_67 [0] : vector<2x1352xf32> to vector<1352xf32>
    %95 = vector.shape_cast %94 : vector<1352xf32> to vector<1x1352xf32>
    %c0_68 = arith.constant 0 : index
    %c0_69 = arith.constant 0 : index
    %96 = vector.load %arg17[%c0_68, %c0_69] : memref<1352x8xf32, #tpu.memory_space<vmem>>, vector<1352x8xf32>
    %cst_70 = arith.constant dense<0.000000e+00> : vector<1x8xf32>
    %97 = tpu.matmul %95, %96, %cst_70 {dimension_numbers = #tpu.dot_dimension_numbers<[1], [0], [0], [1], [0, 0, 1, 1], [], []>} : vector<1x1352xf32>, vector<1352x8xf32>, vector<1x8xf32> -> vector<1x8xf32>
    %cst_71 = arith.constant 2.958580e-03 : f32
    %98 = vector.broadcast %cst_71 : f32 to vector<1x8xf32>
    %99 = arith.mulf %97, %98 : vector<1x8xf32>
    %c0_72 = arith.constant 0 : index
    %c0_73 = arith.constant 0 : index
    %100 = vector.load %arg18[%c0_72, %c0_73] : memref<8x1352xf32, #tpu.memory_space<vmem>>, vector<8x1352xf32>
    %cst_74 = arith.constant dense<0.000000e+00> : vector<1x1352xf32>
    %101 = tpu.matmul %99, %100, %cst_74 {dimension_numbers = #tpu.dot_dimension_numbers<[1], [0], [0], [1], [0, 0, 1, 1], [], []>} : vector<1x8xf32>, vector<8x1352xf32>, vector<1x1352xf32> -> vector<1x1352xf32>
    %cst_75 = arith.constant 9.99999974E-6 : f32
    %102 = vector.broadcast %cst_75 : f32 to vector<1x1352xf32>
    %103 = arith.addf %101, %102 : vector<1x1352xf32>
    %104 = math.rsqrt %103 : vector<1x1352xf32>
    %105 = vector.broadcast %104 : vector<1x1352xf32> to vector<2x1352xf32>
    %106 = arith.mulf %92, %105 : vector<2x1352xf32>
    %c0_76 = arith.constant 0 : index
    %c0_77 = arith.constant 0 : index
    %107 = vector.load %arg15[%c0_76, %c0_77] : memref<1x1352xf32, #tpu.memory_space<vmem>>, vector<1x1352xf32>
    %108 = vector.broadcast %107 : vector<1x1352xf32> to vector<2x1352xf32>
    %109 = arith.mulf %106, %108 : vector<2x1352xf32>
    %c0_78 = arith.constant 0 : index
    %c0_79 = arith.constant 0 : index
    %110 = vector.load %arg16[%c0_78, %c0_79] : memref<1x1352xf32, #tpu.memory_space<vmem>>, vector<1x1352xf32>
    %111 = vector.broadcast %110 : vector<1x1352xf32> to vector<2x1352xf32>
    %112 = arith.addf %109, %111 : vector<2x1352xf32>
    %cst_80 = arith.constant 0.000000e+00 : f32
    %113 = vector.broadcast %cst_80 : f32 to vector<2x1352xf32>
    %114 = arith.maximumf %112, %113 : vector<2x1352xf32>
    %115 = arith.truncf %114 : vector<2x1352xf32> to vector<2x1352xbf16>
    %c0_81 = arith.constant 0 : index
    %c0_82 = arith.constant 0 : index
    %116 = vector.load %arg19[%c0_81, %c0_82] : memref<1352x784xbf16, #tpu.memory_space<vmem>>, vector<1352x784xbf16>
    %cst_83 = arith.constant dense<0.000000e+00> : vector<2x784xf32>
    %117 = tpu.matmul %115, %116, %cst_83 {dimension_numbers = #tpu.dot_dimension_numbers<[1], [0], [0], [1], [0, 0, 1, 1], [], []>} : vector<2x1352xbf16>, vector<1352x784xbf16>, vector<2x784xf32> -> vector<2x784xf32>
    %c0_84 = arith.constant 0 : index
    %c0_85 = arith.constant 0 : index
    %118 = vector.load %arg20[%c0_84, %c0_85] : memref<1x784xf32, #tpu.memory_space<vmem>>, vector<1x784xf32>
    %119 = vector.broadcast %118 : vector<1x784xf32> to vector<2x784xf32>
    %120 = arith.addf %117, %119 : vector<2x784xf32>
    %cst_86 = arith.constant 5.000000e-01 : f32
    %121 = vector.broadcast %cst_86 : f32 to vector<2x784xf32>
    %122 = arith.mulf %121, %120 : vector<2x784xf32>
    %123 = math.tanh %122 : vector<2x784xf32>
    %cst_87 = arith.constant 1.000000e+00 : f32
    %124 = vector.broadcast %cst_87 : f32 to vector<2x784xf32>
    %125 = arith.addf %123, %124 : vector<2x784xf32>
    %cst_88 = arith.constant 5.000000e-01 : f32
    %126 = vector.broadcast %cst_88 : f32 to vector<2x784xf32>
    %127 = arith.mulf %126, %125 : vector<2x784xf32>
    %c0_89 = arith.constant 0 : index
    %c0_90 = arith.constant 0 : index
    %128 = vector.load %arg21[%c0_89, %c0_90] : memref<2x784xf32, #tpu.memory_space<vmem>>, vector<2x784xf32>
    tpu.vector_store %arg21[%c0_89, %c0_90], %127 {strides = array<i32>} : memref<2x784xf32, #tpu.memory_space<vmem>>, vector<2x784xf32>,
    return
  }
}

</mosaic_0001>

<bundles_post_ra>
// kernel: generator_forward.1
= control target key start
LH: loop header
LB: loop body
LE: loop exit
PB: predicated region body
PF: predicated region fallthrough
CT: control target
= control target key end

     0   :  { %v23579_v0 = vmov 0.0   ;;  %vm17861_vm0 = vmmov 0   ;;  %v23575_v3 = vmov 0   ;;  %vm108_vm1 = vcmask 130048   ;;  %s23549_s1 = inlined_call_operand.vmem [shape: bf16[16,288], index: 1, kind: input, shape index: {}]   ;;  %s23550_s0 = inlined_call_operand.vmem [shape: f32[2,16], index: 0, kind: input, shape index: {}]   ;;  %s23551_s5 = inlined_call_operand.vmem [shape: f32[288,32], index: 5, kind: input, shape index: {}]   ;;  %s23552_s2 = inlined_call_operand.vmem [shape: f32[1,288], index: 2, kind: input, shape index: {}]   ;;  %s23553_s6 = inlined_call_operand.vmem [shape: f32[32,288], index: 6, kind: input, shape index: {}]   ;;  %s23554_s7 = inlined_call_operand.vmem [shape: bf16[288,576], index: 7, kind: input, shape index: {}]   ;;  %s23555_s3 = inlined_call_operand.vmem [shape: f32[1,288], index: 3, kind: input, shape index: {}]   ;;  %s23556_s4 = inlined_call_operand.vmem [shape: f32[1,288], index: 4, kind: input, shape index: {}]   ;;  %s23557_s11 = inlined_call_operand.vmem [shape: f32[576,16], index: 11, kind: input, shape index: {}]   ;;  %s23558_s8 = inlined_call_operand.vmem [shape: f32[1,576], index: 8, kind: input, shape index: {}]   ;;  %s23559_s12 = inlined_call_operand.vmem [shape: f32[16,576], index: 12, kind: input, shape index: {}]   ;;  %s23560_s13 = inlined_call_operand.vmem [shape: bf16[576,1352], index: 13, kind: input, shape index: {}]   ;;  %s23561_s9 = inlined_call_operand.vmem [shape: f32[1,576], index: 9, kind: input, shape index: {}]   ;;  %s23562_s10 = inlined_call_operand.vmem [shape: f32[1,576], index: 10, kind: input, shape index: {}]   ;;  %s23563_s14 = inlined_call_operand.vmem [shape: f32[1,1352], index: 14, kind: input, shape index: {}]   ;;  %s23564_s17 = inlined_call_operand.vmem [shape: f32[1352,8], index: 17, kind: input, shape index: {}]   ;;  %s23565_s18 = inlined_call_operand.vmem [shape: f32[8,1352], index: 18, kind: input, shape index: {}]   ;;  %s23566_s19 = inlined_call_operand.vmem [shape: bf16[1352,784], index: 19, kind: input, shape index: {}]   ;;  %s23567_s15 = inlined_call_operand.vmem [shape: f32[1,1352], index: 15, kind: input, shape index: {}]   ;;  %s23568_s16 = inlined_call_operand.vmem [shape: f32[1,1352], index: 16, kind: input, shape index: {}]   ;;  %s23569_s20 = inlined_call_operand.vmem [shape: f32[1,784], index: 20, kind: input, shape index: {}]   ;;  %s23570_s21 = inlined_call_operand.vmem [shape: f32[2,784], index: 21, kind: output, shape index: {}]  }
   0x1   :  { %23654 = sst [smem:[#allocation66_spill]] %s23549_s1  ;;  %15308 = vmatprep.subr.bf16.mxu1 %v23579_v0  ;;  %15310 = vmatprep.mubr.msk.bf16.mxu1 %vm17861_vm0, %v23579_v0  ;;  %v23577_v46 = vmov 0.0|0.0   ;;  %v77_v62 = vlaneseq  ;;  %vm208_vm2 = vcmask 254976   ;;  %vm193_vm3 = vcmask 1041408  }
   0x2   :  { %23655 = sst [smem:[#allocation67_spill]] %s23550_s0  ;;  %s23660_s26 = sld [smem:[#allocation66_spill]]  ;;  %144 = vmatprep.mubr.bf16.mxu0 %v23575_v3  ;;  %vm252_vm4 = vcmask 261120   ;;  %vm1822_vm5 = vcmask 517120   ;;  %vm1902_vm6 = vcmask 523264   ;;  %vm6255_vm7 = vcmask 582656  }
   0x3   :  { %23656 = sst [smem:[#allocation68_spill]] %s23551_s5  ;;  %s23661_s30 = sld [smem:[#allocation67_spill]]  ;;  %v18160_v63 = vshrl.u32 %v77_v62, 7  ;;  %vm6432_vm8 = vcmask 588800   ;;  %vm6868_vm9 = vcmask 64512   ;;  %vm12278_vm10 = vcmask 1043456  }
   0x4   :  { %23657 = sst [smem:[#allocation69_spill]] %s23552_s2  ;;  %s23662_s23 = sld [smem:[#allocation68_spill]]  ;;  %vm13349_vm11 = vcmask 1043458   ;;  %vm13351_vm13 = vcmask 128004  }
   0x5   :  { %23658 = sst [smem:[#allocation70_spill]] %s23553_s6  ;;  %23663 = vst [vmem:[#allocation2_spill] sm:$0xff] %v18160_v63  ;;  %s23665_s5 = sld [smem:[#allocation69_spill]]  ;;  %vm13350_vm12 = vmor %vm13349_vm11, %vm193_vm3 }
   0x6   :  { %23659 = sst [smem:[#allocation71_spill]] %s23554_s7  ;;  %vm13352_vm14 = vmor %vm13351_vm13, %vm13350_vm12 }
   0x7   :  { %s23668_s0 = sld [smem:[#allocation71_spill]] }
   0x8   :  { %v16249_v1 = vld [vmem:[%s23660_s26 + $0x4] ss:$12 sps:$4 sm:$0xff]   ;;  %v16251_v2 = vld [vmem:[%s23660_s26 + $0x8] ss:$12 sps:$4 sm:$0xff]   ;;  %v16252_v4 = vld [vmem:[%s23660_s26] ss:$12 sps:$4 sm:$0xff]  }
   0x9   :  { %112 = vmatprep.subr.bf16.mxu0 %v16249_v1  ;;  %v69_v5 = vld [vmem:[%s23661_s30] sm:$0x3]  ;;  %15309 = vmatpush3.bf16.msra.mxu1 %v16251_v2  ;;  %v18163_v1 = vsub.s32 2, %v18160_v63  ;;  %s23667_s26 = sld [smem:[#allocation70_spill]] }
   0xa   :  { %v232_v6 = vld [vmem:[%s23662_s23 + $0x80] sm:$0xff]  ;;  %v70_v7 = vpack.c.bf16 %v69_v5, %v69_v5  ;;  %v233_v8 = vld [vmem:[%s23662_s23 + $0x88] sm:$0xff]  ;;  %113 = vmatpush1.bf16.msra.mxu0 %v16252_v4  ;;  %v234_v13 = vld [vmem:[%s23662_s23 + $0x90] sm:$0xff]  ;;  %15528 = vmatprep.subr.bf16.mxu1 %v23577_v46  ;;  %v18169_v4 = vsub.s32 0, %v18160_v63  ;;  %v18172_v5 = vsub.s32 1, %v18160_v63 }
   0xb   :  { %v216_v9 = vld [vmem:[%s23662_s23] sm:$0xff]  ;;  %v217_v10 = vld [vmem:[%s23662_s23 + $0x8] sm:$0xff]  ;;  %v18003_v11 = vpack.c.bf16 %v233_v8, %v232_v6  ;;  %v235_v14 = vld [vmem:[%s23662_s23 + $0x98] sm:$0xff]  ;;  %23664 = vst [vmem:[#allocation3_spill] sm:$0xff] %v18163_v1 }
   0xc   :  { %v18005_v12 = vpack.c.bf16 %v217_v10, %v216_v9  ;;  %v18013_v15 = vpack.c.bf16 %v235_v14, %v234_v13  ;;  %v218_v16 = vld [vmem:[%s23662_s23 + $0x10] sm:$0xff]  ;;  %v219_v17 = vld [vmem:[%s23662_s23 + $0x18] sm:$0xff]  ;;  %15311 = vmatmul.mubr.msk.bf16.vlgmr.msra.gmra.mrb[0].mxu1 %vm108_vm1, %v70_v7  ;;  %v236_v18 = vld [vmem:[%s23662_s23 + $0xa0] sm:$0xff]  ;;  %23666 = vst [vmem:[#allocation4_spill] sm:$0xff] %v18172_v5 }
   0xd   :  { %15497 = vmatprep.subr.bf16.mxu0 %v18003_v11  ;;  %v237_v19 = vld [vmem:[%s23662_s23 + $0xa8] sm:$0xff]  ;;  %13361 = vmatmul.mubr.msk.bf16.vlgmr.msra.gmra.mrb[0].mxu0 %vm108_vm1, %v70_v7  ;;  %v18033_v20 = vpack.c.bf16 %v219_v17, %v218_v16  ;;  %v220_v22 = vld [vmem:[%s23662_s23 + $0x20] sm:$0xff]  ;;  %v238_v24 = vld [vmem:[%s23662_s23 + $0xb0] sm:$0xff] }
   0xe   :  { %15322 = vmatprep.mubr.msk.f32.mxu1 %vm17861_vm0, %v23579_v0  ;;  %15499 = vmatpush3.bf16.msra.mxu0 %v18005_v12  ;;  %v18036_v21 = vpack.c.bf16 %v237_v19, %v236_v18  ;;  %v221_v23 = vld [vmem:[%s23662_s23 + $0x28] sm:$0xff]  ;;  %v239_v25 = vld [vmem:[%s23662_s23 + $0xb8] sm:$0xff]  ;;  %v222_v28 = vld [vmem:[%s23662_s23 + $0x30] sm:$0xff] }
   0xf   :  { %15501 = vmatprep.subr.bf16.mxu0 %v18013_v15  ;;  %v18051_v26 = vpack.c.bf16 %v221_v23, %v220_v22  ;;  %v18054_v27 = vpack.c.bf16 %v239_v25, %v238_v24  ;;  %v223_v29 = vld [vmem:[%s23662_s23 + $0x38] sm:$0xff]  ;;  %v240_v31 = vld [vmem:[%s23662_s23 + $0xc0] sm:$0xff]  ;;  %v241_v32 = vld [vmem:[%s23662_s23 + $0xc8] sm:$0xff] }
  0x10   :  { %v18064_v30 = vpack.c.bf16 %v223_v29, %v222_v28  ;;  %v18073_v33 = vpack.c.bf16 %v241_v32, %v240_v31  ;;  %v224_v34 = vld [vmem:[%s23662_s23 + $0x40] sm:$0xff]  ;;  %v225_v35 = vld [vmem:[%s23662_s23 + $0x48] sm:$0xff]  ;;  %v242_v37 = vld [vmem:[%s23662_s23 + $0xd0] sm:$0xff] }
  0x11   :  { %v18081_v36 = vpack.c.bf16 %v225_v35, %v224_v34  ;;  %v243_v38 = vld [vmem:[%s23662_s23 + $0xd8] sm:$0xff]  ;;  %v226_v40 = vld [vmem:[%s23662_s23 + $0x50] sm:$0xff]  ;;  %v248_v43 = vld [vmem:[%s23662_s23 + $0x100] sm:$0xff] }
  0x12   :  { %15503 = vmatpush3.bf16.msra.mxu0 %v18033_v20  ;;  %v18091_v39 = vpack.c.bf16 %v243_v38, %v242_v37  ;;  %v227_v41 = vld [vmem:[%s23662_s23 + $0x58] sm:$0xff]  ;;  %v249_v44 = vld [vmem:[%s23662_s23 + $0x108] sm:$0xff]  ;;  %v244_v47 = vld [vmem:[%s23662_s23 + $0xe0] sm:$0xff] }
  0x13   :  { %15505 = vmatprep.subr.bf16.mxu0 %v18036_v21  ;;  %v18099_v42 = vpack.c.bf16 %v227_v41, %v226_v40  ;;  %v18108_v45 = vpack.c.bf16 %v249_v44, %v248_v43  ;;  %v245_v48 = vld [vmem:[%s23662_s23 + $0xe8] sm:$0xff]  ;;  %v228_v50 = vld [vmem:[%s23662_s23 + $0x60] sm:$0xff]  ;;  %v250_v53 = vld [vmem:[%s23662_s23 + $0x110] sm:$0xff] }
  0x14   :  { %v18119_v49 = vpack.c.bf16 %v245_v48, %v244_v47  ;;  %v229_v51 = vld [vmem:[%s23662_s23 + $0x68] sm:$0xff]  ;;  %v251_v54 = vld [vmem:[%s23662_s23 + $0x118] sm:$0xff]  ;;  %v246_v56 = vld [vmem:[%s23662_s23 + $0xf0] sm:$0xff] }
  0x15   :  { %15530 = vmatpush3.bf16.msra.mxu1 %v18108_v45  ;;  %v18127_v52 = vpack.c.bf16 %v229_v51, %v228_v50  ;;  %v18137_v55 = vpack.c.bf16 %v251_v54, %v250_v53  ;;  %v247_v57 = vld [vmem:[%s23662_s23 + $0xf8] sm:$0xff]  ;;  %v230_v59 = vld [vmem:[%s23662_s23 + $0x70] sm:$0xff]  ;;  %v75_v2 = vld [vmem:[%s23665_s5] sm:$0x7] }
  0x16   :  { %15507 = vmatpush3.bf16.msra.mxu0 %v18051_v26  ;;  %15531 = vmatprep.subr.bf16.mxu1 %v23577_v46  ;;  %v18147_v58 = vpack.c.bf16 %v247_v57, %v246_v56  ;;  %v231_v60 = vld [vmem:[%s23662_s23 + $0x78] sm:$0xff]  ;;  %v88_v6 = vrot.slane %v75_v2, %v18163_v1  ;;  %v80_v7 = vrot.slane %v75_v2, %v18169_v4 }
  0x17   :  { %15509 = vmatprep.subr.bf16.mxu0 %v18054_v27  ;;  %v18155_v61 = vpack.c.bf16 %v231_v60, %v230_v59  ;;  %v84_v8 = vrot.slane %v75_v2, %v18172_v5  ;;  %v398_v59 = vld [vmem:[%s23667_s26 + $0x8] sm:$0xff]  ;;  %v401_v60 = vld [vmem:[%s23667_s26 + $0x20] sm:$0xff]  ;;  %v400_v2 = vld [vmem:[%s23667_s26 + $0x18] sm:$0xff] }
  0x18   :  { %v15534_v62 = vpack.c.bf16 %v401_v60, %v398_v59 }
  0x19   :  { %15533 = vmatpush3.bf16.msra.mxu1 %v18137_v55 }
  0x1a   :  { %15511 = vmatpush3.bf16.msra.mxu0 %v18064_v30  ;;  %15535 = vmatprep.subr.bf16.mxu1 %v15534_v62 }
  0x1b   :  { %15513 = vmatprep.subr.bf16.mxu0 %v18073_v33 }
  0x1e   :  { %15515 = vmatpush3.bf16.msra.mxu0 %v18081_v36 }
  0x1f   :  { %15517 = vmatprep.subr.bf16.mxu0 %v18091_v39 }
  0x22   :  { %15519 = vmatpush3.bf16.msra.mxu0 %v18099_v42 }
  0x23   :  { %15521 = vmatprep.subr.bf16.mxu0 %v18119_v49 }
  0x26   :  { %15523 = vmatpush3.bf16.msra.mxu0 %v18127_v52 }
  0x27   :  { %15525 = vmatprep.subr.bf16.mxu0 %v18147_v58 }
  0x2a   :  { %15527 = vmatpush3.bf16.msra.mxu0 %v18155_v61 }
  0x2b   :  { %15580 = vmatprep.subr.bf16.mxu0 %v23577_v46 }
  0xdf   :  { %v187_v9 = vpop.f32.mrb[0].mxu1 }
  0xe0   :  { %v18177_v10 = vadd.f32 %v187_v9, %v88_v6  ;;  %v146_v13 = vpop.f32.mrb[0].mxu0  ;;  %v15312_v14 = vpop.f32.mrb[1].mxu1  ;;  %v403_v9 = vld [vmem:[%s23667_s26 + $0x30] sm:$0xff] }
  0xe1   :  { %v18179_v16 = vadd.f32 %v146_v13, %v80_v7  ;;  %v148_v17 = vpop.f32.mrb[1].mxu0  ;;  %v190_v18 = vpop.f32.mrb[2].mxu1  ;;  %v407_v7 = vld [vmem:[%s23667_s26 + $0x50] sm:$0xff]  ;;  %v406_v13 = vld [vmem:[%s23667_s26 + $0x48] sm:$0xff] }
  0xe2   :  { %v209_v19 = vsel %vm208_vm2, %v18177_v10, 0.0  ;;  %v18183_v22 = vadd.f32 %v148_v17, %v84_v8  ;;  %v150_v23 = vpop.f32.mrb[2].mxu0  ;;  %v15313_v24 = vpop.f32.mrb[3].mxu1  ;;  %v18225_v14 = vpack.c.bf16 %v406_v13, %v403_v9 }
  0xe3   :  { %v210_v25 = vrot.slane %v209_v19, 4  ;;  %v194_v28 = vsel %vm193_vm3, %v18179_v16, 0.0  ;;  %v151_v29 = vpop.f32.mrb[3].mxu0 }
  0xe4   :  { %v195_v31 = vrot.slane %v194_v28, 4  ;;  %v201_v32 = vsel %vm193_vm3, %v18183_v22, 0.0 }
  0xe5   :  { %v211_v34 = vadd.f32 %v210_v25, %v209_v19  ;;  %v202_v35 = vrot.slane %v201_v32, 4  ;;  %v399_v25 = vld [vmem:[%s23667_s26 + $0x10] sm:$0xff] }
  0xe6   :  { %v196_v37 = vadd.f32 %v195_v31, %v194_v28  ;;  %v402_v28 = vld [vmem:[%s23667_s26 + $0x28] sm:$0xff] }
  0xe7   :  { %v212_v38 = vrot.slane %v211_v34, 2  ;;  %v203_v40 = vadd.f32 %v202_v35, %v201_v32  ;;  %v18236_v31 = vpack.c.bf16 %v402_v28, %v399_v25  ;;  %v408_v35 = vld [vmem:[%s23667_s26 + $0x58] sm:$0xff]  ;;  %v16265_v28 = vld [vmem:[%s23668_s0 + $0xa0] ss:$20 sps:$4 sm:$0xff]  }
  0xe8   :  { %v197_v41 = vrot.slane %v196_v37, 2  ;;  %v16267_v25 = vld [vmem:[%s23668_s0 + $0xa4] ss:$20 sps:$4 sm:$0xff]  }
  0xe9   :  { %v213_v43 = vadd.f32 %v212_v38, %v211_v34  ;;  %v204_v44 = vrot.slane %v203_v40, 2  ;;  %v405_v34 = vld [vmem:[%s23667_s26 + $0x40] sm:$0xff] }
  0xea   :  { %v198_v47 = vadd.f32 %v197_v41, %v196_v37  ;;  %v18246_v37 = vpack.c.bf16 %v408_v35, %v405_v34  ;;  %v16271_v34 = vld [vmem:[%s23668_s0 + $0xf0] ss:$20 sps:$4 sm:$0xff]  }
  0xeb   :  { %v214_v48 = vrot.slane %v213_v43, 1  ;;  %v205_v50 = vadd.f32 %v204_v44, %v203_v40  ;;  %v16276_v35 = vld [vmem:[%s23668_s0 + $0x11c] ss:$20 sps:$4 sm:$0xff]  }
  0xec   :  { %v199_v51 = vrot.slane %v198_v47, 1 }
  0xed   :  { %v215_v53 = vadd.f32 %v214_v48, %v213_v43  ;;  %v206_v54 = vrot.slane %v205_v50, 1 }
  0xee   :  { %v200_v57 = vadd.f32 %v199_v51, %v198_v47 }
  0xef   :  { %15323 = vmatmul.mubr.msk.f32.vlgmr.msra.gmra.mrb[4].mxu1 %vm252_vm4, %v215_v53  ;;  %v207_v56 = vadd.f32 %v206_v54, %v205_v50 }
  0xf0   :  { %476 = vmatprep.mubr.f32.mxu1 %v23579_v0 }
  0xf1   :  { %320 = vmatprep.mubr.f32.mxu0 %v207_v56 }
  0xf2   :  { %321 = vmatmul.mubr.f32.vlgmr.msra.gmra.mrb[4].mxu0 %v200_v57 }
  0xf3   :  { %15582 = vmatpush3.bf16.msra.mxu0 %v18108_v45  ;;  %15344 = vmatprep.mubr.msk.f32.mxu0 %vm17861_vm0, %v23579_v0  ;;  %v397_v45 = vld [vmem:[%s23667_s26] sm:$0xff] }
  0xf4   :  { %15583 = vmatprep.subr.bf16.mxu0 %v23577_v46  ;;  %v18208_v6 = vpack.c.bf16 %v400_v2, %v397_v45 }
  0xf6   :  { %15537 = vmatpush1.bf16.msra.mxu1 %v18208_v6 }
  0xf7   :  { %15585 = vmatpush3.bf16.msra.mxu0 %v18137_v55  ;;  %v404_v55 = vld [vmem:[%s23667_s26 + $0x38] sm:$0xff] }
  0xf8   :  { %15587 = vmatprep.subr.bf16.mxu0 %v15534_v62  ;;  %v18217_v8 = vpack.c.bf16 %v407_v7, %v404_v55 }
  0xfa   :  { %15539 = vmatprep.subr.bf16.mxu1 %v18217_v8 }
  0xfb   :  { %15541 = vmatpush1.bf16.msra.mxu1 %v18225_v14 }
  0xfc   :  { %15542 = vmatprep.subr.bf16.mxu1 %v23577_v46 }
 0x1c2   :  { %v392_v17 = vpop.f32.mrb[4].mxu1 }
 0x1c3   :  { %v15324_v18 = vpop.f32.mrb[5].mxu1 }
 0x1c4   :  { %v16261_v18 = vld [vmem:[%s23668_s0 + $0x54] ss:$20 sps:$4 sm:$0xff]  }
 0x1c5   :  { %v14522_v19 = vpop.f32.mrb[4].mxu0 }
 0x1c6   :  { %v14523_v23 = vpop.f32.mrb[5].mxu0 }
 0x1c7   :  { %v14524_v24 = vadd.f32 %v14523_v23, %v14522_v19  ;;  %v16259_v19 = vld [vmem:[%s23668_s0 + $0x50] ss:$20 sps:$4 sm:$0xff]  }
 0x1c8   :  { %v16264_v23 = vld [vmem:[%s23668_s0 + $0x7c] ss:$20 sps:$4 sm:$0xff]  }
 0x1c9   :  { %v393_v29 = vadd.f32 %v14524_v24, %v392_v17  ;;  %v16256_v17 = vld [vmem:[%s23668_s0 + $0x28] ss:$20 sps:$4 sm:$0xff]   ;;  %v16262_v24 = vld [vmem:[%s23668_s0 + $0x78] ss:$20 sps:$4 sm:$0xff]  }
 0x1cb   :  { %v396_v32 = vmul.f32 0.055555556, %v393_v29  ;;  %v16270_v29 = vld [vmem:[%s23668_s0 + $0xcc] ss:$20 sps:$4 sm:$0xff]  }
 0x1cd   :  { %13364 = vmatmul.mubr.msk.f32.vlgmr.msra.gmra.mrb[6].mxu1 %vm252_vm4, %v396_v32 }
 0x1ce   :  { %15544 = vmatpush3.bf16.msra.mxu1 %v18236_v31  ;;  %15333 = vmatprep.mubr.msk.f32.mxu1 %vm17861_vm0, %v23579_v0 }
 0x1cf   :  { %15545 = vmatprep.subr.bf16.mxu1 %v23577_v46 }
 0x1d2   :  { %15547 = vmatpush3.bf16.msra.mxu1 %v18246_v37 }
 0x1d3   :  { %15549 = vmatprep.subr.bf16.mxu1 %v18003_v11 }
 0x1d5   :  { %15334 = vmatmul.mubr.msk.f32.vlgmr.msra.gmra.mrb[8].mxu1 %vm252_vm4, %v396_v32  ;;  %v16273_v32 = vld [vmem:[%s23668_s0 + $0xf4] ss:$20 sps:$4 sm:$0xff]  }
 0x1d6   :  { %15551 = vmatpush3.bf16.msra.mxu1 %v18005_v12 }
 0x1d7   :  { %15553 = vmatprep.subr.bf16.mxu1 %v18013_v15 }
 0x1da   :  { %15555 = vmatpush3.bf16.msra.mxu1 %v18033_v20 }
 0x1db   :  { %15557 = vmatprep.subr.bf16.mxu1 %v18036_v21 }
 0x1de   :  { %15559 = vmatpush3.bf16.msra.mxu1 %v18051_v26 }
 0x1df   :  { %15561 = vmatprep.subr.bf16.mxu1 %v18054_v27 }
 0x1e2   :  { %15563 = vmatpush3.bf16.msra.mxu1 %v18064_v30 }
 0x1e3   :  { %15565 = vmatprep.subr.bf16.mxu1 %v18073_v33 }
 0x1e6   :  { %15567 = vmatpush3.bf16.msra.mxu1 %v18081_v36 }
 0x1e7   :  { %15569 = vmatprep.subr.bf16.mxu1 %v18091_v39 }
 0x1ea   :  { %15571 = vmatpush3.bf16.msra.mxu1 %v18099_v42 }
 0x1eb   :  { %15573 = vmatprep.subr.bf16.mxu1 %v18119_v49 }
 0x1ee   :  { %15575 = vmatpush3.bf16.msra.mxu1 %v18127_v52 }
 0x1ef   :  { %15577 = vmatprep.subr.bf16.mxu1 %v18147_v58 }
 0x1f2   :  { %15579 = vmatpush3.bf16.msra.mxu1 %v18155_v61 }
 0x2a0   :  { %v478_v11 = vpop.f32.mrb[6].mxu1 }
 0x2a1   :  { %v556_v12 = vrot.slane %v478_v11, %v18169_v4  ;;  %v480_v15 = vpop.f32.mrb[7].mxu1  ;;  %v16279_v11 = vld [vmem:[%s23668_s0 + $0x144] ss:$20 sps:$4 sm:$0xff]  }
 0x2a2   :  { %v560_v20 = vrot.slane %v480_v15, %v18169_v4  ;;  %v16282_v15 = vld [vmem:[%s23668_s0 + $0x16c] ss:$20 sps:$4 sm:$0xff]  }
 0x2a3   :  { %v18272_v21 = vsub.f32 %v18179_v16, %v556_v12  ;;  %v16277_v12 = vld [vmem:[%s23668_s0 + $0x140] ss:$20 sps:$4 sm:$0xff]  }
 0x2a4   :  { %v18275_v26 = vsub.f32 %v18183_v22, %v560_v20  ;;  %v16280_v20 = vld [vmem:[%s23668_s0 + $0x168] ss:$20 sps:$4 sm:$0xff]  }
 0x2a5   :  { %v568_v27 = vmul.f32 %v18272_v21, %v18272_v21 }
 0x2a6   :  { %v569_v30 = vmul.f32 %v18275_v26, %v18275_v26 }
 0x2a7   :  { %v571_v33 = vsel %vm193_vm3, %v568_v27, 0.0  ;;  %v16285_v27 = vld [vmem:[%s23668_s0 + $0x194] ss:$20 sps:$4 sm:$0xff]  }
 0x2a8   :  { %v572_v36 = vrot.slane %v571_v33, 4  ;;  %v578_v39 = vsel %vm193_vm3, %v569_v30, 0.0  ;;  %v549_v42 = vpop.f32.mrb[8].mxu1  ;;  %v16283_v30 = vld [vmem:[%s23668_s0 + $0x190] ss:$20 sps:$4 sm:$0xff]  }
 0x2a9   :  { %v579_v49 = vrot.slane %v578_v39, 4  ;;  %v564_v52 = vrot.slane %v549_v42, %v18169_v4  ;;  %v15335_v58 = vpop.f32.mrb[9].mxu1  ;;  %v16289_v42 = vld [vmem:[%s23668_s0 + $0x1e0] ss:$20 sps:$4 sm:$0xff]  }
 0x2aa   :  { %v573_v61 = vadd.f32 %v572_v36, %v571_v33  ;;  %v16288_v33 = vld [vmem:[%s23668_s0 + $0x1bc] ss:$20 sps:$4 sm:$0xff]   ;;  %v16286_v36 = vld [vmem:[%s23668_s0 + $0x1b8] ss:$20 sps:$4 sm:$0xff]   ;;  %v16297_v58 = vld [vmem:[%s23668_s0 + $0x234] ss:$20 sps:$4 sm:$0xff]  }
 0x2ab   :  { %v580_v16 = vadd.f32 %v579_v49, %v578_v39  ;;  %v18285_v22 = vsub.f32 %v18177_v10, %v564_v52  ;;  %v16291_v39 = vld [vmem:[%s23668_s0 + $0x1e4] ss:$20 sps:$4 sm:$0xff]   ;;  %v16294_v49 = vld [vmem:[%s23668_s0 + $0x20c] ss:$20 sps:$4 sm:$0xff]   ;;  %v16292_v52 = vld [vmem:[%s23668_s0 + $0x208] ss:$20 sps:$4 sm:$0xff]  }
 0x2ac   :  { %v574_v38 = vrot.slane %v573_v61, 2 }
 0x2ad   :  { %v570_v40 = vmul.f32 %v18285_v22, %v18285_v22  ;;  %v581_v41 = vrot.slane %v580_v16, 2 }
 0x2ae   :  { %v575_v43 = vadd.f32 %v574_v38, %v573_v61  ;;  %v16295_v61 = vld [vmem:[%s23668_s0 + $0x230] ss:$20 sps:$4 sm:$0xff]   ;;  %v16298_v38 = vld [vmem:[%s23668_s0 + $0x258] ss:$20 sps:$4 sm:$0xff]  }
 0x2af   :  { %v585_v44 = vsel %vm208_vm2, %v570_v40, 0.0  ;;  %v582_v47 = vadd.f32 %v581_v41, %v580_v16  ;;  %v16300_v16 = vld [vmem:[%s23668_s0 + $0x25c] ss:$20 sps:$4 sm:$0xff]   ;;  %v16303_v41 = vld [vmem:[%s23668_s0 + $0x28c] ss:$20 sps:$4 sm:$0xff]  }
 0x2b0   :  { %v586_v48 = vrot.slane %v585_v44, 4  ;;  %v576_v50 = vrot.slane %v575_v43, 1  ;;  %v16301_v40 = vld [vmem:[%s23668_s0 + $0x288] ss:$20 sps:$4 sm:$0xff]   ;;  %1673 = vmatprep.subr.bf16.mxu1 %v16303_v41  ;;  %v1832_v41 = vld [vmem:[%s23557_s11 + $0x10] sm:$0xff] }
 0x2b1   :  { %v583_v51 = vrot.slane %v582_v47, 1 }
 0x2b2   :  { %v587_v53 = vadd.f32 %v586_v48, %v585_v44  ;;  %v577_v57 = vadd.f32 %v576_v50, %v575_v43  ;;  %v16306_v43 = vld [vmem:[%s23668_s0 + $0x284] ss:$20 sps:$4 sm:$0xff]   ;;  %v16309_v44 = vld [vmem:[%s23668_s0 + $0x2b4] ss:$20 sps:$4 sm:$0xff]  }
 0x2b3   :  { %v584_v54 = vadd.f32 %v583_v51, %v582_v47  ;;  %v16307_v47 = vld [vmem:[%s23668_s0 + $0x2b0] ss:$20 sps:$4 sm:$0xff]  }
 0x2b4   :  { %v588_v56 = vrot.slane %v587_v53, 2 }
 0x2b5   :  { %659 = vmatprep.mubr.f32.mxu1 %v584_v54 }
 0x2b6   :  { %v589_v59 = vadd.f32 %v588_v56, %v587_v53  ;;  %660 = vmatmul.mubr.f32.vlgmr.msra.gmra.mrb[10].mxu1 %v577_v57 }
 0x2b7   :  { %1705 = vmatprep.mubr.bf16.mxu1 %v23575_v3  ;;  %1674 = vmatpush1.bf16.msra.mxu1 %v16301_v40 }
 0x2b8   :  { %v590_v10 = vrot.slane %v589_v59, 1  ;;  %1675 = vmatprep.subr.bf16.mxu1 %v16309_v44  ;;  %v16318_v44 = vld [vmem:[%s23668_s0 + $0x30] ss:$20 sps:$4 sm:$0xff]  }
 0x2ba   :  { %v591_v60 = vadd.f32 %v590_v10, %v589_v59  ;;  %v898_v59 = vld [vmem:[%s23555_s3] sm:$0x7] }
 0x2bb   :  { %1676 = vmatpush1.bf16.msra.mxu1 %v16307_v47  ;;  %v16323_v47 = vld [vmem:[%s23668_s0 + $0x5c] ss:$20 sps:$4 sm:$0xff]  }
 0x2bc   :  { %15345 = vmatmul.mubr.msk.f32.vlgmr.msra.gmra.mrb[6].mxu0 %vm252_vm4, %v591_v60  ;;  %15358 = vmatprep.subr.bf16.mxu1 %v23579_v0  ;;  %v918_v60 = vld [vmem:[%s23556_s4] sm:$0x7] }
 0x2bd   :  { %15589 = vmatpush1.bf16.msra.mxu0 %v18208_v6  ;;  %803 = vmatprep.mubr.f32.mxu0 %v23579_v0  ;;  %v16255_v6 = vld [vmem:[%s23668_s0 + $0x4] ss:$20 sps:$4 sm:$0xff]  }
 0x2be   :  { %15591 = vmatprep.subr.bf16.mxu0 %v18217_v8  ;;  %v16253_v8 = vld [vmem:[%s23668_s0] ss:$20 sps:$4 sm:$0xff]  }
 0x2c1   :  { %15593 = vmatpush1.bf16.msra.mxu0 %v18225_v14  ;;  %v16258_v14 = vld [vmem:[%s23668_s0 + $0x2c] ss:$20 sps:$4 sm:$0xff]  }
 0x2c2   :  { %15594 = vmatprep.subr.bf16.mxu0 %v23577_v46 }
 0x389   :  { %v14567_v62 = vpop.f32.mrb[10].mxu1 }
 0x38a   :  { %v14568_v45 = vpop.f32.mrb[11].mxu1 }
 0x38b   :  { %v14569_v2 = vadd.f32 %v14568_v45, %v14567_v62 }
 0x38f   :  { %v731_v55 = vpop.f32.mrb[6].mxu0 }
 0x390   :  { %v732_v7 = vadd.f32 %v14569_v2, %v731_v55  ;;  %v15346_v9 = vpop.f32.mrb[7].mxu0  ;;  %v903_v2 = vrot.slane %v898_v59, %v18169_v4 }
 0x392   :  { %v735_v13 = vmul.f32 0.055555556, %v732_v7  ;;  %v907_v7 = vrot.slane %v898_v59, %v18172_v5 }
 0x394   :  { %13367 = vmatmul.mubr.msk.f32.vlgmr.msra.gmra.mrb[8].mxu0 %vm252_vm4, %v735_v13 }
 0x395   :  { %15596 = vmatpush3.bf16.msra.mxu0 %v18236_v31  ;;  %15355 = vmatprep.mubr.msk.f32.mxu0 %vm17861_vm0, %v23579_v0  ;;  %v16268_v31 = vld [vmem:[%s23668_s0 + $0xc8] ss:$20 sps:$4 sm:$0xff]  }
 0x396   :  { %15597 = vmatprep.subr.bf16.mxu0 %v23577_v46 }
 0x399   :  { %15599 = vmatpush3.bf16.msra.mxu0 %v18246_v37  ;;  %v16274_v37 = vld [vmem:[%s23668_s0 + $0x118] ss:$20 sps:$4 sm:$0xff]  }
 0x39a   :  { %1550 = vmatprep.subr.bf16.mxu0 %v16255_v6 }
 0x39c   :  { %15356 = vmatmul.mubr.msk.f32.vlgmr.msra.gmra.mrb[10].mxu0 %vm252_vm4, %v735_v13  ;;  %v923_v13 = vrot.slane %v918_v60, %v18169_v4 }
 0x39d   :  { %1551 = vmatpush1.bf16.msra.mxu0 %v16253_v8  ;;  %v927_v8 = vrot.slane %v918_v60, %v18172_v5 }
 0x39e   :  { %1552 = vmatprep.subr.bf16.mxu0 %v16258_v14 }
 0x3a1   :  { %1553 = vmatpush1.bf16.msra.mxu0 %v16256_v17 }
 0x3a2   :  { %1554 = vmatprep.subr.bf16.mxu0 %v16261_v18 }
 0x3a5   :  { %1555 = vmatpush1.bf16.msra.mxu0 %v16259_v19 }
 0x3a6   :  { %1556 = vmatprep.subr.bf16.mxu0 %v16264_v23 }
 0x3a9   :  { %1557 = vmatpush1.bf16.msra.mxu0 %v16262_v24 }
 0x3aa   :  { %1558 = vmatprep.subr.bf16.mxu0 %v16267_v25  ;;  %v911_v25 = vrot.slane %v898_v59, %v18163_v1  ;;  %v16330_v59 = vld [vmem:[%s23668_s0 + $0xd0] ss:$20 sps:$4 sm:$0xff]  }
 0x3ad   :  { %1559 = vmatpush1.bf16.msra.mxu0 %v16265_v28 }
 0x3ae   :  { %1560 = vmatprep.subr.bf16.mxu0 %v16270_v29 }
 0x3b1   :  { %1561 = vmatpush1.bf16.msra.mxu0 %v16268_v31 }
 0x3b2   :  { %1562 = vmatprep.subr.bf16.mxu0 %v16273_v32 }
 0x3b5   :  { %1563 = vmatpush1.bf16.msra.mxu0 %v16271_v34 }
 0x3b6   :  { %1564 = vmatprep.subr.bf16.mxu0 %v16276_v35  ;;  %v16312_v35 = vld [vmem:[%s23668_s0 + $0x2ac] ss:$20 sps:$4 sm:$0xff]  }
 0x3b9   :  { %1565 = vmatpush1.bf16.msra.mxu0 %v16274_v37 }
 0x3ba   :  { %1566 = vmatprep.subr.bf16.mxu0 %v16279_v11  ;;  %v16310_v11 = vld [vmem:[%s23668_s0 + $0x2a8] ss:$20 sps:$4 sm:$0xff]  }
 0x3bd   :  { %1567 = vmatpush1.bf16.msra.mxu0 %v16277_v12 }
 0x3be   :  { %1568 = vmatprep.subr.bf16.mxu0 %v16282_v15  ;;  %v16317_v15 = vld [vmem:[%s23668_s0 + $0xc] ss:$20 sps:$4 sm:$0xff]  }
 0x3c1   :  { %1569 = vmatpush1.bf16.msra.mxu0 %v16280_v20  ;;  %v16313_v20 = vld [vmem:[%s23668_s0 + $0x290] ss:$20 sps:$4 sm:$0xff]  }
 0x3c2   :  { %1570 = vmatprep.subr.bf16.mxu0 %v16285_v27 }
 0x3c5   :  { %1571 = vmatpush1.bf16.msra.mxu0 %v16283_v30  ;;  %v1846_v30 = vld [vmem:[%s23557_s11 + $0x80] sm:$0xff] }
 0x3c6   :  { %1572 = vmatprep.subr.bf16.mxu0 %v16288_v33  ;;  %v1847_v33 = vld [vmem:[%s23557_s11 + $0x88] sm:$0xff] }
 0x3c9   :  { %1573 = vmatpush1.bf16.msra.mxu0 %v16286_v36  ;;  %v16314_v36 = vld [vmem:[%s23668_s0 + $0x2b8] ss:$20 sps:$4 sm:$0xff]  }
 0x3ca   :  { %1574 = vmatprep.subr.bf16.mxu0 %v16291_v39  ;;  %v18469_v39 = vpack.c.bf16 %v1847_v33, %v1846_v30  ;;  %v1834_v30 = vld [vmem:[%s23557_s11 + $0x20] sm:$0xff]  ;;  %v1835_v33 = vld [vmem:[%s23557_s11 + $0x28] sm:$0xff] }
 0x3cd   :  { %1575 = vmatpush1.bf16.msra.mxu0 %v16289_v42  ;;  %v1830_v42 = vld [vmem:[%s23557_s11] sm:$0xff] }
 0x3ce   :  { %1576 = vmatprep.subr.bf16.mxu0 %v16294_v49  ;;  %v1831_v49 = vld [vmem:[%s23557_s11 + $0x8] sm:$0xff] }
 0x3d1   :  { %1577 = vmatpush1.bf16.msra.mxu0 %v16292_v52  ;;  %v16315_v52 = vld [vmem:[%s23668_s0 + $0x8] ss:$20 sps:$4 sm:$0xff]  }
 0x3d2   :  { %1578 = vmatprep.subr.bf16.mxu0 %v16297_v58  ;;  %v1848_v58 = vld [vmem:[%s23557_s11 + $0x90] sm:$0xff] }
 0x3d5   :  { %1579 = vmatpush1.bf16.msra.mxu0 %v16295_v61  ;;  %v1849_v61 = vld [vmem:[%s23557_s11 + $0x98] sm:$0xff] }
 0x3d6   :  { %1580 = vmatprep.subr.bf16.mxu0 %v16300_v16  ;;  %v16320_v16 = vld [vmem:[%s23668_s0 + $0x34] ss:$20 sps:$4 sm:$0xff]   ;;  %v18493_v40 = vpack.c.bf16 %v1849_v61, %v1848_v58  ;;  %v1853_v58 = vld [vmem:[%s23557_s11 + $0xb8] sm:$0xff] }
 0x3d9   :  { %1581 = vmatpush1.bf16.msra.mxu0 %v16298_v38  ;;  %v18489_v38 = vpack.c.bf16 %v1831_v49, %v1830_v42  ;;  %v18641_v42 = vpack.c.bf16 %v1835_v33, %v1834_v30  ;;  %v16373_v49 = vld [vmem:[%s23668_s0 + $0x218] ss:$20 sps:$4 sm:$0xff]  }
 0x3da   :  { %1591 = vmatprep.subr.bf16.mxu0 %v16306_v43  ;;  %v1833_v43 = vld [vmem:[%s23557_s11 + $0x18] sm:$0xff]  ;;  %v1883_v30 = vld [vmem:[%s23557_s11 + $0x1a8] sm:$0xff] }
 0x467   :  { %v805_v48 = vpop.f32.mrb[8].mxu0 }
 0x468   :  { %v806_v50 = vadd.f32 1e-05, %v805_v48  ;;  %v807_v51 = vpop.f32.mrb[9].mxu0  ;;  %v18510_v48 = vpack.c.bf16 %v1833_v43, %v1832_v41  ;;  %v1837_v41 = vld [vmem:[%s23557_s11 + $0x38] sm:$0xff] }
 0x469   :  { %v808_v53 = vadd.f32 1e-05, %v807_v51  ;;  %v16326_v51 = vld [vmem:[%s23668_s0 + $0x84] ss:$20 sps:$4 sm:$0xff]  }
 0x46a   :  { %17802 = vrsqrt.f32 %v806_v50  ;;  %v16321_v50 = vld [vmem:[%s23668_s0 + $0x58] ss:$20 sps:$4 sm:$0xff]  }
 0x46b   :  { %17804 = vrsqrt.f32 %v808_v53  ;;  %v16324_v53 = vld [vmem:[%s23668_s0 + $0x80] ss:$20 sps:$4 sm:$0xff]   ;;  %v16374_v43 = vld [vmem:[%s23668_s0 + $0xd8] ss:$20 sps:$4 sm:$0xff]  }
 0x46f   :  { %v876_v54 = vpop.f32.mrb[10].mxu0 }
 0x470   :  { %v877_v56 = vadd.f32 1e-05, %v876_v54  ;;  %v15357_v57 = vpop.f32.mrb[11].mxu0  ;;  %v16329_v54 = vld [vmem:[%s23668_s0 + $0xac] ss:$20 sps:$4 sm:$0xff]  }
 0x471   :  { %v16332_v57 = vld [vmem:[%s23668_s0 + $0xd4] ss:$20 sps:$4 sm:$0xff]  }
 0x472   :  { %17806 = vrsqrt.f32 %v877_v56  ;;  %v16327_v56 = vld [vmem:[%s23668_s0 + $0xa8] ss:$20 sps:$4 sm:$0xff]  }
 0x474   :  { %v17803_v10 = vpop.eup %17802 }
 0x475   :  { %v17805_v62 = vpop.eup %17804  ;;  %v886_v45 = vrot.slane %v17803_v10, %v18169_v4  ;;  %v16335_v10 = vld [vmem:[%s23668_s0 + $0xfc] ss:$20 sps:$4 sm:$0xff]  }
 0x476   :  { %v890_v55 = vrot.slane %v17805_v62, %v18169_v4  ;;  %v16338_v62 = vld [vmem:[%s23668_s0 + $0x124] ss:$20 sps:$4 sm:$0xff]  }
 0x477   :  { %v895_v9 = vmul.f32 %v886_v45, %v18272_v21  ;;  %v931_v21 = vrot.slane %v918_v60, %v18163_v1  ;;  %v16333_v60 = vld [vmem:[%s23668_s0 + $0xf8] ss:$20 sps:$4 sm:$0xff]   ;;  %v16336_v45 = vld [vmem:[%s23668_s0 + $0x120] ss:$20 sps:$4 sm:$0xff]  }
 0x478   :  { %v896_v6 = vmul.f32 %v890_v55, %v18275_v26  ;;  %v16304_v26 = vld [vmem:[%s23668_s0 + $0x280] ss:$20 sps:$4 sm:$0xff]   ;;  %v16339_v55 = vld [vmem:[%s23668_s0 + $0x148] ss:$20 sps:$4 sm:$0xff]  }
 0x479   :  { %v915_v14 = vmul.f32 %v903_v2, %v895_v9  ;;  %v16341_v2 = vld [vmem:[%s23668_s0 + $0x14c] ss:$20 sps:$4 sm:$0xff]   ;;  %v16342_v9 = vld [vmem:[%s23668_s0 + $0x170] ss:$20 sps:$4 sm:$0xff]  }
 0x47a   :  { %v916_v17 = vmul.f32 %v907_v7, %v896_v6  ;;  %v16344_v7 = vld [vmem:[%s23668_s0 + $0x174] ss:$20 sps:$4 sm:$0xff]   ;;  %v16345_v6 = vld [vmem:[%s23668_s0 + $0x198] ss:$20 sps:$4 sm:$0xff]  }
 0x47b   :  { %v935_v18 = vadd.f32 %v923_v13, %v915_v14  ;;  %v16347_v13 = vld [vmem:[%s23668_s0 + $0x19c] ss:$20 sps:$4 sm:$0xff]   ;;  %v16348_v14 = vld [vmem:[%s23668_s0 + $0x1c0] ss:$20 sps:$4 sm:$0xff]  }
 0x47c   :  { %v17807_v19 = vpop.eup %17806  ;;  %v936_v23 = vadd.f32 %v927_v8, %v916_v17  ;;  %v16350_v8 = vld [vmem:[%s23668_s0 + $0x1c4] ss:$20 sps:$4 sm:$0xff]   ;;  %v16353_v17 = vld [vmem:[%s23668_s0 + $0x1ec] ss:$20 sps:$4 sm:$0xff]  }
 0x47d   :  { %v894_v24 = vrot.slane %v17807_v19, %v18169_v4  ;;  %v938_v28 = vmax.f32 %v935_v18, 0.0  ;;  %v16351_v18 = vld [vmem:[%s23668_s0 + $0x1e8] ss:$20 sps:$4 sm:$0xff]  }
 0x47e   :  { %v939_v29 = vmax.f32 %v936_v23, 0.0  ;;  %v16356_v19 = vld [vmem:[%s23668_s0 + $0x214] ss:$20 sps:$4 sm:$0xff]   ;;  %v16354_v23 = vld [vmem:[%s23668_s0 + $0x210] ss:$20 sps:$4 sm:$0xff]  }
 0x47f   :  { %v897_v31 = vmul.f32 %v894_v24, %v18285_v22  ;;  %v18439_v34 = vpack.c.bf16 %v938_v28, %v938_v28  ;;  %v16359_v24 = vld [vmem:[%s23668_s0 + $0x23c] ss:$20 sps:$4 sm:$0xff]   ;;  %v16362_v28 = vld [vmem:[%s23668_s0 + $0x264] ss:$20 sps:$4 sm:$0xff]  }
 0x480   :  { %v18434_v32 = vpack.c.bf16 %v939_v29, %v939_v29  ;;  %v16360_v29 = vld [vmem:[%s23668_s0 + $0x260] ss:$20 sps:$4 sm:$0xff]  }
 0x481   :  { %v917_v37 = vmul.f32 %v911_v25, %v897_v31  ;;  %v16357_v25 = vld [vmem:[%s23668_s0 + $0x238] ss:$20 sps:$4 sm:$0xff]   ;;  %v16363_v31 = vld [vmem:[%s23668_s0 + $0x150] ss:$20 sps:$4 sm:$0xff]  }
 0x482   :  { %1582 = vmatprep.mubr.bf16.mxu0 %v18434_v32 }
 0x483   :  { %1583 = vmatmul.mubr.bf16.vlgmr.msra.gmra.mrb[12].mxu0 %v18439_v34  ;;  %v937_v22 = vadd.f32 %v931_v21, %v917_v37  ;;  %v16364_v21 = vld [vmem:[%s23668_s0 + $0x10] ss:$20 sps:$4 sm:$0xff]   ;;  %v16367_v37 = vld [vmem:[%s23668_s0 + $0x1a0] ss:$20 sps:$4 sm:$0xff]  }
 0x484   :  { %1592 = vmatpush1.bf16.msra.mxu0 %v16304_v26  ;;  %1623 = vmatprep.mubr.bf16.mxu0 %v23575_v3  ;;  %v16365_v26 = vld [vmem:[%s23668_s0 + $0x178] ss:$20 sps:$4 sm:$0xff]  }
 0x485   :  { %1593 = vmatprep.subr.bf16.mxu0 %v16312_v35  ;;  %v940_v12 = vmax.f32 %v937_v22, 0.0  ;;  %v16366_v35 = vld [vmem:[%s23668_s0 + $0x38] ss:$20 sps:$4 sm:$0xff]   ;;  %v16368_v22 = vld [vmem:[%s23668_s0 + $0x60] ss:$20 sps:$4 sm:$0xff]  }
 0x487   :  { %v943_v27 = vpack.c.bf16 %v940_v12, %v940_v12  ;;  %v16371_v12 = vld [vmem:[%s23668_s0 + $0x1f0] ss:$20 sps:$4 sm:$0xff]  }
 0x488   :  { %1594 = vmatpush1.bf16.msra.mxu0 %v16310_v11  ;;  %v16369_v11 = vld [vmem:[%s23668_s0 + $0x1c8] ss:$20 sps:$4 sm:$0xff]  }
 0x489   :  { %13460 = vmatmul.mubr.msk.bf16.vlgmr.msra.gmra.mrb[12].mxu1 %vm252_vm4, %v943_v27  ;;  %1632 = vmatprep.subr.bf16.mxu0 %v16317_v15  ;;  %v1850_v15 = vld [vmem:[%s23557_s11 + $0xa0] sm:$0xff] }
 0x48a   :  { %15359 = vmatpush3.bf16.msra.mxu1 %v16313_v20  ;;  %15362 = vmatprep.mubr.msk.bf16.mxu1 %vm17861_vm0, %v23579_v0  ;;  %v1851_v20 = vld [vmem:[%s23557_s11 + $0xa8] sm:$0xff] }
 0x48b   :  { %15360 = vmatprep.subr.bf16.mxu1 %v23579_v0 }
 0x48e   :  { %15361 = vmatpush3.bf16.msra.mxu1 %v16314_v36  ;;  %v16372_v36 = vld [vmem:[%s23668_s0 + $0xb0] ss:$20 sps:$4 sm:$0xff]  }
 0x48f   :  { %13459 = vmatmul.mubr.msk.bf16.vlgmr.msra.gmra.mrb[12].mxu0 %vm252_vm4, %v943_v27  ;;  %15601 = vmatprep.subr.bf16.mxu1 %v18469_v39 }
 0x490   :  { %1633 = vmatpush1.bf16.msra.mxu0 %v16315_v52  ;;  %1664 = vmatprep.mubr.bf16.mxu0 %v18434_v32  ;;  %v1852_v52 = vld [vmem:[%s23557_s11 + $0xb0] sm:$0xff] }
 0x491   :  { %15363 = vmatmul.mubr.msk.bf16.vlgmr.msra.gmra.mrb[16].mxu1 %vm252_vm4, %v943_v27  ;;  %1634 = vmatprep.subr.bf16.mxu0 %v16320_v16  ;;  %v18630_v27 = vpack.c.bf16 %v1851_v20, %v1850_v15  ;;  %v18654_v61 = vpack.c.bf16 %v1853_v58, %v1852_v52  ;;  %v1836_v16 = vld [vmem:[%s23557_s11 + $0x30] sm:$0xff]  ;;  %v1865_v15 = vld [vmem:[%s23557_s11 + $0x118] sm:$0xff]  ;;  %v1882_v20 = vld [vmem:[%s23557_s11 + $0x1a0] sm:$0xff] }
 0x492   :  { %15603 = vmatpush3.bf16.msra.mxu1 %v18489_v38  ;;  %v1867_v52 = vld [vmem:[%s23557_s11 + $0x128] sm:$0xff] }
 0x493   :  { %15605 = vmatprep.subr.bf16.mxu1 %v18493_v40 }
 0x494   :  { %1635 = vmatpush1.bf16.msra.mxu0 %v16318_v44  ;;  %v18665_v44 = vpack.c.bf16 %v1837_v41, %v1836_v16  ;;  %v1884_v16 = vld [vmem:[%s23557_s11 + $0x1b0] sm:$0xff]  ;;  %v1885_v41 = vld [vmem:[%s23557_s11 + $0x1b8] sm:$0xff] }
 0x495   :  { %1636 = vmatprep.subr.bf16.mxu0 %v16323_v47  ;;  %v16375_v47 = vld [vmem:[%s23668_s0 + $0x240] ss:$20 sps:$4 sm:$0xff]  }
 0x496   :  { %15607 = vmatpush3.bf16.msra.mxu1 %v18510_v48 }
 0x497   :  { %15609 = vmatprep.subr.bf16.mxu1 %v18630_v27 }
 0x498   :  { %1637 = vmatpush1.bf16.msra.mxu0 %v16321_v50  ;;  %v1854_v50 = vld [vmem:[%s23557_s11 + $0xc0] sm:$0xff] }
 0x499   :  { %1638 = vmatprep.subr.bf16.mxu0 %v16326_v51  ;;  %v1855_v51 = vld [vmem:[%s23557_s11 + $0xc8] sm:$0xff] }
 0x49a   :  { %15611 = vmatpush3.bf16.msra.mxu1 %v18641_v42 }
 0x49b   :  { %15613 = vmatprep.subr.bf16.mxu1 %v18654_v61 }
 0x49c   :  { %1639 = vmatpush1.bf16.msra.mxu0 %v16324_v53  ;;  %v18678_v53 = vpack.c.bf16 %v1855_v51, %v1854_v50  ;;  %v1869_v50 = vld [vmem:[%s23557_s11 + $0x138] sm:$0xff] }
 0x49d   :  { %1640 = vmatprep.subr.bf16.mxu0 %v16329_v54  ;;  %v1838_v54 = vld [vmem:[%s23557_s11 + $0x40] sm:$0xff] }
 0x49e   :  { %15615 = vmatpush3.bf16.msra.mxu1 %v18665_v44 }
 0x49f   :  { %15617 = vmatprep.subr.bf16.mxu1 %v18678_v53 }
 0x4a0   :  { %1641 = vmatpush1.bf16.msra.mxu0 %v16327_v56  ;;  %v1839_v56 = vld [vmem:[%s23557_s11 + $0x48] sm:$0xff] }
 0x4a1   :  { %1642 = vmatprep.subr.bf16.mxu0 %v16332_v57  ;;  %v16376_v57 = vld [vmem:[%s23668_s0 + $0x100] ss:$20 sps:$4 sm:$0xff]  }
 0x4a4   :  { %1643 = vmatpush1.bf16.msra.mxu0 %v16330_v59  ;;  %v18689_v59 = vpack.c.bf16 %v1839_v56, %v1838_v54  ;;  %v1886_v54 = vld [vmem:[%s23557_s11 + $0x1c0] sm:$0xff]  ;;  %v1887_v56 = vld [vmem:[%s23557_s11 + $0x1c8] sm:$0xff] }
 0x4a5   :  { %1644 = vmatprep.subr.bf16.mxu0 %v16335_v10  ;;  %v16377_v10 = vld [vmem:[%s23668_s0 + $0x268] ss:$20 sps:$4 sm:$0xff]  }
 0x4a6   :  { %15619 = vmatpush3.bf16.msra.mxu1 %v18689_v59 }
 0x4a8   :  { %1645 = vmatpush1.bf16.msra.mxu0 %v16333_v60  ;;  %v1856_v60 = vld [vmem:[%s23557_s11 + $0xd0] sm:$0xff] }
 0x4a9   :  { %1646 = vmatprep.subr.bf16.mxu0 %v16338_v62  ;;  %v1857_v62 = vld [vmem:[%s23557_s11 + $0xd8] sm:$0xff] }
 0x4ac   :  { %1647 = vmatpush1.bf16.msra.mxu0 %v16336_v45  ;;  %v18702_v45 = vpack.c.bf16 %v1857_v62, %v1856_v60  ;;  %v1871_v60 = vld [vmem:[%s23557_s11 + $0x148] sm:$0xff] }
 0x4ad   :  { %1648 = vmatprep.subr.bf16.mxu0 %v16341_v2  ;;  %v1840_v2 = vld [vmem:[%s23557_s11 + $0x50] sm:$0xff] }
 0x4ae   :  { %15621 = vmatprep.subr.bf16.mxu1 %v18702_v45 }
 0x4b0   :  { %1649 = vmatpush1.bf16.msra.mxu0 %v16339_v55  ;;  %v1841_v55 = vld [vmem:[%s23557_s11 + $0x58] sm:$0xff] }
 0x4b1   :  { %1650 = vmatprep.subr.bf16.mxu0 %v16344_v7  ;;  %v16378_v7 = vld [vmem:[%s23668_s0 + $0x128] ss:$20 sps:$4 sm:$0xff]  }
 0x4b4   :  { %1651 = vmatpush1.bf16.msra.mxu0 %v16342_v9  ;;  %v18713_v9 = vpack.c.bf16 %v1841_v55, %v1840_v2  ;;  %v1888_v2 = vld [vmem:[%s23557_s11 + $0x1d0] sm:$0xff]  ;;  %v1889_v55 = vld [vmem:[%s23557_s11 + $0x1d8] sm:$0xff] }
 0x4b5   :  { %1652 = vmatprep.subr.bf16.mxu0 %v16347_v13  ;;  %v1858_v13 = vld [vmem:[%s23557_s11 + $0xe0] sm:$0xff] }
 0x4b6   :  { %15623 = vmatpush3.bf16.msra.mxu1 %v18713_v9 }
 0x4b8   :  { %1653 = vmatpush1.bf16.msra.mxu0 %v16345_v6  ;;  %v1859_v6 = vld [vmem:[%s23557_s11 + $0xe8] sm:$0xff] }
 0x4b9   :  { %1654 = vmatprep.subr.bf16.mxu0 %v16350_v8  ;;  %v18723_v8 = vpack.c.bf16 %v1859_v6, %v1858_v13  ;;  %v1872_v13 = vld [vmem:[%s23557_s11 + $0x150] sm:$0xff]  ;;  %v1873_v6 = vld [vmem:[%s23557_s11 + $0x158] sm:$0xff] }
 0x4bb   :  { %15625 = vmatprep.subr.bf16.mxu1 %v18723_v8 }
 0x4bc   :  { %1655 = vmatpush1.bf16.msra.mxu0 %v16348_v14  ;;  %v1842_v14 = vld [vmem:[%s23557_s11 + $0x60] sm:$0xff] }
 0x4bd   :  { %1656 = vmatprep.subr.bf16.mxu0 %v16353_v17  ;;  %v1843_v17 = vld [vmem:[%s23557_s11 + $0x68] sm:$0xff] }
 0x4c0   :  { %1657 = vmatpush1.bf16.msra.mxu0 %v16351_v18  ;;  %v18731_v18 = vpack.c.bf16 %v1843_v17, %v1842_v14  ;;  %v18858_v14 = vpack.c.bf16 %v1873_v6, %v1872_v13  ;;  %v1890_v17 = vld [vmem:[%s23557_s11 + $0x1e0] sm:$0xff] }
 0x4c1   :  { %1658 = vmatprep.subr.bf16.mxu0 %v16356_v19  ;;  %v1860_v19 = vld [vmem:[%s23557_s11 + $0xf0] sm:$0xff] }
 0x4c2   :  { %15627 = vmatpush3.bf16.msra.mxu1 %v18731_v18 }
 0x4c4   :  { %1659 = vmatpush1.bf16.msra.mxu0 %v16354_v23  ;;  %v1861_v23 = vld [vmem:[%s23557_s11 + $0xf8] sm:$0xff] }
 0x4c5   :  { %1660 = vmatprep.subr.bf16.mxu0 %v16359_v24  ;;  %v1844_v24 = vld [vmem:[%s23557_s11 + $0x70] sm:$0xff] }
 0x4c8   :  { %1661 = vmatpush1.bf16.msra.mxu0 %v16357_v25  ;;  %v18745_v25 = vpack.c.bf16 %v1861_v23, %v1860_v19  ;;  %v1891_v19 = vld [vmem:[%s23557_s11 + $0x1e8] sm:$0xff] }
 0x4c9   :  { %1662 = vmatprep.subr.bf16.mxu0 %v16362_v28  ;;  %v1845_v28 = vld [vmem:[%s23557_s11 + $0x78] sm:$0xff]  ;;  %v18868_v23 = vpack.c.bf16 %v1891_v19, %v1890_v17 }
 0x4ca   :  { %15629 = vmatprep.subr.bf16.mxu1 %v18745_v25 }
 0x4cc   :  { %1663 = vmatpush1.bf16.msra.mxu0 %v16360_v29  ;;  %v18750_v29 = vpack.c.bf16 %v1845_v28, %v1844_v24  ;;  %v1874_v24 = vld [vmem:[%s23557_s11 + $0x160] sm:$0xff]  ;;  %v1875_v28 = vld [vmem:[%s23557_s11 + $0x168] sm:$0xff] }
 0x4cd   :  { %14580 = vmatprep.subr.bf16.mxu0 %v16363_v31  ;;  %v1878_v31 = vld [vmem:[%s23557_s11 + $0x180] sm:$0xff] }
 0x4ce   :  { %15631 = vmatpush3.bf16.msra.mxu1 %v18750_v29 }
 0x4cf   :  { %1665 = vmatmul.mubr.bf16.vlgmr.msra.gmra.mrb[16].mxu0 %v18439_v34 }
 0x4d0   :  { %14581 = vmatpush3.bf16.msra.mxu0 %v16364_v21  ;;  %1746 = vmatprep.mubr.bf16.mxu0 %v18434_v32  ;;  %v16370_v32 = vld [vmem:[%s23668_s0 + $0x88] ss:$20 sps:$4 sm:$0xff]   ;;  %v1862_v21 = vld [vmem:[%s23557_s11 + $0x100] sm:$0xff] }
 0x4d1   :  { %14582 = vmatprep.subr.bf16.mxu0 %v16365_v26 }
 0x4d4   :  { %14583 = vmatpush3.bf16.msra.mxu0 %v16366_v35  ;;  %v1863_v35 = vld [vmem:[%s23557_s11 + $0x108] sm:$0xff] }
 0x4d5   :  { %14584 = vmatprep.subr.bf16.mxu0 %v16367_v37  ;;  %v1880_v37 = vld [vmem:[%s23557_s11 + $0x190] sm:$0xff] }
 0x4d8   :  { %14585 = vmatpush3.bf16.msra.mxu0 %v16368_v22  ;;  %v1881_v22 = vld [vmem:[%s23557_s11 + $0x198] sm:$0xff] }
 0x4d9   :  { %14586 = vmatprep.subr.bf16.mxu0 %v16369_v11  ;;  %v18774_v11 = vpack.c.bf16 %v1863_v35, %v1862_v21  ;;  %v1893_v21 = vld [vmem:[%s23557_s11 + $0x1f8] sm:$0xff]  ;;  %v1876_v35 = vld [vmem:[%s23557_s11 + $0x170] sm:$0xff] }
 0x4dc   :  { %14587 = vmatpush3.bf16.msra.mxu0 %v16370_v32  ;;  %v18776_v32 = vpack.c.bf16 %v1881_v22, %v1880_v37  ;;  %v1877_v22 = vld [vmem:[%s23557_s11 + $0x178] sm:$0xff] }
 0x4dd   :  { %14588 = vmatprep.subr.bf16.mxu0 %v16371_v12  ;;  %v1864_v12 = vld [vmem:[%s23557_s11 + $0x110] sm:$0xff] }
 0x4de   :  { %v18792_v33 = vpack.c.bf16 %v1865_v15, %v1864_v12  ;;  %v18894_v12 = vpack.c.bf16 %v1877_v22, %v1876_v35 }
 0x4e0   :  { %14589 = vmatpush3.bf16.msra.mxu0 %v16372_v36  ;;  %v18795_v36 = vpack.c.bf16 %v1883_v30, %v1882_v20  ;;  %v18902_v20 = vld [vmem:[%s23558_s8] sm:$0x1f] }
 0x4e1   :  { %14590 = vmatprep.subr.bf16.mxu0 %v16373_v49  ;;  %v1866_v49 = vld [vmem:[%s23557_s11 + $0x120] sm:$0xff] }
 0x4e2   :  { %v18804_v58 = vpack.c.bf16 %v1867_v52, %v1866_v49 }
 0x4e4   :  { %14591 = vmatpush3.bf16.msra.mxu0 %v16374_v43  ;;  %v18814_v43 = vpack.c.bf16 %v1885_v41, %v1884_v16  ;;  %v1057_v16 = vrot.slane %v18902_v20, %v18169_v4  ;;  %v1061_v41 = vrot.slane %v18902_v20, %v18172_v5 }
 0x4e5   :  { %14592 = vmatprep.subr.bf16.mxu0 %v16375_v47  ;;  %v1868_v47 = vld [vmem:[%s23557_s11 + $0x130] sm:$0xff] }
 0x4e6   :  { %v18822_v51 = vpack.c.bf16 %v1869_v50, %v1868_v47 }
 0x4e8   :  { %14593 = vmatpush3.bf16.msra.mxu0 %v16376_v57  ;;  %v18832_v57 = vpack.c.bf16 %v1887_v56, %v1886_v54 }
 0x4e9   :  { %14594 = vmatprep.subr.bf16.mxu0 %v16377_v10  ;;  %v1870_v10 = vld [vmem:[%s23557_s11 + $0x140] sm:$0xff] }
 0x4ea   :  { %v18840_v62 = vpack.c.bf16 %v1871_v60, %v1870_v10 }
 0x4ec   :  { %14595 = vmatpush3.bf16.msra.mxu0 %v16378_v7  ;;  %v18850_v7 = vpack.c.bf16 %v1889_v55, %v1888_v2 }
 0x4ef   :  { %1747 = vmatmul.mubr.bf16.vlgmr.msra.gmra.mrb[20].mxu0 %v18439_v34  ;;  %v1879_v34 = vld [vmem:[%s23557_s11 + $0x188] sm:$0xff] }
 0x4f0   :  { %v18763_v26 = vpack.c.bf16 %v1879_v34, %v1878_v31  ;;  %v18876_v31 = vpack.c.bf16 %v1875_v28, %v1874_v24  ;;  %v1892_v34 = vld [vmem:[%s23557_s11 + $0x1f0] sm:$0xff] }
 0x4f1   :  { %v18889_v37 = vpack.c.bf16 %v1893_v21, %v1892_v34 }
 0x4f2   :  { %15633 = vmatprep.subr.bf16.mxu0 %v18763_v26 }
 0x4f3   :  { %15635 = vmatpush3.bf16.msra.mxu0 %v18774_v11 }
 0x4f4   :  { %15637 = vmatprep.subr.bf16.mxu0 %v18776_v32 }
 0x4f7   :  { %15639 = vmatpush3.bf16.msra.mxu0 %v18792_v33 }
 0x4f8   :  { %15641 = vmatprep.subr.bf16.mxu0 %v18795_v36 }
 0x4fb   :  { %15643 = vmatpush3.bf16.msra.mxu0 %v18804_v58 }
 0x4fc   :  { %15645 = vmatprep.subr.bf16.mxu0 %v18814_v43 }
 0x4ff   :  { %15647 = vmatpush3.bf16.msra.mxu0 %v18822_v51 }
 0x500   :  { %15649 = vmatprep.subr.bf16.mxu0 %v18832_v57 }
 0x503   :  { %15651 = vmatpush3.bf16.msra.mxu0 %v18840_v62 }
 0x504   :  { %15653 = vmatprep.subr.bf16.mxu0 %v18850_v7 }
 0x507   :  { %15655 = vmatpush3.bf16.msra.mxu0 %v18858_v14 }
 0x508   :  { %15657 = vmatprep.subr.bf16.mxu0 %v18868_v23 }
 0x50b   :  { %15659 = vmatpush3.bf16.msra.mxu0 %v18876_v31 }
 0x50c   :  { %15661 = vmatprep.subr.bf16.mxu0 %v18889_v37 }
 0x50f   :  { %15663 = vmatpush3.bf16.msra.mxu0 %v18894_v12 }
 0x510   :  { %15664 = vmatprep.subr.bf16.mxu0 %v23577_v46 }
 0x55c   :  { %v1707_v15 = vpop.f32.mrb[12].mxu1 }
 0x55d   :  { %v1709_v30 = vpop.f32.mrb[13].mxu1 }
 0x55e   :  { %v1711_v49 = vpop.f32.mrb[14].mxu1 }
 0x55f   :  { %v1712_v52 = vpop.f32.mrb[15].mxu1 }
 0x562   :  { %v1625_v47 = vpop.f32.mrb[12].mxu0 }
 0x563   :  { %v18908_v50 = vadd.f32 %v1625_v47, %v1057_v16  ;;  %v1627_v54 = vpop.f32.mrb[13].mxu0 }
 0x564   :  { %v18910_v56 = vadd.f32 %v1627_v54, %v1061_v41  ;;  %v18912_v10 = vpop.f32.mrb[16].mxu1  ;;  %v1629_v60 = vpop.f32.mrb[14].mxu0 }
 0x565   :  { %v1794_v2 = vsel %vm193_vm3, %v18908_v50, 0.0  ;;  %v15364_v55 = vpop.f32.mrb[17].mxu1  ;;  %v1630_v13 = vpop.f32.mrb[15].mxu0  ;;  %v18920_v60 = vsub.s32 3, %v18160_v63 }
 0x566   :  { %v1795_v6 = vrot.slane %v1794_v2, 4  ;;  %v1801_v17 = vsel %vm193_vm3, %v18910_v56, 0.0  ;;  %v1791_v19 = vpop.f32.mrb[18].mxu1  ;;  %v1065_v55 = vrot.slane %v18902_v20, %v18163_v1 }
 0x567   :  { %v1802_v24 = vrot.slane %v1801_v17, 4  ;;  %v15365_v28 = vpop.f32.mrb[19].mxu1  ;;  %23669 = vst [vmem:[#allocation5_spill] sm:$0xff] %v18920_v60 }
 0x568   :  { %v1796_v34 = vadd.f32 %v1795_v6, %v1794_v2  ;;  %v1069_v2 = vrot.slane %v18902_v20, %v18920_v60 }
 0x569   :  { %v1803_v21 = vadd.f32 %v1802_v24, %v1801_v17 }
 0x56a   :  { %v1797_v35 = vrot.slane %v1796_v34, 2 }
 0x56b   :  { %v1804_v22 = vrot.slane %v1803_v21, 2 }
 0x56c   :  { %v1798_v49 = vadd.f32 %v1797_v35, %v1796_v34 }
 0x56d   :  { %v1805_v52 = vadd.f32 %v1804_v22, %v1803_v21 }
 0x56e   :  { %v1799_v16 = vrot.slane %v1798_v49, 1 }
 0x56f   :  { %v1806_v41 = vrot.slane %v1805_v52, 1 }
 0x570   :  { %v1800_v54 = vadd.f32 %v1799_v16, %v1798_v49 }
 0x571   :  { %v1807_v47 = vadd.f32 %v1806_v41, %v1805_v52 }
 0x573   :  { %1970 = vmatprep.mubr.f32.mxu1 %v1807_v47 }
 0x574   :  { %1971 = vmatmul.mubr.f32.vlgmr.msra.gmra.mrb[20].mxu1 %v1800_v54 }
 0x575   :  { %2194 = vmatprep.mubr.f32.mxu1 %v23579_v0 }
 0x5a2   :  { %v1666_v13 = vpop.f32.mrb[16].mxu0 }
 0x5a3   :  { %v1667_v6 = vadd.f32 %v1666_v13, %v1065_v55  ;;  %v1668_v17 = vpop.f32.mrb[17].mxu0 }
 0x5a4   :  { %v1669_v19 = vadd.f32 %v1668_v17, %v1069_v2  ;;  %v1670_v24 = vpop.f32.mrb[18].mxu0 }
 0x5a5   :  { %v18926_v28 = vadd.f32 %v1707_v15, %v1667_v6  ;;  %v1671_v34 = vpop.f32.mrb[19].mxu0  ;;  %v1894_v15 = vld [vmem:[%s23557_s11 + $0x200] sm:$0xff] }
 0x5a6   :  { %v18928_v21 = vadd.f32 %v1709_v30, %v1669_v19  ;;  %v1895_v30 = vld [vmem:[%s23557_s11 + $0x208] sm:$0xff]  ;;  %v1896_v34 = vld [vmem:[%s23557_s11 + $0x210] sm:$0xff] }
 0x5a7   :  { %v1808_v35 = vsel %vm193_vm3, %v18926_v28, 0.0  ;;  %v18940_v19 = vpack.c.bf16 %v1895_v30, %v1894_v15 }
 0x5a8   :  { %v1809_v22 = vrot.slane %v1808_v35, 4  ;;  %v1815_v49 = vsel %vm193_vm3, %v18928_v21, 0.0 }
 0x5a9   :  { %v1816_v52 = vrot.slane %v1815_v49, 4 }
 0x5aa   :  { %v1810_v16 = vadd.f32 %v1809_v22, %v1808_v35  ;;  %v1897_v35 = vld [vmem:[%s23557_s11 + $0x218] sm:$0xff] }
 0x5ab   :  { %v1817_v41 = vadd.f32 %v1816_v52, %v1815_v49  ;;  %v18949_v22 = vpack.c.bf16 %v1897_v35, %v1896_v34  ;;  %v1898_v49 = vld [vmem:[%s23557_s11 + $0x220] sm:$0xff]  ;;  %v1899_v52 = vld [vmem:[%s23557_s11 + $0x228] sm:$0xff] }
 0x5ac   :  { %v1811_v47 = vrot.slane %v1810_v16, 2 }
 0x5ad   :  { %v1818_v54 = vrot.slane %v1817_v41, 2 }
 0x5ae   :  { %v1812_v55 = vadd.f32 %v1811_v47, %v1810_v16  ;;  %v18961_v16 = vpack.c.bf16 %v1899_v52, %v1898_v49  ;;  %v1901_v47 = vld [vmem:[%s23557_s11 + $0x238] sm:$0xff] }
 0x5af   :  { %v1819_v2 = vadd.f32 %v1818_v54, %v1817_v41  ;;  %v1900_v41 = vld [vmem:[%s23557_s11 + $0x230] sm:$0xff]  ;;  %v18971_v54 = vsub.s32 4, %v18160_v63 }
 0x5b0   :  { %v1813_v13 = vrot.slane %v1812_v55, 1 }
 0x5b1   :  { %v1820_v6 = vrot.slane %v1819_v2, 1  ;;  %23670 = vst [vmem:[#allocation6_spill] sm:$0xff] %v18971_v54 }
 0x5b2   :  { %v1814_v24 = vadd.f32 %v1813_v13, %v1812_v55  ;;  %v18974_v55 = vpack.c.bf16 %v1901_v47, %v1900_v41  ;;  %v1073_v13 = vrot.slane %v18902_v20, %v18971_v54 }
 0x5b3   :  { %v1821_v17 = vadd.f32 %v1820_v6, %v1819_v2 }
 0x5b5   :  { %2040 = vmatprep.mubr.f32.mxu0 %v1821_v17 }
 0x5b6   :  { %2041 = vmatmul.mubr.f32.vlgmr.msra.gmra.mrb[24].mxu0 %v1814_v24 }
 0x5b7   :  { %15666 = vmatpush3.bf16.msra.mxu0 %v18940_v19  ;;  %15382 = vmatprep.mubr.msk.f32.mxu0 %vm17861_vm0, %v23579_v0 }
 0x5b8   :  { %15667 = vmatprep.subr.bf16.mxu0 %v23577_v46 }
 0x5bb   :  { %15669 = vmatpush3.bf16.msra.mxu0 %v18949_v22 }
 0x5bc   :  { %15670 = vmatprep.subr.bf16.mxu0 %v23577_v46 }
 0x5bf   :  { %15672 = vmatpush3.bf16.msra.mxu0 %v18961_v16 }
 0x5c0   :  { %15673 = vmatprep.subr.bf16.mxu0 %v23577_v46 }
 0x5c2   :  { %v14596_v2 = vpop.f32.mrb[20].mxu0 }
 0x5c3   :  { %v14597_v15 = vpop.f32.mrb[21].mxu0  ;;  %15675 = vmatpush3.bf16.msra.mxu0 %v18974_v55 }
 0x5c4   :  { %v14598_v30 = vadd.f32 %v14597_v15, %v14596_v2  ;;  %v14599_v6 = vpop.f32.mrb[22].mxu0  ;;  %15684 = vmatprep.subr.bf16.mxu0 %v23577_v46  ;;  %v2123_v2 = vld [vmem:[%s23559_s12 + $0x30] sm:$0xff]  ;;  %v2117_v15 = vld [vmem:[%s23559_s12] sm:$0xff] }
 0x5c5   :  { %v14600_v17 = vpop.f32.mrb[23].mxu0 }
 0x5c6   :  { %v1749_v24 = vadd.f32 %v14598_v30, %v1073_v13  ;;  %v2121_v30 = vld [vmem:[%s23559_s12 + $0x20] sm:$0xff]  ;;  %v2126_v17 = vld [vmem:[%s23559_s12 + $0x48] sm:$0xff] }
 0x5c8   :  { %v18982_v34 = vadd.f32 %v18912_v10, %v1749_v24  ;;  %v2118_v10 = vld [vmem:[%s23559_s12 + $0x8] sm:$0xff]  ;;  %v19012_v24 = vpack.c.bf16 %v2126_v17, %v2121_v30  ;;  %v2119_v30 = vld [vmem:[%s23559_s12 + $0x10] sm:$0xff]  ;;  %v2124_v17 = vld [vmem:[%s23559_s12 + $0x38] sm:$0xff] }
 0x5c9   :  { %v18995_v13 = vpack.c.bf16 %v2123_v2, %v2118_v10  ;;  %v19032_v46 = vpack.c.bf16 %v2124_v17, %v2119_v30 }
 0x5ca   :  { %v1823_v35 = vsel %vm1822_vm5, %v18982_v34, 0.0 }
 0x5cb   :  { %v1824_v49 = vrot.slane %v1823_v35, 4  ;;  %15677 = vmatprep.subr.bf16.mxu1 %v18995_v13 }
 0x5cd   :  { %v1825_v52 = vadd.f32 %v1824_v49, %v1823_v35  ;;  %v2120_v35 = vld [vmem:[%s23559_s12 + $0x18] sm:$0xff]  ;;  %v2125_v49 = vld [vmem:[%s23559_s12 + $0x40] sm:$0xff] }
 0x5cf   :  { %v1826_v41 = vrot.slane %v1825_v52, 2 }
 0x5d1   :  { %v1827_v20 = vadd.f32 %v1826_v41, %v1825_v52  ;;  %v19022_v52 = vpack.c.bf16 %v2125_v49, %v2120_v35 }
 0x5d3   :  { %v1828_v47 = vrot.slane %v1827_v20, 1 }
 0x5d5   :  { %v1829_v3 = vadd.f32 %v1828_v47, %v1827_v20 }
 0x5d7   :  { %15383 = vmatmul.mubr.msk.f32.vlgmr.msra.gmra.mrb[26].mxu0 %vm1902_vm6, %v1829_v3  ;;  %v2122_v3 = vld [vmem:[%s23559_s12 + $0x28] sm:$0xff] }
 0x5d8   :  { %15389 = vmatprep.mubr.msk.f32.mxu0 %vm17861_vm0, %v23579_v0  ;;  %v19006_v6 = vpack.c.bf16 %v2122_v3, %v2117_v15  ;;  %15686 = vmatpush3.bf16.msra.mxu0 %v19012_v24 }
 0x5d9   :  { %15720 = vmatprep.subr.bf16.mxu0 %v18763_v26 }
 0x5da   :  { %15679 = vmatpush1.bf16.msra.mxu1 %v19006_v6 }
 0x5db   :  { %15681 = vmatprep.subr.bf16.mxu1 %v19022_v52 }
 0x647   :  { %v14637_v41 = vpop.f32.mrb[20].mxu1 }
 0x648   :  { %v14638_v20 = vpop.f32.mrb[21].mxu1 }
 0x649   :  { %v14639_v47 = vadd.f32 %v14638_v20, %v14637_v41  ;;  %v23671_v41 = vmov 0.0  }
 0x689   :  { %v14672_v10 = vpop.f32.mrb[24].mxu0 }
 0x68a   :  { %v14673_v2 = vpop.f32.mrb[25].mxu0 }
 0x68b   :  { %v14674_v15 = vadd.f32 %v14673_v2, %v14672_v10 }
 0x68d   :  { %v2043_v3 = vadd.f32 %v14674_v15, %v14639_v47 }
 0x6aa   :  { %v2112_v35 = vpop.f32.mrb[26].mxu0 }
 0x6ab   :  { %v2113_v49 = vadd.f32 %v2112_v35, %v2043_v3  ;;  %v15384_v26 = vpop.f32.mrb[27].mxu0 }
 0x6ad   :  { %v2116_v0 = vmul.f32 0.013888889, %v2113_v49 }
 0x6af   :  { %13463 = vmatmul.mubr.msk.f32.vlgmr.msra.gmra.mrb[22].mxu1 %vm108_vm1, %v2116_v0  ;;  %15390 = vmatmul.mubr.msk.f32.vlgmr.msra.gmra.mrb[28].mxu0 %vm108_vm1, %v2116_v0 }
 0x6b0   :  { %15683 = vmatpush1.bf16.msra.mxu1 %v19032_v46  ;;  %2265 = vmatprep.mubr.f32.mxu1 %v23671_v41 }
 0x6b1   :  { %15688 = vmatprep.subr.bf16.mxu1 %v18469_v39  ;;  %15722 = vmatpush3.bf16.msra.mxu0 %v18774_v11 }
 0x6b2   :  { %15724 = vmatprep.subr.bf16.mxu0 %v18776_v32 }
 0x6b3   :  { %13464 = vmatmul.mubr.msk.f32.vlgmr.msra.gmra.mrb[24].mxu1 %vm108_vm1, %v2116_v0  ;;  %v23672_v0 = vmov 0.0|0.0  }
 0x6b4   :  { %15690 = vmatpush3.bf16.msra.mxu1 %v18489_v38 }
 0x6b5   :  { %15692 = vmatprep.subr.bf16.mxu1 %v18493_v40  ;;  %15726 = vmatpush3.bf16.msra.mxu0 %v18792_v33 }
 0x6b6   :  { %15728 = vmatprep.subr.bf16.mxu0 %v18795_v36 }
 0x6b8   :  { %15694 = vmatpush3.bf16.msra.mxu1 %v18510_v48 }
 0x6b9   :  { %15696 = vmatprep.subr.bf16.mxu1 %v18630_v27  ;;  %15730 = vmatpush3.bf16.msra.mxu0 %v18804_v58 }
 0x6ba   :  { %15732 = vmatprep.subr.bf16.mxu0 %v18814_v43 }
 0x6bc   :  { %15698 = vmatpush3.bf16.msra.mxu1 %v18641_v42 }
 0x6bd   :  { %15700 = vmatprep.subr.bf16.mxu1 %v18654_v61  ;;  %15734 = vmatpush3.bf16.msra.mxu0 %v18822_v51 }
 0x6be   :  { %15736 = vmatprep.subr.bf16.mxu0 %v18832_v57 }
 0x6c0   :  { %15702 = vmatpush3.bf16.msra.mxu1 %v18665_v44 }
 0x6c1   :  { %15704 = vmatprep.subr.bf16.mxu1 %v18678_v53  ;;  %15738 = vmatpush3.bf16.msra.mxu0 %v18840_v62 }
 0x6c2   :  { %15740 = vmatprep.subr.bf16.mxu0 %v18850_v7 }
 0x6c4   :  { %15706 = vmatpush3.bf16.msra.mxu1 %v18689_v59 }
 0x6c5   :  { %15708 = vmatprep.subr.bf16.mxu1 %v18702_v45  ;;  %15742 = vmatpush3.bf16.msra.mxu0 %v18858_v14 }
 0x6c6   :  { %15744 = vmatprep.subr.bf16.mxu0 %v18868_v23 }
 0x6c8   :  { %15710 = vmatpush3.bf16.msra.mxu1 %v18713_v9 }
 0x6c9   :  { %15712 = vmatprep.subr.bf16.mxu1 %v18723_v8  ;;  %15746 = vmatpush3.bf16.msra.mxu0 %v18876_v31 }
 0x6ca   :  { %15748 = vmatprep.subr.bf16.mxu0 %v18889_v37 }
 0x6cc   :  { %15714 = vmatpush3.bf16.msra.mxu1 %v18731_v18 }
 0x6cd   :  { %15716 = vmatprep.subr.bf16.mxu1 %v18745_v25  ;;  %15750 = vmatpush3.bf16.msra.mxu0 %v18894_v12 }
 0x6ce   :  { %15764 = vmatprep.subr.bf16.mxu0 %v18995_v13 }
 0x6d0   :  { %15718 = vmatpush3.bf16.msra.mxu1 %v18750_v29 }
 0x6d1   :  { %15751 = vmatprep.subr.bf16.mxu1 %v23672_v0 }
 0x782   :  { %v2196_v39 = vpop.f32.mrb[22].mxu1  ;;  %v2338_v38 = vpop.f32.mrb[28].mxu0 }
 0x783   :  { %v2345_v40 = vrot.slane %v2196_v39, %v18169_v4  ;;  %v2361_v48 = vrot.slane %v2338_v38, %v18169_v4  ;;  %v2198_v27 = vpop.f32.mrb[23].mxu1  ;;  %v15391_v42 = vpop.f32.mrb[29].mxu0 }
 0x784   :  { %v2349_v61 = vrot.slane %v2198_v27, %v18169_v4 }
 0x785   :  { %v19076_v44 = vsub.f32 %v18908_v50, %v2345_v40  ;;  %v19084_v9 = vsub.f32 %v18982_v34, %v2361_v48 }
 0x786   :  { %v19079_v53 = vsub.f32 %v18910_v56, %v2349_v61  ;;  %v2267_v59 = vpop.f32.mrb[24].mxu1 }
 0x787   :  { %v2367_v45 = vmul.f32 %v19076_v44, %v19076_v44  ;;  %v2353_v8 = vrot.slane %v2267_v59, %v18169_v4  ;;  %v2269_v18 = vpop.f32.mrb[25].mxu1  ;;  %v2371_v43 = vmul.f32 %v19084_v9, %v19084_v9  ;;  %v16394_v59 = vld [vmem:[%s23560_s13 + $0xb8] ss:$44 sps:$4 sm:$0xff]  }
 0x788   :  { %v2368_v25 = vmul.f32 %v19079_v53, %v19079_v53  ;;  %v2357_v29 = vrot.slane %v2269_v18, %v18169_v4  ;;  %v16408_v18 = vld [vmem:[%s23560_s13 + $0x16c] ss:$44 sps:$4 sm:$0xff]  }
 0x789   :  { %v2372_v11 = vsel %vm193_vm3, %v2367_v45, 0.0  ;;  %v19092_v32 = vsub.f32 %v18926_v28, %v2353_v8  ;;  %v2400_v50 = vsel %vm1822_vm5, %v2371_v43, 0.0  ;;  %v16402_v45 = vld [vmem:[%s23560_s13 + $0x114] ss:$44 sps:$4 sm:$0xff]   ;;  %v16400_v8 = vld [vmem:[%s23560_s13 + $0x110] ss:$44 sps:$4 sm:$0xff]  }
 0x78a   :  { %v2373_v33 = vrot.slane %v2372_v11, 4  ;;  %v2379_v36 = vsel %vm193_vm3, %v2368_v25, 0.0  ;;  %v19096_v58 = vsub.f32 %v18928_v21, %v2357_v29  ;;  %v2401_v47 = vrot.slane %v2400_v50, 4  ;;  %v16406_v25 = vld [vmem:[%s23560_s13 + $0x168] ss:$44 sps:$4 sm:$0xff]  }
 0x78b   :  { %v2380_v51 = vrot.slane %v2379_v36, 4  ;;  %v2369_v57 = vmul.f32 %v19092_v32, %v19092_v32  ;;  %v16414_v29 = vld [vmem:[%s23560_s13 + $0x1c4] ss:$44 sps:$4 sm:$0xff]   ;;  %v16426_v43 = vld [vmem:[%s23560_s13 + $0x274] ss:$44 sps:$4 sm:$0xff]  }
 0x78c   :  { %v2374_v62 = vadd.f32 %v2373_v33, %v2372_v11  ;;  %v2370_v7 = vmul.f32 %v19096_v58, %v19096_v58  ;;  %v2402_v49 = vadd.f32 %v2401_v47, %v2400_v50  ;;  %v16412_v11 = vld [vmem:[%s23560_s13 + $0x1c0] ss:$44 sps:$4 sm:$0xff]   ;;  %v16420_v33 = vld [vmem:[%s23560_s13 + $0x21c] ss:$44 sps:$4 sm:$0xff]   ;;  %v16381_v47 = vld [vmem:[%s23560_s13 + $0x4] ss:$44 sps:$4 sm:$0xff]  }
 0x78d   :  { %v2381_v14 = vadd.f32 %v2380_v51, %v2379_v36  ;;  %v2386_v23 = vsel %vm193_vm3, %v2369_v57, 0.0  ;;  %v16418_v36 = vld [vmem:[%s23560_s13 + $0x218] ss:$44 sps:$4 sm:$0xff]   ;;  %v16424_v51 = vld [vmem:[%s23560_s13 + $0x270] ss:$44 sps:$4 sm:$0xff]  }
 0x78e   :  { %v2375_v31 = vrot.slane %v2374_v62, 2  ;;  %v2387_v37 = vrot.slane %v2386_v23, 4  ;;  %v2393_v12 = vsel %vm193_vm3, %v2370_v7, 0.0  ;;  %v2403_v48 = vrot.slane %v2402_v49, 2  ;;  %v16432_v57 = vld [vmem:[%s23560_s13 + $0x2cc] ss:$44 sps:$4 sm:$0xff]  }
 0x78f   :  { %v2394_v56 = vrot.slane %v2393_v12, 4  ;;  %v2382_v28 = vrot.slane %v2381_v14, 2  ;;  %v16438_v7 = vld [vmem:[%s23560_s13 + $0x324] ss:$44 sps:$4 sm:$0xff]  }
 0x790   :  { %v2388_v21 = vadd.f32 %v2387_v37, %v2386_v23  ;;  %v2376_v34 = vadd.f32 %v2375_v31, %v2374_v62  ;;  %v2404_v42 = vadd.f32 %v2403_v48, %v2402_v49  ;;  %v16430_v62 = vld [vmem:[%s23560_s13 + $0x2c8] ss:$44 sps:$4 sm:$0xff]  }
 0x791   :  { %v2395_v13 = vadd.f32 %v2394_v56, %v2393_v12  ;;  %v2383_v20 = vadd.f32 %v2382_v28, %v2381_v14  ;;  %v16436_v14 = vld [vmem:[%s23560_s13 + $0x320] ss:$44 sps:$4 sm:$0xff]   ;;  %v16411_v49 = vld [vmem:[%s23560_s13 + $0x1bc] ss:$44 sps:$4 sm:$0xff]  }
 0x792   :  { %v2389_v10 = vrot.slane %v2388_v21, 2  ;;  %v2377_v2 = vrot.slane %v2376_v34, 1  ;;  %v16421_v48 = vld [vmem:[%s23560_s13 + $0x268] ss:$44 sps:$4 sm:$0xff]  }
 0x793   :  { %v2384_v15 = vrot.slane %v2383_v20, 1  ;;  %v2396_v3 = vrot.slane %v2395_v13, 2 }
 0x794   :  { %v2390_v30 = vadd.f32 %v2389_v10, %v2388_v21  ;;  %v2378_v26 = vadd.f32 %v2377_v2, %v2376_v34  ;;  %v16379_v10 = vld [vmem:[%s23560_s13] ss:$44 sps:$4 sm:$0xff]   ;;  %v16387_v2 = vld [vmem:[%s23560_s13 + $0x5c] ss:$44 sps:$4 sm:$0xff]  }
 0x795   :  { %v2385_v17 = vadd.f32 %v2384_v15, %v2383_v20  ;;  %v2397_v35 = vadd.f32 %v2396_v3, %v2395_v13  ;;  %v16393_v15 = vld [vmem:[%s23560_s13 + $0xb4] ss:$44 sps:$4 sm:$0xff]   ;;  %v16399_v3 = vld [vmem:[%s23560_s13 + $0x10c] ss:$44 sps:$4 sm:$0xff]  }
 0x796   :  { %v2391_v39 = vrot.slane %v2390_v30, 1 }
 0x797   :  { %2474 = vmatprep.mubr.f32.mxu1 %v2385_v17  ;;  %v2398_v38 = vrot.slane %v2397_v35, 1  ;;  %v16405_v17 = vld [vmem:[%s23560_s13 + $0x164] ss:$44 sps:$4 sm:$0xff]  }
 0x798   :  { %2475 = vmatmul.mubr.f32.vlgmr.msra.gmra.mrb[26].mxu1 %v2378_v26  ;;  %v2392_v27 = vadd.f32 %v2391_v39, %v2390_v30  ;;  %v16397_v30 = vld [vmem:[%s23560_s13 + $0x108] ss:$44 sps:$4 sm:$0xff]   ;;  %v16409_v26 = vld [vmem:[%s23560_s13 + $0x1b8] ss:$44 sps:$4 sm:$0xff]  }
 0x799   :  { %15753 = vmatpush3.bf16.msra.mxu1 %v18940_v19  ;;  %v2399_v40 = vadd.f32 %v2398_v38, %v2397_v35  ;;  %15408 = vmatprep.mubr.msk.f32.mxu1 %vm17861_vm0, %v23671_v41  ;;  %v2405_v19 = vrot.slane %v2404_v42, 1  ;;  %v16403_v35 = vld [vmem:[%s23560_s13 + $0x160] ss:$44 sps:$4 sm:$0xff]   ;;  %v16415_v38 = vld [vmem:[%s23560_s13 + $0x210] ss:$44 sps:$4 sm:$0xff]  }
 0x79a   :  { %15754 = vmatprep.subr.bf16.mxu1 %v23672_v0  ;;  %v16417_v39 = vld [vmem:[%s23560_s13 + $0x214] ss:$44 sps:$4 sm:$0xff]  }
 0x79b   :  { %2544 = vmatprep.mubr.f32.mxu0 %v2399_v40  ;;  %v2406_v61 = vadd.f32 %v2405_v19, %v2404_v42  ;;  %v16423_v40 = vld [vmem:[%s23560_s13 + $0x26c] ss:$44 sps:$4 sm:$0xff]   ;;  %v16435_v19 = vld [vmem:[%s23560_s13 + $0x31c] ss:$44 sps:$4 sm:$0xff]  }
 0x79c   :  { %2545 = vmatmul.mubr.f32.vlgmr.msra.gmra.mrb[30].mxu0 %v2392_v27  ;;  %v16429_v27 = vld [vmem:[%s23560_s13 + $0x2c4] ss:$44 sps:$4 sm:$0xff]   ;;  %v16427_v42 = vld [vmem:[%s23560_s13 + $0x2c0] ss:$44 sps:$4 sm:$0xff]  }
 0x79d   :  { %15756 = vmatpush3.bf16.msra.mxu1 %v18949_v22  ;;  %15766 = vmatpush1.bf16.msra.mxu0 %v19006_v6  ;;  %v16382_v22 = vld [vmem:[%s23560_s13 + $0x8] ss:$44 sps:$4 sm:$0xff]   ;;  %v16384_v6 = vld [vmem:[%s23560_s13 + $0xc] ss:$44 sps:$4 sm:$0xff]  }
 0x79e   :  { %15757 = vmatprep.subr.bf16.mxu1 %v23672_v0  ;;  %2688 = vmatprep.mubr.f32.mxu0 %v23671_v41 }
 0x79f   :  { %15768 = vmatprep.subr.bf16.mxu0 %v19022_v52  ;;  %v16396_v52 = vld [vmem:[%s23560_s13 + $0xbc] ss:$44 sps:$4 sm:$0xff]  }
 0x7a1   :  { %15759 = vmatpush3.bf16.msra.mxu1 %v18961_v16  ;;  %v16388_v16 = vld [vmem:[%s23560_s13 + $0x60] ss:$44 sps:$4 sm:$0xff]  }
 0x7a2   :  { %15760 = vmatprep.subr.bf16.mxu1 %v23672_v0 }
 0x7a5   :  { %15762 = vmatpush3.bf16.msra.mxu1 %v18974_v55  ;;  %v16390_v55 = vld [vmem:[%s23560_s13 + $0x64] ss:$44 sps:$4 sm:$0xff]  }
 0x7a6   :  { %5573 = vmatprep.subr.bf16.mxu1 %v16384_v6  ;;  %v16444_v6 = vld [vmem:[%s23560_s13 + $0x37c] ss:$44 sps:$4 sm:$0xff]  }
 0x7a8   :  { %15409 = vmatmul.mubr.msk.f32.vlgmr.msra.gmra.mrb[28].mxu1 %vm1902_vm6, %v2406_v61  ;;  %v16433_v61 = vld [vmem:[%s23560_s13 + $0x318] ss:$44 sps:$4 sm:$0xff]  }
 0x7a9   :  { %5574 = vmatpush1.bf16.msra.mxu1 %v16382_v22  ;;  %v16441_v22 = vld [vmem:[%s23560_s13 + $0x374] ss:$44 sps:$4 sm:$0xff]  }
 0x7aa   :  { %5575 = vmatprep.subr.bf16.mxu1 %v16390_v55  ;;  %v16442_v55 = vld [vmem:[%s23560_s13 + $0x378] ss:$44 sps:$4 sm:$0xff]  }
 0x7ad   :  { %5576 = vmatpush1.bf16.msra.mxu1 %v16388_v16  ;;  %v16439_v16 = vld [vmem:[%s23560_s13 + $0x370] ss:$44 sps:$4 sm:$0xff]  }
 0x7ae   :  { %5577 = vmatprep.subr.bf16.mxu1 %v16396_v52  ;;  %v16447_v52 = vld [vmem:[%s23560_s13 + $0x3cc] ss:$44 sps:$4 sm:$0xff]  }
 0x7b1   :  { %5578 = vmatpush1.bf16.msra.mxu1 %v16394_v59  ;;  %v16450_v59 = vld [vmem:[%s23560_s13 + $0x3d4] ss:$44 sps:$4 sm:$0xff]  }
 0x7b2   :  { %5579 = vmatprep.subr.bf16.mxu1 %v16402_v45  ;;  %v16445_v45 = vld [vmem:[%s23560_s13 + $0x3c8] ss:$44 sps:$4 sm:$0xff]  }
 0x7b5   :  { %5580 = vmatpush1.bf16.msra.mxu1 %v16400_v8  ;;  %v16448_v8 = vld [vmem:[%s23560_s13 + $0x3d0] ss:$44 sps:$4 sm:$0xff]  }
 0x7b6   :  { %5581 = vmatprep.subr.bf16.mxu1 %v16408_v18  ;;  %v16453_v18 = vld [vmem:[%s23560_s13 + $0x424] ss:$44 sps:$4 sm:$0xff]  }
 0x7b9   :  { %5582 = vmatpush1.bf16.msra.mxu1 %v16406_v25  ;;  %v16456_v25 = vld [vmem:[%s23560_s13 + $0x42c] ss:$44 sps:$4 sm:$0xff]  }
 0x7ba   :  { %5583 = vmatprep.subr.bf16.mxu1 %v16414_v29  ;;  %v16451_v29 = vld [vmem:[%s23560_s13 + $0x420] ss:$44 sps:$4 sm:$0xff]  }
 0x7bd   :  { %5584 = vmatpush1.bf16.msra.mxu1 %v16412_v11  ;;  %v16454_v11 = vld [vmem:[%s23560_s13 + $0x428] ss:$44 sps:$4 sm:$0xff]  }
 0x7be   :  { %5585 = vmatprep.subr.bf16.mxu1 %v16420_v33  ;;  %v16459_v33 = vld [vmem:[%s23560_s13 + $0x47c] ss:$44 sps:$4 sm:$0xff]  }
 0x7c1   :  { %5586 = vmatpush1.bf16.msra.mxu1 %v16418_v36  ;;  %v16462_v36 = vld [vmem:[%s23560_s13 + $0x484] ss:$44 sps:$4 sm:$0xff]  }
 0x7c2   :  { %5587 = vmatprep.subr.bf16.mxu1 %v16426_v43  ;;  %v16457_v43 = vld [vmem:[%s23560_s13 + $0x478] ss:$44 sps:$4 sm:$0xff]  }
 0x7c5   :  { %5588 = vmatpush1.bf16.msra.mxu1 %v16424_v51  ;;  %v16460_v51 = vld [vmem:[%s23560_s13 + $0x480] ss:$44 sps:$4 sm:$0xff]  }
 0x7c6   :  { %5589 = vmatprep.subr.bf16.mxu1 %v16432_v57  ;;  %v16465_v57 = vld [vmem:[%s23560_s13 + $0x4d4] ss:$44 sps:$4 sm:$0xff]  }
 0x7c9   :  { %5590 = vmatpush1.bf16.msra.mxu1 %v16430_v62  ;;  %v16468_v62 = vld [vmem:[%s23560_s13 + $0x4dc] ss:$44 sps:$4 sm:$0xff]  }
 0x7ca   :  { %5591 = vmatprep.subr.bf16.mxu1 %v16438_v7  ;;  %v16463_v7 = vld [vmem:[%s23560_s13 + $0x4d0] ss:$44 sps:$4 sm:$0xff]  }
 0x7cd   :  { %5592 = vmatpush1.bf16.msra.mxu1 %v16436_v14  ;;  %v16466_v14 = vld [vmem:[%s23560_s13 + $0x4d8] ss:$44 sps:$4 sm:$0xff]  }
 0x7ce   :  { %5593 = vmatprep.subr.bf16.mxu1 %v16444_v6 }
 0x7d1   :  { %5594 = vmatpush1.bf16.msra.mxu1 %v16442_v55 }
 0x7d2   :  { %5595 = vmatprep.subr.bf16.mxu1 %v16450_v59 }
 0x7d5   :  { %5596 = vmatpush1.bf16.msra.mxu1 %v16448_v8 }
 0x7d6   :  { %5597 = vmatprep.subr.bf16.mxu1 %v16456_v25 }
 0x7d9   :  { %5598 = vmatpush1.bf16.msra.mxu1 %v16454_v11 }
 0x7da   :  { %5599 = vmatprep.subr.bf16.mxu1 %v16462_v36 }
 0x7dd   :  { %5600 = vmatpush1.bf16.msra.mxu1 %v16460_v51 }
 0x7de   :  { %5601 = vmatprep.subr.bf16.mxu1 %v16468_v62 }
 0x7e1   :  { %5602 = vmatpush1.bf16.msra.mxu1 %v16466_v14 }
 0x86b   :  { %v14719_v23 = vpop.f32.mrb[26].mxu1 }
 0x86c   :  { %v14720_v31 = vpop.f32.mrb[27].mxu1 }
 0x86d   :  { %v14721_v37 = vadd.f32 %v14720_v31, %v14719_v23  ;;  %v16471_v23 = vld [vmem:[%s23560_s13 + $0x52c] ss:$44 sps:$4 sm:$0xff]   ;;  %v16474_v31 = vld [vmem:[%s23560_s13 + $0x534] ss:$44 sps:$4 sm:$0xff]  }
 0x86e   :  { %5603 = vmatprep.subr.bf16.mxu1 %v16474_v31  ;;  %v16478_v31 = vld [vmem:[%s23560_s13 + $0x588] ss:$44 sps:$4 sm:$0xff]  }
 0x86f   :  { %v14754_v12 = vpop.f32.mrb[30].mxu0 }
 0x870   :  { %v14755_v50 = vpop.f32.mrb[31].mxu0 }
 0x871   :  { %v14756_v56 = vadd.f32 %v14755_v50, %v14754_v12  ;;  %v16472_v12 = vld [vmem:[%s23560_s13 + $0x530] ss:$44 sps:$4 sm:$0xff]  }
 0x872   :  { %5604 = vmatpush1.bf16.msra.mxu1 %v16472_v12  ;;  %v16477_v50 = vld [vmem:[%s23560_s13 + $0x584] ss:$44 sps:$4 sm:$0xff]  }
 0x873   :  { %v2547_v28 = vadd.f32 %v14756_v56, %v14721_v37  ;;  %v16469_v37 = vld [vmem:[%s23560_s13 + $0x528] ss:$44 sps:$4 sm:$0xff]   ;;  %v16480_v56 = vld [vmem:[%s23560_s13 + $0x58c] ss:$44 sps:$4 sm:$0xff]  }
 0x874   :  { %5614 = vmatprep.subr.bf16.mxu1 %v16480_v56 }
 0x87b   :  { %v2616_v21 = vpop.f32.mrb[28].mxu1 }
 0x87c   :  { %v2617_v34 = vadd.f32 %v2616_v21, %v2547_v28  ;;  %v15410_v13 = vpop.f32.mrb[29].mxu1 }
 0x87e   :  { %v2620_v20 = vmul.f32 0.013888889, %v2617_v34 }
 0x880   :  { %13467 = vmatmul.mubr.msk.f32.vlgmr.msra.gmra.mrb[32].mxu0 %vm108_vm1, %v2620_v20 }
 0x881   :  { %15770 = vmatpush1.bf16.msra.mxu0 %v19032_v46  ;;  %2759 = vmatprep.mubr.f32.mxu0 %v23671_v41  ;;  %v16385_v46 = vld [vmem:[%s23560_s13 + $0x58] ss:$44 sps:$4 sm:$0xff]  }
 0x882   :  { %15771 = vmatprep.subr.bf16.mxu0 %v23672_v0 }
 0x884   :  { %13468 = vmatmul.mubr.msk.f32.vlgmr.msra.gmra.mrb[34].mxu0 %vm108_vm1, %v2620_v20 }
 0x885   :  { %15773 = vmatpush3.bf16.msra.mxu0 %v19012_v24  ;;  %15415 = vmatprep.mubr.msk.f32.mxu0 %vm17861_vm0, %v23671_v41  ;;  %v16391_v24 = vld [vmem:[%s23560_s13 + $0xb0] ss:$44 sps:$4 sm:$0xff]  }
 0x886   :  { %5450 = vmatprep.subr.bf16.mxu0 %v16381_v47 }
 0x888   :  { %15416 = vmatmul.mubr.msk.f32.vlgmr.msra.gmra.mrb[36].mxu0 %vm108_vm1, %v2620_v20 }
 0x889   :  { %5451 = vmatpush1.bf16.msra.mxu0 %v16379_v10 }
 0x88a   :  { %5452 = vmatprep.subr.bf16.mxu0 %v16387_v2 }
 0x88d   :  { %5453 = vmatpush1.bf16.msra.mxu0 %v16385_v46 }
 0x88e   :  { %5454 = vmatprep.subr.bf16.mxu0 %v16393_v15 }
 0x891   :  { %5455 = vmatpush1.bf16.msra.mxu0 %v16391_v24 }
 0x892   :  { %5456 = vmatprep.subr.bf16.mxu0 %v16399_v3  ;;  %v2866_v3 = vld [vmem:[%s23561_s9] sm:$0x1f] }
 0x893   :  { %v2883_v59 = vrot.slane %v2866_v3, %v18920_v60  ;;  %v2887_v36 = vrot.slane %v2866_v3, %v18971_v54 }
 0x895   :  { %5457 = vmatpush1.bf16.msra.mxu0 %v16397_v30 }
 0x896   :  { %5458 = vmatprep.subr.bf16.mxu0 %v16405_v17  ;;  %v2898_v17 = vld [vmem:[%s23562_s10] sm:$0x1f] }
 0x897   :  { %v2911_v8 = vrot.slane %v2898_v17, %v18163_v1 }
 0x899   :  { %5459 = vmatpush1.bf16.msra.mxu0 %v16403_v35 }
 0x89a   :  { %5460 = vmatprep.subr.bf16.mxu0 %v16411_v49 }
 0x89d   :  { %5461 = vmatpush1.bf16.msra.mxu0 %v16409_v26  ;;  %v2871_v26 = vrot.slane %v2866_v3, %v18169_v4 }
 0x89e   :  { %5462 = vmatprep.subr.bf16.mxu0 %v16417_v39 }
 0x8a1   :  { %5463 = vmatpush1.bf16.msra.mxu0 %v16415_v38  ;;  %v2875_v38 = vrot.slane %v2866_v3, %v18172_v5 }
 0x8a2   :  { %5464 = vmatprep.subr.bf16.mxu0 %v16423_v40 }
 0x8a5   :  { %5465 = vmatpush1.bf16.msra.mxu0 %v16421_v48  ;;  %v2903_v48 = vrot.slane %v2898_v17, %v18169_v4 }
 0x8a6   :  { %5466 = vmatprep.subr.bf16.mxu0 %v16429_v27 }
 0x8a9   :  { %5467 = vmatpush1.bf16.msra.mxu0 %v16427_v42 }
 0x8aa   :  { %5468 = vmatprep.subr.bf16.mxu0 %v16435_v19  ;;  %v2907_v19 = vrot.slane %v2898_v17, %v18172_v5 }
 0x8ad   :  { %5469 = vmatpush1.bf16.msra.mxu0 %v16433_v61 }
 0x8ae   :  { %5470 = vmatprep.subr.bf16.mxu0 %v16441_v22 }
 0x8b1   :  { %5471 = vmatpush1.bf16.msra.mxu0 %v16439_v16  ;;  %v2879_v16 = vrot.slane %v2866_v3, %v18163_v1  ;;  %v16496_v3 = vld [vmem:[%s23560_s13 + $0x690] ss:$44 sps:$4 sm:$0xff]  }
 0x8b2   :  { %5472 = vmatprep.subr.bf16.mxu0 %v16447_v52 }
 0x8b5   :  { %5473 = vmatpush1.bf16.msra.mxu0 %v16445_v45 }
 0x8b6   :  { %5474 = vmatprep.subr.bf16.mxu0 %v16453_v18 }
 0x8b9   :  { %5475 = vmatpush1.bf16.msra.mxu0 %v16451_v29  ;;  %v2915_v29 = vrot.slane %v2898_v17, %v18920_v60 }
 0x8ba   :  { %5476 = vmatprep.subr.bf16.mxu0 %v16459_v33 }
 0x8bd   :  { %5477 = vmatpush1.bf16.msra.mxu0 %v16457_v43 }
 0x8be   :  { %5478 = vmatprep.subr.bf16.mxu0 %v16465_v57 }
 0x8c1   :  { %5479 = vmatpush1.bf16.msra.mxu0 %v16463_v7  ;;  %v2919_v7 = vrot.slane %v2898_v17, %v18971_v54  ;;  %v16504_v17 = vld [vmem:[%s23560_s13 + $0x6ec] ss:$44 sps:$4 sm:$0xff]  }
 0x8c2   :  { %5480 = vmatprep.subr.bf16.mxu0 %v16471_v23 }
 0x8c5   :  { %5481 = vmatpush1.bf16.msra.mxu0 %v16469_v37 }
 0x8c6   :  { %5491 = vmatprep.subr.bf16.mxu0 %v16477_v50  ;;  %v16486_v50 = vld [vmem:[%s23560_s13 + $0x5e4] ss:$44 sps:$4 sm:$0xff]  }
 0x953   :  { %v2690_v28 = vpop.f32.mrb[32].mxu0 }
 0x954   :  { %v2691_v21 = vadd.f32 1e-05, %v2690_v28  ;;  %v2692_v34 = vpop.f32.mrb[33].mxu0 }
 0x955   :  { %v2693_v13 = vadd.f32 1e-05, %v2692_v34 }
 0x956   :  { %17808 = vrsqrt.f32 %v2691_v21  ;;  %v16481_v21 = vld [vmem:[%s23560_s13 + $0x5d8] ss:$44 sps:$4 sm:$0xff]  }
 0x957   :  { %17810 = vrsqrt.f32 %v2693_v13  ;;  %v2761_v20 = vpop.f32.mrb[34].mxu0  ;;  %v16484_v13 = vld [vmem:[%s23560_s13 + $0x5e0] ss:$44 sps:$4 sm:$0xff]  }
 0x958   :  { %v2762_v47 = vadd.f32 1e-05, %v2761_v20  ;;  %v2763_v10 = vpop.f32.mrb[35].mxu0  ;;  %v16489_v20 = vld [vmem:[%s23560_s13 + $0x634] ss:$44 sps:$4 sm:$0xff]  }
 0x959   :  { %v2764_v2 = vadd.f32 1e-05, %v2763_v10  ;;  %v16487_v10 = vld [vmem:[%s23560_s13 + $0x630] ss:$44 sps:$4 sm:$0xff]  }
 0x95a   :  { %17812 = vrsqrt.f32 %v2762_v47  ;;  %v16492_v47 = vld [vmem:[%s23560_s13 + $0x63c] ss:$44 sps:$4 sm:$0xff]  }
 0x95b   :  { %17814 = vrsqrt.f32 %v2764_v2  ;;  %v2832_v46 = vpop.f32.mrb[36].mxu0  ;;  %v16490_v2 = vld [vmem:[%s23560_s13 + $0x638] ss:$44 sps:$4 sm:$0xff]  }
 0x95c   :  { %v2833_v15 = vadd.f32 1e-05, %v2832_v46  ;;  %v15417_v24 = vpop.f32.mrb[37].mxu0  ;;  %v16495_v46 = vld [vmem:[%s23560_s13 + $0x68c] ss:$44 sps:$4 sm:$0xff]  }
 0x95d   :  { %v16493_v24 = vld [vmem:[%s23560_s13 + $0x688] ss:$44 sps:$4 sm:$0xff]  }
 0x95e   :  { %17816 = vrsqrt.f32 %v2833_v15  ;;  %v16498_v15 = vld [vmem:[%s23560_s13 + $0x694] ss:$44 sps:$4 sm:$0xff]  }
 0x960   :  { %v17809_v30 = vpop.eup %17808 }
 0x961   :  { %v17811_v35 = vpop.eup %17810  ;;  %v2844_v49 = vrot.slane %v17809_v30, %v18169_v4  ;;  %v16501_v30 = vld [vmem:[%s23560_s13 + $0x6e4] ss:$44 sps:$4 sm:$0xff]  }
 0x962   :  { %v2848_v39 = vrot.slane %v17811_v35, %v18169_v4  ;;  %v16499_v35 = vld [vmem:[%s23560_s13 + $0x6e0] ss:$44 sps:$4 sm:$0xff]  }
 0x963   :  { %v2861_v40 = vmul.f32 %v2844_v49, %v19076_v44  ;;  %v16502_v49 = vld [vmem:[%s23560_s13 + $0x6e8] ss:$44 sps:$4 sm:$0xff]  }
 0x964   :  { %v17813_v27 = vpop.eup %17812  ;;  %v2862_v42 = vmul.f32 %v2848_v39, %v19079_v53  ;;  %v16510_v39 = vld [vmem:[%s23560_s13 + $0x744] ss:$44 sps:$4 sm:$0xff]  }
 0x965   :  { %v17815_v61 = vpop.eup %17814  ;;  %v2893_v22 = vmul.f32 %v2871_v26, %v2861_v40  ;;  %v2852_v6 = vrot.slane %v17813_v27, %v18169_v4  ;;  %v16507_v26 = vld [vmem:[%s23560_s13 + $0x73c] ss:$44 sps:$4 sm:$0xff]   ;;  %v16508_v40 = vld [vmem:[%s23560_s13 + $0x740] ss:$44 sps:$4 sm:$0xff]  }
 0x966   :  { %v2894_v55 = vmul.f32 %v2875_v38, %v2862_v42  ;;  %v2856_v52 = vrot.slane %v17815_v61, %v18169_v4  ;;  %v16505_v38 = vld [vmem:[%s23560_s13 + $0x738] ss:$44 sps:$4 sm:$0xff]   ;;  %v16516_v27 = vld [vmem:[%s23560_s13 + $0x79c] ss:$44 sps:$4 sm:$0xff]  }
 0x967   :  { %v2925_v45 = vadd.f32 %v2903_v48, %v2893_v22  ;;  %v2863_v44 = vmul.f32 %v2852_v6, %v19092_v32  ;;  %v16513_v48 = vld [vmem:[%s23560_s13 + $0x794] ss:$44 sps:$4 sm:$0xff]   ;;  %v16511_v42 = vld [vmem:[%s23560_s13 + $0x790] ss:$44 sps:$4 sm:$0xff]   ;;  %v16519_v61 = vld [vmem:[%s23560_s13 + $0x7ec] ss:$44 sps:$4 sm:$0xff]  }
 0x968   :  { %v17817_v18 = vpop.eup %17816  ;;  %v2926_v53 = vadd.f32 %v2907_v19, %v2894_v55  ;;  %v2864_v25 = vmul.f32 %v2856_v52, %v19096_v58  ;;  %v16475_v58 = vld [vmem:[%s23560_s13 + $0x580] ss:$44 sps:$4 sm:$0xff]   ;;  %v16514_v19 = vld [vmem:[%s23560_s13 + $0x798] ss:$44 sps:$4 sm:$0xff]   ;;  %v16517_v6 = vld [vmem:[%s23560_s13 + $0x7e8] ss:$44 sps:$4 sm:$0xff]  }
 0x969   :  { %v2895_v11 = vmul.f32 %v2879_v16, %v2863_v44  ;;  %v2860_v33 = vrot.slane %v17817_v18, %v18169_v4  ;;  %v2930_v43 = vmax.f32 %v2925_v45, 0.0  ;;  %v16522_v22 = vld [vmem:[%s23560_s13 + $0x7f4] ss:$44 sps:$4 sm:$0xff]   ;;  %v16520_v16 = vld [vmem:[%s23560_s13 + $0x7f0] ss:$44 sps:$4 sm:$0xff]  }
 0x96a   :  { %v2896_v51 = vmul.f32 %v2883_v59, %v2864_v25  ;;  %v2931_v57 = vmax.f32 %v2926_v53, 0.0  ;;  %v16525_v55 = vld [vmem:[%s23560_s13 + $0x844] ss:$44 sps:$4 sm:$0xff]   ;;  %v16528_v52 = vld [vmem:[%s23560_s13 + $0x84c] ss:$44 sps:$4 sm:$0xff]  }
 0x96b   :  { %v19351_v62 = vadd.f32 %v2911_v8, %v2895_v11  ;;  %v2865_v32 = vmul.f32 %v2860_v33, %v19084_v9  ;;  %v19363_v12 = vpack.c.bf16 %v2930_v43, %v2930_v43  ;;  %v16483_v9 = vld [vmem:[%s23560_s13 + $0x5dc] ss:$44 sps:$4 sm:$0xff]   ;;  %v16523_v59 = vld [vmem:[%s23560_s13 + $0x840] ss:$44 sps:$4 sm:$0xff]   ;;  %v16534_v8 = vld [vmem:[%s23560_s13 + $0x8a4] ss:$44 sps:$4 sm:$0xff]  }
 0x96c   :  { %v2928_v14 = vadd.f32 %v2915_v29, %v2896_v51  ;;  %v19355_v23 = vpack.c.bf16 %v2931_v57, %v2931_v57  ;;  %v16526_v45 = vld [vmem:[%s23560_s13 + $0x848] ss:$44 sps:$4 sm:$0xff]   ;;  %v16529_v18 = vld [vmem:[%s23560_s13 + $0x898] ss:$44 sps:$4 sm:$0xff]   ;;  %v16532_v53 = vld [vmem:[%s23560_s13 + $0x8a0] ss:$44 sps:$4 sm:$0xff]  }
 0x96d   :  { %v2897_v37 = vmul.f32 %v2887_v36, %v2865_v32  ;;  %v16531_v44 = vld [vmem:[%s23560_s13 + $0x89c] ss:$44 sps:$4 sm:$0xff]   ;;  %v16537_v25 = vld [vmem:[%s23560_s13 + $0x8f4] ss:$44 sps:$4 sm:$0xff]   ;;  %v16538_v33 = vld [vmem:[%s23560_s13 + $0x8f8] ss:$44 sps:$4 sm:$0xff]  }
 0x96e   :  { %5482 = vmatprep.mubr.bf16.mxu0 %v19355_v23  ;;  %5605 = vmatprep.mubr.bf16.mxu1 %v19355_v23  ;;  %v2933_v56 = vmax.f32 %v2928_v14, 0.0  ;;  %v16540_v29 = vld [vmem:[%s23560_s13 + $0x8fc] ss:$44 sps:$4 sm:$0xff]   ;;  %v16543_v36 = vld [vmem:[%s23560_s13 + $0x94c] ss:$44 sps:$4 sm:$0xff]  }
 0x96f   :  { %v19373_v28 = vadd.f32 %v2919_v7, %v2897_v37  ;;  %5483 = vmatmul.mubr.bf16.vlgmr.msra.gmra.mrb[40].mxu0 %v19363_v12  ;;  %5606 = vmatmul.mubr.bf16.vlgmr.msra.gmra.mrb[32].mxu1 %v19363_v12  ;;  %v16535_v11 = vld [vmem:[%s23560_s13 + $0x8f0] ss:$44 sps:$4 sm:$0xff]   ;;  %v16546_v43 = vld [vmem:[%s23560_s13 + $0x954] ss:$44 sps:$4 sm:$0xff]   ;;  %v16552_v7 = vld [vmem:[%s23560_s13 + $0x9ac] ss:$44 sps:$4 sm:$0xff]  }
 0x970   :  { %5492 = vmatpush1.bf16.msra.mxu0 %v16475_v58  ;;  %5615 = vmatpush1.bf16.msra.mxu1 %v16478_v31  ;;  %v19380_v34 = vpack.c.bf16 %v2933_v56, %v2933_v56  ;;  %v16541_v51 = vld [vmem:[%s23560_s13 + $0x948] ss:$44 sps:$4 sm:$0xff]   ;;  %v16544_v57 = vld [vmem:[%s23560_s13 + $0x950] ss:$44 sps:$4 sm:$0xff]   ;;  %v16547_v14 = vld [vmem:[%s23560_s13 + $0x9a0] ss:$44 sps:$4 sm:$0xff]  }
 0x971   :  { %5493 = vmatprep.subr.bf16.mxu0 %v16483_v9  ;;  %5616 = vmatprep.subr.bf16.mxu1 %v16486_v50  ;;  %v16549_v32 = vld [vmem:[%s23560_s13 + $0x9a4] ss:$44 sps:$4 sm:$0xff]   ;;  %v16550_v58 = vld [vmem:[%s23560_s13 + $0x9a8] ss:$44 sps:$4 sm:$0xff]   ;;  %v16556_v50 = vld [vmem:[%s23560_s13 + $0xa00] ss:$44 sps:$4 sm:$0xff]  }
 0x972   :  { %5523 = vmatprep.mubr.bf16.mxu0 %v19380_v34  ;;  %5646 = vmatprep.mubr.bf16.mxu1 %v19380_v34  ;;  %v16555_v31 = vld [vmem:[%s23560_s13 + $0x9fc] ss:$44 sps:$4 sm:$0xff]   ;;  %v16558_v37 = vld [vmem:[%s23560_s13 + $0xa04] ss:$44 sps:$4 sm:$0xff]   ;;  %v16561_v56 = vld [vmem:[%s23560_s13 + $0xa54] ss:$44 sps:$4 sm:$0xff]  }
 0x973   :  { %v16553_v9 = vld [vmem:[%s23560_s13 + $0x9f8] ss:$44 sps:$4 sm:$0xff]  }
 0x974   :  { %5494 = vmatpush1.bf16.msra.mxu0 %v16481_v21  ;;  %5617 = vmatpush1.bf16.msra.mxu1 %v16484_v13  ;;  %v16564_v21 = vld [vmem:[%s23560_s13 + $0xa5c] ss:$44 sps:$4 sm:$0xff]  }
 0x975   :  { %5495 = vmatprep.subr.bf16.mxu0 %v16489_v20  ;;  %5618 = vmatprep.subr.bf16.mxu1 %v16492_v47  ;;  %v16559_v13 = vld [vmem:[%s23560_s13 + $0xa50] ss:$44 sps:$4 sm:$0xff]   ;;  %v16562_v20 = vld [vmem:[%s23560_s13 + $0xa58] ss:$44 sps:$4 sm:$0xff]  }
 0x976   :  { %v16567_v47 = vld [vmem:[%s23560_s13 + $0xaac] ss:$44 sps:$4 sm:$0xff]  }
 0x978   :  { %5496 = vmatpush1.bf16.msra.mxu0 %v16487_v10  ;;  %5619 = vmatpush1.bf16.msra.mxu1 %v16490_v2  ;;  %v16570_v10 = vld [vmem:[%s23560_s13 + $0xab4] ss:$44 sps:$4 sm:$0xff]  }
 0x979   :  { %5497 = vmatprep.subr.bf16.mxu0 %v16495_v46  ;;  %5620 = vmatprep.subr.bf16.mxu1 %v16498_v15  ;;  %v16565_v2 = vld [vmem:[%s23560_s13 + $0xaa8] ss:$44 sps:$4 sm:$0xff]   ;;  %v16568_v46 = vld [vmem:[%s23560_s13 + $0xab0] ss:$44 sps:$4 sm:$0xff]   ;;  %v2932_v15 = vmax.f32 %v19351_v62, 0.0 }
 0x97a   :  { %v16579_v62 = vld [vmem:[%s23560_s13 + $0xb5c] ss:$44 sps:$4 sm:$0xff]  }
 0x97c   :  { %5498 = vmatpush1.bf16.msra.mxu0 %v16493_v24  ;;  %5621 = vmatpush1.bf16.msra.mxu1 %v16496_v3  ;;  %v16573_v24 = vld [vmem:[%s23560_s13 + $0xb04] ss:$44 sps:$4 sm:$0xff]   ;;  %v16576_v3 = vld [vmem:[%s23560_s13 + $0xb0c] ss:$44 sps:$4 sm:$0xff]  }
 0x97d   :  { %5499 = vmatprep.subr.bf16.mxu0 %v16501_v30  ;;  %5622 = vmatprep.subr.bf16.mxu1 %v16504_v17  ;;  %v16571_v30 = vld [vmem:[%s23560_s13 + $0xb00] ss:$44 sps:$4 sm:$0xff]   ;;  %v16574_v17 = vld [vmem:[%s23560_s13 + $0xb08] ss:$44 sps:$4 sm:$0xff]  }
 0x980   :  { %5500 = vmatpush1.bf16.msra.mxu0 %v16499_v35  ;;  %5623 = vmatpush1.bf16.msra.mxu1 %v16502_v49  ;;  %v19568_v35 = vpack.c.bf16 %v2932_v15, %v2932_v15  ;;  %v16582_v49 = vld [vmem:[%s23560_s13 + $0xb64] ss:$44 sps:$4 sm:$0xff]   ;;  %v16645_v15 = vld [vmem:[%s23560_s13 + $0x2d4] ss:$44 sps:$4 sm:$0xff]  }
 0x981   :  { %5501 = vmatprep.subr.bf16.mxu0 %v16507_v26  ;;  %5624 = vmatprep.subr.bf16.mxu1 %v16510_v39  ;;  %v16577_v26 = vld [vmem:[%s23560_s13 + $0xb58] ss:$44 sps:$4 sm:$0xff]   ;;  %v16580_v39 = vld [vmem:[%s23560_s13 + $0xb60] ss:$44 sps:$4 sm:$0xff]  }
 0x984   :  { %5502 = vmatpush1.bf16.msra.mxu0 %v16505_v38  ;;  %5625 = vmatpush1.bf16.msra.mxu1 %v16508_v40  ;;  %v16585_v38 = vld [vmem:[%s23560_s13 + $0xbb4] ss:$44 sps:$4 sm:$0xff]   ;;  %v16588_v40 = vld [vmem:[%s23560_s13 + $0xbbc] ss:$44 sps:$4 sm:$0xff]  }
 0x985   :  { %5503 = vmatprep.subr.bf16.mxu0 %v16513_v48  ;;  %5626 = vmatprep.subr.bf16.mxu1 %v16516_v27  ;;  %v23673_v48 = vmov 0   ;;  %v16583_v27 = vld [vmem:[%s23560_s13 + $0xbb0] ss:$44 sps:$4 sm:$0xff]  }
 0x988   :  { %5504 = vmatpush1.bf16.msra.mxu0 %v16511_v42  ;;  %5627 = vmatpush1.bf16.msra.mxu1 %v16514_v19  ;;  %v16586_v42 = vld [vmem:[%s23560_s13 + $0xbb8] ss:$44 sps:$4 sm:$0xff]  }
 0x989   :  { %5505 = vmatprep.subr.bf16.mxu0 %v16519_v61  ;;  %5628 = vmatprep.subr.bf16.mxu1 %v16522_v22  ;;  %v16591_v19 = vld [vmem:[%s23560_s13 + $0xc0c] ss:$44 sps:$4 sm:$0xff]   ;;  %v16594_v61 = vld [vmem:[%s23560_s13 + $0xc14] ss:$44 sps:$4 sm:$0xff]  }
 0x98a   :  { %v16589_v22 = vld [vmem:[%s23560_s13 + $0xc08] ss:$44 sps:$4 sm:$0xff]  }
 0x98c   :  { %5506 = vmatpush1.bf16.msra.mxu0 %v16517_v6  ;;  %5629 = vmatpush1.bf16.msra.mxu1 %v16520_v16  ;;  %v16592_v6 = vld [vmem:[%s23560_s13 + $0xc10] ss:$44 sps:$4 sm:$0xff]   ;;  %v2934_v16 = vmax.f32 %v19373_v28, 0.0  ;;  %v16598_v28 = vld [vmem:[%s23560_s13 + $0x18] ss:$44 sps:$4 sm:$0xff]  }
 0x98d   :  { %5507 = vmatprep.subr.bf16.mxu0 %v16525_v55  ;;  %5630 = vmatprep.subr.bf16.mxu1 %v16528_v52  ;;  %v16597_v55 = vld [vmem:[%s23560_s13 + $0x14] ss:$44 sps:$4 sm:$0xff]   ;;  %v16600_v52 = vld [vmem:[%s23560_s13 + $0x1c] ss:$44 sps:$4 sm:$0xff]  }
 0x990   :  { %5508 = vmatpush1.bf16.msra.mxu0 %v16523_v59  ;;  %5631 = vmatpush1.bf16.msra.mxu1 %v16526_v45  ;;  %v16595_v59 = vld [vmem:[%s23560_s13 + $0x10] ss:$44 sps:$4 sm:$0xff]   ;;  %v19620_v45 = vpack.c.bf16 %v2934_v16, %v2934_v16 }
 0x991   :  { %5509 = vmatprep.subr.bf16.mxu0 %v16531_v44  ;;  %5632 = vmatprep.subr.bf16.mxu1 %v16534_v8  ;;  %v16603_v44 = vld [vmem:[%s23560_s13 + $0x6c] ss:$44 sps:$4 sm:$0xff]   ;;  %v16606_v8 = vld [vmem:[%s23560_s13 + $0x74] ss:$44 sps:$4 sm:$0xff]   ;;  %v16672_v16 = vld [vmem:[%s23560_s13 + $0x43c] ss:$44 sps:$4 sm:$0xff]  }
 0x994   :  { %5510 = vmatpush1.bf16.msra.mxu0 %v16529_v18  ;;  %5633 = vmatpush1.bf16.msra.mxu1 %v16532_v53  ;;  %v16601_v18 = vld [vmem:[%s23560_s13 + $0x68] ss:$44 sps:$4 sm:$0xff]   ;;  %v16604_v53 = vld [vmem:[%s23560_s13 + $0x70] ss:$44 sps:$4 sm:$0xff]  }
 0x995   :  { %5511 = vmatprep.subr.bf16.mxu0 %v16537_v25  ;;  %5634 = vmatprep.subr.bf16.mxu1 %v16540_v29  ;;  %v16609_v25 = vld [vmem:[%s23560_s13 + $0xc4] ss:$44 sps:$4 sm:$0xff]   ;;  %v16612_v29 = vld [vmem:[%s23560_s13 + $0xcc] ss:$44 sps:$4 sm:$0xff]  }
 0x998   :  { %5512 = vmatpush1.bf16.msra.mxu0 %v16535_v11  ;;  %5635 = vmatpush1.bf16.msra.mxu1 %v16538_v33  ;;  %v16607_v11 = vld [vmem:[%s23560_s13 + $0xc0] ss:$44 sps:$4 sm:$0xff]   ;;  %v16610_v33 = vld [vmem:[%s23560_s13 + $0xc8] ss:$44 sps:$4 sm:$0xff]  }
 0x999   :  { %5513 = vmatprep.subr.bf16.mxu0 %v16543_v36  ;;  %5636 = vmatprep.subr.bf16.mxu1 %v16546_v43  ;;  %v16615_v36 = vld [vmem:[%s23560_s13 + $0x11c] ss:$44 sps:$4 sm:$0xff]   ;;  %v16618_v43 = vld [vmem:[%s23560_s13 + $0x124] ss:$44 sps:$4 sm:$0xff]  }
 0x99c   :  { %5514 = vmatpush1.bf16.msra.mxu0 %v16541_v51  ;;  %5637 = vmatpush1.bf16.msra.mxu1 %v16544_v57  ;;  %v16613_v51 = vld [vmem:[%s23560_s13 + $0x118] ss:$44 sps:$4 sm:$0xff]   ;;  %v16616_v57 = vld [vmem:[%s23560_s13 + $0x120] ss:$44 sps:$4 sm:$0xff]  }
 0x99d   :  { %5515 = vmatprep.subr.bf16.mxu0 %v16549_v32  ;;  %5638 = vmatprep.subr.bf16.mxu1 %v16552_v7  ;;  %v16621_v32 = vld [vmem:[%s23560_s13 + $0x174] ss:$44 sps:$4 sm:$0xff]   ;;  %v16624_v7 = vld [vmem:[%s23560_s13 + $0x17c] ss:$44 sps:$4 sm:$0xff]  }
 0x9a0   :  { %5516 = vmatpush1.bf16.msra.mxu0 %v16547_v14  ;;  %5639 = vmatpush1.bf16.msra.mxu1 %v16550_v58  ;;  %v16619_v14 = vld [vmem:[%s23560_s13 + $0x170] ss:$44 sps:$4 sm:$0xff]   ;;  %v16622_v58 = vld [vmem:[%s23560_s13 + $0x178] ss:$44 sps:$4 sm:$0xff]  }
 0x9a1   :  { %5517 = vmatprep.subr.bf16.mxu0 %v16555_v31  ;;  %5640 = vmatprep.subr.bf16.mxu1 %v16558_v37  ;;  %v16627_v31 = vld [vmem:[%s23560_s13 + $0x1cc] ss:$44 sps:$4 sm:$0xff]   ;;  %v16630_v37 = vld [vmem:[%s23560_s13 + $0x1d4] ss:$44 sps:$4 sm:$0xff]  }
 0x9a4   :  { %5518 = vmatpush1.bf16.msra.mxu0 %v16553_v9  ;;  %5641 = vmatpush1.bf16.msra.mxu1 %v16556_v50  ;;  %v16625_v9 = vld [vmem:[%s23560_s13 + $0x1c8] ss:$44 sps:$4 sm:$0xff]   ;;  %v16628_v50 = vld [vmem:[%s23560_s13 + $0x1d0] ss:$44 sps:$4 sm:$0xff]  }
 0x9a5   :  { %5519 = vmatprep.subr.bf16.mxu0 %v16561_v56  ;;  %5642 = vmatprep.subr.bf16.mxu1 %v16564_v21  ;;  %v16633_v56 = vld [vmem:[%s23560_s13 + $0x224] ss:$44 sps:$4 sm:$0xff]   ;;  %v16636_v21 = vld [vmem:[%s23560_s13 + $0x22c] ss:$44 sps:$4 sm:$0xff]  }
 0x9a8   :  { %5520 = vmatpush1.bf16.msra.mxu0 %v16559_v13  ;;  %5643 = vmatpush1.bf16.msra.mxu1 %v16562_v20  ;;  %v16631_v13 = vld [vmem:[%s23560_s13 + $0x220] ss:$44 sps:$4 sm:$0xff]   ;;  %v16634_v20 = vld [vmem:[%s23560_s13 + $0x228] ss:$44 sps:$4 sm:$0xff]  }
 0x9a9   :  { %5521 = vmatprep.subr.bf16.mxu0 %v16567_v47  ;;  %5644 = vmatprep.subr.bf16.mxu1 %v16570_v10  ;;  %v16639_v47 = vld [vmem:[%s23560_s13 + $0x27c] ss:$44 sps:$4 sm:$0xff]   ;;  %v16642_v10 = vld [vmem:[%s23560_s13 + $0x284] ss:$44 sps:$4 sm:$0xff]  }
 0x9ac   :  { %5522 = vmatpush1.bf16.msra.mxu0 %v16565_v2  ;;  %5645 = vmatpush1.bf16.msra.mxu1 %v16568_v46  ;;  %v16637_v2 = vld [vmem:[%s23560_s13 + $0x278] ss:$44 sps:$4 sm:$0xff]   ;;  %v16640_v46 = vld [vmem:[%s23560_s13 + $0x280] ss:$44 sps:$4 sm:$0xff]  }
 0x9ad   :  { %5532 = vmatprep.subr.bf16.mxu0 %v16573_v24  ;;  %5655 = vmatprep.subr.bf16.mxu1 %v16576_v3  ;;  %v16648_v24 = vld [vmem:[%s23560_s13 + $0x2dc] ss:$44 sps:$4 sm:$0xff]  }
 0x9ae   :  { %v16643_v3 = vld [vmem:[%s23560_s13 + $0x2d0] ss:$44 sps:$4 sm:$0xff]  }
 0x9af   :  { %5524 = vmatmul.mubr.bf16.vlgmr.msra.gmra.mrb[40].mxu0 %v19568_v35  ;;  %5647 = vmatmul.mubr.bf16.vlgmr.msra.gmra.mrb[32].mxu1 %v19568_v35 }
 0x9b0   :  { %5533 = vmatpush1.bf16.msra.mxu0 %v16571_v30  ;;  %5656 = vmatpush1.bf16.msra.mxu1 %v16574_v17  ;;  %v16646_v30 = vld [vmem:[%s23560_s13 + $0x2d8] ss:$44 sps:$4 sm:$0xff]  }
 0x9b1   :  { %5534 = vmatprep.subr.bf16.mxu0 %v16579_v62  ;;  %5657 = vmatprep.subr.bf16.mxu1 %v16582_v49  ;;  %v16651_v17 = vld [vmem:[%s23560_s13 + $0x32c] ss:$44 sps:$4 sm:$0xff]   ;;  %v16654_v62 = vld [vmem:[%s23560_s13 + $0x334] ss:$44 sps:$4 sm:$0xff]  }
 0x9b2   :  { %5564 = vmatprep.mubr.bf16.mxu0 %v23673_v48  ;;  %5687 = vmatprep.mubr.bf16.mxu1 %v23673_v48  ;;  %v16649_v49 = vld [vmem:[%s23560_s13 + $0x328] ss:$44 sps:$4 sm:$0xff]  }
 0x9b4   :  { %5535 = vmatpush1.bf16.msra.mxu0 %v16577_v26  ;;  %5658 = vmatpush1.bf16.msra.mxu1 %v16580_v39  ;;  %v16652_v26 = vld [vmem:[%s23560_s13 + $0x330] ss:$44 sps:$4 sm:$0xff]  }
 0x9b5   :  { %5536 = vmatprep.subr.bf16.mxu0 %v16585_v38  ;;  %5659 = vmatprep.subr.bf16.mxu1 %v16588_v40  ;;  %v16657_v39 = vld [vmem:[%s23560_s13 + $0x384] ss:$44 sps:$4 sm:$0xff]   ;;  %v16660_v38 = vld [vmem:[%s23560_s13 + $0x38c] ss:$44 sps:$4 sm:$0xff]  }
 0x9b6   :  { %v16655_v40 = vld [vmem:[%s23560_s13 + $0x380] ss:$44 sps:$4 sm:$0xff]  }
 0x9b8   :  { %5537 = vmatpush1.bf16.msra.mxu0 %v16583_v27  ;;  %5660 = vmatpush1.bf16.msra.mxu1 %v16586_v42  ;;  %v16658_v27 = vld [vmem:[%s23560_s13 + $0x388] ss:$44 sps:$4 sm:$0xff]  }
 0x9b9   :  { %5538 = vmatprep.subr.bf16.mxu0 %v16591_v19  ;;  %5661 = vmatprep.subr.bf16.mxu1 %v16594_v61  ;;  %v16663_v42 = vld [vmem:[%s23560_s13 + $0x3dc] ss:$44 sps:$4 sm:$0xff]   ;;  %v16666_v19 = vld [vmem:[%s23560_s13 + $0x3e4] ss:$44 sps:$4 sm:$0xff]  }
 0x9ba   :  { %v16661_v61 = vld [vmem:[%s23560_s13 + $0x3d8] ss:$44 sps:$4 sm:$0xff]  }
 0x9bc   :  { %5539 = vmatpush1.bf16.msra.mxu0 %v16589_v22  ;;  %5662 = vmatpush1.bf16.msra.mxu1 %v16592_v6  ;;  %v16664_v22 = vld [vmem:[%s23560_s13 + $0x3e0] ss:$44 sps:$4 sm:$0xff]  }
 0x9bd   :  { %5696 = vmatprep.subr.bf16.mxu0 %v16597_v55  ;;  %5819 = vmatprep.subr.bf16.mxu1 %v16600_v52  ;;  %v16669_v6 = vld [vmem:[%s23560_s13 + $0x434] ss:$44 sps:$4 sm:$0xff]   ;;  %v16667_v55 = vld [vmem:[%s23560_s13 + $0x430] ss:$44 sps:$4 sm:$0xff]   ;;  %v16670_v52 = vld [vmem:[%s23560_s13 + $0x438] ss:$44 sps:$4 sm:$0xff]  }
 0x9bf   :  { %13866 = vmatmul.mubr.msk.bf16.vlgmr.msra.gmra.mrb[40].mxu0 %vm1902_vm6, %v19620_v45  ;;  %13867 = vmatmul.mubr.msk.bf16.vlgmr.msra.gmra.mrb[32].mxu1 %vm1902_vm6, %v19620_v45 }
 0x9c0   :  { %5697 = vmatpush1.bf16.msra.mxu0 %v16595_v59  ;;  %5728 = vmatprep.mubr.bf16.mxu0 %v19355_v23  ;;  %v16675_v59 = vld [vmem:[%s23560_s13 + $0x48c] ss:$44 sps:$4 sm:$0xff]  }
 0x9c1   :  { %5820 = vmatpush1.bf16.msra.mxu1 %v16598_v28  ;;  %5851 = vmatprep.mubr.bf16.mxu1 %v19355_v23  ;;  %v16678_v28 = vld [vmem:[%s23560_s13 + $0x494] ss:$44 sps:$4 sm:$0xff]  }
 0x9c2   :  { %5698 = vmatprep.subr.bf16.mxu0 %v16603_v44  ;;  %5821 = vmatprep.subr.bf16.mxu1 %v16606_v8  ;;  %v16673_v44 = vld [vmem:[%s23560_s13 + $0x488] ss:$44 sps:$4 sm:$0xff]   ;;  %v16676_v8 = vld [vmem:[%s23560_s13 + $0x490] ss:$44 sps:$4 sm:$0xff]  }
 0x9c4   :  { %5699 = vmatpush1.bf16.msra.mxu0 %v16601_v18  ;;  %v16681_v18 = vld [vmem:[%s23560_s13 + $0x4e4] ss:$44 sps:$4 sm:$0xff]  }
 0x9c5   :  { %5822 = vmatpush1.bf16.msra.mxu1 %v16604_v53  ;;  %5700 = vmatprep.subr.bf16.mxu0 %v16609_v25  ;;  %v16684_v53 = vld [vmem:[%s23560_s13 + $0x4ec] ss:$44 sps:$4 sm:$0xff]  }
 0x9c6   :  { %5823 = vmatprep.subr.bf16.mxu1 %v16612_v29  ;;  %v16679_v25 = vld [vmem:[%s23560_s13 + $0x4e0] ss:$44 sps:$4 sm:$0xff]   ;;  %v16682_v29 = vld [vmem:[%s23560_s13 + $0x4e8] ss:$44 sps:$4 sm:$0xff]  }
 0x9c8   :  { %5701 = vmatpush1.bf16.msra.mxu0 %v16607_v11  ;;  %v16687_v11 = vld [vmem:[%s23560_s13 + $0x53c] ss:$44 sps:$4 sm:$0xff]  }
 0x9c9   :  { %5824 = vmatpush1.bf16.msra.mxu1 %v16610_v33  ;;  %5702 = vmatprep.subr.bf16.mxu0 %v16615_v36  ;;  %v16690_v33 = vld [vmem:[%s23560_s13 + $0x544] ss:$44 sps:$4 sm:$0xff]  }
 0x9ca   :  { %5825 = vmatprep.subr.bf16.mxu1 %v16618_v43  ;;  %v16685_v36 = vld [vmem:[%s23560_s13 + $0x538] ss:$44 sps:$4 sm:$0xff]   ;;  %v16688_v43 = vld [vmem:[%s23560_s13 + $0x540] ss:$44 sps:$4 sm:$0xff]  }
 0x9cc   :  { %5703 = vmatpush1.bf16.msra.mxu0 %v16613_v51  ;;  %v16693_v51 = vld [vmem:[%s23560_s13 + $0x594] ss:$44 sps:$4 sm:$0xff]  }
 0x9cd   :  { %5826 = vmatpush1.bf16.msra.mxu1 %v16616_v57  ;;  %5704 = vmatprep.subr.bf16.mxu0 %v16621_v32  ;;  %v16696_v57 = vld [vmem:[%s23560_s13 + $0x59c] ss:$44 sps:$4 sm:$0xff]  }
 0x9ce   :  { %5827 = vmatprep.subr.bf16.mxu1 %v16624_v7  ;;  %v16691_v32 = vld [vmem:[%s23560_s13 + $0x590] ss:$44 sps:$4 sm:$0xff]   ;;  %v16694_v7 = vld [vmem:[%s23560_s13 + $0x598] ss:$44 sps:$4 sm:$0xff]  }
 0x9d0   :  { %5705 = vmatpush1.bf16.msra.mxu0 %v16619_v14  ;;  %v16699_v14 = vld [vmem:[%s23560_s13 + $0x5ec] ss:$44 sps:$4 sm:$0xff]  }
 0x9d1   :  { %5828 = vmatpush1.bf16.msra.mxu1 %v16622_v58  ;;  %5706 = vmatprep.subr.bf16.mxu0 %v16627_v31  ;;  %v16702_v58 = vld [vmem:[%s23560_s13 + $0x5f4] ss:$44 sps:$4 sm:$0xff]  }
 0x9d2   :  { %5829 = vmatprep.subr.bf16.mxu1 %v16630_v37  ;;  %v16697_v31 = vld [vmem:[%s23560_s13 + $0x5e8] ss:$44 sps:$4 sm:$0xff]   ;;  %v16700_v37 = vld [vmem:[%s23560_s13 + $0x5f0] ss:$44 sps:$4 sm:$0xff]  }
 0x9d4   :  { %5707 = vmatpush1.bf16.msra.mxu0 %v16625_v9  ;;  %v16705_v9 = vld [vmem:[%s23560_s13 + $0x644] ss:$44 sps:$4 sm:$0xff]  }
 0x9d5   :  { %5830 = vmatpush1.bf16.msra.mxu1 %v16628_v50  ;;  %5708 = vmatprep.subr.bf16.mxu0 %v16633_v56  ;;  %v16708_v50 = vld [vmem:[%s23560_s13 + $0x64c] ss:$44 sps:$4 sm:$0xff]  }
 0x9d6   :  { %5831 = vmatprep.subr.bf16.mxu1 %v16636_v21  ;;  %v16703_v56 = vld [vmem:[%s23560_s13 + $0x640] ss:$44 sps:$4 sm:$0xff]   ;;  %v16706_v21 = vld [vmem:[%s23560_s13 + $0x648] ss:$44 sps:$4 sm:$0xff]  }
 0x9d8   :  { %5709 = vmatpush1.bf16.msra.mxu0 %v16631_v13  ;;  %v16711_v13 = vld [vmem:[%s23560_s13 + $0x69c] ss:$44 sps:$4 sm:$0xff]  }
 0x9d9   :  { %5832 = vmatpush1.bf16.msra.mxu1 %v16634_v20  ;;  %5710 = vmatprep.subr.bf16.mxu0 %v16639_v47  ;;  %v16714_v20 = vld [vmem:[%s23560_s13 + $0x6a4] ss:$44 sps:$4 sm:$0xff]  }
 0x9da   :  { %5833 = vmatprep.subr.bf16.mxu1 %v16642_v10  ;;  %v16709_v47 = vld [vmem:[%s23560_s13 + $0x698] ss:$44 sps:$4 sm:$0xff]   ;;  %v16712_v10 = vld [vmem:[%s23560_s13 + $0x6a0] ss:$44 sps:$4 sm:$0xff]  }
 0x9dc   :  { %5711 = vmatpush1.bf16.msra.mxu0 %v16637_v2  ;;  %v16717_v2 = vld [vmem:[%s23560_s13 + $0x6f4] ss:$44 sps:$4 sm:$0xff]  }
 0x9dd   :  { %5834 = vmatpush1.bf16.msra.mxu1 %v16640_v46  ;;  %5712 = vmatprep.subr.bf16.mxu0 %v16645_v15  ;;  %v16720_v46 = vld [vmem:[%s23560_s13 + $0x6fc] ss:$44 sps:$4 sm:$0xff]  }
 0x9de   :  { %5835 = vmatprep.subr.bf16.mxu1 %v16648_v24  ;;  %v16715_v15 = vld [vmem:[%s23560_s13 + $0x6f0] ss:$44 sps:$4 sm:$0xff]   ;;  %v16718_v24 = vld [vmem:[%s23560_s13 + $0x6f8] ss:$44 sps:$4 sm:$0xff]  }
 0x9e0   :  { %5713 = vmatpush1.bf16.msra.mxu0 %v16643_v3  ;;  %v16723_v3 = vld [vmem:[%s23560_s13 + $0x74c] ss:$44 sps:$4 sm:$0xff]  }
 0x9e1   :  { %5836 = vmatpush1.bf16.msra.mxu1 %v16646_v30  ;;  %5714 = vmatprep.subr.bf16.mxu0 %v16651_v17  ;;  %v16726_v30 = vld [vmem:[%s23560_s13 + $0x754] ss:$44 sps:$4 sm:$0xff]  }
 0x9e2   :  { %5837 = vmatprep.subr.bf16.mxu1 %v16654_v62  ;;  %v16721_v17 = vld [vmem:[%s23560_s13 + $0x748] ss:$44 sps:$4 sm:$0xff]   ;;  %v16724_v62 = vld [vmem:[%s23560_s13 + $0x750] ss:$44 sps:$4 sm:$0xff]  }
 0x9e4   :  { %5715 = vmatpush1.bf16.msra.mxu0 %v16649_v49  ;;  %v16729_v49 = vld [vmem:[%s23560_s13 + $0x7a4] ss:$44 sps:$4 sm:$0xff]  }
 0x9e5   :  { %5838 = vmatpush1.bf16.msra.mxu1 %v16652_v26  ;;  %5716 = vmatprep.subr.bf16.mxu0 %v16657_v39  ;;  %v16732_v26 = vld [vmem:[%s23560_s13 + $0x7ac] ss:$44 sps:$4 sm:$0xff]  }
 0x9e6   :  { %5839 = vmatprep.subr.bf16.mxu1 %v16660_v38  ;;  %v16727_v39 = vld [vmem:[%s23560_s13 + $0x7a0] ss:$44 sps:$4 sm:$0xff]   ;;  %v16730_v38 = vld [vmem:[%s23560_s13 + $0x7a8] ss:$44 sps:$4 sm:$0xff]  }
 0x9e8   :  { %5717 = vmatpush1.bf16.msra.mxu0 %v16655_v40  ;;  %v16735_v40 = vld [vmem:[%s23560_s13 + $0x7fc] ss:$44 sps:$4 sm:$0xff]  }
 0x9e9   :  { %5840 = vmatpush1.bf16.msra.mxu1 %v16658_v27  ;;  %5718 = vmatprep.subr.bf16.mxu0 %v16663_v42  ;;  %v16738_v27 = vld [vmem:[%s23560_s13 + $0x804] ss:$44 sps:$4 sm:$0xff]  }
 0x9ea   :  { %5841 = vmatprep.subr.bf16.mxu1 %v16666_v19  ;;  %v16733_v42 = vld [vmem:[%s23560_s13 + $0x7f8] ss:$44 sps:$4 sm:$0xff]   ;;  %v16736_v19 = vld [vmem:[%s23560_s13 + $0x800] ss:$44 sps:$4 sm:$0xff]  }
 0x9ec   :  { %5719 = vmatpush1.bf16.msra.mxu0 %v16661_v61  ;;  %v16741_v61 = vld [vmem:[%s23560_s13 + $0x854] ss:$44 sps:$4 sm:$0xff]  }
 0x9ed   :  { %5842 = vmatpush1.bf16.msra.mxu1 %v16664_v22  ;;  %5720 = vmatprep.subr.bf16.mxu0 %v16669_v6  ;;  %v16744_v22 = vld [vmem:[%s23560_s13 + $0x85c] ss:$44 sps:$4 sm:$0xff]  }
 0x9ee   :  { %5843 = vmatprep.subr.bf16.mxu1 %v16672_v16  ;;  %v16739_v6 = vld [vmem:[%s23560_s13 + $0x850] ss:$44 sps:$4 sm:$0xff]   ;;  %v16742_v16 = vld [vmem:[%s23560_s13 + $0x858] ss:$44 sps:$4 sm:$0xff]  }
 0x9f0   :  { %5721 = vmatpush1.bf16.msra.mxu0 %v16667_v55  ;;  %v16747_v55 = vld [vmem:[%s23560_s13 + $0x8ac] ss:$44 sps:$4 sm:$0xff]  }
 0x9f1   :  { %5844 = vmatpush1.bf16.msra.mxu1 %v16670_v52  ;;  %5722 = vmatprep.subr.bf16.mxu0 %v16675_v59  ;;  %v16750_v52 = vld [vmem:[%s23560_s13 + $0x8b4] ss:$44 sps:$4 sm:$0xff]  }
 0x9f2   :  { %5845 = vmatprep.subr.bf16.mxu1 %v16678_v28  ;;  %v16745_v59 = vld [vmem:[%s23560_s13 + $0x8a8] ss:$44 sps:$4 sm:$0xff]   ;;  %v16748_v28 = vld [vmem:[%s23560_s13 + $0x8b0] ss:$44 sps:$4 sm:$0xff]  }
 0x9f4   :  { %5723 = vmatpush1.bf16.msra.mxu0 %v16673_v44  ;;  %v16753_v44 = vld [vmem:[%s23560_s13 + $0x904] ss:$44 sps:$4 sm:$0xff]  }
 0x9f5   :  { %5846 = vmatpush1.bf16.msra.mxu1 %v16676_v8  ;;  %5724 = vmatprep.subr.bf16.mxu0 %v16681_v18  ;;  %v16756_v8 = vld [vmem:[%s23560_s13 + $0x90c] ss:$44 sps:$4 sm:$0xff]  }
 0x9f6   :  { %5847 = vmatprep.subr.bf16.mxu1 %v16684_v53  ;;  %v16751_v18 = vld [vmem:[%s23560_s13 + $0x900] ss:$44 sps:$4 sm:$0xff]   ;;  %v16754_v53 = vld [vmem:[%s23560_s13 + $0x908] ss:$44 sps:$4 sm:$0xff]  }
 0x9f8   :  { %5725 = vmatpush1.bf16.msra.mxu0 %v16679_v25  ;;  %v16759_v25 = vld [vmem:[%s23560_s13 + $0x95c] ss:$44 sps:$4 sm:$0xff]  }
 0x9f9   :  { %5848 = vmatpush1.bf16.msra.mxu1 %v16682_v29  ;;  %5726 = vmatprep.subr.bf16.mxu0 %v16687_v11  ;;  %v16762_v29 = vld [vmem:[%s23560_s13 + $0x964] ss:$44 sps:$4 sm:$0xff]  }
 0x9fa   :  { %5849 = vmatprep.subr.bf16.mxu1 %v16690_v33  ;;  %v16757_v11 = vld [vmem:[%s23560_s13 + $0x958] ss:$44 sps:$4 sm:$0xff]   ;;  %v16760_v33 = vld [vmem:[%s23560_s13 + $0x960] ss:$44 sps:$4 sm:$0xff]  }
 0x9fc   :  { %5727 = vmatpush1.bf16.msra.mxu0 %v16685_v36  ;;  %v16765_v36 = vld [vmem:[%s23560_s13 + $0x9b4] ss:$44 sps:$4 sm:$0xff]  }
 0x9fd   :  { %5850 = vmatpush1.bf16.msra.mxu1 %v16688_v43  ;;  %5737 = vmatprep.subr.bf16.mxu0 %v16693_v51  ;;  %v16768_v43 = vld [vmem:[%s23560_s13 + $0x9bc] ss:$44 sps:$4 sm:$0xff]  }
 0x9fe   :  { %5860 = vmatprep.subr.bf16.mxu1 %v16696_v57  ;;  %v16763_v51 = vld [vmem:[%s23560_s13 + $0x9b0] ss:$44 sps:$4 sm:$0xff]   ;;  %v16766_v57 = vld [vmem:[%s23560_s13 + $0x9b8] ss:$44 sps:$4 sm:$0xff]  }
 0x9ff   :  { %5729 = vmatmul.mubr.bf16.vlgmr.msra.gmra.mrb[44].mxu0 %v19363_v12 }
 0xa00   :  { %5852 = vmatmul.mubr.bf16.vlgmr.msra.gmra.mrb[36].mxu1 %v19363_v12  ;;  %5738 = vmatpush1.bf16.msra.mxu0 %v16691_v32  ;;  %v16771_v32 = vld [vmem:[%s23560_s13 + $0xa0c] ss:$44 sps:$4 sm:$0xff]  }
 0xa01   :  { %5769 = vmatprep.mubr.bf16.mxu0 %v19380_v34  ;;  %5861 = vmatpush1.bf16.msra.mxu1 %v16694_v7  ;;  %v16774_v7 = vld [vmem:[%s23560_s13 + $0xa14] ss:$44 sps:$4 sm:$0xff]  }
 0xa02   :  { %5892 = vmatprep.mubr.bf16.mxu1 %v19380_v34  ;;  %5739 = vmatprep.subr.bf16.mxu0 %v16699_v14  ;;  %v16769_v14 = vld [vmem:[%s23560_s13 + $0xa08] ss:$44 sps:$4 sm:$0xff]  }
 0xa03   :  { %5862 = vmatprep.subr.bf16.mxu1 %v16702_v58  ;;  %v16772_v58 = vld [vmem:[%s23560_s13 + $0xa10] ss:$44 sps:$4 sm:$0xff]  }
 0xa04   :  { %5740 = vmatpush1.bf16.msra.mxu0 %v16697_v31  ;;  %v16777_v31 = vld [vmem:[%s23560_s13 + $0xa64] ss:$44 sps:$4 sm:$0xff]  }
 0xa05   :  { %5863 = vmatpush1.bf16.msra.mxu1 %v16700_v37  ;;  %5741 = vmatprep.subr.bf16.mxu0 %v16705_v9  ;;  %v16780_v37 = vld [vmem:[%s23560_s13 + $0xa6c] ss:$44 sps:$4 sm:$0xff]  }
 0xa06   :  { %5864 = vmatprep.subr.bf16.mxu1 %v16708_v50  ;;  %v16775_v9 = vld [vmem:[%s23560_s13 + $0xa60] ss:$44 sps:$4 sm:$0xff]   ;;  %v16778_v50 = vld [vmem:[%s23560_s13 + $0xa68] ss:$44 sps:$4 sm:$0xff]  }
 0xa08   :  { %5742 = vmatpush1.bf16.msra.mxu0 %v16703_v56  ;;  %v16783_v56 = vld [vmem:[%s23560_s13 + $0xabc] ss:$44 sps:$4 sm:$0xff]  }
 0xa09   :  { %5865 = vmatpush1.bf16.msra.mxu1 %v16706_v21  ;;  %5743 = vmatprep.subr.bf16.mxu0 %v16711_v13  ;;  %v16786_v21 = vld [vmem:[%s23560_s13 + $0xac4] ss:$44 sps:$4 sm:$0xff]  }
 0xa0a   :  { %5866 = vmatprep.subr.bf16.mxu1 %v16714_v20  ;;  %v16781_v13 = vld [vmem:[%s23560_s13 + $0xab8] ss:$44 sps:$4 sm:$0xff]   ;;  %v16784_v20 = vld [vmem:[%s23560_s13 + $0xac0] ss:$44 sps:$4 sm:$0xff]  }
 0xa0c   :  { %5744 = vmatpush1.bf16.msra.mxu0 %v16709_v47  ;;  %v16789_v47 = vld [vmem:[%s23560_s13 + $0xb14] ss:$44 sps:$4 sm:$0xff]  }
 0xa0d   :  { %5867 = vmatpush1.bf16.msra.mxu1 %v16712_v10  ;;  %5745 = vmatprep.subr.bf16.mxu0 %v16717_v2  ;;  %v16792_v10 = vld [vmem:[%s23560_s13 + $0xb1c] ss:$44 sps:$4 sm:$0xff]  }
 0xa0e   :  { %5868 = vmatprep.subr.bf16.mxu1 %v16720_v46  ;;  %v16787_v2 = vld [vmem:[%s23560_s13 + $0xb10] ss:$44 sps:$4 sm:$0xff]   ;;  %v16790_v46 = vld [vmem:[%s23560_s13 + $0xb18] ss:$44 sps:$4 sm:$0xff]  }
 0xa10   :  { %5746 = vmatpush1.bf16.msra.mxu0 %v16715_v15  ;;  %v16795_v15 = vld [vmem:[%s23560_s13 + $0xb6c] ss:$44 sps:$4 sm:$0xff]  }
 0xa11   :  { %5869 = vmatpush1.bf16.msra.mxu1 %v16718_v24  ;;  %5747 = vmatprep.subr.bf16.mxu0 %v16723_v3  ;;  %v16798_v24 = vld [vmem:[%s23560_s13 + $0xb74] ss:$44 sps:$4 sm:$0xff]  }
 0xa12   :  { %5870 = vmatprep.subr.bf16.mxu1 %v16726_v30  ;;  %v16793_v3 = vld [vmem:[%s23560_s13 + $0xb68] ss:$44 sps:$4 sm:$0xff]   ;;  %v16796_v30 = vld [vmem:[%s23560_s13 + $0xb70] ss:$44 sps:$4 sm:$0xff]  }
 0xa14   :  { %5748 = vmatpush1.bf16.msra.mxu0 %v16721_v17  ;;  %v16801_v17 = vld [vmem:[%s23560_s13 + $0xbc4] ss:$44 sps:$4 sm:$0xff]  }
 0xa15   :  { %5871 = vmatpush1.bf16.msra.mxu1 %v16724_v62  ;;  %5749 = vmatprep.subr.bf16.mxu0 %v16729_v49  ;;  %v16804_v62 = vld [vmem:[%s23560_s13 + $0xbcc] ss:$44 sps:$4 sm:$0xff]  }
 0xa16   :  { %5872 = vmatprep.subr.bf16.mxu1 %v16732_v26  ;;  %v16799_v49 = vld [vmem:[%s23560_s13 + $0xbc0] ss:$44 sps:$4 sm:$0xff]   ;;  %v16802_v26 = vld [vmem:[%s23560_s13 + $0xbc8] ss:$44 sps:$4 sm:$0xff]  }
 0xa18   :  { %5750 = vmatpush1.bf16.msra.mxu0 %v16727_v39  ;;  %v16807_v39 = vld [vmem:[%s23560_s13 + $0xc1c] ss:$44 sps:$4 sm:$0xff]  }
 0xa19   :  { %5873 = vmatpush1.bf16.msra.mxu1 %v16730_v38  ;;  %5751 = vmatprep.subr.bf16.mxu0 %v16735_v40  ;;  %v16810_v38 = vld [vmem:[%s23560_s13 + $0xc24] ss:$44 sps:$4 sm:$0xff]  }
 0xa1a   :  { %5874 = vmatprep.subr.bf16.mxu1 %v16738_v27  ;;  %v16805_v40 = vld [vmem:[%s23560_s13 + $0xc18] ss:$44 sps:$4 sm:$0xff]   ;;  %v16808_v27 = vld [vmem:[%s23560_s13 + $0xc20] ss:$44 sps:$4 sm:$0xff]  }
 0xa1c   :  { %5752 = vmatpush1.bf16.msra.mxu0 %v16733_v42  ;;  %v16813_v42 = vld [vmem:[%s23560_s13 + $0x24] ss:$44 sps:$4 sm:$0xff]  }
 0xa1d   :  { %5875 = vmatpush1.bf16.msra.mxu1 %v16736_v19  ;;  %5753 = vmatprep.subr.bf16.mxu0 %v16741_v61  ;;  %v16814_v19 = vld [vmem:[%s23560_s13 + $0x2e8] ss:$44 sps:$4 sm:$0xff]   ;;  %v16811_v61 = vld [vmem:[%s23560_s13 + $0x20] ss:$44 sps:$4 sm:$0xff]  }
 0xa1e   :  { %5876 = vmatprep.subr.bf16.mxu1 %v16744_v22  ;;  %v16815_v22 = vld [vmem:[%s23560_s13 + $0x28] ss:$44 sps:$4 sm:$0xff]  }
 0xa20   :  { %5754 = vmatpush1.bf16.msra.mxu0 %v16739_v6  ;;  %v16818_v6 = vld [vmem:[%s23560_s13 + $0x7c] ss:$44 sps:$4 sm:$0xff]  }
 0xa21   :  { %5877 = vmatpush1.bf16.msra.mxu1 %v16742_v16  ;;  %5755 = vmatprep.subr.bf16.mxu0 %v16747_v55  ;;  %v16819_v16 = vld [vmem:[%s23560_s13 + $0x340] ss:$44 sps:$4 sm:$0xff]   ;;  %v16816_v55 = vld [vmem:[%s23560_s13 + $0x78] ss:$44 sps:$4 sm:$0xff]  }
 0xa22   :  { %5878 = vmatprep.subr.bf16.mxu1 %v16750_v52  ;;  %v16820_v52 = vld [vmem:[%s23560_s13 + $0x80] ss:$44 sps:$4 sm:$0xff]  }
 0xa24   :  { %5756 = vmatpush1.bf16.msra.mxu0 %v16745_v59  ;;  %v16823_v59 = vld [vmem:[%s23560_s13 + $0xd4] ss:$44 sps:$4 sm:$0xff]  }
 0xa25   :  { %5879 = vmatpush1.bf16.msra.mxu1 %v16748_v28  ;;  %5757 = vmatprep.subr.bf16.mxu0 %v16753_v44  ;;  %v16824_v28 = vld [vmem:[%s23560_s13 + $0x398] ss:$44 sps:$4 sm:$0xff]   ;;  %v16821_v44 = vld [vmem:[%s23560_s13 + $0xd0] ss:$44 sps:$4 sm:$0xff]  }
 0xa26   :  { %5880 = vmatprep.subr.bf16.mxu1 %v16756_v8  ;;  %v16825_v8 = vld [vmem:[%s23560_s13 + $0xd8] ss:$44 sps:$4 sm:$0xff]  }
 0xa28   :  { %5758 = vmatpush1.bf16.msra.mxu0 %v16751_v18  ;;  %v16829_v18 = vld [vmem:[%s23560_s13 + $0x3f0] ss:$44 sps:$4 sm:$0xff]  }
 0xa29   :  { %5881 = vmatpush1.bf16.msra.mxu1 %v16754_v53  ;;  %5759 = vmatprep.subr.bf16.mxu0 %v16759_v25  ;;  %v16826_v53 = vld [vmem:[%s23560_s13 + $0x128] ss:$44 sps:$4 sm:$0xff]   ;;  %v16830_v25 = vld [vmem:[%s23560_s13 + $0x130] ss:$44 sps:$4 sm:$0xff]  }
 0xa2a   :  { %5882 = vmatprep.subr.bf16.mxu1 %v16762_v29  ;;  %v16833_v29 = vld [vmem:[%s23560_s13 + $0x184] ss:$44 sps:$4 sm:$0xff]  }
 0xa2c   :  { %5760 = vmatpush1.bf16.msra.mxu0 %v16757_v11  ;;  %v16834_v11 = vld [vmem:[%s23560_s13 + $0x448] ss:$44 sps:$4 sm:$0xff]  }
 0xa2d   :  { %5883 = vmatpush1.bf16.msra.mxu1 %v16760_v33  ;;  %5761 = vmatprep.subr.bf16.mxu0 %v16765_v36  ;;  %v16831_v33 = vld [vmem:[%s23560_s13 + $0x180] ss:$44 sps:$4 sm:$0xff]   ;;  %v16835_v36 = vld [vmem:[%s23560_s13 + $0x188] ss:$44 sps:$4 sm:$0xff]  }
 0xa2e   :  { %5884 = vmatprep.subr.bf16.mxu1 %v16768_v43  ;;  %v16838_v43 = vld [vmem:[%s23560_s13 + $0x1dc] ss:$44 sps:$4 sm:$0xff]  }
 0xa30   :  { %5762 = vmatpush1.bf16.msra.mxu0 %v16763_v51  ;;  %v16839_v51 = vld [vmem:[%s23560_s13 + $0x4a0] ss:$44 sps:$4 sm:$0xff]  }
 0xa31   :  { %5885 = vmatpush1.bf16.msra.mxu1 %v16766_v57  ;;  %5763 = vmatprep.subr.bf16.mxu0 %v16771_v32  ;;  %v16836_v57 = vld [vmem:[%s23560_s13 + $0x1d8] ss:$44 sps:$4 sm:$0xff]   ;;  %v16840_v32 = vld [vmem:[%s23560_s13 + $0x1e0] ss:$44 sps:$4 sm:$0xff]  }
 0xa32   :  { %5886 = vmatprep.subr.bf16.mxu1 %v16774_v7  ;;  %v16843_v7 = vld [vmem:[%s23560_s13 + $0x234] ss:$44 sps:$4 sm:$0xff]  }
 0xa34   :  { %5764 = vmatpush1.bf16.msra.mxu0 %v16769_v14  ;;  %v16844_v14 = vld [vmem:[%s23560_s13 + $0x4f8] ss:$44 sps:$4 sm:$0xff]  }
 0xa35   :  { %5887 = vmatpush1.bf16.msra.mxu1 %v16772_v58  ;;  %5765 = vmatprep.subr.bf16.mxu0 %v16777_v31  ;;  %v16841_v58 = vld [vmem:[%s23560_s13 + $0x230] ss:$44 sps:$4 sm:$0xff]   ;;  %v16845_v31 = vld [vmem:[%s23560_s13 + $0x238] ss:$44 sps:$4 sm:$0xff]  }
 0xa36   :  { %5888 = vmatprep.subr.bf16.mxu1 %v16780_v37  ;;  %v16848_v37 = vld [vmem:[%s23560_s13 + $0x28c] ss:$44 sps:$4 sm:$0xff]  }
 0xa38   :  { %5766 = vmatpush1.bf16.msra.mxu0 %v16775_v9  ;;  %v16849_v9 = vld [vmem:[%s23560_s13 + $0x550] ss:$44 sps:$4 sm:$0xff]  }
 0xa39   :  { %5889 = vmatpush1.bf16.msra.mxu1 %v16778_v50  ;;  %5767 = vmatprep.subr.bf16.mxu0 %v16783_v56  ;;  %v16846_v50 = vld [vmem:[%s23560_s13 + $0x288] ss:$44 sps:$4 sm:$0xff]   ;;  %v16850_v56 = vld [vmem:[%s23560_s13 + $0x290] ss:$44 sps:$4 sm:$0xff]  }
 0xa3a   :  { %5890 = vmatprep.subr.bf16.mxu1 %v16786_v21  ;;  %v16853_v21 = vld [vmem:[%s23560_s13 + $0x2e4] ss:$44 sps:$4 sm:$0xff]  }
 0xa3c   :  { %5768 = vmatpush1.bf16.msra.mxu0 %v16781_v13  ;;  %v16854_v13 = vld [vmem:[%s23560_s13 + $0x868] ss:$44 sps:$4 sm:$0xff]  }
 0xa3d   :  { %5891 = vmatpush1.bf16.msra.mxu1 %v16784_v20  ;;  %5778 = vmatprep.subr.bf16.mxu0 %v16789_v47  ;;  %v16851_v20 = vld [vmem:[%s23560_s13 + $0x2e0] ss:$44 sps:$4 sm:$0xff]   ;;  %v16855_v47 = vld [vmem:[%s23560_s13 + $0x5a8] ss:$44 sps:$4 sm:$0xff]  }
 0xa3e   :  { %5901 = vmatprep.subr.bf16.mxu1 %v16792_v10  ;;  %v16858_v10 = vld [vmem:[%s23560_s13 + $0x33c] ss:$44 sps:$4 sm:$0xff]  }
 0xa3f   :  { %5770 = vmatmul.mubr.bf16.vlgmr.msra.gmra.mrb[44].mxu0 %v19568_v35 }
 0xa40   :  { %5893 = vmatmul.mubr.bf16.vlgmr.msra.gmra.mrb[36].mxu1 %v19568_v35  ;;  %5779 = vmatpush1.bf16.msra.mxu0 %v16787_v2  ;;  %v16859_v2 = vld [vmem:[%s23560_s13 + $0x8c0] ss:$44 sps:$4 sm:$0xff]  }
 0xa41   :  { %5902 = vmatpush1.bf16.msra.mxu1 %v16790_v46  ;;  %5780 = vmatprep.subr.bf16.mxu0 %v16795_v15  ;;  %v16856_v46 = vld [vmem:[%s23560_s13 + $0x338] ss:$44 sps:$4 sm:$0xff]   ;;  %v16860_v15 = vld [vmem:[%s23560_s13 + $0x600] ss:$44 sps:$4 sm:$0xff]  }
 0xa42   :  { %5903 = vmatprep.subr.bf16.mxu1 %v16798_v24  ;;  %5810 = vmatprep.mubr.bf16.mxu0 %v23673_v48  ;;  %v16863_v24 = vld [vmem:[%s23560_s13 + $0x394] ss:$44 sps:$4 sm:$0xff]  }
 0xa43   :  { %5933 = vmatprep.mubr.bf16.mxu1 %v23673_v48 }
 0xa44   :  { %5781 = vmatpush1.bf16.msra.mxu0 %v16793_v3  ;;  %v16864_v3 = vld [vmem:[%s23560_s13 + $0x918] ss:$44 sps:$4 sm:$0xff]  }
 0xa45   :  { %5904 = vmatpush1.bf16.msra.mxu1 %v16796_v30  ;;  %5782 = vmatprep.subr.bf16.mxu0 %v16801_v17  ;;  %v16861_v30 = vld [vmem:[%s23560_s13 + $0x390] ss:$44 sps:$4 sm:$0xff]   ;;  %v16865_v17 = vld [vmem:[%s23560_s13 + $0x658] ss:$44 sps:$4 sm:$0xff]  }
 0xa46   :  { %5905 = vmatprep.subr.bf16.mxu1 %v16804_v62  ;;  %v16868_v62 = vld [vmem:[%s23560_s13 + $0x3ec] ss:$44 sps:$4 sm:$0xff]  }
 0xa48   :  { %5783 = vmatpush1.bf16.msra.mxu0 %v16799_v49  ;;  %v16869_v49 = vld [vmem:[%s23560_s13 + $0x970] ss:$44 sps:$4 sm:$0xff]  }
 0xa49   :  { %5906 = vmatpush1.bf16.msra.mxu1 %v16802_v26  ;;  %5784 = vmatprep.subr.bf16.mxu0 %v16807_v39  ;;  %v16866_v26 = vld [vmem:[%s23560_s13 + $0x3e8] ss:$44 sps:$4 sm:$0xff]   ;;  %v16870_v39 = vld [vmem:[%s23560_s13 + $0x6b0] ss:$44 sps:$4 sm:$0xff]  }
 0xa4a   :  { %5907 = vmatprep.subr.bf16.mxu1 %v16810_v38  ;;  %v16873_v38 = vld [vmem:[%s23560_s13 + $0x444] ss:$44 sps:$4 sm:$0xff]  }
 0xa4c   :  { %5785 = vmatpush1.bf16.msra.mxu0 %v16805_v40  ;;  %v16874_v40 = vld [vmem:[%s23560_s13 + $0x9c8] ss:$44 sps:$4 sm:$0xff]  }
 0xa4d   :  { %5908 = vmatpush1.bf16.msra.mxu1 %v16808_v27  ;;  %5942 = vmatprep.subr.bf16.mxu0 %v16813_v42  ;;  %v16871_v27 = vld [vmem:[%s23560_s13 + $0x440] ss:$44 sps:$4 sm:$0xff]   ;;  %v16875_v42 = vld [vmem:[%s23560_s13 + $0x708] ss:$44 sps:$4 sm:$0xff]  }
 0xa4e   :  { %14769 = vmatprep.subr.bf16.mxu1 %v16814_v19  ;;  %v16878_v19 = vld [vmem:[%s23560_s13 + $0x49c] ss:$44 sps:$4 sm:$0xff]  }
 0xa4f   :  { %13868 = vmatmul.mubr.msk.bf16.vlgmr.msra.gmra.mrb[44].mxu0 %vm1902_vm6, %v19620_v45 }
 0xa50   :  { %13869 = vmatmul.mubr.msk.bf16.vlgmr.msra.gmra.mrb[36].mxu1 %vm1902_vm6, %v19620_v45  ;;  %5943 = vmatpush1.bf16.msra.mxu0 %v16811_v61  ;;  %v16879_v61 = vld [vmem:[%s23560_s13 + $0xa20] ss:$44 sps:$4 sm:$0xff]  }
 0xa51   :  { %5974 = vmatprep.mubr.bf16.mxu0 %v19355_v23  ;;  %14770 = vmatpush3.bf16.msra.mxu1 %v16815_v22  ;;  %v16876_v22 = vld [vmem:[%s23560_s13 + $0x498] ss:$44 sps:$4 sm:$0xff]  }
 0xa52   :  { %6097 = vmatprep.mubr.bf16.mxu1 %v19355_v23  ;;  %5944 = vmatprep.subr.bf16.mxu0 %v16818_v6  ;;  %v16828_v23 = vld [vmem:[%s23560_s13 + $0x12c] ss:$44 sps:$4 sm:$0xff]  }
 0xa53   :  { %14771 = vmatprep.subr.bf16.mxu1 %v16819_v16  ;;  %v16880_v6 = vld [vmem:[%s23560_s13 + $0x760] ss:$44 sps:$4 sm:$0xff]  }
 0xa54   :  { %5945 = vmatpush1.bf16.msra.mxu0 %v16816_v55  ;;  %v16883_v16 = vld [vmem:[%s23560_s13 + $0x4f4] ss:$44 sps:$4 sm:$0xff]   ;;  %v16884_v55 = vld [vmem:[%s23560_s13 + $0xa78] ss:$44 sps:$4 sm:$0xff]  }
 0xa55   :  { %14772 = vmatpush3.bf16.msra.mxu1 %v16820_v52  ;;  %5946 = vmatprep.subr.bf16.mxu0 %v16823_v59  ;;  %v16881_v52 = vld [vmem:[%s23560_s13 + $0x4f0] ss:$44 sps:$4 sm:$0xff]   ;;  %v16885_v59 = vld [vmem:[%s23560_s13 + $0x7b8] ss:$44 sps:$4 sm:$0xff]  }
 0xa56   :  { %14773 = vmatprep.subr.bf16.mxu1 %v16824_v28  ;;  %v16888_v28 = vld [vmem:[%s23560_s13 + $0x54c] ss:$44 sps:$4 sm:$0xff]  }
 0xa58   :  { %5947 = vmatpush1.bf16.msra.mxu0 %v16821_v44  ;;  %v16889_v44 = vld [vmem:[%s23560_s13 + $0xad0] ss:$44 sps:$4 sm:$0xff]  }
 0xa59   :  { %14774 = vmatpush3.bf16.msra.mxu1 %v16825_v8  ;;  %5948 = vmatprep.subr.bf16.mxu0 %v16828_v23  ;;  %v16886_v8 = vld [vmem:[%s23560_s13 + $0x548] ss:$44 sps:$4 sm:$0xff]   ;;  %v16890_v23 = vld [vmem:[%s23560_s13 + $0x810] ss:$44 sps:$4 sm:$0xff]  }
 0xa5a   :  { %14775 = vmatprep.subr.bf16.mxu1 %v16829_v18  ;;  %v16893_v18 = vld [vmem:[%s23560_s13 + $0x5a4] ss:$44 sps:$4 sm:$0xff]  }
 0xa5c   :  { %5949 = vmatpush1.bf16.msra.mxu0 %v16826_v53  ;;  %v16891_v53 = vld [vmem:[%s23560_s13 + $0x5a0] ss:$44 sps:$4 sm:$0xff]  }
 0xa5d   :  { %14776 = vmatpush3.bf16.msra.mxu1 %v16830_v25  ;;  %5950 = vmatprep.subr.bf16.mxu0 %v16833_v29  ;;  %v16894_v25 = vld [vmem:[%s23560_s13 + $0xb28] ss:$44 sps:$4 sm:$0xff]   ;;  %v20271_v29 = vld [vmem:[%s23563_s14] sm:$0xff] }
 0xa5e   :  { %14777 = vmatprep.subr.bf16.mxu1 %v16834_v11  ;;  %v16897_v11 = vld [vmem:[%s23560_s13 + $0x5fc] ss:$44 sps:$4 sm:$0xff]  }
 0xa60   :  { %5951 = vmatpush1.bf16.msra.mxu0 %v16831_v33  ;;  %v3383_v33 = vrot.slane %v20271_v29, %v18172_v5 }
 0xa61   :  { %14778 = vmatpush3.bf16.msra.mxu1 %v16835_v36  ;;  %5952 = vmatprep.subr.bf16.mxu0 %v16838_v43  ;;  %v16895_v36 = vld [vmem:[%s23560_s13 + $0x5f8] ss:$44 sps:$4 sm:$0xff]   ;;  %v16898_v43 = vld [vmem:[%s23560_s13 + $0xb80] ss:$44 sps:$4 sm:$0xff]  }
 0xa62   :  { %14779 = vmatprep.subr.bf16.mxu1 %v16839_v51 }
 0xa64   :  { %5953 = vmatpush1.bf16.msra.mxu0 %v16836_v57 }
 0xa65   :  { %14780 = vmatpush3.bf16.msra.mxu1 %v16840_v32  ;;  %5954 = vmatprep.subr.bf16.mxu0 %v16843_v7 }
 0xa66   :  { %14781 = vmatprep.subr.bf16.mxu1 %v16844_v14 }
 0xa68   :  { %5955 = vmatpush1.bf16.msra.mxu0 %v16841_v58 }
 0xa69   :  { %14782 = vmatpush3.bf16.msra.mxu1 %v16845_v31  ;;  %5956 = vmatprep.subr.bf16.mxu0 %v16848_v37  ;;  %v16899_v31 = vld [vmem:[%s23560_s13 + $0x650] ss:$44 sps:$4 sm:$0xff]  }
 0xa6a   :  { %14783 = vmatprep.subr.bf16.mxu1 %v16849_v9 }
 0xa6c   :  { %5957 = vmatpush1.bf16.msra.mxu0 %v16846_v50  ;;  %v16902_v50 = vld [vmem:[%s23560_s13 + $0xbd8] ss:$44 sps:$4 sm:$0xff]  }
 0xa6d   :  { %14784 = vmatpush3.bf16.msra.mxu1 %v16850_v56  ;;  %5958 = vmatprep.subr.bf16.mxu0 %v16853_v21  ;;  %v16905_v56 = vld [vmem:[%s23560_s13 + $0x6ac] ss:$44 sps:$4 sm:$0xff]  }
 0xa6e   :  { %14791 = vmatprep.subr.bf16.mxu1 %v16854_v13 }
 0xa70   :  { %6098 = vmatmul.mubr.bf16.vlgmr.msra.gmra.mrb[40].mxu1 %v19363_v12  ;;  %5959 = vmatpush1.bf16.msra.mxu0 %v16851_v20  ;;  %v6279_v20 = vld [vmem:[%s23564_s17 + $0x80] sm:$0xff] }
 0xa71   :  { %14792 = vmatpush3.bf16.msra.mxu1 %v16855_v47  ;;  %6137 = vmatprep.mubr.bf16.mxu1 %v19380_v34  ;;  %v6280_v47 = vld [vmem:[%s23564_s17 + $0x88] sm:$0xff] }
 0xa72   :  { %5960 = vmatprep.subr.bf16.mxu0 %v16858_v10  ;;  %14793 = vmatprep.subr.bf16.mxu1 %v16859_v2  ;;  %v16903_v10 = vld [vmem:[%s23560_s13 + $0x6a8] ss:$44 sps:$4 sm:$0xff]  }
 0xa74   :  { %5961 = vmatpush1.bf16.msra.mxu0 %v16856_v46  ;;  %v16906_v46 = vld [vmem:[%s23560_s13 + $0xc30] ss:$44 sps:$4 sm:$0xff]  }
 0xa75   :  { %14794 = vmatpush3.bf16.msra.mxu1 %v16860_v15  ;;  %5962 = vmatprep.subr.bf16.mxu0 %v16863_v24  ;;  %v16909_v15 = vld [vmem:[%s23560_s13 + $0x704] ss:$44 sps:$4 sm:$0xff]   ;;  %v20330_v24 = vpack.c.bf16 %v6280_v47, %v6279_v20  ;;  %v6272_v47 = vld [vmem:[%s23564_s17 + $0x48] sm:$0xff] }
 0xa76   :  { %14795 = vmatprep.subr.bf16.mxu1 %v16864_v3  ;;  %v6263_v3 = vld [vmem:[%s23564_s17] sm:$0xff] }
 0xa77   :  { %v6271_v20 = vld [vmem:[%s23564_s17 + $0x40] sm:$0xff] }
 0xa78   :  { %5963 = vmatpush1.bf16.msra.mxu0 %v16861_v30  ;;  %v6264_v30 = vld [vmem:[%s23564_s17 + $0x8] sm:$0xff] }
 0xa79   :  { %14796 = vmatpush3.bf16.msra.mxu1 %v16865_v17  ;;  %5964 = vmatprep.subr.bf16.mxu0 %v16868_v62  ;;  %v6281_v62 = vld [vmem:[%s23564_s17 + $0x90] sm:$0xff] }
 0xa7a   :  { %14797 = vmatprep.subr.bf16.mxu1 %v16869_v49  ;;  %v6282_v49 = vld [vmem:[%s23564_s17 + $0x98] sm:$0xff] }
 0xa7c   :  { %5965 = vmatpush1.bf16.msra.mxu0 %v16866_v26  ;;  %v16907_v26 = vld [vmem:[%s23560_s13 + $0x700] ss:$44 sps:$4 sm:$0xff]  }
 0xa7d   :  { %14798 = vmatpush3.bf16.msra.mxu1 %v16870_v39  ;;  %5966 = vmatprep.subr.bf16.mxu0 %v16873_v38  ;;  %v20347_v38 = vpack.c.bf16 %v6264_v30, %v6263_v3  ;;  %v20459_v3 = vpack.c.bf16 %v6272_v47, %v6271_v20  ;;  %v16924_v30 = vld [vmem:[%s23560_s13 + $0x8bc] ss:$44 sps:$4 sm:$0xff]   ;;  %v6295_v47 = vld [vmem:[%s23564_s17 + $0x100] sm:$0xff] }
 0xa7e   :  { %14799 = vmatprep.subr.bf16.mxu1 %v16874_v40  ;;  %v16912_v40 = vld [vmem:[%s23560_s13 + $0x75c] ss:$44 sps:$4 sm:$0xff]  }
 0xa80   :  { %5967 = vmatpush1.bf16.msra.mxu0 %v16871_v27  ;;  %v20353_v27 = vpack.c.bf16 %v6282_v49, %v6281_v62  ;;  %v6273_v49 = vld [vmem:[%s23564_s17 + $0x50] sm:$0xff] }
 0xa81   :  { %14800 = vmatpush3.bf16.msra.mxu1 %v16875_v42  ;;  %5968 = vmatprep.subr.bf16.mxu0 %v16878_v19  ;;  %v6265_v42 = vld [vmem:[%s23564_s17 + $0x10] sm:$0xff]  ;;  %v6266_v19 = vld [vmem:[%s23564_s17 + $0x18] sm:$0xff] }
 0xa82   :  { %14801 = vmatprep.subr.bf16.mxu1 %v16879_v61  ;;  %v3379_v61 = vrot.slane %v20271_v29, %v18169_v4 }
 0xa84   :  { %5969 = vmatpush1.bf16.msra.mxu0 %v16876_v22 }
 0xa85   :  { %14802 = vmatpush3.bf16.msra.mxu1 %v16880_v6  ;;  %5970 = vmatprep.subr.bf16.mxu0 %v16883_v16  ;;  %v6283_v6 = vld [vmem:[%s23564_s17 + $0xa0] sm:$0xff]  ;;  %v6284_v16 = vld [vmem:[%s23564_s17 + $0xa8] sm:$0xff] }
 0xa86   :  { %14803 = vmatprep.subr.bf16.mxu1 %v16884_v55  ;;  %v3391_v55 = vrot.slane %v20271_v29, %v18920_v60 }
 0xa88   :  { %5971 = vmatpush1.bf16.msra.mxu0 %v16881_v52  ;;  %v16910_v52 = vld [vmem:[%s23560_s13 + $0x758] ss:$44 sps:$4 sm:$0xff]  }
 0xa89   :  { %14804 = vmatpush3.bf16.msra.mxu1 %v16885_v59  ;;  %5972 = vmatprep.subr.bf16.mxu0 %v16888_v28  ;;  %v20377_v28 = vpack.c.bf16 %v6266_v19, %v6265_v42  ;;  %v6292_v42 = vld [vmem:[%s23564_s17 + $0xe8] sm:$0xff]  ;;  %v16922_v19 = vld [vmem:[%s23560_s13 + $0x8b8] ss:$44 sps:$4 sm:$0xff]  }
 0xa8a   :  { %14805 = vmatprep.subr.bf16.mxu1 %v16889_v44  ;;  %v16915_v44 = vld [vmem:[%s23560_s13 + $0x7b4] ss:$44 sps:$4 sm:$0xff]  }
 0xa8c   :  { %5973 = vmatpush1.bf16.msra.mxu0 %v16886_v8  ;;  %v20383_v8 = vpack.c.bf16 %v6284_v16, %v6283_v6 }
 0xa8d   :  { %14806 = vmatpush3.bf16.msra.mxu1 %v16890_v23  ;;  %5983 = vmatprep.subr.bf16.mxu0 %v16893_v18  ;;  %v6267_v23 = vld [vmem:[%s23564_s17 + $0x20] sm:$0xff]  ;;  %v6268_v18 = vld [vmem:[%s23564_s17 + $0x28] sm:$0xff] }
 0xa8e   :  { %15418 = vmatprep.subr.bf16.mxu1 %v23671_v41 }
 0xa8f   :  { %5975 = vmatmul.mubr.bf16.vlgmr.msra.gmra.mrb[48].mxu0 %v19363_v12  ;;  %v16901_v12 = vld [vmem:[%s23560_s13 + $0x654] ss:$44 sps:$4 sm:$0xff]  }
 0xa90   :  { %6138 = vmatmul.mubr.bf16.vlgmr.msra.gmra.mrb[44].mxu1 %v19568_v35  ;;  %5984 = vmatpush1.bf16.msra.mxu0 %v16891_v53 }
 0xa91   :  { %6015 = vmatprep.mubr.bf16.mxu0 %v19380_v34  ;;  %15419 = vmatpush3.bf16.msra.mxu1 %v16894_v25  ;;  %v6285_v25 = vld [vmem:[%s23564_s17 + $0xb0] sm:$0xff] }
 0xa92   :  { %v20291_v51 = vpop.f32.mrb[40].mxu0  ;;  %v20293_v57 = vpop.f32.mrb[32].mxu1  ;;  %5985 = vmatprep.subr.bf16.mxu0 %v16897_v11  ;;  %15420 = vmatprep.subr.bf16.mxu1 %v23671_v41  ;;  %v6286_v11 = vld [vmem:[%s23564_s17 + $0xb8] sm:$0xff] }
 0xa93   :  { %v5568_v32 = vpop.f32.mrb[41].mxu0  ;;  %v20296_v7 = vpop.f32.mrb[33].mxu1  ;;  %15426 = vmatprep.mubr.msk.bf16.mxu1 %vm17861_vm0, %v23671_v41  ;;  %v20392_v53 = vadd.f32 %v20291_v51, %v3379_v61  ;;  %v20413_v51 = vpack.c.bf16 %v6286_v11, %v6285_v25  ;;  %v16930_v11 = vld [vmem:[%s23560_s13 + $0x96c] ss:$44 sps:$4 sm:$0xff]  }
 0xa94   :  { %v20300_v34 = vadd.f32 %v5568_v32, %v3383_v33  ;;  %v5570_v14 = vpop.f32.mrb[42].mxu0  ;;  %v5693_v58 = vpop.f32.mrb[34].mxu1  ;;  %5986 = vmatpush1.bf16.msra.mxu0 %v16895_v36  ;;  %v20401_v33 = vadd.f32 %v20296_v7, %v3391_v55  ;;  %v16913_v36 = vld [vmem:[%s23560_s13 + $0x7b0] ss:$44 sps:$4 sm:$0xff]   ;;  %v6275_v55 = vld [vmem:[%s23564_s17 + $0x60] sm:$0xff] }
 0xa95   :  { %15421 = vmatpush3.bf16.msra.mxu1 %v16898_v43  ;;  %v5571_v37 = vpop.f32.mrb[43].mxu0  ;;  %v5694_v9 = vpop.f32.mrb[35].mxu1  ;;  %5987 = vmatprep.subr.bf16.mxu0 %v16901_v12  ;;  %v20407_v43 = vpack.c.bf16 %v6268_v18, %v6267_v23  ;;  %v16918_v12 = vld [vmem:[%s23560_s13 + $0x80c] ss:$44 sps:$4 sm:$0xff]   ;;  %v6269_v32 = vld [vmem:[%s23564_s17 + $0x30] sm:$0xff]  ;;  %v6185_v14 = vsel %vm193_vm3, %v20392_v53, 0.0 }
 0xa96   :  { %v6192_v21 = vsel %vm193_vm3, %v20300_v34, 0.0  ;;  %15422 = vmatprep.subr.bf16.mxu1 %v23671_v41  ;;  %23674 = vst [vmem:[#allocation7_spill] sm:$0xff] %v20401_v33  ;;  %v6270_v7 = vld [vmem:[%s23564_s17 + $0x38] sm:$0xff]  ;;  %v6287_v58 = vld [vmem:[%s23564_s17 + $0xc0] sm:$0xff]  ;;  %v6206_v37 = vsel %vm193_vm3, %v20401_v33, 0.0 }
 0xa97   :  { %v6193_v13 = vrot.slane %v6192_v21, 4  ;;  %v16916_v9 = vld [vmem:[%s23560_s13 + $0x808] ss:$44 sps:$4 sm:$0xff]   ;;  %v6294_v23 = vld [vmem:[%s23564_s17 + $0xf8] sm:$0xff] }
 0xa98   :  { %5988 = vmatpush1.bf16.msra.mxu0 %v16899_v31  ;;  %v6288_v31 = vld [vmem:[%s23564_s17 + $0xc8] sm:$0xff]  ;;  %v16925_v18 = vld [vmem:[%s23560_s13 + $0x910] ss:$44 sps:$4 sm:$0xff]  }
 0xa99   :  { %v6194_v2 = vadd.f32 %v6193_v13, %v6192_v21  ;;  %15423 = vmatpush3.bf16.msra.mxu1 %v16902_v50  ;;  %5989 = vmatprep.subr.bf16.mxu0 %v16905_v56  ;;  %v20435_v50 = vpack.c.bf16 %v6270_v7, %v6269_v32  ;;  %v16921_v56 = vld [vmem:[%s23560_s13 + $0x864] ss:$44 sps:$4 sm:$0xff]   ;;  %v6186_v21 = vrot.slane %v6185_v14, 4  ;;  %v20441_v13 = vpack.c.bf16 %v6288_v31, %v6287_v58  ;;  %v6278_v7 = vld [vmem:[%s23564_s17 + $0x78] sm:$0xff]  ;;  %v6312_v31 = vld [vmem:[%s23564_s17 + $0x188] sm:$0xff] }
 0xa9a   :  { %15424 = vmatprep.subr.bf16.mxu1 %v23671_v41  ;;  %v6277_v32 = vld [vmem:[%s23564_s17 + $0x70] sm:$0xff]  ;;  %v6311_v58 = vld [vmem:[%s23564_s17 + $0x180] sm:$0xff] }
 0xa9b   :  { %v6195_v17 = vrot.slane %v6194_v2, 2  ;;  %v20537_v20 = vpack.c.bf16 %v6312_v31, %v6311_v58 }
 0xa9c   :  { %5990 = vmatpush1.bf16.msra.mxu0 %v16903_v10  ;;  %v6207_v10 = vrot.slane %v6206_v37, 4 }
 0xa9d   :  { %v6196_v39 = vadd.f32 %v6195_v17, %v6194_v2  ;;  %15425 = vmatpush3.bf16.msra.mxu1 %v16906_v46  ;;  %5991 = vmatprep.subr.bf16.mxu0 %v16909_v15  ;;  %v6289_v2 = vld [vmem:[%s23564_s17 + $0xd0] sm:$0xff]  ;;  %v6290_v46 = vld [vmem:[%s23564_s17 + $0xd8] sm:$0xff]  ;;  %v16919_v15 = vld [vmem:[%s23560_s13 + $0x860] ss:$44 sps:$4 sm:$0xff]   ;;  %v6187_v17 = vadd.f32 %v6186_v21, %v6185_v14 }
 0xa9e   :  { %15775 = vmatprep.subr.bf16.mxu1 %v20330_v24  ;;  %v20465_v62 = vpack.c.bf16 %v6290_v46, %v6289_v2  ;;  %v6313_v46 = vld [vmem:[%s23564_s17 + $0x190] sm:$0xff] }
 0xa9f   :  { %v6197_v22 = vrot.slane %v6196_v39, 1  ;;  %v6188_v6 = vrot.slane %v6187_v17, 2 }
 0xaa0   :  { %15427 = vmatmul.mubr.msk.bf16.vlgmr.msra.gmra.mrb[48].mxu1 %vm1902_vm6, %v19620_v45  ;;  %5992 = vmatpush1.bf16.msra.mxu0 %v16907_v26  ;;  %v6274_v26 = vld [vmem:[%s23564_s17 + $0x58] sm:$0xff] }
 0xaa1   :  { %15777 = vmatpush3.bf16.msra.mxu1 %v20347_v38  ;;  %5993 = vmatprep.subr.bf16.mxu0 %v16912_v40  ;;  %v6198_v59 = vadd.f32 %v6197_v22, %v6196_v39  ;;  %v6208_v39 = vadd.f32 %v6207_v10, %v6206_v37  ;;  %v6291_v40 = vld [vmem:[%s23564_s17 + $0xe0] sm:$0xff]  ;;  %v20483_v61 = vpack.c.bf16 %v6274_v26, %v6273_v49  ;;  %v16928_v37 = vld [vmem:[%s23560_s13 + $0x968] ss:$44 sps:$4 sm:$0xff]  }
 0xaa2   :  { %15779 = vmatprep.subr.bf16.mxu1 %v20353_v27  ;;  %v16927_v22 = vld [vmem:[%s23560_s13 + $0x914] ss:$44 sps:$4 sm:$0xff]   ;;  %v20489_v16 = vpack.c.bf16 %v6292_v42, %v6291_v40  ;;  %v6296_v10 = vld [vmem:[%s23564_s17 + $0x108] sm:$0xff]  ;;  %v6298_v42 = vld [vmem:[%s23564_s17 + $0x118] sm:$0xff] }
 0xaa3   :  { %6500 = vmatprep.mubr.f32.mxu1 %v6198_v59  ;;  %v6209_v59 = vrot.slane %v6208_v39, 2  ;;  %v16936_v26 = vld [vmem:[%s23560_s13 + $0xa1c] ss:$44 sps:$4 sm:$0xff]   ;;  %v6297_v40 = vld [vmem:[%s23564_s17 + $0x110] sm:$0xff] }
 0xaa4   :  { %5994 = vmatpush1.bf16.msra.mxu0 %v16910_v52  ;;  %v6276_v52 = vld [vmem:[%s23564_s17 + $0x68] sm:$0xff] }
 0xaa5   :  { %15781 = vmatpush3.bf16.msra.mxu1 %v20377_v28  ;;  %5995 = vmatprep.subr.bf16.mxu0 %v16915_v44  ;;  %v6293_v44 = vld [vmem:[%s23564_s17 + $0xf0] sm:$0xff]  ;;  %v20507_v25 = vpack.c.bf16 %v6276_v52, %v6275_v55  ;;  %v6210_v14 = vadd.f32 %v6209_v59, %v6208_v39  ;;  %v6316_v55 = vld [vmem:[%s23564_s17 + $0x1a8] sm:$0xff]  ;;  %v16934_v52 = vld [vmem:[%s23560_s13 + $0xa18] ss:$44 sps:$4 sm:$0xff]   ;;  %v20581_v59 = vpack.c.bf16 %v6298_v42, %v6297_v40 }
 0xaa6   :  { %15783 = vmatprep.subr.bf16.mxu1 %v20383_v8  ;;  %v6304_v40 = vld [vmem:[%s23564_s17 + $0x148] sm:$0xff]  ;;  %v6321_v42 = vld [vmem:[%s23564_s17 + $0x1d0] sm:$0xff] }
 0xaa7   :  { %v6211_v2 = vrot.slane %v6210_v14, 1 }
 0xaa8   :  { %5996 = vmatpush1.bf16.msra.mxu0 %v16913_v36  ;;  %v6189_v36 = vadd.f32 %v6188_v6, %v6187_v17  ;;  %v20555_v17 = vpack.c.bf16 %v6296_v10, %v6295_v47  ;;  %v6315_v6 = vld [vmem:[%s23564_s17 + $0x1a0] sm:$0xff]  ;;  %v6320_v10 = vld [vmem:[%s23564_s17 + $0x1c8] sm:$0xff] }
 0xaa9   :  { %15785 = vmatpush3.bf16.msra.mxu1 %v20407_v43  ;;  %5997 = vmatprep.subr.bf16.mxu0 %v16918_v12  ;;  %v20513_v12 = vpack.c.bf16 %v6294_v23, %v6293_v44  ;;  %v16939_v44 = vld [vmem:[%s23560_s13 + $0xa74] ss:$44 sps:$4 sm:$0xff]   ;;  %v20587_v23 = vpack.c.bf16 %v6316_v55, %v6315_v6  ;;  %v16948_v55 = vld [vmem:[%s23560_s13 + $0xb7c] ss:$44 sps:$4 sm:$0xff]  }
 0xaaa   :  { %15787 = vmatprep.subr.bf16.mxu1 %v20413_v51  ;;  %v6190_v21 = vrot.slane %v6189_v36, 1  ;;  %v6319_v47 = vld [vmem:[%s23564_s17 + $0x1c0] sm:$0xff] }
 0xaac   :  { %5998 = vmatpush1.bf16.msra.mxu0 %v16916_v9  ;;  %v20531_v9 = vpack.c.bf16 %v6278_v7, %v6277_v32  ;;  %v6191_v49 = vadd.f32 %v6190_v21, %v6189_v36  ;;  %v6317_v32 = vld [vmem:[%s23564_s17 + $0x1b0] sm:$0xff]  ;;  %v6318_v7 = vld [vmem:[%s23564_s17 + $0x1b8] sm:$0xff] }
 0xaad   :  { %15789 = vmatpush3.bf16.msra.mxu1 %v20435_v50  ;;  %5999 = vmatprep.subr.bf16.mxu0 %v16921_v56  ;;  %v16933_v56 = vld [vmem:[%s23560_s13 + $0x9c4] ss:$44 sps:$4 sm:$0xff]   ;;  %v20614_v31 = vpack.c.bf16 %v6318_v7, %v6317_v32  ;;  %v6324_v7 = vld [vmem:[%s23564_s17 + $0x1e8] sm:$0xff] }
 0xaae   :  { %15791 = vmatprep.subr.bf16.mxu1 %v20441_v13  ;;  %v6323_v32 = vld [vmem:[%s23564_s17 + $0x1e0] sm:$0xff] }
 0xab0   :  { %6000 = vmatpush1.bf16.msra.mxu0 %v16919_v15  ;;  %v6314_v15 = vld [vmem:[%s23564_s17 + $0x198] sm:$0xff] }
 0xab1   :  { %15793 = vmatpush3.bf16.msra.mxu1 %v20459_v3  ;;  %6001 = vmatprep.subr.bf16.mxu0 %v16924_v30  ;;  %v16931_v30 = vld [vmem:[%s23560_s13 + $0x9c0] ss:$44 sps:$4 sm:$0xff]   ;;  %v20561_v39 = vpack.c.bf16 %v6314_v15, %v6313_v46  ;;  %v16945_v15 = vld [vmem:[%s23560_s13 + $0xb24] ss:$44 sps:$4 sm:$0xff]  }
 0xab2   :  { %15795 = vmatprep.subr.bf16.mxu1 %v20465_v62 }
 0xab4   :  { %6002 = vmatpush1.bf16.msra.mxu0 %v16922_v19  ;;  %v3387_v19 = vrot.slane %v20271_v29, %v18163_v1 }
 0xab5   :  { %15797 = vmatpush3.bf16.msra.mxu1 %v20483_v61  ;;  %6003 = vmatprep.subr.bf16.mxu0 %v16927_v22  ;;  %v6212_v22 = vadd.f32 %v6211_v2, %v6210_v14  ;;  %v16937_v14 = vld [vmem:[%s23560_s13 + $0xa70] ss:$44 sps:$4 sm:$0xff]   ;;  %v16940_v2 = vld [vmem:[%s23560_s13 + $0xac8] ss:$44 sps:$4 sm:$0xff]  }
 0xab6   :  { %15799 = vmatprep.subr.bf16.mxu1 %v20489_v16  ;;  %v20596_v36 = vadd.f32 %v20293_v57, %v3387_v19  ;;  %v16942_v57 = vld [vmem:[%s23560_s13 + $0xacc] ss:$44 sps:$4 sm:$0xff]  }
 0xab7   :  { %v6322_v19 = vld [vmem:[%s23564_s17 + $0x1d8] sm:$0xff] }
 0xab8   :  { %6004 = vmatpush1.bf16.msra.mxu0 %v16925_v18  ;;  %v6299_v18 = vld [vmem:[%s23564_s17 + $0x120] sm:$0xff]  ;;  %23675 = vst [vmem:[#allocation8_spill] sm:$0xff] %v20596_v36  ;;  %v6199_v21 = vsel %vm193_vm3, %v20596_v36, 0.0 }
 0xab9   :  { %15801 = vmatpush3.bf16.msra.mxu1 %v20507_v25  ;;  %6005 = vmatprep.subr.bf16.mxu0 %v16930_v11  ;;  %v6300_v11 = vld [vmem:[%s23564_s17 + $0x128] sm:$0xff] }
 0xaba   :  { %15803 = vmatprep.subr.bf16.mxu1 %v20513_v12  ;;  %v20608_v58 = vpack.c.bf16 %v6300_v11, %v6299_v18  ;;  %v6305_v18 = vld [vmem:[%s23564_s17 + $0x150] sm:$0xff]  ;;  %v6306_v11 = vld [vmem:[%s23564_s17 + $0x158] sm:$0xff] }
 0xabc   :  { %6006 = vmatpush1.bf16.msra.mxu0 %v16928_v37  ;;  %v6301_v37 = vld [vmem:[%s23564_s17 + $0x130] sm:$0xff] }
 0xabd   :  { %15805 = vmatpush3.bf16.msra.mxu1 %v20531_v9  ;;  %6007 = vmatprep.subr.bf16.mxu0 %v16933_v56  ;;  %v6302_v56 = vld [vmem:[%s23564_s17 + $0x138] sm:$0xff] }
 0xabe   :  { %15807 = vmatprep.subr.bf16.mxu1 %v20537_v20  ;;  %v20634_v46 = vpack.c.bf16 %v6302_v56, %v6301_v37  ;;  %v20690_v56 = vpack.c.bf16 %v6324_v7, %v6323_v32  ;;  %v16952_v32 = vld [vmem:[%s23560_s13 + $0xc28] ss:$44 sps:$4 sm:$0xff]  }
 0xac0   :  { %6501 = vmatmul.mubr.f32.vlgmr.msra.gmra.mrb[30].mxu1 %v6191_v49  ;;  %6008 = vmatpush1.bf16.msra.mxu0 %v16931_v30  ;;  %v6200_v30 = vrot.slane %v6199_v21, 4  ;;  %v20640_v49 = vpack.c.bf16 %v6320_v10, %v6319_v47  ;;  %v6308_v47 = vld [vmem:[%s23564_s17 + $0x168] sm:$0xff]  ;;  %v6325_v10 = vld [vmem:[%s23564_s17 + $0x1f0] sm:$0xff] }
 0xac1   :  { %15809 = vmatpush3.bf16.msra.mxu1 %v20555_v17  ;;  %6570 = vmatprep.mubr.f32.mxu1 %v6212_v22  ;;  %v16943_v22 = vld [vmem:[%s23560_s13 + $0xb20] ss:$44 sps:$4 sm:$0xff]  }
 0xac2   :  { %6009 = vmatprep.subr.bf16.mxu0 %v16936_v26  ;;  %15811 = vmatprep.subr.bf16.mxu1 %v20561_v39  ;;  %v6303_v26 = vld [vmem:[%s23564_s17 + $0x140] sm:$0xff] }
 0xac3   :  { %v20658_v6 = vpack.c.bf16 %v6304_v40, %v6303_v26  ;;  %v16954_v26 = vld [vmem:[%s23560_s13 + $0xc2c] ss:$44 sps:$4 sm:$0xff]   ;;  %v6309_v40 = vld [vmem:[%s23564_s17 + $0x170] sm:$0xff] }
 0xac4   :  { %6010 = vmatpush1.bf16.msra.mxu0 %v16934_v52  ;;  %v6201_v52 = vadd.f32 %v6200_v30, %v6199_v21  ;;  %v6307_v21 = vld [vmem:[%s23564_s17 + $0x160] sm:$0xff] }
 0xac5   :  { %15813 = vmatpush3.bf16.msra.mxu1 %v20581_v59  ;;  %6011 = vmatprep.subr.bf16.mxu0 %v16939_v44  ;;  %v20664_v44 = vpack.c.bf16 %v6322_v19, %v6321_v42  ;;  %v20708_v30 = vpack.c.bf16 %v6308_v47, %v6307_v21  ;;  %v6359_v21 = vld [vmem:[%s23564_s17 + $0x300] sm:$0xff] }
 0xac6   :  { %15815 = vmatprep.subr.bf16.mxu1 %v20587_v23  ;;  %v6202_v37 = vrot.slane %v6201_v52, 2 }
 0xac8   :  { %6012 = vmatpush1.bf16.msra.mxu0 %v16937_v14  ;;  %v16946_v14 = vld [vmem:[%s23560_s13 + $0xb78] ss:$44 sps:$4 sm:$0xff]   ;;  %v6203_v42 = vadd.f32 %v6202_v37, %v6201_v52  ;;  %v6328_v37 = vld [vmem:[%s23564_s17 + $0x208] sm:$0xff] }
 0xac9   :  { %15817 = vmatpush3.bf16.msra.mxu1 %v20608_v58  ;;  %6013 = vmatprep.subr.bf16.mxu0 %v16942_v57  ;;  %v20684_v57 = vpack.c.bf16 %v6306_v11, %v6305_v18  ;;  %v6344_v18 = vld [vmem:[%s23564_s17 + $0x288] sm:$0xff]  ;;  %v6375_v52 = vld [vmem:[%s23564_s17 + $0x380] sm:$0xff] }
 0xaca   :  { %15819 = vmatprep.subr.bf16.mxu1 %v20614_v31  ;;  %v6376_v11 = vld [vmem:[%s23564_s17 + $0x388] sm:$0xff]  ;;  %v6204_v47 = vrot.slane %v6203_v42, 1 }
 0xacc   :  { %6014 = vmatpush1.bf16.msra.mxu0 %v16940_v2  ;;  %v6326_v2 = vld [vmem:[%s23564_s17 + $0x1f8] sm:$0xff] }
 0xacd   :  { %15821 = vmatpush3.bf16.msra.mxu1 %v20634_v46  ;;  %6024 = vmatprep.subr.bf16.mxu0 %v16945_v15  ;;  %v16949_v15 = vld [vmem:[%s23560_s13 + $0xbd0] ss:$44 sps:$4 sm:$0xff]   ;;  %v20717_v19 = vpack.c.bf16 %v6326_v2, %v6325_v10  ;;  %v20752_v10 = vpack.c.bf16 %v6376_v11, %v6375_v52  ;;  %v6360_v2 = vld [vmem:[%s23564_s17 + $0x308] sm:$0xff] }
 0xace   :  { %15823 = vmatprep.subr.bf16.mxu1 %v20640_v49  ;;  %v6329_v11 = vld [vmem:[%s23564_s17 + $0x210] sm:$0xff] }
 0xacf   :  { %6016 = vmatmul.mubr.bf16.vlgmr.msra.gmra.mrb[48].mxu0 %v19568_v35  ;;  %v16951_v35 = vld [vmem:[%s23560_s13 + $0xbd4] ss:$44 sps:$4 sm:$0xff]  }
 0xad0   :  { %6025 = vmatpush1.bf16.msra.mxu0 %v16943_v22  ;;  %6056 = vmatprep.mubr.bf16.mxu0 %v23673_v48  ;;  %v6310_v22 = vld [vmem:[%s23564_s17 + $0x178] sm:$0xff] }
 0xad1   :  { %15825 = vmatpush3.bf16.msra.mxu1 %v20658_v6  ;;  %6026 = vmatprep.subr.bf16.mxu0 %v16948_v55  ;;  %v6343_v55 = vld [vmem:[%s23564_s17 + $0x280] sm:$0xff]  ;;  %v20738_v7 = vpack.c.bf16 %v6310_v22, %v6309_v40  ;;  %v6377_v40 = vld [vmem:[%s23564_s17 + $0x390] sm:$0xff]  ;;  %v6378_v22 = vld [vmem:[%s23564_s17 + $0x398] sm:$0xff] }
 0xad2   :  { %15827 = vmatprep.subr.bf16.mxu1 %v20664_v44  ;;  %v6330_v48 = vld [vmem:[%s23564_s17 + $0x218] sm:$0xff] }
 0xad4   :  { %6027 = vmatpush1.bf16.msra.mxu0 %v16946_v14  ;;  %v20740_v14 = vpack.c.bf16 %v6344_v18, %v6343_v55  ;;  %v20773_v18 = vpack.c.bf16 %v6360_v2, %v6359_v21  ;;  %v6362_v21 = vld [vmem:[%s23564_s17 + $0x318] sm:$0xff]  ;;  %v6347_v2 = vld [vmem:[%s23564_s17 + $0x2a0] sm:$0xff] }
 0xad5   :  { %15829 = vmatpush3.bf16.msra.mxu1 %v20684_v57  ;;  %6028 = vmatprep.subr.bf16.mxu0 %v16951_v35  ;;  %v6327_v35 = vld [vmem:[%s23564_s17 + $0x200] sm:$0xff] }
 0xad6   :  { %15831 = vmatprep.subr.bf16.mxu1 %v20690_v56  ;;  %v20769_v55 = vpack.c.bf16 %v6328_v37, %v6327_v35  ;;  %23677 = vst [vmem:[#allocation10_spill] sm:$0xff] %v20773_v18  ;;  %v6205_v35 = vadd.f32 %v6204_v47, %v6203_v42  ;;  %v20787_v37 = vpack.c.bf16 %v6378_v22, %v6377_v40  ;;  %v6379_v42 = vld [vmem:[%s23564_s17 + $0x3a0] sm:$0xff]  ;;  %v6380_v47 = vld [vmem:[%s23564_s17 + $0x3a8] sm:$0xff] }
 0xad7   :  { %v6331_v22 = vld [vmem:[%s23564_s17 + $0x220] sm:$0xff] }
 0xad8   :  { %6029 = vmatpush1.bf16.msra.mxu0 %v16949_v15  ;;  %v6345_v15 = vld [vmem:[%s23564_s17 + $0x290] sm:$0xff]  ;;  %23676 = vst [vmem:[#allocation9_spill] sm:$0xff] %v20769_v55  ;;  %23679 = vst [vmem:[#allocation12_spill] sm:$0xff] %v20787_v37 }
 0xad9   :  { %15833 = vmatpush3.bf16.msra.mxu1 %v20708_v30  ;;  %6030 = vmatprep.subr.bf16.mxu0 %v16954_v26  ;;  %v6346_v26 = vld [vmem:[%s23564_s17 + $0x298] sm:$0xff] }
 0xada   :  { %15835 = vmatprep.subr.bf16.mxu1 %v20717_v19  ;;  %v20775_v52 = vpack.c.bf16 %v6346_v26, %v6345_v15  ;;  %v6348_v15 = vld [vmem:[%s23564_s17 + $0x2a8] sm:$0xff]  ;;  %v20807_v26 = vpack.c.bf16 %v6330_v48, %v6329_v11  ;;  %v6363_v48 = vld [vmem:[%s23564_s17 + $0x320] sm:$0xff]  ;;  %v20825_v11 = vpack.c.bf16 %v6380_v47, %v6379_v42  ;;  %v6382_v42 = vld [vmem:[%s23564_s17 + $0x3b8] sm:$0xff] }
 0xadc   :  { %6031 = vmatpush1.bf16.msra.mxu0 %v16952_v32  ;;  %23678 = vst [vmem:[#allocation11_spill] sm:$0xff] %v20775_v52  ;;  %v6361_v32 = vld [vmem:[%s23564_s17 + $0x310] sm:$0xff]  ;;  %23680 = vst [vmem:[#allocation13_spill] sm:$0xff] %v20807_v26 }
 0xadd   :  { %15837 = vmatpush3.bf16.msra.mxu1 %v20738_v7  ;;  %15839 = vmatprep.subr.bf16.mxu0 %v20740_v14  ;;  %v20811_v40 = vpack.c.bf16 %v6362_v21, %v6361_v32  ;;  %23683 = vst [vmem:[#allocation16_spill] sm:$0xff] %v20825_v11  ;;  %v6364_v32 = vld [vmem:[%s23564_s17 + $0x328] sm:$0xff]  ;;  %v6349_v21 = vld [vmem:[%s23564_s17 + $0x2b0] sm:$0xff] }
 0xade   :  { %15871 = vmatprep.subr.bf16.mxu1 %v20752_v10  ;;  %v20847_v60 = vpack.c.bf16 %v6364_v32, %v6363_v48  ;;  %v6366_v48 = vld [vmem:[%s23564_s17 + $0x338] sm:$0xff]  ;;  %v6351_v32 = vld [vmem:[%s23564_s17 + $0x2c0] sm:$0xff] }
 0xadf   :  { %13870 = vmatmul.mubr.msk.bf16.vlgmr.msra.gmra.mrb[48].mxu0 %vm1902_vm6, %v19620_v45  ;;  %23681 = vst [vmem:[#allocation14_spill] sm:$0xff] %v20811_v40  ;;  %v20813_v45 = vpack.c.bf16 %v6348_v15, %v6347_v2  ;;  %v6350_v2 = vld [vmem:[%s23564_s17 + $0x2b8] sm:$0xff]  ;;  %v6381_v15 = vld [vmem:[%s23564_s17 + $0x3b0] sm:$0xff] }
 0xae0   :  { %6571 = vmatmul.mubr.f32.vlgmr.msra.gmra.mrb[52].mxu1 %v6205_v35  ;;  %15841 = vmatpush3.bf16.msra.mxu0 %v20769_v55  ;;  %v6332_v35 = vld [vmem:[%s23564_s17 + $0x228] sm:$0xff]  ;;  %23685 = vst [vmem:[#allocation18_spill] sm:$0xff] %v20847_v60 }
 0xae1   :  { %15873 = vmatpush3.bf16.msra.mxu1 %v20773_v18  ;;  %15843 = vmatprep.subr.bf16.mxu0 %v20775_v52  ;;  %23682 = vst [vmem:[#allocation15_spill] sm:$0xff] %v20813_v45  ;;  %v20843_v47 = vpack.c.bf16 %v6332_v35, %v6331_v22  ;;  %v6333_v18 = vld [vmem:[%s23564_s17 + $0x230] sm:$0xff]  ;;  %v6334_v52 = vld [vmem:[%s23564_s17 + $0x238] sm:$0xff]  ;;  %v20861_v35 = vpack.c.bf16 %v6382_v42, %v6381_v15  ;;  %v6384_v15 = vld [vmem:[%s23564_s17 + $0x3c8] sm:$0xff] }
 0xae2   :  { %15875 = vmatprep.subr.bf16.mxu1 %v20787_v37  ;;  %v20849_v37 = vpack.c.bf16 %v6350_v2, %v6349_v21  ;;  %v6365_v22 = vld [vmem:[%s23564_s17 + $0x330] sm:$0xff]  ;;  %v6352_v21 = vld [vmem:[%s23564_s17 + $0x2c8] sm:$0xff]  ;;  %v6383_v2 = vld [vmem:[%s23564_s17 + $0x3c0] sm:$0xff]  ;;  %v20879_v42 = vpack.c.bf16 %v6334_v52, %v6333_v18 }
 0xae3   :  { %23684 = vst [vmem:[#allocation17_spill] sm:$0xff] %v20843_v47  ;;  %23687 = vst [vmem:[#allocation20_spill] sm:$0xff] %v20861_v35  ;;  %v6367_v18 = vld [vmem:[%s23564_s17 + $0x340] sm:$0xff]  ;;  %v20897_v52 = vpack.c.bf16 %v6384_v15, %v6383_v2  ;;  %v6386_v2 = vld [vmem:[%s23564_s17 + $0x3d8] sm:$0xff] }
 0xae4   :  { %15845 = vmatpush3.bf16.msra.mxu0 %v20807_v26  ;;  %23686 = vst [vmem:[#allocation19_spill] sm:$0xff] %v20849_v37  ;;  %23688 = vst [vmem:[#allocation21_spill] sm:$0xff] %v20879_v42  ;;  %v6336_v26 = vld [vmem:[%s23564_s17 + $0x248] sm:$0xff] }
 0xae5   :  { %15877 = vmatpush3.bf16.msra.mxu1 %v20811_v40  ;;  %15847 = vmatprep.subr.bf16.mxu0 %v20813_v45  ;;  %v20885_v40 = vpack.c.bf16 %v6352_v21, %v6351_v32  ;;  %v6335_v45 = vld [vmem:[%s23564_s17 + $0x240] sm:$0xff]  ;;  %23691 = vst [vmem:[#allocation24_spill] sm:$0xff] %v20897_v52  ;;  %v6354_v32 = vld [vmem:[%s23564_s17 + $0x2d8] sm:$0xff]  ;;  %v6385_v21 = vld [vmem:[%s23564_s17 + $0x3d0] sm:$0xff] }
 0xae6   :  { %15879 = vmatprep.subr.bf16.mxu1 %v20825_v11  ;;  %v20883_v11 = vpack.c.bf16 %v6366_v48, %v6365_v22  ;;  %v6368_v22 = vld [vmem:[%s23564_s17 + $0x348] sm:$0xff]  ;;  %v6353_v48 = vld [vmem:[%s23564_s17 + $0x2d0] sm:$0xff]  ;;  %v20915_v15 = vpack.c.bf16 %v6336_v26, %v6335_v45  ;;  %v20933_v45 = vpack.c.bf16 %v6386_v2, %v6385_v21 }
 0xae7   :  { %23690 = vst [vmem:[#allocation23_spill] sm:$0xff] %v20885_v40  ;;  %v6369_v26 = vld [vmem:[%s23564_s17 + $0x350] sm:$0xff]  ;;  %v6388_v21 = vld [vmem:[%s23564_s17 + $0x3e8] sm:$0xff] }
 0xae8   :  { %15849 = vmatpush3.bf16.msra.mxu0 %v20843_v47  ;;  %23689 = vst [vmem:[#allocation22_spill] sm:$0xff] %v20883_v11  ;;  %23692 = vst [vmem:[#allocation25_spill] sm:$0xff] %v20915_v15  ;;  %v6338_v47 = vld [vmem:[%s23564_s17 + $0x258] sm:$0xff] }
 0xae9   :  { %15881 = vmatpush3.bf16.msra.mxu1 %v20847_v60  ;;  %15851 = vmatprep.subr.bf16.mxu0 %v20849_v37  ;;  %v20921_v60 = vpack.c.bf16 %v6354_v32, %v6353_v48  ;;  %v6337_v37 = vld [vmem:[%s23564_s17 + $0x250] sm:$0xff]  ;;  %23695 = vst [vmem:[#allocation28_spill] sm:$0xff] %v20933_v45  ;;  %v6356_v48 = vld [vmem:[%s23564_s17 + $0x2e8] sm:$0xff]  ;;  %v6387_v32 = vld [vmem:[%s23564_s17 + $0x3e0] sm:$0xff] }
 0xaea   :  { %15883 = vmatprep.subr.bf16.mxu1 %v20861_v35  ;;  %v20919_v35 = vpack.c.bf16 %v6368_v22, %v6367_v18  ;;  %v6370_v18 = vld [vmem:[%s23564_s17 + $0x358] sm:$0xff]  ;;  %v6355_v22 = vld [vmem:[%s23564_s17 + $0x2e0] sm:$0xff]  ;;  %v20951_v2 = vpack.c.bf16 %v6338_v47, %v6337_v37  ;;  %v20969_v47 = vpack.c.bf16 %v6388_v21, %v6387_v32 }
 0xaeb   :  { %23694 = vst [vmem:[#allocation27_spill] sm:$0xff] %v20921_v60  ;;  %v6371_v37 = vld [vmem:[%s23564_s17 + $0x360] sm:$0xff]  ;;  %v6390_v32 = vld [vmem:[%s23564_s17 + $0x3f8] sm:$0xff] }
 0xaec   :  { %15853 = vmatpush3.bf16.msra.mxu0 %v20879_v42  ;;  %23693 = vst [vmem:[#allocation26_spill] sm:$0xff] %v20919_v35  ;;  %23696 = vst [vmem:[#allocation29_spill] sm:$0xff] %v20951_v2  ;;  %v6340_v42 = vld [vmem:[%s23564_s17 + $0x268] sm:$0xff] }
 0xaed   :  { %15885 = vmatpush3.bf16.msra.mxu1 %v20883_v11  ;;  %15855 = vmatprep.subr.bf16.mxu0 %v20885_v40  ;;  %v20957_v11 = vpack.c.bf16 %v6356_v48, %v6355_v22  ;;  %v6339_v40 = vld [vmem:[%s23564_s17 + $0x260] sm:$0xff]  ;;  %23699 = vst [vmem:[#allocation32_spill] sm:$0xff] %v20969_v47  ;;  %v6358_v22 = vld [vmem:[%s23564_s17 + $0x2f8] sm:$0xff]  ;;  %v6389_v48 = vld [vmem:[%s23564_s17 + $0x3f0] sm:$0xff] }
 0xaee   :  { %15887 = vmatprep.subr.bf16.mxu1 %v20897_v52  ;;  %v20955_v52 = vpack.c.bf16 %v6370_v18, %v6369_v26  ;;  %v6372_v26 = vld [vmem:[%s23564_s17 + $0x368] sm:$0xff]  ;;  %v6357_v18 = vld [vmem:[%s23564_s17 + $0x2f0] sm:$0xff]  ;;  %v20987_v21 = vpack.c.bf16 %v6340_v42, %v6339_v40  ;;  %v21002_v40 = vpack.c.bf16 %v6390_v32, %v6389_v48  ;;  %v21031_v48 = vsub.s32 6, %v18160_v63 }
 0xaef   :  { %23698 = vst [vmem:[#allocation31_spill] sm:$0xff] %v20957_v11  ;;  %v6373_v42 = vld [vmem:[%s23564_s17 + $0x370] sm:$0xff]  ;;  %v21034_v32 = vsub.s32 5, %v18160_v63 }
 0xaf0   :  { %15857 = vmatpush3.bf16.msra.mxu0 %v20915_v15  ;;  %23697 = vst [vmem:[#allocation30_spill] sm:$0xff] %v20955_v52  ;;  %23700 = vst [vmem:[#allocation33_spill] sm:$0xff] %v20987_v21  ;;  %v6342_v15 = vld [vmem:[%s23564_s17 + $0x278] sm:$0xff] }
 0xaf1   :  { %15889 = vmatpush3.bf16.msra.mxu1 %v20919_v35  ;;  %15859 = vmatprep.subr.bf16.mxu0 %v20921_v60  ;;  %v20993_v35 = vpack.c.bf16 %v6358_v22, %v6357_v18  ;;  %v6341_v60 = vld [vmem:[%s23564_s17 + $0x270] sm:$0xff]  ;;  %23703 = vst [vmem:[#allocation36_spill] sm:$0xff] %v21002_v40  ;;  %v6407_v22 = vld [vmem:[%s23564_s17 + $0x480] sm:$0xff]  ;;  %23707 = vst [vmem:[#allocation40_spill] sm:$0xff] %v21031_v48 }
 0xaf2   :  { %15891 = vmatprep.subr.bf16.mxu1 %v20933_v45  ;;  %v20991_v45 = vpack.c.bf16 %v6372_v26, %v6371_v37  ;;  %v6374_v37 = vld [vmem:[%s23564_s17 + $0x378] sm:$0xff]  ;;  %v21011_v26 = vpack.c.bf16 %v6342_v15, %v6341_v60  ;;  %v6408_v60 = vld [vmem:[%s23564_s17 + $0x488] sm:$0xff]  ;;  %23708 = vst [vmem:[#allocation41_spill] sm:$0xff] %v21034_v32 }
 0xaf3   :  { %23702 = vst [vmem:[#allocation35_spill] sm:$0xff] %v20993_v35  ;;  %v21015_v18 = vpack.c.bf16 %v6374_v37, %v6373_v42  ;;  %v21027_v15 = vpack.c.bf16 %v6408_v60, %v6407_v22  ;;  %v21037_v42 = vsub.s32 7, %v18160_v63  ;;  %v3395_v37 = vrot.slane %v20271_v29, %v18971_v54 }
 0xaf4   :  { %15861 = vmatpush3.bf16.msra.mxu0 %v20951_v2  ;;  %23701 = vst [vmem:[#allocation34_spill] sm:$0xff] %v20991_v45  ;;  %23704 = vst [vmem:[#allocation37_spill] sm:$0xff] %v21011_v26  ;;  %v3399_v22 = vrot.slane %v20271_v29, %v21034_v32 }
 0xaf5   :  { %15893 = vmatpush3.bf16.msra.mxu1 %v20955_v52  ;;  %15863 = vmatprep.subr.bf16.mxu0 %v20957_v11  ;;  %23705 = vst [vmem:[#allocation38_spill] sm:$0xff] %v21015_v18  ;;  %23706 = vst [vmem:[#allocation39_spill] sm:$0xff] %v21027_v15  ;;  %v3407_v60 = vrot.slane %v20271_v29, %v21037_v42 }
 0xaf6   :  { %15895 = vmatprep.subr.bf16.mxu1 %v20969_v47  ;;  %23709 = vst [vmem:[#allocation42_spill] sm:$0xff] %v21037_v42 }
 0xaf8   :  { %15865 = vmatpush3.bf16.msra.mxu0 %v20987_v21 }
 0xaf9   :  { %15897 = vmatpush3.bf16.msra.mxu1 %v20991_v45  ;;  %15867 = vmatprep.subr.bf16.mxu0 %v20993_v35 }
 0xafa   :  { %15899 = vmatprep.subr.bf16.mxu1 %v21002_v40 }
 0xafc   :  { %15869 = vmatpush3.bf16.msra.mxu0 %v21011_v26 }
 0xafd   :  { %15901 = vmatpush3.bf16.msra.mxu1 %v21015_v18  ;;  %15903 = vmatprep.subr.bf16.mxu0 %v21027_v15  ;;  %v3403_v18 = vrot.slane %v20271_v29, %v21031_v48 }
 0xafe   :  { %15934 = vmatprep.subr.bf16.mxu1 %v23672_v0 }
 0xb22   :  { %v5812_v40 = vpop.f32.mrb[44].mxu0 }
 0xb23   :  { %v21047_v45 = vadd.f32 %v5812_v40, %v3395_v37  ;;  %v5935_v15 = vpop.f32.mrb[36].mxu1  ;;  %v5814_v26 = vpop.f32.mrb[45].mxu0 }
 0xb24   :  { %v21049_v47 = vadd.f32 %v5935_v15, %v3403_v18  ;;  %v21051_v63 = vadd.f32 %v5814_v26, %v3399_v22  ;;  %v5937_v52 = vpop.f32.mrb[37].mxu1  ;;  %v5816_v54 = vpop.f32.mrb[46].mxu0 }
 0xb25   :  { %23710 = vst [vmem:[#allocation43_spill] sm:$0xff] %v21047_v45  ;;  %v6213_v48 = vsel %vm193_vm3, %v21047_v45, 0.0  ;;  %v21055_v35 = vadd.f32 %v5937_v52, %v3407_v60  ;;  %v5939_v32 = vpop.f32.mrb[38].mxu1  ;;  %v5817_v21 = vpop.f32.mrb[47].mxu0 }
 0xb26   :  { %23711 = vst [vmem:[#allocation44_spill] sm:$0xff] %v21049_v47  ;;  %23712 = vst [vmem:[#allocation45_spill] sm:$0xff] %v21051_v63  ;;  %v6214_v11 = vrot.slane %v6213_v48, 4  ;;  %v6227_v29 = vsel %vm193_vm3, %v21049_v47, 0.0  ;;  %v6220_v40 = vsel %vm193_vm3, %v21051_v63, 0.0  ;;  %v5940_v18 = vpop.f32.mrb[39].mxu1 }
 0xb27   :  { %v6228_v15 = vrot.slane %v6227_v29, 4  ;;  %v6221_v26 = vrot.slane %v6220_v40, 4  ;;  %v6234_v54 = vsel %vm193_vm3, %v21055_v35, 0.0  ;;  %v6391_v18 = vld [vmem:[%s23564_s17 + $0x400] sm:$0xff] }
 0xb28   :  { %v6215_v37 = vadd.f32 %v6214_v11, %v6213_v48  ;;  %v6235_v22 = vrot.slane %v6234_v54, 4  ;;  %v6392_v11 = vld [vmem:[%s23564_s17 + $0x408] sm:$0xff] }
 0xb29   :  { %v6229_v42 = vadd.f32 %v6228_v15, %v6227_v29  ;;  %v6222_v52 = vadd.f32 %v6221_v26, %v6220_v40  ;;  %v6423_v40 = vld [vmem:[%s23564_s17 + $0x500] sm:$0xff]  ;;  %v6410_v15 = vld [vmem:[%s23564_s17 + $0x498] sm:$0xff] }
 0xb2a   :  { %v6216_v60 = vrot.slane %v6215_v37, 2  ;;  %v6236_v32 = vadd.f32 %v6235_v22, %v6234_v54  ;;  %v21081_v54 = vpack.c.bf16 %v6392_v11, %v6391_v18  ;;  %v6412_v18 = vld [vmem:[%s23564_s17 + $0x4a8] sm:$0xff] }
 0xb2b   :  { %v6230_v21 = vrot.slane %v6229_v42, 2  ;;  %v6223_v2 = vrot.slane %v6222_v52, 2 }
 0xb2c   :  { %v6217_v55 = vadd.f32 %v6216_v60, %v6215_v37  ;;  %v6237_v45 = vrot.slane %v6236_v32, 2  ;;  %23713 = vst [vmem:[#allocation46_spill] sm:$0xff] %v21081_v54  ;;  %v6425_v60 = vld [vmem:[%s23564_s17 + $0x510] sm:$0xff] }
 0xb2d   :  { %v6231_v47 = vadd.f32 %v6230_v21, %v6229_v42  ;;  %v6224_v33 = vadd.f32 %v6223_v2, %v6222_v52  ;;  %v6424_v2 = vld [vmem:[%s23564_s17 + $0x508] sm:$0xff]  ;;  %v6394_v21 = vld [vmem:[%s23564_s17 + $0x418] sm:$0xff] }
 0xb2e   :  { %v6218_v36 = vrot.slane %v6217_v55, 1  ;;  %v6238_v63 = vadd.f32 %v6237_v45, %v6236_v32  ;;  %v6409_v45 = vld [vmem:[%s23564_s17 + $0x490] sm:$0xff]  ;;  %v21083_v52 = vpack.c.bf16 %v6424_v2, %v6423_v40  ;;  %v6395_v40 = vld [vmem:[%s23564_s17 + $0x420] sm:$0xff]  ;;  %v6396_v2 = vld [vmem:[%s23564_s17 + $0x428] sm:$0xff] }
 0xb2f   :  { %v6232_v48 = vrot.slane %v6231_v47, 1  ;;  %v6225_v29 = vrot.slane %v6224_v33, 1  ;;  %v6393_v32 = vld [vmem:[%s23564_s17 + $0x410] sm:$0xff] }
 0xb30   :  { %v6239_v42 = vrot.slane %v6238_v63, 1  ;;  %v6219_v22 = vadd.f32 %v6218_v36, %v6217_v55  ;;  %23714 = vst [vmem:[#allocation47_spill] sm:$0xff] %v21083_v52  ;;  %v21097_v36 = vpack.c.bf16 %v6410_v15, %v6409_v45  ;;  %v6411_v55 = vld [vmem:[%s23564_s17 + $0x4a0] sm:$0xff]  ;;  %v6413_v45 = vld [vmem:[%s23564_s17 + $0x4b0] sm:$0xff]  ;;  %v6414_v15 = vld [vmem:[%s23564_s17 + $0x4b8] sm:$0xff] }
 0xb31   :  { %v6226_v26 = vadd.f32 %v6225_v29, %v6224_v33  ;;  %v6233_v33 = vadd.f32 %v6232_v48, %v6231_v47  ;;  %v21106_v47 = vpack.c.bf16 %v6394_v21, %v6393_v32  ;;  %v6427_v48 = vld [vmem:[%s23564_s17 + $0x520] sm:$0xff]  ;;  %v21116_v29 = vpack.c.bf16 %v6412_v18, %v6411_v55  ;;  %v6397_v32 = vld [vmem:[%s23564_s17 + $0x430] sm:$0xff]  ;;  %v6398_v21 = vld [vmem:[%s23564_s17 + $0x438] sm:$0xff] }
 0xb32   :  { %v6240_v37 = vadd.f32 %v6239_v42, %v6238_v63  ;;  %v6426_v63 = vld [vmem:[%s23564_s17 + $0x518] sm:$0xff]  ;;  %23715 = vst [vmem:[#allocation48_spill] sm:$0xff] %v21097_v36  ;;  %v6428_v42 = vld [vmem:[%s23564_s17 + $0x528] sm:$0xff]  ;;  %v21164_v18 = vpack.c.bf16 %v6398_v21, %v6397_v32  ;;  %v6401_v21 = vld [vmem:[%s23564_s17 + $0x450] sm:$0xff] }
 0xb33   :  { %6640 = vmatprep.mubr.f32.mxu0 %v6226_v26  ;;  %23716 = vst [vmem:[#allocation49_spill] sm:$0xff] %v21106_v47  ;;  %v21109_v11 = vpack.c.bf16 %v6426_v63, %v6425_v60  ;;  %23718 = vst [vmem:[#allocation51_spill] sm:$0xff] %v21116_v29  ;;  %v21136_v26 = vpack.c.bf16 %v6396_v2, %v6395_v40  ;;  %v21145_v60 = vpack.c.bf16 %v6414_v15, %v6413_v45  ;;  %v6415_v63 = vld [vmem:[%s23564_s17 + $0x4c0] sm:$0xff]  ;;  %v6416_v55 = vld [vmem:[%s23564_s17 + $0x4c8] sm:$0xff] }
 0xb34   :  { %6710 = vmatprep.mubr.f32.mxu1 %v6240_v37  ;;  %6641 = vmatmul.mubr.f32.vlgmr.msra.gmra.mrb[38].mxu0 %v6219_v22  ;;  %v21139_v37 = vpack.c.bf16 %v6428_v42, %v6427_v48  ;;  %v6429_v22 = vld [vmem:[%s23564_s17 + $0x530] sm:$0xff]  ;;  %23722 = vst [vmem:[#allocation55_spill] sm:$0xff] %v21164_v18  ;;  %v21170_v40 = vpack.c.bf16 %v6416_v55, %v6415_v63  ;;  %v6399_v2 = vld [vmem:[%s23564_s17 + $0x440] sm:$0xff]  ;;  %v6400_v42 = vld [vmem:[%s23564_s17 + $0x448] sm:$0xff] }
 0xb35   :  { %6711 = vmatmul.mubr.f32.vlgmr.msra.gmra.mrb[54].mxu1 %v6233_v33  ;;  %15905 = vmatpush3.bf16.msra.mxu0 %v21081_v54  ;;  %23717 = vst [vmem:[#allocation50_spill] sm:$0xff] %v21109_v11  ;;  %23719 = vst [vmem:[#allocation52_spill] sm:$0xff] %v21136_v26  ;;  %v6430_v33 = vld [vmem:[%s23564_s17 + $0x538] sm:$0xff]  ;;  %v6417_v45 = vld [vmem:[%s23564_s17 + $0x4d0] sm:$0xff] }
 0xb36   :  { %15936 = vmatpush3.bf16.msra.mxu1 %v21083_v52  ;;  %15448 = vmatprep.mubr.msk.f32.mxu1 %vm17861_vm0, %v23671_v41  ;;  %23720 = vst [vmem:[#allocation53_spill] sm:$0xff] %v21139_v37  ;;  %23721 = vst [vmem:[#allocation54_spill] sm:$0xff] %v21145_v60  ;;  %v21167_v48 = vpack.c.bf16 %v6430_v33, %v6429_v22  ;;  %v6418_v15 = vld [vmem:[%s23564_s17 + $0x4d8] sm:$0xff]  ;;  %v21186_v22 = vpack.c.bf16 %v6400_v42, %v6399_v2  ;;  %v21202_v55 = vld [vmem:[%s23564_s17 + $0x540] sm:$0xff] }
 0xb37   :  { %15937 = vmatprep.subr.bf16.mxu1 %v23672_v0  ;;  %15907 = vmatprep.subr.bf16.mxu0 %v21097_v36  ;;  %23724 = vst [vmem:[#allocation57_spill] sm:$0xff] %v21170_v40  ;;  %v21190_v32 = vpack.c.bf16 %v6418_v15, %v6417_v45  ;;  %v6402_v33 = vld [vmem:[%s23564_s17 + $0x458] sm:$0xff]  ;;  %23727 = vst [vmem:[#allocation60_spill] sm:$0xff] %v21202_v55  ;;  %v6419_v2 = vld [vmem:[%s23564_s17 + $0x4e0] sm:$0xff] }
 0xb38   :  { %23723 = vst [vmem:[#allocation56_spill] sm:$0xff] %v21167_v48  ;;  %23725 = vst [vmem:[#allocation58_spill] sm:$0xff] %v21186_v22  ;;  %v6420_v42 = vld [vmem:[%s23564_s17 + $0x4e8] sm:$0xff] }
 0xb39   :  { %15909 = vmatpush3.bf16.msra.mxu0 %v21106_v47  ;;  %23726 = vst [vmem:[#allocation59_spill] sm:$0xff] %v21190_v32 }
 0xb3a   :  { %15939 = vmatpush3.bf16.msra.mxu1 %v21109_v11  ;;  %15911 = vmatprep.subr.bf16.mxu0 %v21116_v29  ;;  %v6403_v11 = vld [vmem:[%s23564_s17 + $0x460] sm:$0xff] }
 0xb3b   :  { %15940 = vmatprep.subr.bf16.mxu1 %v23672_v0 }
 0xb3d   :  { %15913 = vmatpush3.bf16.msra.mxu0 %v21136_v26 }
 0xb3e   :  { %15942 = vmatpush3.bf16.msra.mxu1 %v21139_v37  ;;  %15915 = vmatprep.subr.bf16.mxu0 %v21145_v60  ;;  %v21211_v37 = vpack.c.bf16 %v6402_v33, %v6401_v21 }
 0xb3f   :  { %15943 = vmatprep.subr.bf16.mxu1 %v23672_v0 }
 0xb40   :  { %23728 = vst [vmem:[#allocation61_spill] sm:$0xff] %v21211_v37 }
 0xb41   :  { %15917 = vmatpush3.bf16.msra.mxu0 %v21164_v18  ;;  %v21215_v18 = vpack.c.bf16 %v6420_v42, %v6419_v2  ;;  %v6405_v2 = vld [vmem:[%s23564_s17 + $0x470] sm:$0xff]  ;;  %v6406_v42 = vld [vmem:[%s23564_s17 + $0x478] sm:$0xff] }
 0xb42   :  { %15945 = vmatpush3.bf16.msra.mxu1 %v21167_v48  ;;  %15919 = vmatprep.subr.bf16.mxu0 %v21170_v40 }
 0xb43   :  { %v14785_v63 = vpop.f32.mrb[40].mxu1  ;;  %15446 = vmatprep.subr.mxu1 %v23671_v41  ;;  %23729 = vst [vmem:[#allocation62_spill] sm:$0xff] %v21215_v18 }
 0xb44   :  { %v14786_v45 = vpop.f32.mrb[41].mxu1 }
 0xb45   :  { %v14787_v15 = vadd.f32 %v14786_v45, %v14785_v63  ;;  %v14788_v48 = vpop.f32.mrb[42].mxu1  ;;  %15921 = vmatpush3.bf16.msra.mxu0 %v21186_v22  ;;  %v6404_v63 = vld [vmem:[%s23564_s17 + $0x468] sm:$0xff]  ;;  %v21242_v45 = vpack.c.bf16 %v6406_v42, %v6405_v2 }
 0xb46   :  { %v14789_v40 = vpop.f32.mrb[43].mxu1  ;;  %15447 = vmatpush3.msra.mxu1 %v21202_v55  ;;  %15923 = vmatprep.subr.bf16.mxu0 %v21190_v32  ;;  %v6421_v48 = vld [vmem:[%s23564_s17 + $0x4f0] sm:$0xff]  ;;  %v21230_v21 = vpack.c.bf16 %v6404_v63, %v6403_v11  ;;  %v3373_v11 = vld [vmem:[%s23563_s14 + $0x8] sm:$0x7] }
 0xb47   :  { %v6422_v40 = vld [vmem:[%s23564_s17 + $0x4f8] sm:$0xff]  ;;  %23732 = vst [vmem:[#allocation65_spill] sm:$0xff] %v21242_v45  ;;  %v3419_v63 = vrot.slane %v3373_v11, %v18163_v1 }
 0xb48   :  { %23730 = vst [vmem:[#allocation63_spill] sm:$0xff] %v21230_v21  ;;  %v21233_v33 = vpack.c.bf16 %v6422_v40, %v6421_v48 }
 0xb49   :  { %15925 = vmatpush3.bf16.msra.mxu0 %v21211_v37  ;;  %v6100_v55 = vadd.f32 %v14787_v15, %v3419_v63 }
 0xb4a   :  { %15927 = vmatprep.subr.bf16.mxu0 %v21215_v18  ;;  %23731 = vst [vmem:[#allocation64_spill] sm:$0xff] %v21233_v33 }
 0xb4d   :  { %15929 = vmatpush3.bf16.msra.mxu0 %v21230_v21 }
 0xb4e   :  { %15931 = vmatprep.subr.bf16.mxu0 %v21233_v33 }
 0xb51   :  { %15933 = vmatpush3.bf16.msra.mxu0 %v21242_v45 }
 0xb63   :  { %v14807_v48 = vpop.f32.mrb[44].mxu1 }
 0xb64   :  { %v14808_v40 = vpop.f32.mrb[45].mxu1 }
 0xb65   :  { %v14809_v18 = vadd.f32 %v14808_v40, %v14807_v48  ;;  %v14810_v37 = vpop.f32.mrb[46].mxu1 }
 0xb66   :  { %v14811_v32 = vpop.f32.mrb[47].mxu1 }
 0xb67   :  { %v6140_v22 = vadd.f32 %v14809_v18, %v6100_v55  ;;  %v3411_v32 = vrot.slane %v3373_v11, %v18169_v4  ;;  %v3415_v55 = vrot.slane %v3373_v11, %v18172_v5 }
 0xb73   :  { %v6179_v21 = vpop.f32.mrb[48].mxu1 }
 0xb74   :  { %v21250_v2 = vadd.f32 %v6179_v21, %v6140_v22  ;;  %v15428_v42 = vpop.f32.mrb[49].mxu1 }
 0xb75   :  { %v6182_v33 = vpop.f32.mrb[50].mxu1 }
 0xb76   :  { %v6256_v45 = vsel %vm6255_vm7, %v21250_v2, 0.0  ;;  %v15429_v60 = vpop.f32.mrb[51].mxu1 }
 0xb77   :  { %v6257_v26 = vrot.slane %v6256_v45, 4 }
 0xb79   :  { %v6258_v52 = vadd.f32 %v6257_v26, %v6256_v45 }
 0xb7b   :  { %v6259_v1 = vrot.slane %v6258_v52, 2 }
 0xb7d   :  { %v6260_v29 = vadd.f32 %v6259_v1, %v6258_v52 }
 0xb7f   :  { %v6261_v47 = vrot.slane %v6260_v29, 1 }
 0xb81   :  { %v6262_v15 = vadd.f32 %v6261_v47, %v6260_v29 }
 0xb83   :  { %15449 = vmatmul.mubr.msk.f32.vlgmr.msra.gmra.mrb[56].mxu1 %vm6432_vm8, %v6262_v15 }
 0xb84   :  { %6936 = vmatprep.mubr.f32.mxu1 %v23671_v41 }
 0xb93   :  { %v14850_v37 = vpop.f32.mrb[30].mxu1 }
 0xb94   :  { %v14851_v18 = vpop.f32.mrb[31].mxu1 }
 0xb95   :  { %v14852_v22 = vadd.f32 %v14851_v18, %v14850_v37 }
 0xbb2   :  { %v6058_v21 = vpop.f32.mrb[48].mxu0 }
 0xbb3   :  { %v21258_v60 = vadd.f32 %v6058_v21, %v3411_v32  ;;  %v14885_v26 = vpop.f32.mrb[52].mxu1  ;;  %v6060_v33 = vpop.f32.mrb[49].mxu0 }
 0xbb4   :  { %v21260_v1 = vadd.f32 %v6060_v33, %v3415_v55  ;;  %v14886_v52 = vpop.f32.mrb[53].mxu1  ;;  %v6062_v47 = vpop.f32.mrb[50].mxu0 }
 0xbb5   :  { %v6241_v29 = vsel %vm193_vm3, %v21258_v60, 0.0  ;;  %v14887_v45 = vadd.f32 %v14886_v52, %v14885_v26  ;;  %v6063_v63 = vpop.f32.mrb[51].mxu0 }
 0xbb6   :  { %v6242_v48 = vrot.slane %v6241_v29, 4  ;;  %v6248_v40 = vsel %vm193_vm3, %v21260_v1, 0.0 }
 0xbb7   :  { %v6249_v42 = vrot.slane %v6248_v40, 4  ;;  %v6573_v11 = vadd.f32 %v14887_v45, %v14852_v22 }
 0xbb8   :  { %v6243_v15 = vadd.f32 %v6242_v48, %v6241_v29  ;;  %v21270_v48 = vld [vmem:[%s23565_s18 + $0x8] sm:$0xff] }
 0xbb9   :  { %v6250_v37 = vadd.f32 %v6249_v42, %v6248_v40  ;;  %6872 = vmatprep.subr.mxu1 %v21270_v48 }
 0xbba   :  { %v6244_v18 = vrot.slane %v6243_v15, 2 }
 0xbbb   :  { %v6251_v32 = vrot.slane %v6250_v37, 2 }
 0xbbc   :  { %v6245_v21 = vadd.f32 %v6244_v18, %v6243_v15 }
 0xbbd   :  { %v6252_v55 = vadd.f32 %v6251_v32, %v6250_v37 }
 0xbbe   :  { %v6246_v33 = vrot.slane %v6245_v21, 1 }
 0xbbf   :  { %v6253_v5 = vrot.slane %v6252_v55, 1 }
 0xbc0   :  { %v6247_v0 = vadd.f32 %v6246_v33, %v6245_v21  ;;  %v6862_v33 = vld [vmem:[%s23565_s18 + $0x28] sm:$0xff] }
 0xbc1   :  { %v6254_v47 = vadd.f32 %v6253_v5, %v6252_v55  ;;  %v21275_v5 = vld [vmem:[%s23565_s18] sm:$0xff]  ;;  %v6859_v55 = vld [vmem:[%s23565_s18 + $0x10] sm:$0xff] }
 0xbc2   :  { %6873 = vmatpush1.msra.mxu1 %v21275_v5 }
 0xbc3   :  { %6780 = vmatprep.mubr.f32.mxu0 %v6254_v47  ;;  %v21308_v47 = vld [vmem:[%s23565_s18 + $0x38] sm:$0xff] }
 0xbc4   :  { %6781 = vmatmul.mubr.f32.vlgmr.msra.gmra.mrb[52].mxu0 %v6247_v0  ;;  %v6866_v0 = vld [vmem:[%s23565_s18 + $0x48] sm:$0xff] }
 0xbc5   :  { %7220 = vmatprep.mubr.f32.mxu0 %v23671_v41  ;;  %7156 = vmatprep.subr.mxu0 %v6866_v0 }
 0xc07   :  { %v14920_v26 = vpop.f32.mrb[38].mxu0 }
 0xc08   :  { %v14955_v52 = vpop.f32.mrb[54].mxu1  ;;  %v14921_v63 = vpop.f32.mrb[39].mxu0 }
 0xc09   :  { %v14922_v36 = vadd.f32 %v14921_v63, %v14920_v26  ;;  %v14956_v54 = vpop.f32.mrb[55].mxu1  ;;  %v21317_v26 = vld [vmem:[%s23565_s18 + $0x30] sm:$0xff] }
 0xc0a   :  { %v14957_v22 = vadd.f32 %v14956_v54, %v14955_v52  ;;  %v6865_v54 = vld [vmem:[%s23565_s18 + $0x40] sm:$0xff]  ;;  %v23735_v52 = vld [vmem:[#allocation45_spill] sm:$0xff] }
 0xc0b   :  { %v6643_v29 = vadd.f32 %v14922_v36, %v6573_v11  ;;  %v21287_v36 = vld [vmem:[%s23565_s18 + $0x18] sm:$0xff]  ;;  %7157 = vmatpush1.msra.mxu0 %v6865_v54 }
 0xc0c   :  { %6943 = vmatprep.subr.mxu1 %v21287_v36  ;;  %15947 = vmatprep.subr.bf16.mxu0 %v20330_v24  ;;  %v6861_v24 = vld [vmem:[%s23565_s18 + $0x20] sm:$0xff] }
 0xc0d   :  { %v6713_v45 = vadd.f32 %v14957_v22, %v6643_v29 }
 0xc56   :  { %v6852_v40 = vpop.f32.mrb[56].mxu1 }
 0xc57   :  { %v15450_v42 = vpop.f32.mrb[57].mxu1 }
 0xc97   :  { %v14990_v11 = vpop.f32.mrb[52].mxu0 }
 0xc98   :  { %v14991_v15 = vpop.f32.mrb[53].mxu0 }
 0xc99   :  { %v14992_v37 = vadd.f32 %v14991_v15, %v14990_v11 }
 0xc9b   :  { %v6783_v18 = vadd.f32 %v14992_v37, %v6713_v45 }
 0xc9d   :  { %v6853_v32 = vadd.f32 %v6852_v40, %v6783_v18 }
 0xc9f   :  { %v6856_v21 = vmul.f32 0.00295858, %v6853_v32 }
 0xca1   :  { %13873 = vmatmul.mubr.msk.f32.vlgmr.msra.gmra.mrb[58].mxu1 %vm6868_vm9, %v6856_v21  ;;  %13877 = vmatmul.mubr.msk.f32.vlgmr.msra.gmra.mrb[54].mxu0 %vm6868_vm9, %v6856_v21 }
 0xca2   :  { %6944 = vmatpush1.msra.mxu1 %v6859_v55  ;;  %7007 = vmatprep.mubr.f32.mxu1 %v23671_v41 }
 0xca3   :  { %7014 = vmatprep.subr.mxu1 %v6862_v33  ;;  %15949 = vmatpush3.bf16.msra.mxu0 %v20347_v38  ;;  %v6867_v38 = vld [vmem:[%s23565_s18 + $0x50] sm:$0xff] }
 0xca4   :  { %15951 = vmatprep.subr.bf16.mxu0 %v20353_v27 }
 0xca5   :  { %13874 = vmatmul.mubr.msk.f32.vlgmr.msra.gmra.mrb[60].mxu1 %vm6868_vm9, %v6856_v21 }
 0xca6   :  { %7015 = vmatpush1.msra.mxu1 %v6861_v24  ;;  %7078 = vmatprep.mubr.f32.mxu1 %v23671_v41 }
 0xca7   :  { %7085 = vmatprep.subr.mxu1 %v21308_v47  ;;  %15953 = vmatpush3.bf16.msra.mxu0 %v20377_v28 }
 0xca8   :  { %15955 = vmatprep.subr.bf16.mxu0 %v20383_v8 }
 0xca9   :  { %13875 = vmatmul.mubr.msk.f32.vlgmr.msra.gmra.mrb[62].mxu1 %vm6868_vm9, %v6856_v21 }
 0xcaa   :  { %7086 = vmatpush1.msra.mxu1 %v21317_v26  ;;  %7149 = vmatprep.mubr.f32.mxu1 %v23671_v41 }
 0xcab   :  { %15451 = vmatprep.subr.mxu1 %v23671_v41  ;;  %15957 = vmatpush3.bf16.msra.mxu0 %v20407_v43 }
 0xcac   :  { %15959 = vmatprep.subr.bf16.mxu0 %v20413_v51 }
 0xcad   :  { %13876 = vmatmul.mubr.msk.f32.vlgmr.msra.gmra.mrb[64].mxu1 %vm6868_vm9, %v6856_v21 }
 0xcae   :  { %15452 = vmatpush3.msra.mxu1 %v6867_v38  ;;  %15453 = vmatprep.mubr.msk.f32.mxu1 %vm17861_vm0, %v23671_v41 }
 0xcaf   :  { %15979 = vmatprep.subr.bf16.mxu1 %v20537_v20  ;;  %15961 = vmatpush3.bf16.msra.mxu0 %v20435_v50 }
 0xcb0   :  { %15963 = vmatprep.subr.bf16.mxu0 %v20441_v13 }
 0xcb1   :  { %15454 = vmatmul.mubr.msk.f32.vlgmr.msra.gmra.mrb[66].mxu1 %vm6868_vm9, %v6856_v21 }
 0xcb2   :  { %15981 = vmatpush3.bf16.msra.mxu1 %v20555_v17  ;;  %v23733_v17 = vld [vmem:[#allocation8_spill] sm:$0xff] }
 0xcb3   :  { %15983 = vmatprep.subr.bf16.mxu1 %v20561_v39  ;;  %15965 = vmatpush3.bf16.msra.mxu0 %v20459_v3 }
 0xcb4   :  { %15967 = vmatprep.subr.bf16.mxu0 %v20465_v62 }
 0xcb6   :  { %15985 = vmatpush3.bf16.msra.mxu1 %v20581_v59 }
 0xcb7   :  { %15987 = vmatprep.subr.bf16.mxu1 %v20587_v23  ;;  %15969 = vmatpush3.bf16.msra.mxu0 %v20483_v61 }
 0xcb8   :  { %15971 = vmatprep.subr.bf16.mxu0 %v20489_v16 }
 0xcba   :  { %15989 = vmatpush3.bf16.msra.mxu1 %v20608_v58 }
 0xcbb   :  { %15991 = vmatprep.subr.bf16.mxu1 %v20614_v31  ;;  %15973 = vmatpush3.bf16.msra.mxu0 %v20507_v25  ;;  %v23734_v31 = vld [vmem:[#allocation7_spill] sm:$0xff] }
 0xcbc   :  { %15975 = vmatprep.subr.bf16.mxu0 %v20513_v12 }
 0xcbe   :  { %15993 = vmatpush3.bf16.msra.mxu1 %v20634_v46 }
 0xcbf   :  { %15995 = vmatprep.subr.bf16.mxu1 %v20640_v49  ;;  %15977 = vmatpush3.bf16.msra.mxu0 %v20531_v9 }
 0xcc0   :  { %16011 = vmatprep.subr.bf16.mxu0 %v20740_v14 }
 0xcc2   :  { %15997 = vmatpush3.bf16.msra.mxu1 %v20658_v6 }
 0xcc3   :  { %15999 = vmatprep.subr.bf16.mxu1 %v20664_v44 }
 0xcc6   :  { %16001 = vmatpush3.bf16.msra.mxu1 %v20684_v57 }
 0xcc7   :  { %16003 = vmatprep.subr.bf16.mxu1 %v20690_v56 }
 0xcca   :  { %16005 = vmatpush3.bf16.msra.mxu1 %v20708_v30 }
 0xccb   :  { %16007 = vmatprep.subr.bf16.mxu1 %v20717_v19 }
 0xcce   :  { %16009 = vmatpush3.bf16.msra.mxu1 %v20738_v7 }
 0xccf   :  { %16043 = vmatprep.subr.bf16.mxu1 %v20752_v10 }
 0xd74   :  { %v6938_v27 = vpop.f32.mrb[58].mxu1  ;;  %v21361_v28 = vpop.f32.mrb[54].mxu0 }
 0xd75   :  { %v7300_v8 = vrot.slane %v6938_v27, %v18169_v4  ;;  %v6940_v43 = vpop.f32.mrb[59].mxu1  ;;  %v7224_v51 = vpop.f32.mrb[55].mxu0 }
 0xd76   :  { %v7304_v50 = vrot.slane %v6940_v43, %v18169_v4  ;;  %v7336_v43 = vrot.slane %v7224_v51, %v18169_v4 }
 0xd77   :  { %v21366_v13 = vsub.f32 %v20392_v53, %v7300_v8 }
 0xd78   :  { %v21369_v3 = vsub.f32 %v20300_v34, %v7304_v50  ;;  %v7009_v62 = vpop.f32.mrb[60].mxu1 }
 0xd79   :  { %v7352_v61 = vmul.f32 %v21366_v13, %v21366_v13  ;;  %v7308_v16 = vrot.slane %v7009_v62, %v18169_v4  ;;  %v7011_v25 = vpop.f32.mrb[61].mxu1 }
 0xd7a   :  { %v7353_v12 = vmul.f32 %v21369_v3, %v21369_v3  ;;  %v7312_v9 = vrot.slane %v7011_v25, %v18169_v4 }
 0xd7b   :  { %v7363_v20 = vsel %vm193_vm3, %v7352_v61, 0.0  ;;  %v21379_v53 = vsub.f32 %v23733_v17, %v7308_v16 }
 0xd7c   :  { %v7364_v39 = vrot.slane %v7363_v20, 4  ;;  %v7370_v34 = vsel %vm193_vm3, %v7353_v12, 0.0  ;;  %v7080_v59 = vpop.f32.mrb[62].mxu1  ;;  %v21385_v46 = vsub.f32 %v23734_v31, %v7312_v9  ;;  %v23736_v12 = vld [vmem:[#allocation43_spill] sm:$0xff] }
 0xd7d   :  { %v7371_v23 = vrot.slane %v7370_v34, 4  ;;  %v7354_v58 = vmul.f32 %v21379_v53, %v21379_v53  ;;  %v7082_v49 = vpop.f32.mrb[63].mxu1  ;;  %v7316_v21 = vrot.slane %v7080_v59, %v18169_v4 }
 0xd7e   :  { %v7365_v6 = vadd.f32 %v7364_v39, %v7363_v20  ;;  %v7320_v44 = vrot.slane %v7082_v49, %v18169_v4  ;;  %v7355_v30 = vmul.f32 %v21385_v46, %v21385_v46  ;;  %v23738_v49 = vld [vmem:[#allocation11_spill] sm:$0xff] }
 0xd7f   :  { %v7372_v57 = vadd.f32 %v7371_v23, %v7370_v34  ;;  %v7377_v56 = vsel %vm193_vm3, %v7354_v58, 0.0  ;;  %v21410_v9 = vsub.f32 %v23736_v12, %v7316_v21  ;;  %v21413_v34 = vsub.f32 %v21260_v1, %v7336_v43  ;;  %v23737_v23 = vld [vmem:[#allocation9_spill] sm:$0xff] }
 0xd80   :  { %v7366_v19 = vrot.slane %v7365_v6, 2  ;;  %v7378_v7 = vrot.slane %v7377_v56, 4  ;;  %v7151_v14 = vpop.f32.mrb[64].mxu1  ;;  %v7384_v10 = vsel %vm193_vm3, %v7355_v30, 0.0  ;;  %v21393_v63 = vsub.f32 %v23735_v52, %v7320_v44  ;;  %v23740_v52 = vld [vmem:[#allocation13_spill] sm:$0xff] }
 0xd81   :  { %v7153_v22 = vpop.f32.mrb[65].mxu1  ;;  %v7373_v29 = vrot.slane %v7372_v57, 2  ;;  %v7385_v0 = vrot.slane %v7384_v10, 4  ;;  %v7324_v51 = vrot.slane %v7151_v14, %v18169_v4  ;;  %v7361_v1 = vmul.f32 %v21413_v34, %v21413_v34 }
 0xd82   :  { %v7379_v45 = vadd.f32 %v7378_v7, %v7377_v56  ;;  %v7328_v54 = vrot.slane %v7153_v22, %v18169_v4  ;;  %v7357_v40 = vmul.f32 %v21393_v63, %v21393_v63  ;;  %v7367_v11 = vadd.f32 %v7366_v19, %v7365_v6  ;;  %v23741_v22 = vld [vmem:[#allocation15_spill] sm:$0xff] }
 0xd83   :  { %v7374_v42 = vadd.f32 %v7373_v29, %v7372_v57  ;;  %v7386_v15 = vadd.f32 %v7385_v0, %v7384_v10  ;;  %v7356_v57 = vmul.f32 %v21410_v9, %v21410_v9  ;;  %v23739_v10 = vld [vmem:[#allocation44_spill] sm:$0xff] }
 0xd84   :  { %v21399_v37 = vsub.f32 %v21055_v35, %v7328_v54  ;;  %v21401_v18 = vpop.f32.mrb[66].mxu1  ;;  %v7380_v32 = vrot.slane %v7379_v45, 2  ;;  %v7398_v55 = vsel %vm193_vm3, %v7357_v40, 0.0  ;;  %v7368_v8 = vrot.slane %v7367_v11, 1  ;;  %v23742_v54 = vld [vmem:[#allocation10_spill] sm:$0xff] }
 0xd85   :  { %v15455_v33 = vpop.f32.mrb[67].mxu1  ;;  %v7399_v24 = vrot.slane %v7398_v55, 4  ;;  %v7375_v27 = vrot.slane %v7374_v42, 1  ;;  %v7387_v50 = vrot.slane %v7386_v15, 2  ;;  %v21423_v14 = vsub.f32 %v23739_v10, %v7324_v51 }
 0xd86   :  { %v7359_v38 = vmul.f32 %v21399_v37, %v21399_v37  ;;  %v7369_v25 = vadd.f32 %v7368_v8, %v7367_v11  ;;  %v7381_v17 = vadd.f32 %v7380_v32, %v7379_v45  ;;  %v7391_v0 = vsel %vm193_vm3, %v7356_v57, 0.0  ;;  %v23744_v32 = vld [vmem:[#allocation17_spill] sm:$0xff] }
 0xd87   :  { %v7400_v62 = vadd.f32 %v7399_v24, %v7398_v55  ;;  %v7376_v61 = vadd.f32 %v7375_v27, %v7374_v42  ;;  %v7388_v20 = vadd.f32 %v7387_v50, %v7386_v15  ;;  %v7426_v40 = vsel %vm193_vm3, %v7361_v1, 0.0  ;;  %v23743_v42 = vld [vmem:[#allocation12_spill] sm:$0xff]  ;;  %v23745_v55 = vld [vmem:[#allocation19_spill] sm:$0xff]  ;;  %v23746_v24 = vld [vmem:[#allocation14_spill] sm:$0xff] }
 0xd88   :  { %v7412_v35 = vsel %vm193_vm3, %v7359_v38, 0.0  ;;  %v7382_v31 = vrot.slane %v7381_v17, 1  ;;  %v7358_v15 = vmul.f32 %v21423_v14, %v21423_v14  ;;  %v7392_v21 = vrot.slane %v7391_v0, 4  ;;  %v23747_v38 = vld [vmem:[#allocation16_spill] sm:$0xff]  ;;  %v23748_v8 = vld [vmem:[#allocation21_spill] sm:$0xff]  ;;  %v23749_v50 = vld [vmem:[#allocation23_spill] sm:$0xff] }
 0xd89   :  { %v7413_v16 = vrot.slane %v7412_v35, 4  ;;  %7507 = vmatprep.mubr.f32.mxu0 %v7376_v61  ;;  %v7401_v39 = vrot.slane %v7400_v62, 2  ;;  %v7389_v58 = vrot.slane %v7388_v20, 1  ;;  %v7427_v33 = vrot.slane %v7426_v40, 4  ;;  %v23759_v1 = vld [vmem:[#allocation28_spill] sm:$0xff] }
 0xd8a   :  { %7508 = vmatmul.mubr.f32.vlgmr.msra.gmra.mrb[56].mxu0 %v7369_v25  ;;  %v7383_v30 = vadd.f32 %v7382_v31, %v7381_v17  ;;  %v7405_v27 = vsel %vm193_vm3, %v7358_v15, 0.0  ;;  %v7393_v43 = vadd.f32 %v7392_v21, %v7391_v0  ;;  %v23752_v25 = vld [vmem:[#allocation25_spill] sm:$0xff]  ;;  %v7340_v17 = vrot.slane %v21401_v18, %v18169_v4  ;;  %v23757_v31 = vld [vmem:[#allocation31_spill] sm:$0xff]  ;;  %v23767_v15 = vld [vmem:[#allocation36_spill] sm:$0xff] }
 0xd8b   :  { %v7414_v59 = vadd.f32 %v7413_v16, %v7412_v35  ;;  %16013 = vmatpush3.bf16.msra.mxu0 %v23737_v23  ;;  %v7402_v6 = vadd.f32 %v7401_v39, %v7400_v62  ;;  %v7390_v56 = vadd.f32 %v7389_v58, %v7388_v20  ;;  %v7428_v62 = vadd.f32 %v7427_v33, %v7426_v40  ;;  %v23750_v35 = vld [vmem:[#allocation18_spill] sm:$0xff]  ;;  %v23751_v16 = vld [vmem:[#allocation20_spill] sm:$0xff]  ;;  %v23753_v20 = vld [vmem:[#allocation27_spill] sm:$0xff] }
 0xd8c   :  { %16015 = vmatprep.subr.bf16.mxu0 %v23738_v49  ;;  %v7406_v61 = vrot.slane %v7405_v27, 4  ;;  %v7394_v12 = vrot.slane %v7393_v43, 2  ;;  %v23754_v39 = vld [vmem:[#allocation22_spill] sm:$0xff]  ;;  %v23755_v23 = vld [vmem:[#allocation24_spill] sm:$0xff]  ;;  %v23756_v58 = vld [vmem:[#allocation29_spill] sm:$0xff] }
 0xd8d   :  { %v7415_v44 = vrot.slane %v7414_v59, 2  ;;  %v7403_v19 = vrot.slane %v7402_v6, 1  ;;  %7577 = vmatprep.mubr.f32.mxu1 %v7390_v56  ;;  %v23760_v18 = vld [vmem:[#allocation33_spill] sm:$0xff]  ;;  %v23768_v21 = vld [vmem:[#allocation46_spill] sm:$0xff]  ;;  %v23769_v33 = vld [vmem:[#allocation48_spill] sm:$0xff] }
 0xd8e   :  { %7578 = vmatmul.mubr.f32.vlgmr.msra.gmra.mrb[68].mxu1 %v7383_v30  ;;  %v7407_v51 = vadd.f32 %v7406_v61, %v7405_v27  ;;  %v7395_v49 = vadd.f32 %v7394_v12, %v7393_v43  ;;  %v23761_v30 = vld [vmem:[#allocation35_spill] sm:$0xff]  ;;  %v23771_v27 = vmov 0.0|0.0   ;;  %v23775_v61 = vld [vmem:[#allocation52_spill] sm:$0xff]  ;;  %v23776_v12 = vld [vmem:[#allocation54_spill] sm:$0xff] }
 0xd8f   :  { %v7416_v7 = vadd.f32 %v7415_v44, %v7414_v59  ;;  %16017 = vmatpush3.bf16.msra.mxu0 %v23740_v52  ;;  %v7404_v29 = vadd.f32 %v7403_v19, %v7402_v6  ;;  %16045 = vmatpush3.bf16.msra.mxu1 %v23742_v54  ;;  %v7429_v59 = vrot.slane %v7428_v62, 2  ;;  %v21451_v6 = vsub.f32 %v21250_v2, %v7340_v17  ;;  %v23758_v44 = vld [vmem:[#allocation26_spill] sm:$0xff]  ;;  %v23765_v54 = vld [vmem:[#allocation39_spill] sm:$0xff] }
 0xd90   :  { %16019 = vmatprep.subr.bf16.mxu0 %v23741_v22  ;;  %16047 = vmatprep.subr.bf16.mxu1 %v23743_v42  ;;  %v7408_v56 = vrot.slane %v7407_v51, 2  ;;  %v7396_v19 = vrot.slane %v7395_v49, 1  ;;  %v23762_v52 = vld [vmem:[#allocation30_spill] sm:$0xff]  ;;  %v23763_v22 = vld [vmem:[#allocation32_spill] sm:$0xff]  ;;  %v23778_v17 = vld [vmem:[#allocation55_spill] sm:$0xff] }
 0xd91   :  { %v7417_v45 = vrot.slane %v7416_v7, 1  ;;  %7647 = vmatprep.mubr.f32.mxu0 %v7404_v29  ;;  %v7430_v57 = vadd.f32 %v7429_v59, %v7428_v62  ;;  %v7362_v10 = vmul.f32 %v21451_v6, %v21451_v6 }
 0xd92   :  { %v7409_v29 = vadd.f32 %v7408_v56, %v7407_v51  ;;  %v7397_v0 = vadd.f32 %v7396_v19, %v7395_v49  ;;  %v23779_v51 = vld [vmem:[#allocation57_spill] sm:$0xff]  ;;  %v23786_v19 = vld [vmem:[#allocation60_spill] sm:$0xff] }
 0xd93   :  { %v7418_v11 = vadd.f32 %v7417_v45, %v7416_v7  ;;  %16021 = vmatpush3.bf16.msra.mxu0 %v23744_v32  ;;  %16049 = vmatpush3.bf16.msra.mxu1 %v23746_v24  ;;  %v7332_v7 = vrot.slane %v21361_v28, %v18169_v4  ;;  %v7431_v2 = vrot.slane %v7430_v57, 1  ;;  %v23764_v45 = vld [vmem:[#allocation37_spill] sm:$0xff]  ;;  %v7433_v42 = vsel %vm6255_vm7, %v7362_v10, 0.0  ;;  %v23766_v28 = vld [vmem:[#allocation34_spill] sm:$0xff]  ;;  %v23788_v10 = vld [vmem:[#allocation64_spill] sm:$0xff] }
 0xd94   :  { %16023 = vmatprep.subr.bf16.mxu0 %v23745_v55  ;;  %16051 = vmatprep.subr.bf16.mxu1 %v23747_v38  ;;  %v7410_v32 = vrot.slane %v7409_v29, 1  ;;  %v7434_v55 = vrot.slane %v7433_v42, 4  ;;  %v23784_v56 = vld [vmem:[#allocation61_spill] sm:$0xff] }
 0xd95   :  { %7717 = vmatprep.mubr.f32.mxu1 %v7418_v11  ;;  %v21466_v40 = vsub.f32 %v21258_v60, %v7332_v7  ;;  %v7432_v11 = vadd.f32 %v7431_v2, %v7430_v57  ;;  %v23770_v60 = vld [vmem:[#allocation38_spill] sm:$0xff]  ;;  %v23783_v57 = vld [vmem:[#allocation56_spill] sm:$0xff]  ;;  %v23787_v7 = vld [vmem:[#allocation63_spill] sm:$0xff] }
 0xd96   :  { %v7411_v38 = vadd.f32 %v7410_v32, %v7409_v29  ;;  %v7435_v43 = vadd.f32 %v7434_v55, %v7433_v42  ;;  %v23789_v2 = vld [vmem:[#allocation65_spill] sm:$0xff] }
 0xd97   :  { %16025 = vmatpush3.bf16.msra.mxu0 %v23748_v8  ;;  %16053 = vmatpush3.bf16.msra.mxu1 %v23750_v35  ;;  %v7360_v24 = vmul.f32 %v21466_v40, %v21466_v40  ;;  %v23772_v8 = vld [vmem:[#allocation49_spill] sm:$0xff]  ;;  %v23774_v35 = vld [vmem:[#allocation47_spill] sm:$0xff] }
 0xd98   :  { %16027 = vmatprep.subr.bf16.mxu0 %v23749_v50  ;;  %16055 = vmatprep.subr.bf16.mxu1 %v23751_v16  ;;  %v23773_v50 = vld [vmem:[#allocation51_spill] sm:$0xff] }
 0xd99   :  { %v7419_v62 = vsel %vm193_vm3, %v7360_v24, 0.0 }
 0xd9a   :  { %v7420_v16 = vrot.slane %v7419_v62, 4 }
 0xd9b   :  { %16029 = vmatpush3.bf16.msra.mxu0 %v23752_v25  ;;  %16057 = vmatpush3.bf16.msra.mxu1 %v23754_v39  ;;  %v7436_v25 = vrot.slane %v7435_v43, 2 }
 0xd9c   :  { %16031 = vmatprep.subr.bf16.mxu0 %v23753_v20  ;;  %16059 = vmatprep.subr.bf16.mxu1 %v23755_v23  ;;  %v23777_v20 = vld [vmem:[#allocation50_spill] sm:$0xff]  ;;  %v7421_v39 = vadd.f32 %v7420_v16, %v7419_v62  ;;  %v23780_v23 = vld [vmem:[#allocation53_spill] sm:$0xff]  ;;  %v17855_v16 = vld [vmem:[%s23565_s18 + $0x50] sm:$0xff] }
 0xd9d   :  { %v7437_v59 = vadd.f32 %v7436_v25, %v7435_v43  ;;  %v16960_v43 = vld [vmem:[%s23566_s19 + $0xc] ss:$28 sps:$4 sm:$0xff]  }
 0xd9e   :  { %v16958_v62 = vld [vmem:[%s23566_s19 + $0x8] ss:$28 sps:$4 sm:$0xff]  }
 0xd9f   :  { %16033 = vmatpush3.bf16.msra.mxu0 %v23756_v58  ;;  %16061 = vmatpush3.bf16.msra.mxu1 %v23758_v44  ;;  %v23781_v58 = vld [vmem:[#allocation58_spill] sm:$0xff]  ;;  %v7438_v49 = vrot.slane %v7437_v59, 1  ;;  %v23782_v44 = vld [vmem:[#allocation59_spill] sm:$0xff] }
 0xda0   :  { %16035 = vmatprep.subr.bf16.mxu0 %v23757_v31  ;;  %16063 = vmatprep.subr.bf16.mxu1 %v23759_v1  ;;  %v7422_v31 = vrot.slane %v7421_v39, 2  ;;  %v17856_v25 = vld [vmem:[%s23565_s18 + $0x28] sm:$0xff] }
 0xda1   :  { %v7439_v1 = vadd.f32 %v7438_v49, %v7437_v59  ;;  %v17858_v59 = vld [vmem:[%s23565_s18 + $0x48] sm:$0xff]  ;;  %v16978_v49 = vld [vmem:[%s23566_s19 + $0xb4] ss:$28 sps:$4 sm:$0xff]  }
 0xda3   :  { %16037 = vmatpush3.bf16.msra.mxu0 %v23760_v18  ;;  %16065 = vmatpush3.bf16.msra.mxu1 %v23762_v52  ;;  %v23785_v18 = vld [vmem:[#allocation62_spill] sm:$0xff] }
 0xda4   :  { %16039 = vmatprep.subr.bf16.mxu0 %v23761_v30  ;;  %16067 = vmatprep.subr.bf16.mxu1 %v23763_v22  ;;  %v7423_v30 = vadd.f32 %v7422_v31, %v7421_v39  ;;  %v16972_v39 = vld [vmem:[%s23566_s19 + $0x7c] ss:$28 sps:$4 sm:$0xff]   ;;  %v17859_v31 = vld [vmem:[%s23565_s18 + $0x40] sm:$0xff] }
 0xda6   :  { %v7424_v52 = vrot.slane %v7423_v30, 1 }
 0xda7   :  { %16041 = vmatpush3.bf16.msra.mxu0 %v23764_v45  ;;  %16069 = vmatpush3.bf16.msra.mxu1 %v23766_v28 }
 0xda8   :  { %16075 = vmatprep.subr.bf16.mxu0 %v23765_v54  ;;  %16071 = vmatprep.subr.bf16.mxu1 %v23767_v15  ;;  %v7425_v22 = vadd.f32 %v7424_v52, %v7423_v30  ;;  %v16975_v30 = vld [vmem:[%s23566_s19 + $0xac] ss:$28 sps:$4 sm:$0xff]   ;;  %v16981_v52 = vld [vmem:[%s23566_s19 + $0xe4] ss:$28 sps:$4 sm:$0xff]  }
 0xdaa   :  { %7648 = vmatmul.mubr.f32.vlgmr.msra.gmra.mrb[58].mxu0 %v7397_v0 }
 0xdab   :  { %16077 = vmatpush3.bf16.msra.mxu0 %v23768_v21  ;;  %7787 = vmatprep.mubr.f32.mxu0 %v7432_v11 }
 0xdac   :  { %16079 = vmatprep.subr.bf16.mxu0 %v23769_v33  ;;  %16073 = vmatpush3.bf16.msra.mxu1 %v23770_v60 }
 0xdad   :  { %16106 = vmatprep.subr.bf16.mxu1 %v23771_v27 }
 0xdaf   :  { %16081 = vmatpush3.bf16.msra.mxu0 %v23772_v8  ;;  %7718 = vmatmul.mubr.f32.vlgmr.msra.gmra.mrb[70].mxu1 %v7411_v38 }
 0xdb0   :  { %16083 = vmatprep.subr.bf16.mxu0 %v23773_v50  ;;  %16108 = vmatpush3.bf16.msra.mxu1 %v23774_v35  ;;  %v17854_v35 = vld [vmem:[%s23565_s18 + $0x10] sm:$0xff] }
 0xdb1   :  { %15474 = vmatprep.mubr.msk.f32.mxu1 %vm17861_vm0, %v23671_v41  ;;  %16109 = vmatprep.subr.bf16.mxu1 %v23771_v27 }
 0xdb3   :  { %16085 = vmatpush3.bf16.msra.mxu0 %v23775_v61  ;;  %v16966_v61 = vld [vmem:[%s23566_s19 + $0x44] ss:$28 sps:$4 sm:$0xff]  }
 0xdb4   :  { %16087 = vmatprep.subr.bf16.mxu0 %v23776_v12  ;;  %16111 = vmatpush3.bf16.msra.mxu1 %v23777_v20  ;;  %v16957_v12 = vld [vmem:[%s23566_s19 + $0x4] ss:$28 sps:$4 sm:$0xff]  }
 0xdb5   :  { %16112 = vmatprep.subr.bf16.mxu1 %v23771_v27  ;;  %v16964_v20 = vld [vmem:[%s23566_s19 + $0x40] ss:$28 sps:$4 sm:$0xff]  }
 0xdb7   :  { %16089 = vmatpush3.bf16.msra.mxu0 %v23778_v17  ;;  %v17857_v17 = vld [vmem:[%s23565_s18 + $0x20] sm:$0xff] }
 0xdb8   :  { %16091 = vmatprep.subr.bf16.mxu0 %v23779_v51  ;;  %16114 = vmatpush3.bf16.msra.mxu1 %v23780_v23  ;;  %v16955_v51 = vld [vmem:[%s23566_s19] ss:$28 sps:$4 sm:$0xff]  }
 0xdb9   :  { %16115 = vmatprep.subr.bf16.mxu1 %v23771_v27  ;;  %v16963_v23 = vld [vmem:[%s23566_s19 + $0x3c] ss:$28 sps:$4 sm:$0xff]  }
 0xdbb   :  { %16093 = vmatpush3.bf16.msra.mxu0 %v23781_v58  ;;  %v16970_v58 = vld [vmem:[%s23566_s19 + $0x78] ss:$28 sps:$4 sm:$0xff]  }
 0xdbc   :  { %16095 = vmatprep.subr.bf16.mxu0 %v23782_v44  ;;  %16117 = vmatpush3.bf16.msra.mxu1 %v23783_v57  ;;  %v16961_v44 = vld [vmem:[%s23566_s19 + $0x38] ss:$28 sps:$4 sm:$0xff]  }
 0xdbd   :  { %15472 = vmatprep.subr.mxu1 %v23671_v41  ;;  %v16969_v57 = vld [vmem:[%s23566_s19 + $0x74] ss:$28 sps:$4 sm:$0xff]  }
 0xdbf   :  { %16097 = vmatpush3.bf16.msra.mxu0 %v23784_v56  ;;  %v16976_v56 = vld [vmem:[%s23566_s19 + $0xb0] ss:$28 sps:$4 sm:$0xff]  }
 0xdc0   :  { %16099 = vmatprep.subr.bf16.mxu0 %v23785_v18  ;;  %15473 = vmatpush3.msra.mxu1 %v23786_v19  ;;  %v16967_v18 = vld [vmem:[%s23566_s19 + $0x70] ss:$28 sps:$4 sm:$0xff]   ;;  %v16982_v19 = vld [vmem:[%s23566_s19 + $0xe8] ss:$28 sps:$4 sm:$0xff]  }
 0xdc1   :  { %15475 = vmatmul.mubr.msk.f32.vlgmr.msra.gmra.mrb[72].mxu1 %vm6432_vm8, %v7439_v1  ;;  %7867 = vmatprep.subr.mxu1 %v21270_v48  ;;  %v16984_v1 = vld [vmem:[%s23566_s19 + $0xec] ss:$28 sps:$4 sm:$0xff]  }
 0xdc2   :  { %7868 = vmatpush1.msra.mxu1 %v21275_v5  ;;  %7931 = vmatprep.mubr.f32.mxu1 %v23671_v41 }
 0xdc3   :  { %16101 = vmatpush3.bf16.msra.mxu0 %v23787_v7  ;;  %7938 = vmatprep.subr.mxu1 %v21287_v36  ;;  %v16990_v7 = vld [vmem:[%s23566_s19 + $0x124] ss:$28 sps:$4 sm:$0xff]  }
 0xdc4   :  { %16103 = vmatprep.subr.bf16.mxu0 %v23788_v10  ;;  %v16973_v10 = vld [vmem:[%s23566_s19 + $0xa8] ss:$28 sps:$4 sm:$0xff]  }
 0xdc7   :  { %16105 = vmatpush3.bf16.msra.mxu0 %v23789_v2  ;;  %v16988_v2 = vld [vmem:[%s23566_s19 + $0x120] ss:$28 sps:$4 sm:$0xff]  }
 0xdc8   :  { %8080 = vmatprep.subr.mxu0 %v21308_v47 }
 0xdca   :  { %7788 = vmatmul.mubr.f32.vlgmr.msra.gmra.mrb[60].mxu0 %v7425_v22  ;;  %v16996_v22 = vld [vmem:[%s23566_s19 + $0x15c] ss:$28 sps:$4 sm:$0xff]  }
 0xdcb   :  { %8081 = vmatpush1.msra.mxu0 %v21317_v26  ;;  %8144 = vmatprep.mubr.f32.mxu0 %v23671_v41 }
 0xdcc   :  { %15477 = vmatprep.subr.mxu0 %v23671_v41 }
 0xe5d   :  { %v15037_v48 = vpop.f32.mrb[56].mxu0 }
 0xe5e   :  { %v15038_v5 = vpop.f32.mrb[57].mxu0 }
 0xe5f   :  { %v15039_v29 = vadd.f32 %v15038_v5, %v15037_v48  ;;  %v16979_v48 = vld [vmem:[%s23566_s19 + $0xe0] ss:$28 sps:$4 sm:$0xff]  }
 0xe60   :  { %v16987_v5 = vld [vmem:[%s23566_s19 + $0x11c] ss:$28 sps:$4 sm:$0xff]  }
 0xe61   :  { %v15072_v45 = vpop.f32.mrb[68].mxu1 }
 0xe62   :  { %v15073_v0 = vpop.f32.mrb[69].mxu1 }
 0xe63   :  { %v15074_v54 = vadd.f32 %v15073_v0, %v15072_v45  ;;  %v17002_v45 = vld [vmem:[%s23566_s19 + $0x194] ss:$28 sps:$4 sm:$0xff]  }
 0xe64   :  { %v16985_v0 = vld [vmem:[%s23566_s19 + $0x118] ss:$28 sps:$4 sm:$0xff]  }
 0xe65   :  { %v7580_v42 = vadd.f32 %v15074_v54, %v15039_v29  ;;  %v16994_v29 = vld [vmem:[%s23566_s19 + $0x158] ss:$28 sps:$4 sm:$0xff]  }
 0xe66   :  { %v16993_v54 = vld [vmem:[%s23566_s19 + $0x154] ss:$28 sps:$4 sm:$0xff]  }
 0xe7d   :  { %v15107_v36 = vpop.f32.mrb[58].mxu0 }
 0xe7e   :  { %v15108_v28 = vpop.f32.mrb[59].mxu0 }
 0xe7f   :  { %v15109_v11 = vadd.f32 %v15108_v28, %v15107_v36  ;;  %v17008_v36 = vld [vmem:[%s23566_s19 + $0x1cc] ss:$28 sps:$4 sm:$0xff]  }
 0xe80   :  { %v16991_v28 = vld [vmem:[%s23566_s19 + $0x150] ss:$28 sps:$4 sm:$0xff]  }
 0xe81   :  { %v7650_v15 = vadd.f32 %v15109_v11, %v7580_v42  ;;  %v17000_v42 = vld [vmem:[%s23566_s19 + $0x190] ss:$28 sps:$4 sm:$0xff]  }
 0xe82   :  { %v15142_v32 = vpop.f32.mrb[70].mxu1  ;;  %v16999_v11 = vld [vmem:[%s23566_s19 + $0x18c] ss:$28 sps:$4 sm:$0xff]  }
 0xe83   :  { %v15143_v47 = vpop.f32.mrb[71].mxu1 }
 0xe84   :  { %v15144_v21 = vadd.f32 %v15143_v47, %v15142_v32  ;;  %v17014_v32 = vld [vmem:[%s23566_s19 + $0x204] ss:$28 sps:$4 sm:$0xff]  }
 0xe85   :  { %v16997_v47 = vld [vmem:[%s23566_s19 + $0x188] ss:$28 sps:$4 sm:$0xff]  }
 0xe86   :  { %v7720_v55 = vadd.f32 %v15144_v21, %v7650_v15  ;;  %v17006_v15 = vld [vmem:[%s23566_s19 + $0x1c8] ss:$28 sps:$4 sm:$0xff]  }
 0xe87   :  { %v17005_v21 = vld [vmem:[%s23566_s19 + $0x1c4] ss:$28 sps:$4 sm:$0xff]  }
 0xe94   :  { %v7859_v26 = vpop.f32.mrb[72].mxu1 }
 0xe95   :  { %v15476_v33 = vpop.f32.mrb[73].mxu1 }
 0xe96   :  { %v17011_v33 = vld [vmem:[%s23566_s19 + $0x1fc] ss:$28 sps:$4 sm:$0xff]  }
 0xe9d   :  { %v15177_v24 = vpop.f32.mrb[60].mxu0 }
 0xe9e   :  { %v15178_v60 = vpop.f32.mrb[61].mxu0 }
 0xe9f   :  { %v15179_v38 = vadd.f32 %v15178_v60, %v15177_v24  ;;  %v17009_v24 = vld [vmem:[%s23566_s19 + $0x1f8] ss:$28 sps:$4 sm:$0xff]  }
 0xea0   :  { %v17017_v60 = vld [vmem:[%s23566_s19 + $0x234] ss:$28 sps:$4 sm:$0xff]  }
 0xea1   :  { %v7790_v27 = vadd.f32 %v15179_v38, %v7720_v55  ;;  %v17012_v55 = vld [vmem:[%s23566_s19 + $0x200] ss:$28 sps:$4 sm:$0xff]  }
 0xea2   :  { %v17020_v38 = vld [vmem:[%s23566_s19 + $0x23c] ss:$28 sps:$4 sm:$0xff]  }
 0xea3   :  { %v7860_v8 = vadd.f32 %v7859_v26, %v7790_v27  ;;  %v17003_v26 = vld [vmem:[%s23566_s19 + $0x1c0] ss:$28 sps:$4 sm:$0xff]   ;;  %v17015_v27 = vld [vmem:[%s23566_s19 + $0x230] ss:$28 sps:$4 sm:$0xff]  }
 0xea5   :  { %v7863_v50 = vmul.f32 0.00295858, %v7860_v8  ;;  %v17018_v8 = vld [vmem:[%s23566_s19 + $0x238] ss:$28 sps:$4 sm:$0xff]  }
 0xea7   :  { %13880 = vmatmul.mubr.msk.f32.vlgmr.msra.gmra.mrb[74].mxu1 %vm6868_vm9, %v7863_v50  ;;  %13883 = vmatmul.mubr.msk.f32.vlgmr.msra.gmra.mrb[62].mxu0 %vm6868_vm9, %v7863_v50 }
 0xea8   :  { %7939 = vmatpush1.msra.mxu1 %v17854_v35  ;;  %8002 = vmatprep.mubr.f32.mxu1 %v23671_v41  ;;  %v17024_v35 = vld [vmem:[%s23566_s19 + $0x270] ss:$28 sps:$4 sm:$0xff]  }
 0xea9   :  { %15478 = vmatpush3.msra.mxu0 %v17855_v16  ;;  %15479 = vmatprep.mubr.msk.f32.mxu0 %vm17861_vm0, %v23671_v41  ;;  %v17032_v16 = vld [vmem:[%s23566_s19 + $0x2ac] ss:$28 sps:$4 sm:$0xff]  }
 0xeaa   :  { %8009 = vmatprep.subr.mxu1 %v17856_v25  ;;  %12546 = vmatprep.subr.bf16.mxu0 %v16960_v43  ;;  %v17023_v43 = vld [vmem:[%s23566_s19 + $0x26c] ss:$28 sps:$4 sm:$0xff]   ;;  %v17027_v25 = vld [vmem:[%s23566_s19 + $0x2a0] ss:$28 sps:$4 sm:$0xff]  }
 0xeab   :  { %13881 = vmatmul.mubr.msk.f32.vlgmr.msra.gmra.mrb[76].mxu1 %vm6868_vm9, %v7863_v50  ;;  %15480 = vmatmul.mubr.msk.f32.vlgmr.msra.gmra.mrb[64].mxu0 %vm6868_vm9, %v7863_v50 }
 0xeac   :  { %8010 = vmatpush1.msra.mxu1 %v17857_v17  ;;  %8073 = vmatprep.mubr.f32.mxu1 %v23671_v41  ;;  %v17038_v17 = vld [vmem:[%s23566_s19 + $0x2e4] ss:$28 sps:$4 sm:$0xff]  }
 0xead   :  { %8151 = vmatprep.subr.mxu1 %v17858_v59  ;;  %12547 = vmatpush1.bf16.msra.mxu0 %v16958_v62  ;;  %v17021_v62 = vld [vmem:[%s23566_s19 + $0x268] ss:$28 sps:$4 sm:$0xff]   ;;  %v17036_v59 = vld [vmem:[%s23566_s19 + $0x2e0] ss:$28 sps:$4 sm:$0xff]  }
 0xeae   :  { %12548 = vmatprep.subr.bf16.mxu0 %v16966_v61  ;;  %v17029_v61 = vld [vmem:[%s23566_s19 + $0x2a4] ss:$28 sps:$4 sm:$0xff]  }
 0xeaf   :  { %13882 = vmatmul.mubr.msk.f32.vlgmr.msra.gmra.mrb[78].mxu1 %vm6868_vm9, %v7863_v50 }
 0xeb0   :  { %8152 = vmatpush1.msra.mxu1 %v17859_v31  ;;  %8215 = vmatprep.mubr.f32.mxu1 %v23671_v41  ;;  %v17044_v31 = vld [vmem:[%s23566_s19 + $0x31c] ss:$28 sps:$4 sm:$0xff]  }
 0xeb1   :  { %12300 = vmatprep.subr.bf16.mxu1 %v16957_v12  ;;  %12549 = vmatpush1.bf16.msra.mxu0 %v16964_v20  ;;  %v17030_v12 = vld [vmem:[%s23566_s19 + $0x2a8] ss:$28 sps:$4 sm:$0xff]   ;;  %v17035_v20 = vld [vmem:[%s23566_s19 + $0x2dc] ss:$28 sps:$4 sm:$0xff]  }
 0xeb2   :  { %12550 = vmatprep.subr.bf16.mxu0 %v16972_v39  ;;  %v17033_v39 = vld [vmem:[%s23566_s19 + $0x2d8] ss:$28 sps:$4 sm:$0xff]  }
 0xeb3   :  { %13884 = vmatmul.mubr.msk.f32.vlgmr.msra.gmra.mrb[80].mxu1 %vm6868_vm9, %v7863_v50  ;;  %v17026_v50 = vld [vmem:[%s23566_s19 + $0x274] ss:$28 sps:$4 sm:$0xff]  }
 0xeb4   :  { %12301 = vmatpush1.bf16.msra.mxu1 %v16955_v51  ;;  %v17041_v51 = vld [vmem:[%s23566_s19 + $0x314] ss:$28 sps:$4 sm:$0xff]  }
 0xeb5   :  { %12302 = vmatprep.subr.bf16.mxu1 %v16963_v23  ;;  %12551 = vmatpush1.bf16.msra.mxu0 %v16970_v58  ;;  %v17039_v23 = vld [vmem:[%s23566_s19 + $0x310] ss:$28 sps:$4 sm:$0xff]   ;;  %v17042_v58 = vld [vmem:[%s23566_s19 + $0x318] ss:$28 sps:$4 sm:$0xff]  }
 0xeb6   :  { %12552 = vmatprep.subr.bf16.mxu0 %v16978_v49  ;;  %v17047_v49 = vld [vmem:[%s23566_s19 + $0x34c] ss:$28 sps:$4 sm:$0xff]  }
 0xeb8   :  { %12303 = vmatpush1.bf16.msra.mxu1 %v16961_v44  ;;  %v17050_v44 = vld [vmem:[%s23566_s19 + $0x354] ss:$28 sps:$4 sm:$0xff]  }
 0xeb9   :  { %12304 = vmatprep.subr.bf16.mxu1 %v16969_v57  ;;  %12553 = vmatpush1.bf16.msra.mxu0 %v16976_v56  ;;  %v17045_v57 = vld [vmem:[%s23566_s19 + $0x348] ss:$28 sps:$4 sm:$0xff]   ;;  %v17048_v56 = vld [vmem:[%s23566_s19 + $0x350] ss:$28 sps:$4 sm:$0xff]  }
 0xeba   :  { %12554 = vmatprep.subr.bf16.mxu0 %v16984_v1  ;;  %v17053_v1 = vld [vmem:[%s23566_s19 + $0x384] ss:$28 sps:$4 sm:$0xff]  }
 0xebc   :  { %12305 = vmatpush1.bf16.msra.mxu1 %v16967_v18  ;;  %v17056_v18 = vld [vmem:[%s23566_s19 + $0x38c] ss:$28 sps:$4 sm:$0xff]  }
 0xebd   :  { %12306 = vmatprep.subr.bf16.mxu1 %v16975_v30  ;;  %12555 = vmatpush1.bf16.msra.mxu0 %v16982_v19 }
 0xebe   :  { %12556 = vmatprep.subr.bf16.mxu0 %v16990_v7 }
 0xec0   :  { %12307 = vmatpush1.bf16.msra.mxu1 %v16973_v10 }
 0xec1   :  { %12308 = vmatprep.subr.bf16.mxu1 %v16981_v52  ;;  %12557 = vmatpush1.bf16.msra.mxu0 %v16988_v2 }
 0xec2   :  { %12558 = vmatprep.subr.bf16.mxu0 %v16996_v22 }
 0xec4   :  { %12309 = vmatpush1.bf16.msra.mxu1 %v16979_v48 }
 0xec5   :  { %12310 = vmatprep.subr.bf16.mxu1 %v16987_v5  ;;  %12559 = vmatpush1.bf16.msra.mxu0 %v16994_v29 }
 0xec6   :  { %12560 = vmatprep.subr.bf16.mxu0 %v17002_v45 }
 0xec8   :  { %12311 = vmatpush1.bf16.msra.mxu1 %v16985_v0 }
 0xec9   :  { %12312 = vmatprep.subr.bf16.mxu1 %v16993_v54  ;;  %12561 = vmatpush1.bf16.msra.mxu0 %v17000_v42 }
 0xeca   :  { %12562 = vmatprep.subr.bf16.mxu0 %v17008_v36 }
 0xecc   :  { %12313 = vmatpush1.bf16.msra.mxu1 %v16991_v28 }
 0xecd   :  { %12314 = vmatprep.subr.bf16.mxu1 %v16999_v11  ;;  %12563 = vmatpush1.bf16.msra.mxu0 %v17006_v15  ;;  %v21741_v11 = vld [vmem:[%s23567_s15] sm:$0xff] }
 0xece   :  { %12564 = vmatprep.subr.bf16.mxu0 %v17014_v32 }
 0xed0   :  { %12315 = vmatpush1.bf16.msra.mxu1 %v16997_v47 }
 0xed1   :  { %12316 = vmatprep.subr.bf16.mxu1 %v17005_v21  ;;  %12565 = vmatpush1.bf16.msra.mxu0 %v17012_v55  ;;  %v21746_v21 = vld [vmem:[%s23568_s16] sm:$0xff] }
 0xed2   :  { %12566 = vmatprep.subr.bf16.mxu0 %v17020_v38  ;;  %v23790_v55 = vld [vmem:[#allocation42_spill] sm:$0xff]  ;;  %v8365_v38 = vrot.slane %v21741_v11, %v18169_v4 }
 0xed4   :  { %12317 = vmatpush1.bf16.msra.mxu1 %v17003_v26  ;;  %v8393_v26 = vrot.slane %v21741_v11, %v23790_v55 }
 0xed5   :  { %12318 = vmatprep.subr.bf16.mxu1 %v17011_v33  ;;  %12567 = vmatpush1.bf16.msra.mxu0 %v17018_v8 }
 0xed6   :  { %12568 = vmatprep.subr.bf16.mxu0 %v17026_v50 }
 0xed8   :  { %12319 = vmatpush1.bf16.msra.mxu1 %v17009_v24  ;;  %v23791_v24 = vld [vmem:[#allocation4_spill] sm:$0xff] }
 0xed9   :  { %12320 = vmatprep.subr.bf16.mxu1 %v17017_v60  ;;  %12569 = vmatpush1.bf16.msra.mxu0 %v17024_v35  ;;  %v8369_v60 = vrot.slane %v21741_v11, %v23791_v24  ;;  %v8439_v50 = vrot.slane %v21746_v21, %v23791_v24  ;;  %v23792_v35 = vld [vmem:[#allocation40_spill] sm:$0xff] }
 0xeda   :  { %12570 = vmatprep.subr.bf16.mxu0 %v17032_v16 }
 0xedc   :  { %12321 = vmatpush1.bf16.msra.mxu1 %v17015_v27 }
 0xedd   :  { %12322 = vmatprep.subr.bf16.mxu1 %v17023_v43  ;;  %12571 = vmatpush1.bf16.msra.mxu0 %v17030_v12 }
 0xede   :  { %12572 = vmatprep.subr.bf16.mxu0 %v17038_v17 }
 0xee0   :  { %12323 = vmatpush1.bf16.msra.mxu1 %v17021_v62  ;;  %v8435_v62 = vrot.slane %v21746_v21, %v18169_v4 }
 0xee1   :  { %12324 = vmatprep.subr.bf16.mxu1 %v17029_v61  ;;  %12573 = vmatpush1.bf16.msra.mxu0 %v17036_v59  ;;  %v8389_v61 = vrot.slane %v21741_v11, %v23792_v35  ;;  %v21768_v59 = vld [vmem:[%s23567_s15 + $0x8] sm:$0x7] }
 0xee2   :  { %12574 = vmatprep.subr.bf16.mxu0 %v17044_v31  ;;  %v8463_v31 = vrot.slane %v21746_v21, %v23790_v55  ;;  %v23796_v55 = vld [vmem:[#allocation41_spill] sm:$0xff] }
 0xee4   :  { %12325 = vmatpush1.bf16.msra.mxu1 %v17027_v25 }
 0xee5   :  { %12326 = vmatprep.subr.bf16.mxu1 %v17035_v20  ;;  %12575 = vmatpush1.bf16.msra.mxu0 %v17042_v58  ;;  %v23793_v20 = vld [vmem:[#allocation5_spill] sm:$0xff] }
 0xee6   :  { %12576 = vmatprep.subr.bf16.mxu0 %v17050_v44  ;;  %v8377_v17 = vrot.slane %v21741_v11, %v23793_v20  ;;  %v8447_v58 = vrot.slane %v21746_v21, %v23793_v20 }
 0xee8   :  { %12327 = vmatpush1.bf16.msra.mxu1 %v17033_v39  ;;  %v8459_v39 = vrot.slane %v21746_v21, %v23792_v35 }
 0xee9   :  { %12328 = vmatprep.subr.bf16.mxu1 %v17041_v51  ;;  %12577 = vmatpush1.bf16.msra.mxu0 %v17048_v56 }
 0xeea   :  { %12587 = vmatprep.subr.bf16.mxu0 %v17056_v18 }
 0xeec   :  { %12329 = vmatpush1.bf16.msra.mxu1 %v17039_v23 }
 0xeed   :  { %12330 = vmatprep.subr.bf16.mxu1 %v17047_v49  ;;  %v21778_v49 = vld [vmem:[%s23568_s16 + $0x8] sm:$0x7] }
 0xef0   :  { %12331 = vmatpush1.bf16.msra.mxu1 %v17045_v57 }
 0xef1   :  { %12341 = vmatprep.subr.bf16.mxu1 %v17053_v1  ;;  %v23794_v1 = vld [vmem:[#allocation3_spill] sm:$0xff] }
 0xef2   :  { %v8373_v18 = vrot.slane %v21741_v11, %v23794_v1 }
 0xf7a   :  { %v7933_v30 = vpop.f32.mrb[74].mxu1  ;;  %v8146_v19 = vpop.f32.mrb[62].mxu0 }
 0xf7b   :  { %v7934_v7 = vadd.f32 1e-05, %v7933_v30  ;;  %v8147_v10 = vadd.f32 1e-05, %v8146_v19  ;;  %v7935_v52 = vpop.f32.mrb[75].mxu1  ;;  %v8148_v2 = vpop.f32.mrb[63].mxu0 }
 0xf7c   :  { %v7936_v22 = vadd.f32 1e-05, %v7935_v52  ;;  %v8149_v48 = vadd.f32 1e-05, %v8148_v2  ;;  %v8405_v52 = vrot.slane %v21768_v59, %v23794_v1 }
 0xf7d   :  { %17818 = vrsqrt.f32 %v7934_v7  ;;  %v8443_v7 = vrot.slane %v21746_v21, %v23794_v1 }
 0xf7e   :  { %17820 = vrsqrt.f32 %v8147_v10  ;;  %v8004_v5 = vpop.f32.mrb[76].mxu1  ;;  %v8288_v29 = vpop.f32.mrb[64].mxu0 }
 0xf7f   :  { %17822 = vrsqrt.f32 %v7936_v22  ;;  %v8005_v45 = vadd.f32 1e-05, %v8004_v5  ;;  %v8289_v0 = vadd.f32 1e-05, %v8288_v29  ;;  %v8006_v54 = vpop.f32.mrb[77].mxu1  ;;  %v15481_v42 = vpop.f32.mrb[65].mxu0  ;;  %v8475_v5 = vrot.slane %v21778_v49, %v23794_v1 }
 0xf80   :  { %17824 = vrsqrt.f32 %v8149_v48  ;;  %v8007_v36 = vadd.f32 1e-05, %v8006_v54 }
 0xf81   :  { %17826 = vrsqrt.f32 %v8005_v45 }
 0xf82   :  { %17828 = vrsqrt.f32 %v8289_v0  ;;  %v8075_v28 = vpop.f32.mrb[78].mxu1  ;;  %v23795_v0 = vld [vmem:[#allocation6_spill] sm:$0xff] }
 0xf83   :  { %17830 = vrsqrt.f32 %v8007_v36  ;;  %v8076_v15 = vadd.f32 1e-05, %v8075_v28  ;;  %v8077_v32 = vpop.f32.mrb[79].mxu1  ;;  %v8381_v54 = vrot.slane %v21741_v11, %v23795_v0 }
 0xf84   :  { %v8078_v47 = vadd.f32 1e-05, %v8077_v32 }
 0xf85   :  { %17832 = vrsqrt.f32 %v8076_v15 }
 0xf86   :  { %17834 = vrsqrt.f32 %v8078_v47  ;;  %v8217_v33 = vpop.f32.mrb[80].mxu1 }
 0xf87   :  { %v17819_v27 = vpop.eup %17818  ;;  %v8218_v8 = vadd.f32 1e-05, %v8217_v33  ;;  %v8219_v43 = vpop.f32.mrb[81].mxu1  ;;  %v8385_v33 = vrot.slane %v21741_v11, %v23796_v55 }
 0xf88   :  { %v17821_v16 = vpop.eup %17820  ;;  %v8306_v25 = vrot.slane %v17819_v27, %v18169_v4  ;;  %v8220_v12 = vadd.f32 1e-05, %v8219_v43 }
 0xf89   :  { %v17823_v51 = vpop.eup %17822  ;;  %v8330_v23 = vrot.slane %v17821_v16, %v18169_v4  ;;  %17836 = vrsqrt.f32 %v8218_v8 }
 0xf8a   :  { %v17825_v44 = vpop.eup %17824  ;;  %v8310_v57 = vrot.slane %v17823_v51, %v18169_v4  ;;  %17838 = vrsqrt.f32 %v8220_v12  ;;  %v8347_v56 = vmul.f32 %v8306_v25, %v21366_v13 }
 0xf8b   :  { %v17827_v30 = vpop.eup %17826  ;;  %v8334_v19 = vrot.slane %v17825_v44, %v18169_v4  ;;  %v8353_v10 = vmul.f32 %v8330_v23, %v21423_v14  ;;  %v8397_v23 = vrot.slane %v21768_v59, %v18169_v4 }
 0xf8c   :  { %v17829_v2 = vpop.eup %17828  ;;  %v8314_v22 = vrot.slane %v17827_v30, %v18169_v4  ;;  %v8348_v48 = vmul.f32 %v8310_v57, %v21369_v3  ;;  %v8417_v13 = vmul.f32 %v8365_v38, %v8347_v56  ;;  %v17054_v57 = vld [vmem:[%s23566_s19 + $0x388] ss:$28 sps:$4 sm:$0xff]   ;;  %v17059_v30 = vld [vmem:[%s23566_s19 + $0x3bc] ss:$28 sps:$4 sm:$0xff]  }
 0xf8d   :  { %v17831_v29 = vpop.eup %17830  ;;  %v8346_v45 = vrot.slane %v17829_v2, %v18169_v4  ;;  %v8354_v14 = vmul.f32 %v8334_v19, %v21399_v37  ;;  %v8423_v42 = vmul.f32 %v8389_v61, %v8353_v10  ;;  %v17062_v19 = vld [vmem:[%s23566_s19 + $0x3c4] ss:$28 sps:$4 sm:$0xff]   ;;  %v8401_v10 = vrot.slane %v21768_v59, %v23791_v24 }
 0xf8e   :  { %v8318_v36 = vrot.slane %v17831_v29, %v18169_v4  ;;  %v8418_v28 = vmul.f32 %v8369_v60, %v8348_v48  ;;  %v8487_v15 = vadd.f32 %v8435_v62, %v8417_v13  ;;  %v8349_v32 = vmul.f32 %v8314_v22, %v21379_v53 }
 0xf8f   :  { %v17833_v3 = vpop.eup %17832  ;;  %v8357_v47 = vmul.f32 %v8346_v45, %v21451_v6  ;;  %v8424_v38 = vmul.f32 %v8393_v26, %v8354_v14  ;;  %v21803_v27 = vadd.f32 %v8459_v39, %v8423_v42  ;;  %v8451_v26 = vrot.slane %v21746_v21, %v23795_v0  ;;  %v17060_v45 = vld [vmem:[%s23566_s19 + $0x3c0] ss:$28 sps:$4 sm:$0xff]   ;;  %v17065_v14 = vld [vmem:[%s23566_s19 + $0x3f4] ss:$28 sps:$4 sm:$0xff]  }
 0xf90   :  { %v17835_v8 = vpop.eup %17834  ;;  %v8322_v43 = vrot.slane %v17833_v3, %v18169_v4  ;;  %v8488_v37 = vadd.f32 %v8439_v50, %v8418_v28  ;;  %v8498_v61 = vmax.f32 %v8487_v15, 0.0  ;;  %v8350_v16 = vmul.f32 %v8318_v36, %v21385_v46  ;;  %v17068_v42 = vld [vmem:[%s23566_s19 + $0x3fc] ss:$28 sps:$4 sm:$0xff]   ;;  %v17074_v3 = vld [vmem:[%s23566_s19 + $0x434] ss:$28 sps:$4 sm:$0xff]  }
 0xf91   :  { %v8326_v60 = vrot.slane %v17835_v8, %v18169_v4  ;;  %v8419_v62 = vmul.f32 %v8373_v18, %v8349_v32  ;;  %v21808_v53 = vadd.f32 %v8463_v31, %v8424_v38  ;;  %v8427_v25 = vmul.f32 %v8405_v52, %v8357_v47  ;;  %v17066_v15 = vld [vmem:[%s23566_s19 + $0x3f8] ss:$28 sps:$4 sm:$0xff]   ;;  %v17071_v32 = vld [vmem:[%s23566_s19 + $0x42c] ss:$28 sps:$4 sm:$0xff]   ;;  %v17077_v38 = vld [vmem:[%s23566_s19 + $0x464] ss:$28 sps:$4 sm:$0xff]  }
 0xf92   :  { %v8499_v6 = vmax.f32 %v8488_v37, 0.0  ;;  %v8420_v12 = vmul.f32 %v8377_v17, %v8350_v16  ;;  %v8351_v11 = vmul.f32 %v8322_v43, %v21410_v9  ;;  %v8455_v46 = vrot.slane %v21746_v21, %v23796_v55  ;;  %v17051_v9 = vld [vmem:[%s23566_s19 + $0x380] ss:$28 sps:$4 sm:$0xff]   ;;  %v17069_v47 = vld [vmem:[%s23566_s19 + $0x428] ss:$28 sps:$4 sm:$0xff]  }
 0xf93   :  { %v17837_v39 = vpop.eup %17836  ;;  %v21813_v51 = vadd.f32 %v8443_v7, %v8419_v62  ;;  %v8352_v50 = vmul.f32 %v8326_v60, %v21393_v63  ;;  %v21830_v18 = vpack.c.bf16 %v8498_v61, %v8498_v61  ;;  %v8467_v22 = vrot.slane %v21778_v49, %v18169_v4  ;;  %v17080_v8 = vld [vmem:[%s23566_s19 + $0x46c] ss:$28 sps:$4 sm:$0xff]   ;;  %v17075_v43 = vld [vmem:[%s23566_s19 + $0x460] ss:$28 sps:$4 sm:$0xff]   ;;  %v17081_v60 = vld [vmem:[%s23566_s19 + $0x498] ss:$28 sps:$4 sm:$0xff]  }
 0xf94   :  { %v17839_v31 = vpop.eup %17838  ;;  %v8338_v44 = vrot.slane %v17837_v39, %v18169_v4  ;;  %v21821_v17 = vpack.c.bf16 %v8499_v6, %v8499_v6  ;;  %v8490_v63 = vadd.f32 %v8447_v58, %v8420_v12  ;;  %v8421_v56 = vmul.f32 %v8381_v54, %v8351_v11  ;;  %v17078_v37 = vld [vmem:[%s23566_s19 + $0x468] ss:$28 sps:$4 sm:$0xff]   ;;  %v17083_v61 = vld [vmem:[%s23566_s19 + $0x49c] ss:$28 sps:$4 sm:$0xff]   ;;  %v17087_v12 = vld [vmem:[%s23566_s19 + $0x4d0] ss:$28 sps:$4 sm:$0xff]  }
 0xf95   :  { %v8342_v21 = vrot.slane %v17839_v31, %v18169_v4  ;;  %v8422_v7 = vmul.f32 %v8385_v33, %v8352_v50  ;;  %v8471_v13 = vrot.slane %v21778_v49, %v23791_v24  ;;  %v17072_v33 = vld [vmem:[%s23566_s19 + $0x430] ss:$28 sps:$4 sm:$0xff]   ;;  %v17086_v16 = vld [vmem:[%s23566_s19 + $0x4a4] ss:$28 sps:$4 sm:$0xff]   ;;  %v17092_v6 = vld [vmem:[%s23566_s19 + $0x4dc] ss:$28 sps:$4 sm:$0xff]  }
 0xf96   :  { %12332 = vmatprep.mubr.bf16.mxu1 %v21821_v17  ;;  %12578 = vmatprep.mubr.bf16.mxu0 %v21821_v17  ;;  %v8501_v58 = vmax.f32 %v8490_v63, 0.0  ;;  %v21842_v52 = vadd.f32 %v8451_v26, %v8421_v56  ;;  %v8355_v2 = vmul.f32 %v8338_v44, %v21466_v40  ;;  %v17057_v40 = vld [vmem:[%s23566_s19 + $0x3b8] ss:$28 sps:$4 sm:$0xff]   ;;  %v17084_v62 = vld [vmem:[%s23566_s19 + $0x4a0] ss:$28 sps:$4 sm:$0xff]  }
 0xf97   :  { %12333 = vmatmul.mubr.bf16.vlgmr.msra.gmra.mrb[84].mxu1 %v21830_v18  ;;  %12579 = vmatmul.mubr.bf16.vlgmr.msra.gmra.mrb[68].mxu0 %v21830_v18  ;;  %v21849_v48 = vadd.f32 %v8455_v46, %v8422_v7  ;;  %v8356_v59 = vmul.f32 %v8342_v21, %v21413_v34  ;;  %v21865_v34 = vadd.f32 %v8475_v5, %v8427_v25  ;;  %v17063_v5 = vld [vmem:[%s23566_s19 + $0x3f0] ss:$28 sps:$4 sm:$0xff]   ;;  %v17090_v11 = vld [vmem:[%s23566_s19 + $0x4d8] ss:$28 sps:$4 sm:$0xff]   ;;  %v17093_v50 = vld [vmem:[%s23566_s19 + $0x508] ss:$28 sps:$4 sm:$0xff]  }
 0xf98   :  { %12342 = vmatpush1.bf16.msra.mxu1 %v17051_v9  ;;  %12588 = vmatpush1.bf16.msra.mxu0 %v17054_v57  ;;  %v21857_v29 = vpack.c.bf16 %v8501_v58, %v8501_v58  ;;  %v8425_v54 = vmul.f32 %v8397_v23, %v8355_v2  ;;  %v17089_v25 = vld [vmem:[%s23566_s19 + $0x4d4] ss:$28 sps:$4 sm:$0xff]   ;;  %v17095_v26 = vld [vmem:[%s23566_s19 + $0x50c] ss:$28 sps:$4 sm:$0xff]   ;;  %v17101_v23 = vld [vmem:[%s23566_s19 + $0x544] ss:$28 sps:$4 sm:$0xff]  }
 0xf99   :  { %12343 = vmatprep.subr.bf16.mxu1 %v17059_v30  ;;  %12589 = vmatprep.subr.bf16.mxu0 %v17062_v19  ;;  %v8426_v36 = vmul.f32 %v8401_v10, %v8356_v59  ;;  %v17098_v39 = vld [vmem:[%s23566_s19 + $0x514] ss:$28 sps:$4 sm:$0xff]   ;;  %v17104_v31 = vld [vmem:[%s23566_s19 + $0x54c] ss:$28 sps:$4 sm:$0xff]   ;;  %v17099_v44 = vld [vmem:[%s23566_s19 + $0x540] ss:$28 sps:$4 sm:$0xff]  }
 0xf9a   :  { %12373 = vmatprep.mubr.bf16.mxu1 %v21857_v29  ;;  %12619 = vmatprep.mubr.bf16.mxu0 %v21857_v29  ;;  %v21875_v28 = vadd.f32 %v8467_v22, %v8425_v54  ;;  %v17096_v46 = vld [vmem:[%s23566_s19 + $0x510] ss:$28 sps:$4 sm:$0xff]   ;;  %v17102_v9 = vld [vmem:[%s23566_s19 + $0x548] ss:$28 sps:$4 sm:$0xff]   ;;  %v17107_v57 = vld [vmem:[%s23566_s19 + $0x57c] ss:$28 sps:$4 sm:$0xff]  }
 0xf9b   :  { %v21877_v49 = vadd.f32 %v8471_v13, %v8426_v36  ;;  %v17110_v63 = vld [vmem:[%s23566_s19 + $0x584] ss:$28 sps:$4 sm:$0xff]   ;;  %v17105_v56 = vld [vmem:[%s23566_s19 + $0x578] ss:$28 sps:$4 sm:$0xff]   ;;  %v17111_v7 = vld [vmem:[%s23566_s19 + $0x5b0] ss:$28 sps:$4 sm:$0xff]  }
 0xf9c   :  { %12344 = vmatpush1.bf16.msra.mxu1 %v17057_v40  ;;  %12590 = vmatpush1.bf16.msra.mxu0 %v17060_v45  ;;  %v17108_v21 = vld [vmem:[%s23566_s19 + $0x580] ss:$28 sps:$4 sm:$0xff]   ;;  %v17113_v30 = vld [vmem:[%s23566_s19 + $0x5b4] ss:$28 sps:$4 sm:$0xff]   ;;  %v17119_v58 = vld [vmem:[%s23566_s19 + $0x5ec] ss:$28 sps:$4 sm:$0xff]  }
 0xf9d   :  { %12345 = vmatprep.subr.bf16.mxu1 %v17065_v14  ;;  %12591 = vmatprep.subr.bf16.mxu0 %v17068_v42  ;;  %v17116_v19 = vld [vmem:[%s23566_s19 + $0x5bc] ss:$28 sps:$4 sm:$0xff]   ;;  %v17122_v2 = vld [vmem:[%s23566_s19 + $0x5f4] ss:$28 sps:$4 sm:$0xff]   ;;  %v17117_v22 = vld [vmem:[%s23566_s19 + $0x5e8] ss:$28 sps:$4 sm:$0xff]  }
 0xf9e   :  { %v17114_v10 = vld [vmem:[%s23566_s19 + $0x5b8] ss:$28 sps:$4 sm:$0xff]   ;;  %v17120_v59 = vld [vmem:[%s23566_s19 + $0x5f0] ss:$28 sps:$4 sm:$0xff]   ;;  %v17125_v13 = vld [vmem:[%s23566_s19 + $0x624] ss:$28 sps:$4 sm:$0xff]  }
 0xf9f   :  { %v17128_v40 = vld [vmem:[%s23566_s19 + $0x62c] ss:$28 sps:$4 sm:$0xff]   ;;  %v17123_v45 = vld [vmem:[%s23566_s19 + $0x620] ss:$28 sps:$4 sm:$0xff]   ;;  %v17129_v36 = vld [vmem:[%s23566_s19 + $0x658] ss:$28 sps:$4 sm:$0xff]  }
 0xfa0   :  { %12346 = vmatpush1.bf16.msra.mxu1 %v17063_v5  ;;  %12592 = vmatpush1.bf16.msra.mxu0 %v17066_v15  ;;  %v17126_v54 = vld [vmem:[%s23566_s19 + $0x628] ss:$28 sps:$4 sm:$0xff]   ;;  %v17131_v14 = vld [vmem:[%s23566_s19 + $0x65c] ss:$28 sps:$4 sm:$0xff]   ;;  %v17137_v15 = vld [vmem:[%s23566_s19 + $0x694] ss:$28 sps:$4 sm:$0xff]  }
 0xfa1   :  { %12347 = vmatprep.subr.bf16.mxu1 %v17071_v32  ;;  %12593 = vmatprep.subr.bf16.mxu0 %v17074_v3  ;;  %v17134_v42 = vld [vmem:[%s23566_s19 + $0x664] ss:$28 sps:$4 sm:$0xff]   ;;  %v17140_v32 = vld [vmem:[%s23566_s19 + $0x69c] ss:$28 sps:$4 sm:$0xff]   ;;  %v17135_v3 = vld [vmem:[%s23566_s19 + $0x690] ss:$28 sps:$4 sm:$0xff]  }
 0xfa2   :  { %v17132_v5 = vld [vmem:[%s23566_s19 + $0x660] ss:$28 sps:$4 sm:$0xff]  }
 0xfa4   :  { %12348 = vmatpush1.bf16.msra.mxu1 %v17069_v47  ;;  %12594 = vmatpush1.bf16.msra.mxu0 %v17072_v33  ;;  %v17138_v47 = vld [vmem:[%s23566_s19 + $0x698] ss:$28 sps:$4 sm:$0xff]   ;;  %v17143_v33 = vld [vmem:[%s23566_s19 + $0x6cc] ss:$28 sps:$4 sm:$0xff]  }
 0xfa5   :  { %12349 = vmatprep.subr.bf16.mxu1 %v17077_v38  ;;  %12595 = vmatprep.subr.bf16.mxu0 %v17080_v8  ;;  %v17146_v38 = vld [vmem:[%s23566_s19 + $0x6d4] ss:$28 sps:$4 sm:$0xff]   ;;  %v17141_v8 = vld [vmem:[%s23566_s19 + $0x6c8] ss:$28 sps:$4 sm:$0xff]  }
 0xfa8   :  { %12350 = vmatpush1.bf16.msra.mxu1 %v17075_v43  ;;  %12596 = vmatpush1.bf16.msra.mxu0 %v17078_v37  ;;  %v17144_v43 = vld [vmem:[%s23566_s19 + $0x6d0] ss:$28 sps:$4 sm:$0xff]   ;;  %v8500_v37 = vmax.f32 %v21813_v51, 0.0  ;;  %v17150_v51 = vld [vmem:[%s23566_s19 + $0x708] ss:$28 sps:$4 sm:$0xff]  }
 0xfa9   :  { %12351 = vmatprep.subr.bf16.mxu1 %v17083_v61  ;;  %12597 = vmatprep.subr.bf16.mxu0 %v17086_v16  ;;  %v17149_v61 = vld [vmem:[%s23566_s19 + $0x704] ss:$28 sps:$4 sm:$0xff]   ;;  %v17152_v16 = vld [vmem:[%s23566_s19 + $0x70c] ss:$28 sps:$4 sm:$0xff]  }
 0xfac   :  { %12352 = vmatpush1.bf16.msra.mxu1 %v17081_v60  ;;  %12598 = vmatpush1.bf16.msra.mxu0 %v17084_v62  ;;  %v8503_v60 = vmax.f32 %v21849_v48, 0.0  ;;  %v17147_v62 = vld [vmem:[%s23566_s19 + $0x700] ss:$28 sps:$4 sm:$0xff]  }
 0xfad   :  { %12353 = vmatprep.subr.bf16.mxu1 %v17089_v25  ;;  %12599 = vmatprep.subr.bf16.mxu0 %v17092_v6  ;;  %v22052_v25 = vpack.c.bf16 %v8500_v37, %v8500_v37  ;;  %v17155_v48 = vld [vmem:[%s23566_s19 + $0x73c] ss:$28 sps:$4 sm:$0xff]  }
 0xfae   :  { %v22057_v6 = vpack.c.bf16 %v8503_v60, %v8503_v60  ;;  %v17210_v37 = vld [vmem:[%s23566_s19 + $0x938] ss:$28 sps:$4 sm:$0xff]   ;;  %v17213_v60 = vld [vmem:[%s23566_s19 + $0x968] ss:$28 sps:$4 sm:$0xff]  }
 0xfb0   :  { %12354 = vmatpush1.bf16.msra.mxu1 %v17087_v12  ;;  %12600 = vmatpush1.bf16.msra.mxu0 %v17090_v11  ;;  %v17158_v12 = vld [vmem:[%s23566_s19 + $0x744] ss:$28 sps:$4 sm:$0xff]   ;;  %v17153_v11 = vld [vmem:[%s23566_s19 + $0x738] ss:$28 sps:$4 sm:$0xff]  }
 0xfb1   :  { %12355 = vmatprep.subr.bf16.mxu1 %v17095_v26  ;;  %12601 = vmatprep.subr.bf16.mxu0 %v17098_v39  ;;  %v17156_v26 = vld [vmem:[%s23566_s19 + $0x740] ss:$28 sps:$4 sm:$0xff]   ;;  %v17161_v39 = vld [vmem:[%s23566_s19 + $0x774] ss:$28 sps:$4 sm:$0xff]  }
 0xfb4   :  { %12356 = vmatpush1.bf16.msra.mxu1 %v17093_v50  ;;  %12602 = vmatpush1.bf16.msra.mxu0 %v17096_v46  ;;  %v17164_v50 = vld [vmem:[%s23566_s19 + $0x77c] ss:$28 sps:$4 sm:$0xff]   ;;  %v17159_v46 = vld [vmem:[%s23566_s19 + $0x770] ss:$28 sps:$4 sm:$0xff]  }
 0xfb5   :  { %12357 = vmatprep.subr.bf16.mxu1 %v17101_v23  ;;  %12603 = vmatprep.subr.bf16.mxu0 %v17104_v31  ;;  %v17162_v23 = vld [vmem:[%s23566_s19 + $0x778] ss:$28 sps:$4 sm:$0xff]   ;;  %v17167_v31 = vld [vmem:[%s23566_s19 + $0x7ac] ss:$28 sps:$4 sm:$0xff]  }
 0xfb8   :  { %12358 = vmatpush1.bf16.msra.mxu1 %v17099_v44  ;;  %12604 = vmatpush1.bf16.msra.mxu0 %v17102_v9  ;;  %v17170_v44 = vld [vmem:[%s23566_s19 + $0x7b4] ss:$28 sps:$4 sm:$0xff]   ;;  %v17165_v9 = vld [vmem:[%s23566_s19 + $0x7a8] ss:$28 sps:$4 sm:$0xff]  }
 0xfb9   :  { %12359 = vmatprep.subr.bf16.mxu1 %v17107_v57  ;;  %12605 = vmatprep.subr.bf16.mxu0 %v17110_v63  ;;  %v17168_v57 = vld [vmem:[%s23566_s19 + $0x7b0] ss:$28 sps:$4 sm:$0xff]   ;;  %v17173_v63 = vld [vmem:[%s23566_s19 + $0x7e4] ss:$28 sps:$4 sm:$0xff]  }
 0xfbc   :  { %12360 = vmatpush1.bf16.msra.mxu1 %v17105_v56  ;;  %12606 = vmatpush1.bf16.msra.mxu0 %v17108_v21  ;;  %v17176_v56 = vld [vmem:[%s23566_s19 + $0x7ec] ss:$28 sps:$4 sm:$0xff]   ;;  %v17171_v21 = vld [vmem:[%s23566_s19 + $0x7e0] ss:$28 sps:$4 sm:$0xff]  }
 0xfbd   :  { %12361 = vmatprep.subr.bf16.mxu1 %v17113_v30  ;;  %12607 = vmatprep.subr.bf16.mxu0 %v17116_v19  ;;  %v17174_v30 = vld [vmem:[%s23566_s19 + $0x7e8] ss:$28 sps:$4 sm:$0xff]   ;;  %v17179_v19 = vld [vmem:[%s23566_s19 + $0x81c] ss:$28 sps:$4 sm:$0xff]  }
 0xfc0   :  { %12362 = vmatpush1.bf16.msra.mxu1 %v17111_v7  ;;  %12608 = vmatpush1.bf16.msra.mxu0 %v17114_v10  ;;  %v17182_v7 = vld [vmem:[%s23566_s19 + $0x824] ss:$28 sps:$4 sm:$0xff]   ;;  %v17177_v10 = vld [vmem:[%s23566_s19 + $0x818] ss:$28 sps:$4 sm:$0xff]  }
 0xfc1   :  { %12363 = vmatprep.subr.bf16.mxu1 %v17119_v58  ;;  %12609 = vmatprep.subr.bf16.mxu0 %v17122_v2  ;;  %v17180_v58 = vld [vmem:[%s23566_s19 + $0x820] ss:$28 sps:$4 sm:$0xff]   ;;  %v17185_v2 = vld [vmem:[%s23566_s19 + $0x854] ss:$28 sps:$4 sm:$0xff]  }
 0xfc4   :  { %12364 = vmatpush1.bf16.msra.mxu1 %v17117_v22  ;;  %12610 = vmatpush1.bf16.msra.mxu0 %v17120_v59  ;;  %v17188_v22 = vld [vmem:[%s23566_s19 + $0x85c] ss:$28 sps:$4 sm:$0xff]   ;;  %v17183_v59 = vld [vmem:[%s23566_s19 + $0x850] ss:$28 sps:$4 sm:$0xff]  }
 0xfc5   :  { %12365 = vmatprep.subr.bf16.mxu1 %v17125_v13  ;;  %12611 = vmatprep.subr.bf16.mxu0 %v17128_v40  ;;  %v17186_v13 = vld [vmem:[%s23566_s19 + $0x858] ss:$28 sps:$4 sm:$0xff]   ;;  %v17191_v40 = vld [vmem:[%s23566_s19 + $0x88c] ss:$28 sps:$4 sm:$0xff]  }
 0xfc8   :  { %12366 = vmatpush1.bf16.msra.mxu1 %v17123_v45  ;;  %12612 = vmatpush1.bf16.msra.mxu0 %v17126_v54  ;;  %v17194_v45 = vld [vmem:[%s23566_s19 + $0x894] ss:$28 sps:$4 sm:$0xff]   ;;  %v17189_v54 = vld [vmem:[%s23566_s19 + $0x888] ss:$28 sps:$4 sm:$0xff]  }
 0xfc9   :  { %12367 = vmatprep.subr.bf16.mxu1 %v17131_v14  ;;  %12613 = vmatprep.subr.bf16.mxu0 %v17134_v42  ;;  %v17192_v14 = vld [vmem:[%s23566_s19 + $0x890] ss:$28 sps:$4 sm:$0xff]   ;;  %v17197_v42 = vld [vmem:[%s23566_s19 + $0x8c4] ss:$28 sps:$4 sm:$0xff]  }
 0xfcc   :  { %12368 = vmatpush1.bf16.msra.mxu1 %v17129_v36  ;;  %12614 = vmatpush1.bf16.msra.mxu0 %v17132_v5  ;;  %v17200_v36 = vld [vmem:[%s23566_s19 + $0x8cc] ss:$28 sps:$4 sm:$0xff]   ;;  %v17195_v5 = vld [vmem:[%s23566_s19 + $0x8c0] ss:$28 sps:$4 sm:$0xff]  }
 0xfcd   :  { %12369 = vmatprep.subr.bf16.mxu1 %v17137_v15  ;;  %12615 = vmatprep.subr.bf16.mxu0 %v17140_v32  ;;  %v17198_v15 = vld [vmem:[%s23566_s19 + $0x8c8] ss:$28 sps:$4 sm:$0xff]   ;;  %v17203_v32 = vld [vmem:[%s23566_s19 + $0x8fc] ss:$28 sps:$4 sm:$0xff]  }
 0xfd0   :  { %12370 = vmatpush1.bf16.msra.mxu1 %v17135_v3  ;;  %12616 = vmatpush1.bf16.msra.mxu0 %v17138_v47  ;;  %v17206_v3 = vld [vmem:[%s23566_s19 + $0x904] ss:$28 sps:$4 sm:$0xff]   ;;  %v17201_v47 = vld [vmem:[%s23566_s19 + $0x8f8] ss:$28 sps:$4 sm:$0xff]  }
 0xfd1   :  { %12371 = vmatprep.subr.bf16.mxu1 %v17143_v33  ;;  %12617 = vmatprep.subr.bf16.mxu0 %v17146_v38  ;;  %v17204_v33 = vld [vmem:[%s23566_s19 + $0x900] ss:$28 sps:$4 sm:$0xff]   ;;  %v17209_v38 = vld [vmem:[%s23566_s19 + $0x934] ss:$28 sps:$4 sm:$0xff]  }
 0xfd4   :  { %12372 = vmatpush1.bf16.msra.mxu1 %v17141_v8  ;;  %12618 = vmatpush1.bf16.msra.mxu0 %v17144_v43  ;;  %v17212_v8 = vld [vmem:[%s23566_s19 + $0x93c] ss:$28 sps:$4 sm:$0xff]   ;;  %v17207_v43 = vld [vmem:[%s23566_s19 + $0x930] ss:$28 sps:$4 sm:$0xff]  }
 0xfd5   :  { %12382 = vmatprep.subr.bf16.mxu1 %v17149_v61  ;;  %12628 = vmatprep.subr.bf16.mxu0 %v17152_v16  ;;  %v17215_v61 = vld [vmem:[%s23566_s19 + $0x96c] ss:$28 sps:$4 sm:$0xff]   ;;  %v17218_v16 = vld [vmem:[%s23566_s19 + $0x974] ss:$28 sps:$4 sm:$0xff]  }
 0xfd7   :  { %12374 = vmatmul.mubr.bf16.vlgmr.msra.gmra.mrb[84].mxu1 %v22052_v25  ;;  %12620 = vmatmul.mubr.bf16.vlgmr.msra.gmra.mrb[68].mxu0 %v22052_v25 }
 0xfd8   :  { %12383 = vmatpush1.bf16.msra.mxu1 %v17147_v62  ;;  %12414 = vmatprep.mubr.bf16.mxu1 %v22057_v6  ;;  %v17216_v62 = vld [vmem:[%s23566_s19 + $0x970] ss:$28 sps:$4 sm:$0xff]  }
 0xfd9   :  { %12629 = vmatpush1.bf16.msra.mxu0 %v17150_v51  ;;  %12660 = vmatprep.mubr.bf16.mxu0 %v22057_v6  ;;  %v17221_v51 = vld [vmem:[%s23566_s19 + $0x9a4] ss:$28 sps:$4 sm:$0xff]  }
 0xfda   :  { %12384 = vmatprep.subr.bf16.mxu1 %v17155_v48  ;;  %12630 = vmatprep.subr.bf16.mxu0 %v17158_v12  ;;  %v17224_v48 = vld [vmem:[%s23566_s19 + $0x9ac] ss:$28 sps:$4 sm:$0xff]   ;;  %v17219_v12 = vld [vmem:[%s23566_s19 + $0x9a0] ss:$28 sps:$4 sm:$0xff]  }
 0xfdc   :  { %12385 = vmatpush1.bf16.msra.mxu1 %v17153_v11  ;;  %v17222_v11 = vld [vmem:[%s23566_s19 + $0x9a8] ss:$28 sps:$4 sm:$0xff]  }
 0xfdd   :  { %12631 = vmatpush1.bf16.msra.mxu0 %v17156_v26  ;;  %12386 = vmatprep.subr.bf16.mxu1 %v17161_v39  ;;  %v17227_v26 = vld [vmem:[%s23566_s19 + $0x9dc] ss:$28 sps:$4 sm:$0xff]   ;;  %v17230_v39 = vld [vmem:[%s23566_s19 + $0x9e4] ss:$28 sps:$4 sm:$0xff]  }
 0xfde   :  { %12632 = vmatprep.subr.bf16.mxu0 %v17164_v50  ;;  %v17225_v50 = vld [vmem:[%s23566_s19 + $0x9d8] ss:$28 sps:$4 sm:$0xff]  }
 0xfe0   :  { %12387 = vmatpush1.bf16.msra.mxu1 %v17159_v46  ;;  %v17228_v46 = vld [vmem:[%s23566_s19 + $0x9e0] ss:$28 sps:$4 sm:$0xff]  }
 0xfe1   :  { %12633 = vmatpush1.bf16.msra.mxu0 %v17162_v23  ;;  %12388 = vmatprep.subr.bf16.mxu1 %v17167_v31  ;;  %v17233_v23 = vld [vmem:[%s23566_s19 + $0xa14] ss:$28 sps:$4 sm:$0xff]   ;;  %v17236_v31 = vld [vmem:[%s23566_s19 + $0xa1c] ss:$28 sps:$4 sm:$0xff]  }
 0xfe2   :  { %12634 = vmatprep.subr.bf16.mxu0 %v17170_v44  ;;  %v17231_v44 = vld [vmem:[%s23566_s19 + $0xa10] ss:$28 sps:$4 sm:$0xff]  }
 0xfe4   :  { %12389 = vmatpush1.bf16.msra.mxu1 %v17165_v9  ;;  %v17234_v9 = vld [vmem:[%s23566_s19 + $0xa18] ss:$28 sps:$4 sm:$0xff]  }
 0xfe5   :  { %12635 = vmatpush1.bf16.msra.mxu0 %v17168_v57  ;;  %12390 = vmatprep.subr.bf16.mxu1 %v17173_v63  ;;  %v17239_v57 = vld [vmem:[%s23566_s19 + $0xa4c] ss:$28 sps:$4 sm:$0xff]   ;;  %v17242_v63 = vld [vmem:[%s23566_s19 + $0xa54] ss:$28 sps:$4 sm:$0xff]  }
 0xfe6   :  { %12636 = vmatprep.subr.bf16.mxu0 %v17176_v56  ;;  %v17237_v56 = vld [vmem:[%s23566_s19 + $0xa48] ss:$28 sps:$4 sm:$0xff]  }
 0xfe8   :  { %12391 = vmatpush1.bf16.msra.mxu1 %v17171_v21  ;;  %v17240_v21 = vld [vmem:[%s23566_s19 + $0xa50] ss:$28 sps:$4 sm:$0xff]  }
 0xfe9   :  { %12637 = vmatpush1.bf16.msra.mxu0 %v17174_v30  ;;  %12392 = vmatprep.subr.bf16.mxu1 %v17179_v19  ;;  %v8502_v30 = vmax.f32 %v21842_v52, 0.0  ;;  %v17245_v19 = vld [vmem:[%s23566_s19 + $0xa84] ss:$28 sps:$4 sm:$0xff]  }
 0xfea   :  { %12638 = vmatprep.subr.bf16.mxu0 %v17182_v7  ;;  %v17248_v7 = vld [vmem:[%s23566_s19 + $0xa8c] ss:$28 sps:$4 sm:$0xff]  }
 0xfeb   :  { %v17246_v52 = vld [vmem:[%s23566_s19 + $0xa88] ss:$28 sps:$4 sm:$0xff]  }
 0xfec   :  { %12393 = vmatpush1.bf16.msra.mxu1 %v17177_v10  ;;  %v8505_v10 = vmax.f32 %v21808_v53, 0.0 }
 0xfed   :  { %12639 = vmatpush1.bf16.msra.mxu0 %v17180_v58  ;;  %12394 = vmatprep.subr.bf16.mxu1 %v17185_v2  ;;  %v17243_v58 = vld [vmem:[%s23566_s19 + $0xa80] ss:$28 sps:$4 sm:$0xff]   ;;  %v22254_v2 = vpack.c.bf16 %v8502_v30, %v8502_v30  ;;  %v17306_v30 = vld [vmem:[%s23566_s19 + $0xcb8] ss:$28 sps:$4 sm:$0xff]  }
 0xfee   :  { %12640 = vmatprep.subr.bf16.mxu0 %v17188_v22  ;;  %v17251_v22 = vld [vmem:[%s23566_s19 + $0xabc] ss:$28 sps:$4 sm:$0xff]   ;;  %v22263_v53 = vpack.c.bf16 %v8505_v10, %v8505_v10  ;;  %v17309_v10 = vld [vmem:[%s23566_s19 + $0xce8] ss:$28 sps:$4 sm:$0xff]  }
 0xff0   :  { %12395 = vmatpush1.bf16.msra.mxu1 %v17183_v59  ;;  %v17254_v59 = vld [vmem:[%s23566_s19 + $0xac4] ss:$28 sps:$4 sm:$0xff]  }
 0xff1   :  { %12641 = vmatpush1.bf16.msra.mxu0 %v17186_v13  ;;  %12396 = vmatprep.subr.bf16.mxu1 %v17191_v40  ;;  %v17249_v13 = vld [vmem:[%s23566_s19 + $0xab8] ss:$28 sps:$4 sm:$0xff]   ;;  %v17252_v40 = vld [vmem:[%s23566_s19 + $0xac0] ss:$28 sps:$4 sm:$0xff]  }
 0xff2   :  { %12642 = vmatprep.subr.bf16.mxu0 %v17194_v45  ;;  %v17257_v45 = vld [vmem:[%s23566_s19 + $0xaf4] ss:$28 sps:$4 sm:$0xff]  }
 0xff4   :  { %12397 = vmatpush1.bf16.msra.mxu1 %v17189_v54  ;;  %v17260_v54 = vld [vmem:[%s23566_s19 + $0xafc] ss:$28 sps:$4 sm:$0xff]  }
 0xff5   :  { %12643 = vmatpush1.bf16.msra.mxu0 %v17192_v14  ;;  %12398 = vmatprep.subr.bf16.mxu1 %v17197_v42  ;;  %v17255_v14 = vld [vmem:[%s23566_s19 + $0xaf0] ss:$28 sps:$4 sm:$0xff]   ;;  %v17258_v42 = vld [vmem:[%s23566_s19 + $0xaf8] ss:$28 sps:$4 sm:$0xff]  }
 0xff6   :  { %12644 = vmatprep.subr.bf16.mxu0 %v17200_v36  ;;  %v17263_v36 = vld [vmem:[%s23566_s19 + $0xb2c] ss:$28 sps:$4 sm:$0xff]  }
 0xff8   :  { %12399 = vmatpush1.bf16.msra.mxu1 %v17195_v5  ;;  %v17266_v5 = vld [vmem:[%s23566_s19 + $0xb34] ss:$28 sps:$4 sm:$0xff]  }
 0xff9   :  { %12645 = vmatpush1.bf16.msra.mxu0 %v17198_v15  ;;  %12400 = vmatprep.subr.bf16.mxu1 %v17203_v32  ;;  %v17261_v15 = vld [vmem:[%s23566_s19 + $0xb28] ss:$28 sps:$4 sm:$0xff]   ;;  %v17264_v32 = vld [vmem:[%s23566_s19 + $0xb30] ss:$28 sps:$4 sm:$0xff]  }
 0xffa   :  { %12646 = vmatprep.subr.bf16.mxu0 %v17206_v3  ;;  %v17269_v3 = vld [vmem:[%s23566_s19 + $0xb64] ss:$28 sps:$4 sm:$0xff]  }
 0xffc   :  { %12401 = vmatpush1.bf16.msra.mxu1 %v17201_v47  ;;  %v17272_v47 = vld [vmem:[%s23566_s19 + $0xb6c] ss:$28 sps:$4 sm:$0xff]  }
 0xffd   :  { %12647 = vmatpush1.bf16.msra.mxu0 %v17204_v33  ;;  %12402 = vmatprep.subr.bf16.mxu1 %v17209_v38  ;;  %v17267_v33 = vld [vmem:[%s23566_s19 + $0xb60] ss:$28 sps:$4 sm:$0xff]   ;;  %v17270_v38 = vld [vmem:[%s23566_s19 + $0xb68] ss:$28 sps:$4 sm:$0xff]  }
 0xffe   :  { %12648 = vmatprep.subr.bf16.mxu0 %v17212_v8  ;;  %v17275_v8 = vld [vmem:[%s23566_s19 + $0xb9c] ss:$28 sps:$4 sm:$0xff]  }
0x1000   :  { %12403 = vmatpush1.bf16.msra.mxu1 %v17207_v43  ;;  %v17278_v43 = vld [vmem:[%s23566_s19 + $0xba4] ss:$28 sps:$4 sm:$0xff]  }
0x1001   :  { %12649 = vmatpush1.bf16.msra.mxu0 %v17210_v37  ;;  %12404 = vmatprep.subr.bf16.mxu1 %v17215_v61  ;;  %v17273_v37 = vld [vmem:[%s23566_s19 + $0xb98] ss:$28 sps:$4 sm:$0xff]   ;;  %v17276_v61 = vld [vmem:[%s23566_s19 + $0xba0] ss:$28 sps:$4 sm:$0xff]  }
0x1002   :  { %12650 = vmatprep.subr.bf16.mxu0 %v17218_v16  ;;  %v17281_v16 = vld [vmem:[%s23566_s19 + $0xbd4] ss:$28 sps:$4 sm:$0xff]  }
0x1004   :  { %12405 = vmatpush1.bf16.msra.mxu1 %v17213_v60  ;;  %v17284_v60 = vld [vmem:[%s23566_s19 + $0xbdc] ss:$28 sps:$4 sm:$0xff]  }
0x1005   :  { %12651 = vmatpush1.bf16.msra.mxu0 %v17216_v62  ;;  %12406 = vmatprep.subr.bf16.mxu1 %v17221_v51  ;;  %v17279_v62 = vld [vmem:[%s23566_s19 + $0xbd0] ss:$28 sps:$4 sm:$0xff]   ;;  %v17282_v51 = vld [vmem:[%s23566_s19 + $0xbd8] ss:$28 sps:$4 sm:$0xff]  }
0x1006   :  { %12652 = vmatprep.subr.bf16.mxu0 %v17224_v48  ;;  %v17287_v48 = vld [vmem:[%s23566_s19 + $0xc0c] ss:$28 sps:$4 sm:$0xff]  }
0x1008   :  { %12407 = vmatpush1.bf16.msra.mxu1 %v17219_v12  ;;  %v17290_v12 = vld [vmem:[%s23566_s19 + $0xc14] ss:$28 sps:$4 sm:$0xff]  }
0x1009   :  { %12653 = vmatpush1.bf16.msra.mxu0 %v17222_v11  ;;  %12408 = vmatprep.subr.bf16.mxu1 %v17227_v26  ;;  %v17285_v11 = vld [vmem:[%s23566_s19 + $0xc08] ss:$28 sps:$4 sm:$0xff]   ;;  %v17288_v26 = vld [vmem:[%s23566_s19 + $0xc10] ss:$28 sps:$4 sm:$0xff]  }
0x100a   :  { %12654 = vmatprep.subr.bf16.mxu0 %v17230_v39  ;;  %v17293_v39 = vld [vmem:[%s23566_s19 + $0xc44] ss:$28 sps:$4 sm:$0xff]  }
0x100c   :  { %12409 = vmatpush1.bf16.msra.mxu1 %v17225_v50  ;;  %v17296_v50 = vld [vmem:[%s23566_s19 + $0xc4c] ss:$28 sps:$4 sm:$0xff]  }
0x100d   :  { %12655 = vmatpush1.bf16.msra.mxu0 %v17228_v46  ;;  %12410 = vmatprep.subr.bf16.mxu1 %v17233_v23  ;;  %v17291_v46 = vld [vmem:[%s23566_s19 + $0xc40] ss:$28 sps:$4 sm:$0xff]   ;;  %v17294_v23 = vld [vmem:[%s23566_s19 + $0xc48] ss:$28 sps:$4 sm:$0xff]  }
0x100e   :  { %12656 = vmatprep.subr.bf16.mxu0 %v17236_v31  ;;  %v17299_v31 = vld [vmem:[%s23566_s19 + $0xc7c] ss:$28 sps:$4 sm:$0xff]  }
0x1010   :  { %12411 = vmatpush1.bf16.msra.mxu1 %v17231_v44  ;;  %v17302_v44 = vld [vmem:[%s23566_s19 + $0xc84] ss:$28 sps:$4 sm:$0xff]  }
0x1011   :  { %12657 = vmatpush1.bf16.msra.mxu0 %v17234_v9  ;;  %12412 = vmatprep.subr.bf16.mxu1 %v17239_v57  ;;  %v17297_v9 = vld [vmem:[%s23566_s19 + $0xc78] ss:$28 sps:$4 sm:$0xff]   ;;  %v17300_v57 = vld [vmem:[%s23566_s19 + $0xc80] ss:$28 sps:$4 sm:$0xff]  }
0x1012   :  { %12658 = vmatprep.subr.bf16.mxu0 %v17242_v63  ;;  %v17305_v63 = vld [vmem:[%s23566_s19 + $0xcb4] ss:$28 sps:$4 sm:$0xff]  }
0x1014   :  { %12413 = vmatpush1.bf16.msra.mxu1 %v17237_v56  ;;  %v17308_v56 = vld [vmem:[%s23566_s19 + $0xcbc] ss:$28 sps:$4 sm:$0xff]  }
0x1015   :  { %12659 = vmatpush1.bf16.msra.mxu0 %v17240_v21  ;;  %12423 = vmatprep.subr.bf16.mxu1 %v17245_v19  ;;  %v17303_v21 = vld [vmem:[%s23566_s19 + $0xcb0] ss:$28 sps:$4 sm:$0xff]  }
0x1016   :  { %12669 = vmatprep.subr.bf16.mxu0 %v17248_v7  ;;  %v17311_v19 = vld [vmem:[%s23566_s19 + $0xcec] ss:$28 sps:$4 sm:$0xff]   ;;  %v17314_v7 = vld [vmem:[%s23566_s19 + $0xcf4] ss:$28 sps:$4 sm:$0xff]  }
0x1017   :  { %12415 = vmatmul.mubr.bf16.vlgmr.msra.gmra.mrb[84].mxu1 %v22254_v2 }
0x1018   :  { %12661 = vmatmul.mubr.bf16.vlgmr.msra.gmra.mrb[68].mxu0 %v22254_v2  ;;  %12424 = vmatpush1.bf16.msra.mxu1 %v17243_v58  ;;  %v17312_v58 = vld [vmem:[%s23566_s19 + $0xcf0] ss:$28 sps:$4 sm:$0xff]  }
0x1019   :  { %12455 = vmatprep.mubr.bf16.mxu1 %v22263_v53  ;;  %12670 = vmatpush1.bf16.msra.mxu0 %v17246_v52  ;;  %v17317_v52 = vld [vmem:[%s23566_s19 + $0xd24] ss:$28 sps:$4 sm:$0xff]  }
0x101a   :  { %12701 = vmatprep.mubr.bf16.mxu0 %v22263_v53  ;;  %12425 = vmatprep.subr.bf16.mxu1 %v17251_v22  ;;  %v17320_v22 = vld [vmem:[%s23566_s19 + $0xd2c] ss:$28 sps:$4 sm:$0xff]  }
0x101b   :  { %12671 = vmatprep.subr.bf16.mxu0 %v17254_v59  ;;  %v17315_v59 = vld [vmem:[%s23566_s19 + $0xd20] ss:$28 sps:$4 sm:$0xff]  }
0x101c   :  { %12426 = vmatpush1.bf16.msra.mxu1 %v17249_v13  ;;  %v17318_v13 = vld [vmem:[%s23566_s19 + $0xd28] ss:$28 sps:$4 sm:$0xff]  }
0x101d   :  { %12672 = vmatpush1.bf16.msra.mxu0 %v17252_v40  ;;  %12427 = vmatprep.subr.bf16.mxu1 %v17257_v45  ;;  %v17323_v40 = vld [vmem:[%s23566_s19 + $0xd5c] ss:$28 sps:$4 sm:$0xff]   ;;  %v17326_v45 = vld [vmem:[%s23566_s19 + $0xd64] ss:$28 sps:$4 sm:$0xff]  }
0x101e   :  { %12673 = vmatprep.subr.bf16.mxu0 %v17260_v54  ;;  %v17321_v54 = vld [vmem:[%s23566_s19 + $0xd58] ss:$28 sps:$4 sm:$0xff]  }
0x1020   :  { %12428 = vmatpush1.bf16.msra.mxu1 %v17255_v14  ;;  %v17324_v14 = vld [vmem:[%s23566_s19 + $0xd60] ss:$28 sps:$4 sm:$0xff]  }
0x1021   :  { %12674 = vmatpush1.bf16.msra.mxu0 %v17258_v42  ;;  %12429 = vmatprep.subr.bf16.mxu1 %v17263_v36  ;;  %v17329_v42 = vld [vmem:[%s23566_s19 + $0xd94] ss:$28 sps:$4 sm:$0xff]   ;;  %v17332_v36 = vld [vmem:[%s23566_s19 + $0xd9c] ss:$28 sps:$4 sm:$0xff]  }
0x1022   :  { %12675 = vmatprep.subr.bf16.mxu0 %v17266_v5  ;;  %v17327_v5 = vld [vmem:[%s23566_s19 + $0xd90] ss:$28 sps:$4 sm:$0xff]  }
0x1024   :  { %12430 = vmatpush1.bf16.msra.mxu1 %v17261_v15  ;;  %v17330_v15 = vld [vmem:[%s23566_s19 + $0xd98] ss:$28 sps:$4 sm:$0xff]  }
0x1025   :  { %12676 = vmatpush1.bf16.msra.mxu0 %v17264_v32  ;;  %12431 = vmatprep.subr.bf16.mxu1 %v17269_v3  ;;  %v17335_v32 = vld [vmem:[%s23566_s19 + $0xdcc] ss:$28 sps:$4 sm:$0xff]   ;;  %v17338_v3 = vld [vmem:[%s23566_s19 + $0xdd4] ss:$28 sps:$4 sm:$0xff]  }
0x1026   :  { %12677 = vmatprep.subr.bf16.mxu0 %v17272_v47  ;;  %v17333_v47 = vld [vmem:[%s23566_s19 + $0xdc8] ss:$28 sps:$4 sm:$0xff]  }
0x1028   :  { %12432 = vmatpush1.bf16.msra.mxu1 %v17267_v33  ;;  %v17336_v33 = vld [vmem:[%s23566_s19 + $0xdd0] ss:$28 sps:$4 sm:$0xff]  }
0x1029   :  { %12678 = vmatpush1.bf16.msra.mxu0 %v17270_v38  ;;  %12433 = vmatprep.subr.bf16.mxu1 %v17275_v8  ;;  %v8504_v38 = vmax.f32 %v21803_v27, 0.0  ;;  %v17341_v8 = vld [vmem:[%s23566_s19 + $0xe04] ss:$28 sps:$4 sm:$0xff]  }
0x102a   :  { %12679 = vmatprep.subr.bf16.mxu0 %v17278_v43  ;;  %v17344_v43 = vld [vmem:[%s23566_s19 + $0xe0c] ss:$28 sps:$4 sm:$0xff]  }
0x102b   :  { %v17342_v27 = vld [vmem:[%s23566_s19 + $0xe08] ss:$28 sps:$4 sm:$0xff]  }
0x102c   :  { %12434 = vmatpush1.bf16.msra.mxu1 %v17273_v37  ;;  %v8507_v37 = vmax.f32 %v21877_v49, 0.0 }
0x102d   :  { %12680 = vmatpush1.bf16.msra.mxu0 %v17276_v61  ;;  %12435 = vmatprep.subr.bf16.mxu1 %v17281_v16  ;;  %v17339_v61 = vld [vmem:[%s23566_s19 + $0xe00] ss:$28 sps:$4 sm:$0xff]   ;;  %v22456_v16 = vpack.c.bf16 %v8504_v38, %v8504_v38  ;;  %v17402_v38 = vld [vmem:[%s23566_s19 + $0x1038] ss:$28 sps:$4 sm:$0xff]  }
0x102e   :  { %12681 = vmatprep.subr.bf16.mxu0 %v17284_v60  ;;  %v17347_v60 = vld [vmem:[%s23566_s19 + $0xe3c] ss:$28 sps:$4 sm:$0xff]   ;;  %v22465_v49 = vpack.c.bf16 %v8507_v37, %v8507_v37  ;;  %v17405_v37 = vld [vmem:[%s23566_s19 + $0x1068] ss:$28 sps:$4 sm:$0xff]  }
0x1030   :  { %12436 = vmatpush1.bf16.msra.mxu1 %v17279_v62  ;;  %v17350_v62 = vld [vmem:[%s23566_s19 + $0xe44] ss:$28 sps:$4 sm:$0xff]  }
0x1031   :  { %12682 = vmatpush1.bf16.msra.mxu0 %v17282_v51  ;;  %12437 = vmatprep.subr.bf16.mxu1 %v17287_v48  ;;  %v17345_v51 = vld [vmem:[%s23566_s19 + $0xe38] ss:$28 sps:$4 sm:$0xff]   ;;  %v17348_v48 = vld [vmem:[%s23566_s19 + $0xe40] ss:$28 sps:$4 sm:$0xff]  }
0x1032   :  { %12683 = vmatprep.subr.bf16.mxu0 %v17290_v12  ;;  %v17353_v12 = vld [vmem:[%s23566_s19 + $0xe74] ss:$28 sps:$4 sm:$0xff]  }
0x1034   :  { %12438 = vmatpush1.bf16.msra.mxu1 %v17285_v11  ;;  %v17356_v11 = vld [vmem:[%s23566_s19 + $0xe7c] ss:$28 sps:$4 sm:$0xff]  }
0x1035   :  { %12684 = vmatpush1.bf16.msra.mxu0 %v17288_v26  ;;  %12439 = vmatprep.subr.bf16.mxu1 %v17293_v39  ;;  %v17351_v26 = vld [vmem:[%s23566_s19 + $0xe70] ss:$28 sps:$4 sm:$0xff]   ;;  %v17354_v39 = vld [vmem:[%s23566_s19 + $0xe78] ss:$28 sps:$4 sm:$0xff]  }
0x1036   :  { %12685 = vmatprep.subr.bf16.mxu0 %v17296_v50  ;;  %v17359_v50 = vld [vmem:[%s23566_s19 + $0xeac] ss:$28 sps:$4 sm:$0xff]  }
0x1038   :  { %12440 = vmatpush1.bf16.msra.mxu1 %v17291_v46  ;;  %v17362_v46 = vld [vmem:[%s23566_s19 + $0xeb4] ss:$28 sps:$4 sm:$0xff]  }
0x1039   :  { %12686 = vmatpush1.bf16.msra.mxu0 %v17294_v23  ;;  %12441 = vmatprep.subr.bf16.mxu1 %v17299_v31  ;;  %v17357_v23 = vld [vmem:[%s23566_s19 + $0xea8] ss:$28 sps:$4 sm:$0xff]   ;;  %v17360_v31 = vld [vmem:[%s23566_s19 + $0xeb0] ss:$28 sps:$4 sm:$0xff]  }
0x103a   :  { %12687 = vmatprep.subr.bf16.mxu0 %v17302_v44  ;;  %v17365_v44 = vld [vmem:[%s23566_s19 + $0xee4] ss:$28 sps:$4 sm:$0xff]  }
0x103c   :  { %12442 = vmatpush1.bf16.msra.mxu1 %v17297_v9  ;;  %v17368_v9 = vld [vmem:[%s23566_s19 + $0xeec] ss:$28 sps:$4 sm:$0xff]  }
0x103d   :  { %12688 = vmatpush1.bf16.msra.mxu0 %v17300_v57  ;;  %12443 = vmatprep.subr.bf16.mxu1 %v17305_v63  ;;  %v17363_v57 = vld [vmem:[%s23566_s19 + $0xee0] ss:$28 sps:$4 sm:$0xff]   ;;  %v17366_v63 = vld [vmem:[%s23566_s19 + $0xee8] ss:$28 sps:$4 sm:$0xff]  }
0x103e   :  { %12689 = vmatprep.subr.bf16.mxu0 %v17308_v56  ;;  %v17371_v56 = vld [vmem:[%s23566_s19 + $0xf1c] ss:$28 sps:$4 sm:$0xff]  }
0x1040   :  { %12444 = vmatpush1.bf16.msra.mxu1 %v17303_v21  ;;  %v17374_v21 = vld [vmem:[%s23566_s19 + $0xf24] ss:$28 sps:$4 sm:$0xff]  }
0x1041   :  { %12690 = vmatpush1.bf16.msra.mxu0 %v17306_v30  ;;  %12445 = vmatprep.subr.bf16.mxu1 %v17311_v19  ;;  %v17369_v30 = vld [vmem:[%s23566_s19 + $0xf18] ss:$28 sps:$4 sm:$0xff]   ;;  %v17372_v19 = vld [vmem:[%s23566_s19 + $0xf20] ss:$28 sps:$4 sm:$0xff]  }
0x1042   :  { %12691 = vmatprep.subr.bf16.mxu0 %v17314_v7  ;;  %v17377_v7 = vld [vmem:[%s23566_s19 + $0xf54] ss:$28 sps:$4 sm:$0xff]  }
0x1044   :  { %12446 = vmatpush1.bf16.msra.mxu1 %v17309_v10  ;;  %v17380_v10 = vld [vmem:[%s23566_s19 + $0xf5c] ss:$28 sps:$4 sm:$0xff]  }
0x1045   :  { %12692 = vmatpush1.bf16.msra.mxu0 %v17312_v58  ;;  %12447 = vmatprep.subr.bf16.mxu1 %v17317_v52  ;;  %v17375_v58 = vld [vmem:[%s23566_s19 + $0xf50] ss:$28 sps:$4 sm:$0xff]   ;;  %v17378_v52 = vld [vmem:[%s23566_s19 + $0xf58] ss:$28 sps:$4 sm:$0xff]  }
0x1046   :  { %12693 = vmatprep.subr.bf16.mxu0 %v17320_v22  ;;  %v17383_v22 = vld [vmem:[%s23566_s19 + $0xf8c] ss:$28 sps:$4 sm:$0xff]  }
0x1048   :  { %12448 = vmatpush1.bf16.msra.mxu1 %v17315_v59  ;;  %v17386_v59 = vld [vmem:[%s23566_s19 + $0xf94] ss:$28 sps:$4 sm:$0xff]  }
0x1049   :  { %12694 = vmatpush1.bf16.msra.mxu0 %v17318_v13  ;;  %12449 = vmatprep.subr.bf16.mxu1 %v17323_v40  ;;  %v17381_v13 = vld [vmem:[%s23566_s19 + $0xf88] ss:$28 sps:$4 sm:$0xff]   ;;  %v17384_v40 = vld [vmem:[%s23566_s19 + $0xf90] ss:$28 sps:$4 sm:$0xff]  }
0x104a   :  { %12695 = vmatprep.subr.bf16.mxu0 %v17326_v45  ;;  %v17389_v45 = vld [vmem:[%s23566_s19 + $0xfc4] ss:$28 sps:$4 sm:$0xff]  }
0x104c   :  { %12450 = vmatpush1.bf16.msra.mxu1 %v17321_v54  ;;  %v17392_v54 = vld [vmem:[%s23566_s19 + $0xfcc] ss:$28 sps:$4 sm:$0xff]  }
0x104d   :  { %12696 = vmatpush1.bf16.msra.mxu0 %v17324_v14  ;;  %12451 = vmatprep.subr.bf16.mxu1 %v17329_v42  ;;  %v17387_v14 = vld [vmem:[%s23566_s19 + $0xfc0] ss:$28 sps:$4 sm:$0xff]   ;;  %v17390_v42 = vld [vmem:[%s23566_s19 + $0xfc8] ss:$28 sps:$4 sm:$0xff]  }
0x104e   :  { %12697 = vmatprep.subr.bf16.mxu0 %v17332_v36  ;;  %v17395_v36 = vld [vmem:[%s23566_s19 + $0xffc] ss:$28 sps:$4 sm:$0xff]  }
0x1050   :  { %12452 = vmatpush1.bf16.msra.mxu1 %v17327_v5  ;;  %v17398_v5 = vld [vmem:[%s23566_s19 + $0x1004] ss:$28 sps:$4 sm:$0xff]  }
0x1051   :  { %12698 = vmatpush1.bf16.msra.mxu0 %v17330_v15  ;;  %12453 = vmatprep.subr.bf16.mxu1 %v17335_v32  ;;  %v17393_v15 = vld [vmem:[%s23566_s19 + $0xff8] ss:$28 sps:$4 sm:$0xff]   ;;  %v17396_v32 = vld [vmem:[%s23566_s19 + $0x1000] ss:$28 sps:$4 sm:$0xff]  }
0x1052   :  { %12699 = vmatprep.subr.bf16.mxu0 %v17338_v3  ;;  %v17401_v3 = vld [vmem:[%s23566_s19 + $0x1034] ss:$28 sps:$4 sm:$0xff]  }
0x1054   :  { %12454 = vmatpush1.bf16.msra.mxu1 %v17333_v47  ;;  %v17404_v47 = vld [vmem:[%s23566_s19 + $0x103c] ss:$28 sps:$4 sm:$0xff]  }
0x1055   :  { %12700 = vmatpush1.bf16.msra.mxu0 %v17336_v33  ;;  %12464 = vmatprep.subr.bf16.mxu1 %v17341_v8  ;;  %v17399_v33 = vld [vmem:[%s23566_s19 + $0x1030] ss:$28 sps:$4 sm:$0xff]  }
0x1056   :  { %12710 = vmatprep.subr.bf16.mxu0 %v17344_v43  ;;  %v17407_v8 = vld [vmem:[%s23566_s19 + $0x106c] ss:$28 sps:$4 sm:$0xff]   ;;  %v17410_v43 = vld [vmem:[%s23566_s19 + $0x1074] ss:$28 sps:$4 sm:$0xff]  }
0x1057   :  { %12456 = vmatmul.mubr.bf16.vlgmr.msra.gmra.mrb[84].mxu1 %v22456_v16 }
0x1058   :  { %12702 = vmatmul.mubr.bf16.vlgmr.msra.gmra.mrb[68].mxu0 %v22456_v16  ;;  %12465 = vmatpush1.bf16.msra.mxu1 %v17339_v61  ;;  %v17408_v61 = vld [vmem:[%s23566_s19 + $0x1070] ss:$28 sps:$4 sm:$0xff]  }
0x1059   :  { %12496 = vmatprep.mubr.bf16.mxu1 %v22465_v49  ;;  %12711 = vmatpush1.bf16.msra.mxu0 %v17342_v27  ;;  %v17413_v27 = vld [vmem:[%s23566_s19 + $0x10a4] ss:$28 sps:$4 sm:$0xff]  }
0x105a   :  { %12742 = vmatprep.mubr.bf16.mxu0 %v22465_v49  ;;  %12466 = vmatprep.subr.bf16.mxu1 %v17347_v60  ;;  %v17416_v60 = vld [vmem:[%s23566_s19 + $0x10ac] ss:$28 sps:$4 sm:$0xff]  }
0x105b   :  { %12712 = vmatprep.subr.bf16.mxu0 %v17350_v62  ;;  %v17411_v62 = vld [vmem:[%s23566_s19 + $0x10a0] ss:$28 sps:$4 sm:$0xff]  }
0x105c   :  { %12467 = vmatpush1.bf16.msra.mxu1 %v17345_v51  ;;  %v17414_v51 = vld [vmem:[%s23566_s19 + $0x10a8] ss:$28 sps:$4 sm:$0xff]  }
0x105d   :  { %12713 = vmatpush1.bf16.msra.mxu0 %v17348_v48  ;;  %12468 = vmatprep.subr.bf16.mxu1 %v17353_v12  ;;  %v17419_v48 = vld [vmem:[%s23566_s19 + $0x10dc] ss:$28 sps:$4 sm:$0xff]   ;;  %v17422_v12 = vld [vmem:[%s23566_s19 + $0x10e4] ss:$28 sps:$4 sm:$0xff]  }
0x105e   :  { %12714 = vmatprep.subr.bf16.mxu0 %v17356_v11  ;;  %v17417_v11 = vld [vmem:[%s23566_s19 + $0x10d8] ss:$28 sps:$4 sm:$0xff]  }
0x1060   :  { %12469 = vmatpush1.bf16.msra.mxu1 %v17351_v26  ;;  %v17420_v26 = vld [vmem:[%s23566_s19 + $0x10e0] ss:$28 sps:$4 sm:$0xff]  }
0x1061   :  { %12715 = vmatpush1.bf16.msra.mxu0 %v17354_v39  ;;  %12470 = vmatprep.subr.bf16.mxu1 %v17359_v50  ;;  %v17425_v39 = vld [vmem:[%s23566_s19 + $0x1114] ss:$28 sps:$4 sm:$0xff]   ;;  %v17428_v50 = vld [vmem:[%s23566_s19 + $0x111c] ss:$28 sps:$4 sm:$0xff]  }
0x1062   :  { %12716 = vmatprep.subr.bf16.mxu0 %v17362_v46  ;;  %v17423_v46 = vld [vmem:[%s23566_s19 + $0x1110] ss:$28 sps:$4 sm:$0xff]  }
0x1064   :  { %12471 = vmatpush1.bf16.msra.mxu1 %v17357_v23  ;;  %v17426_v23 = vld [vmem:[%s23566_s19 + $0x1118] ss:$28 sps:$4 sm:$0xff]  }
0x1065   :  { %12717 = vmatpush1.bf16.msra.mxu0 %v17360_v31  ;;  %12472 = vmatprep.subr.bf16.mxu1 %v17365_v44  ;;  %v17431_v31 = vld [vmem:[%s23566_s19 + $0x114c] ss:$28 sps:$4 sm:$0xff]   ;;  %v17434_v44 = vld [vmem:[%s23566_s19 + $0x1154] ss:$28 sps:$4 sm:$0xff]  }
0x1066   :  { %12718 = vmatprep.subr.bf16.mxu0 %v17368_v9  ;;  %v17429_v9 = vld [vmem:[%s23566_s19 + $0x1148] ss:$28 sps:$4 sm:$0xff]  }
0x1068   :  { %12473 = vmatpush1.bf16.msra.mxu1 %v17363_v57  ;;  %v17432_v57 = vld [vmem:[%s23566_s19 + $0x1150] ss:$28 sps:$4 sm:$0xff]  }
0x1069   :  { %12719 = vmatpush1.bf16.msra.mxu0 %v17366_v63  ;;  %12474 = vmatprep.subr.bf16.mxu1 %v17371_v56  ;;  %v8506_v63 = vmax.f32 %v21875_v28, 0.0  ;;  %v17437_v56 = vld [vmem:[%s23566_s19 + $0x1184] ss:$28 sps:$4 sm:$0xff]  }
0x106a   :  { %12720 = vmatprep.subr.bf16.mxu0 %v17374_v21  ;;  %v17440_v21 = vld [vmem:[%s23566_s19 + $0x118c] ss:$28 sps:$4 sm:$0xff]  }
0x106b   :  { %v17438_v28 = vld [vmem:[%s23566_s19 + $0x1188] ss:$28 sps:$4 sm:$0xff]  }
0x106c   :  { %12475 = vmatpush1.bf16.msra.mxu1 %v17369_v30  ;;  %v17435_v30 = vld [vmem:[%s23566_s19 + $0x1180] ss:$28 sps:$4 sm:$0xff]  }
0x106d   :  { %12721 = vmatpush1.bf16.msra.mxu0 %v17372_v19  ;;  %12476 = vmatprep.subr.bf16.mxu1 %v17377_v7  ;;  %v22657_v19 = vpack.c.bf16 %v8506_v63, %v8506_v63  ;;  %v17443_v7 = vld [vmem:[%s23566_s19 + $0x11bc] ss:$28 sps:$4 sm:$0xff]  }
0x106e   :  { %12722 = vmatprep.subr.bf16.mxu0 %v17380_v10  ;;  %v17446_v10 = vld [vmem:[%s23566_s19 + $0x11c4] ss:$28 sps:$4 sm:$0xff]   ;;  %v17487_v63 = vld [vmem:[%s23566_s19 + $0xf8] ss:$28 sps:$4 sm:$0xff]  }
0x1070   :  { %12477 = vmatpush1.bf16.msra.mxu1 %v17375_v58  ;;  %v17441_v58 = vld [vmem:[%s23566_s19 + $0x11b8] ss:$28 sps:$4 sm:$0xff]  }
0x1071   :  { %12723 = vmatpush1.bf16.msra.mxu0 %v17378_v52  ;;  %12478 = vmatprep.subr.bf16.mxu1 %v17383_v22  ;;  %v17444_v52 = vld [vmem:[%s23566_s19 + $0x11c0] ss:$28 sps:$4 sm:$0xff]   ;;  %v17449_v22 = vld [vmem:[%s23566_s19 + $0x11f4] ss:$28 sps:$4 sm:$0xff]  }
0x1072   :  { %12724 = vmatprep.subr.bf16.mxu0 %v17386_v59  ;;  %v17452_v59 = vld [vmem:[%s23566_s19 + $0x11fc] ss:$28 sps:$4 sm:$0xff]  }
0x1074   :  { %12479 = vmatpush1.bf16.msra.mxu1 %v17381_v13  ;;  %v23797_v13 = vmov 0  }
0x1075   :  { %12725 = vmatpush1.bf16.msra.mxu0 %v17384_v40  ;;  %12480 = vmatprep.subr.bf16.mxu1 %v17389_v45  ;;  %v17447_v40 = vld [vmem:[%s23566_s19 + $0x11f0] ss:$28 sps:$4 sm:$0xff]   ;;  %v17450_v45 = vld [vmem:[%s23566_s19 + $0x11f8] ss:$28 sps:$4 sm:$0xff]  }
0x1076   :  { %12726 = vmatprep.subr.bf16.mxu0 %v17392_v54  ;;  %v17455_v54 = vld [vmem:[%s23566_s19 + $0x122c] ss:$28 sps:$4 sm:$0xff]  }
0x1078   :  { %12481 = vmatpush1.bf16.msra.mxu1 %v17387_v14  ;;  %v17458_v14 = vld [vmem:[%s23566_s19 + $0x1234] ss:$28 sps:$4 sm:$0xff]  }
0x1079   :  { %12727 = vmatpush1.bf16.msra.mxu0 %v17390_v42  ;;  %12482 = vmatprep.subr.bf16.mxu1 %v17395_v36  ;;  %v9192_v42 = vld [vmem:[%s23566_s19 + $0x1260] sm:$0xff]  ;;  %v9193_v36 = vld [vmem:[%s23566_s19 + $0x1268] sm:$0xff] }
0x107a   :  { %12728 = vmatprep.subr.bf16.mxu0 %v17398_v5  ;;  %v17453_v5 = vld [vmem:[%s23566_s19 + $0x1228] ss:$28 sps:$4 sm:$0xff]  }
0x107c   :  { %12483 = vmatpush1.bf16.msra.mxu1 %v17393_v15  ;;  %v17456_v15 = vld [vmem:[%s23566_s19 + $0x1230] ss:$28 sps:$4 sm:$0xff]  }
0x107d   :  { %12729 = vmatpush1.bf16.msra.mxu0 %v17396_v32  ;;  %12484 = vmatprep.subr.bf16.mxu1 %v17401_v3  ;;  %v14475_v32 = vcombine.high %v9192_v42, %v9192_v42  ;;  %v14474_v3 = vcombine.low %v9192_v42, %v9192_v42  ;;  %v17503_v42 = vld [vmem:[%s23566_s19 + $0x1d0] ss:$28 sps:$4 sm:$0xff]  }
0x107e   :  { %12730 = vmatprep.subr.bf16.mxu0 %v17404_v47  ;;  %v14477_v47 = vcombine.high %v9193_v36, %v9193_v36 }
0x1080   :  { %12485 = vmatpush1.bf16.msra.mxu1 %v17399_v33  ;;  %v14476_v33 = vcombine.low %v9193_v36, %v9193_v36  ;;  %v17507_v36 = vld [vmem:[%s23566_s19 + $0x398] ss:$28 sps:$4 sm:$0xff]  }
0x1081   :  { %12731 = vmatpush1.bf16.msra.mxu0 %v17402_v38  ;;  %12486 = vmatprep.subr.bf16.mxu1 %v17407_v8  ;;  %v12280_v38 = vsel %vm12278_vm10, %v14474_v3, 0  ;;  %v8508_v8 = vmax.f32 %v21865_v34, 0.0  ;;  %v17467_v34 = vld [vmem:[%s23566_s19 + $0x18] ss:$28 sps:$4 sm:$0xff]   ;;  %v17512_v3 = vld [vmem:[%s23566_s19 + $0x3d0] ss:$28 sps:$4 sm:$0xff]  }
0x1082   :  { %12732 = vmatprep.subr.bf16.mxu0 %v17410_v43  ;;  %v17465_v43 = vld [vmem:[%s23566_s19 + $0x14] ss:$28 sps:$4 sm:$0xff]  }
0x1084   :  { %12487 = vmatpush1.bf16.msra.mxu1 %v17405_v37  ;;  %v12286_v37 = vsel %vm12278_vm10, %v14476_v33, 0  ;;  %v17516_v33 = vld [vmem:[%s23566_s19 + $0x5c8] ss:$28 sps:$4 sm:$0xff]  }
0x1085   :  { %12733 = vmatpush1.bf16.msra.mxu0 %v17408_v61  ;;  %12488 = vmatprep.subr.bf16.mxu1 %v17413_v27  ;;  %v17466_v61 = vld [vmem:[%s23566_s19 + $0x1d8] ss:$28 sps:$4 sm:$0xff]   ;;  %v17463_v27 = vld [vmem:[%s23566_s19 + $0x10] ss:$28 sps:$4 sm:$0xff]  }
0x1086   :  { %12734 = vmatprep.subr.bf16.mxu0 %v17416_v60  ;;  %v22722_v60 = vpack.c.bf16 %v8508_v8, %v8508_v8  ;;  %v17517_v8 = vld [vmem:[%s23566_s19 + $0x408] ss:$28 sps:$4 sm:$0xff]  }
0x1088   :  { %12489 = vmatpush1.bf16.msra.mxu1 %v17411_v62  ;;  %v17470_v62 = vld [vmem:[%s23566_s19 + $0x4c] ss:$28 sps:$4 sm:$0xff]  }
0x1089   :  { %12735 = vmatpush1.bf16.msra.mxu0 %v17414_v51  ;;  %12490 = vmatprep.subr.bf16.mxu1 %v17419_v48  ;;  %v17471_v51 = vld [vmem:[%s23566_s19 + $0x210] ss:$28 sps:$4 sm:$0xff]   ;;  %v17468_v48 = vld [vmem:[%s23566_s19 + $0x48] ss:$28 sps:$4 sm:$0xff]  }
0x108a   :  { %12736 = vmatprep.subr.bf16.mxu0 %v17422_v12  ;;  %v17472_v12 = vld [vmem:[%s23566_s19 + $0x50] ss:$28 sps:$4 sm:$0xff]  }
0x108c   :  { %12491 = vmatpush1.bf16.msra.mxu1 %v17417_v11  ;;  %v17475_v11 = vld [vmem:[%s23566_s19 + $0x84] ss:$28 sps:$4 sm:$0xff]  }
0x108d   :  { %12737 = vmatpush1.bf16.msra.mxu0 %v17420_v26  ;;  %12492 = vmatprep.subr.bf16.mxu1 %v17425_v39  ;;  %v17476_v26 = vld [vmem:[%s23566_s19 + $0x248] ss:$28 sps:$4 sm:$0xff]   ;;  %v17473_v39 = vld [vmem:[%s23566_s19 + $0x80] ss:$28 sps:$4 sm:$0xff]  }
0x108e   :  { %12738 = vmatprep.subr.bf16.mxu0 %v17428_v50  ;;  %v17477_v50 = vld [vmem:[%s23566_s19 + $0x88] ss:$28 sps:$4 sm:$0xff]  }
0x1090   :  { %12493 = vmatpush1.bf16.msra.mxu1 %v17423_v46  ;;  %v17481_v46 = vld [vmem:[%s23566_s19 + $0x280] ss:$28 sps:$4 sm:$0xff]  }
0x1091   :  { %12739 = vmatpush1.bf16.msra.mxu0 %v17426_v23  ;;  %12494 = vmatprep.subr.bf16.mxu1 %v17431_v31  ;;  %v17478_v23 = vld [vmem:[%s23566_s19 + $0xb8] ss:$28 sps:$4 sm:$0xff]   ;;  %v17482_v31 = vld [vmem:[%s23566_s19 + $0xc0] ss:$28 sps:$4 sm:$0xff]  }
0x1092   :  { %12740 = vmatprep.subr.bf16.mxu0 %v17434_v44  ;;  %v17485_v44 = vld [vmem:[%s23566_s19 + $0xf4] ss:$28 sps:$4 sm:$0xff]  }
0x1094   :  { %12495 = vmatpush1.bf16.msra.mxu1 %v17429_v9  ;;  %v17486_v9 = vld [vmem:[%s23566_s19 + $0x2b8] ss:$28 sps:$4 sm:$0xff]  }
0x1095   :  { %12741 = vmatpush1.bf16.msra.mxu0 %v17432_v57  ;;  %12505 = vmatprep.subr.bf16.mxu1 %v17437_v56  ;;  %v17483_v57 = vld [vmem:[%s23566_s19 + $0xf0] ss:$28 sps:$4 sm:$0xff]  }
0x1096   :  { %12751 = vmatprep.subr.bf16.mxu0 %v17440_v21  ;;  %v17490_v56 = vld [vmem:[%s23566_s19 + $0x12c] ss:$28 sps:$4 sm:$0xff]  }
0x1097   :  { %12497 = vmatmul.mubr.bf16.vlgmr.msra.gmra.mrb[84].mxu1 %v22657_v19  ;;  %v17491_v21 = vld [vmem:[%s23566_s19 + $0x2f0] ss:$28 sps:$4 sm:$0xff]  }
0x1098   :  { %12743 = vmatmul.mubr.bf16.vlgmr.msra.gmra.mrb[68].mxu0 %v22657_v19  ;;  %12506 = vmatpush1.bf16.msra.mxu1 %v17435_v30  ;;  %v17488_v30 = vld [vmem:[%s23566_s19 + $0x128] ss:$28 sps:$4 sm:$0xff]  }
0x1099   :  { %12752 = vmatpush1.bf16.msra.mxu0 %v17438_v28  ;;  %12507 = vmatprep.subr.bf16.mxu1 %v17443_v7  ;;  %v17492_v28 = vld [vmem:[%s23566_s19 + $0x130] ss:$28 sps:$4 sm:$0xff]   ;;  %v17495_v7 = vld [vmem:[%s23566_s19 + $0x164] ss:$28 sps:$4 sm:$0xff]  }
0x109a   :  { %12753 = vmatprep.subr.bf16.mxu0 %v17446_v10  ;;  %12537 = vmatprep.mubr.bf16.mxu1 %v23797_v13  ;;  %v17496_v10 = vld [vmem:[%s23566_s19 + $0x328] ss:$28 sps:$4 sm:$0xff]  }
0x109b   :  { %12783 = vmatprep.mubr.bf16.mxu0 %v23797_v13 }
0x109c   :  { %12508 = vmatpush1.bf16.msra.mxu1 %v17441_v58  ;;  %v17493_v58 = vld [vmem:[%s23566_s19 + $0x160] ss:$28 sps:$4 sm:$0xff]  }
0x109d   :  { %12754 = vmatpush1.bf16.msra.mxu0 %v17444_v52  ;;  %12509 = vmatprep.subr.bf16.mxu1 %v17449_v22  ;;  %v17497_v52 = vld [vmem:[%s23566_s19 + $0x168] ss:$28 sps:$4 sm:$0xff]   ;;  %v17500_v22 = vld [vmem:[%s23566_s19 + $0x19c] ss:$28 sps:$4 sm:$0xff]  }
0x109e   :  { %12755 = vmatprep.subr.bf16.mxu0 %v17452_v59  ;;  %v17501_v59 = vld [vmem:[%s23566_s19 + $0x360] ss:$28 sps:$4 sm:$0xff]  }
0x10a0   :  { %12510 = vmatpush1.bf16.msra.mxu1 %v17447_v40  ;;  %v17498_v40 = vld [vmem:[%s23566_s19 + $0x198] ss:$28 sps:$4 sm:$0xff]  }
0x10a1   :  { %12756 = vmatpush1.bf16.msra.mxu0 %v17450_v45  ;;  %12511 = vmatprep.subr.bf16.mxu1 %v17455_v54  ;;  %v17502_v45 = vld [vmem:[%s23566_s19 + $0x1a0] ss:$28 sps:$4 sm:$0xff]   ;;  %v17505_v54 = vld [vmem:[%s23566_s19 + $0x1d4] ss:$28 sps:$4 sm:$0xff]  }
0x10a2   :  { %12757 = vmatprep.subr.bf16.mxu0 %v17458_v14  ;;  %v17506_v14 = vld [vmem:[%s23566_s19 + $0x558] ss:$28 sps:$4 sm:$0xff]  }
0x10a4   :  { %12512 = vmatpush1.bf16.msra.mxu1 %v17453_v5  ;;  %v17510_v5 = vld [vmem:[%s23566_s19 + $0x20c] ss:$28 sps:$4 sm:$0xff]  }
0x10a5   :  { %12758 = vmatpush1.bf16.msra.mxu0 %v17456_v15  ;;  %14481 = vmatprep.subr.msk.bf16.mxu1 %vm12278_vm10, %v14475_v32  ;;  %v17511_v15 = vld [vmem:[%s23566_s19 + $0x590] ss:$28 sps:$4 sm:$0xff]   ;;  %v17508_v32 = vld [vmem:[%s23566_s19 + $0x208] ss:$28 sps:$4 sm:$0xff]  }
0x10a6   :  { %14483 = vmatprep.subr.msk.bf16.mxu0 %vm12278_vm10, %v14477_v47  ;;  %v17515_v47 = vld [vmem:[%s23566_s19 + $0x244] ss:$28 sps:$4 sm:$0xff]  }
0x10a8   :  { %12514 = vmatpush1.bf16.msra.mxu1 %v12280_v38  ;;  %v17513_v38 = vld [vmem:[%s23566_s19 + $0x240] ss:$28 sps:$4 sm:$0xff]  }
0x10a9   :  { %12760 = vmatpush1.bf16.msra.mxu0 %v12286_v37  ;;  %12792 = vmatprep.subr.bf16.mxu1 %v17465_v43  ;;  %v17520_v43 = vld [vmem:[%s23566_s19 + $0x27c] ss:$28 sps:$4 sm:$0xff]  }
0x10aa   :  { %15192 = vmatprep.subr.bf16.mxu0 %v17466_v61  ;;  %v17521_v37 = vld [vmem:[%s23566_s19 + $0x600] ss:$28 sps:$4 sm:$0xff]   ;;  %v17518_v61 = vld [vmem:[%s23566_s19 + $0x278] ss:$28 sps:$4 sm:$0xff]  }
0x10ab   :  { %14482 = vmatmul.mubr.msk.bf16.vlgmr.msra.gmra.mrb[84].mxu1 %vm6432_vm8, %v22722_v60 }
0x10ac   :  { %14484 = vmatmul.mubr.msk.bf16.vlgmr.msra.gmra.mrb[68].mxu0 %vm6432_vm8, %v22722_v60  ;;  %12793 = vmatpush1.bf16.msra.mxu1 %v17463_v27  ;;  %v17522_v27 = vld [vmem:[%s23566_s19 + $0x440] ss:$28 sps:$4 sm:$0xff]  }
0x10ad   :  { %12824 = vmatprep.mubr.bf16.mxu1 %v21821_v17  ;;  %15193 = vmatpush3.bf16.msra.mxu0 %v17467_v34  ;;  %v17525_v34 = vld [vmem:[%s23566_s19 + $0x2b4] ss:$28 sps:$4 sm:$0xff]  }
0x10ae   :  { %13070 = vmatprep.mubr.bf16.mxu0 %v21821_v17  ;;  %12794 = vmatprep.subr.bf16.mxu1 %v17470_v62  ;;  %v17480_v17 = vld [vmem:[%s23566_s19 + $0xbc] ss:$28 sps:$4 sm:$0xff]  }
0x10af   :  { %15194 = vmatprep.subr.bf16.mxu0 %v17471_v51  ;;  %v17526_v62 = vld [vmem:[%s23566_s19 + $0x638] ss:$28 sps:$4 sm:$0xff]   ;;  %v17523_v51 = vld [vmem:[%s23566_s19 + $0x2b0] ss:$28 sps:$4 sm:$0xff]  }
0x10b0   :  { %12795 = vmatpush1.bf16.msra.mxu1 %v17468_v48  ;;  %v17527_v48 = vld [vmem:[%s23566_s19 + $0x478] ss:$28 sps:$4 sm:$0xff]  }
0x10b1   :  { %15195 = vmatpush3.bf16.msra.mxu0 %v17472_v12  ;;  %12796 = vmatprep.subr.bf16.mxu1 %v17475_v11  ;;  %v17530_v12 = vld [vmem:[%s23566_s19 + $0x2ec] ss:$28 sps:$4 sm:$0xff]  }
0x10b2   :  { %15196 = vmatprep.subr.bf16.mxu0 %v17476_v26  ;;  %v17531_v11 = vld [vmem:[%s23566_s19 + $0x670] ss:$28 sps:$4 sm:$0xff]   ;;  %v17528_v26 = vld [vmem:[%s23566_s19 + $0x2e8] ss:$28 sps:$4 sm:$0xff]  }
0x10b4   :  { %12797 = vmatpush1.bf16.msra.mxu1 %v17473_v39  ;;  %v17532_v39 = vld [vmem:[%s23566_s19 + $0x4b0] ss:$28 sps:$4 sm:$0xff]  }
0x10b5   :  { %15197 = vmatpush3.bf16.msra.mxu0 %v17477_v50  ;;  %12798 = vmatprep.subr.bf16.mxu1 %v17480_v17  ;;  %v17535_v50 = vld [vmem:[%s23566_s19 + $0x324] ss:$28 sps:$4 sm:$0xff]  }
0x10b6   :  { %15198 = vmatprep.subr.bf16.mxu0 %v17481_v46  ;;  %v17536_v17 = vld [vmem:[%s23566_s19 + $0x6a8] ss:$28 sps:$4 sm:$0xff]   ;;  %v17533_v46 = vld [vmem:[%s23566_s19 + $0x320] ss:$28 sps:$4 sm:$0xff]  }
0x10b8   :  { %12799 = vmatpush1.bf16.msra.mxu1 %v17478_v23  ;;  %v17537_v23 = vld [vmem:[%s23566_s19 + $0x4e8] ss:$28 sps:$4 sm:$0xff]  }
0x10b9   :  { %15199 = vmatpush3.bf16.msra.mxu0 %v17482_v31  ;;  %12800 = vmatprep.subr.bf16.mxu1 %v17485_v44  ;;  %v17540_v31 = vld [vmem:[%s23566_s19 + $0x35c] ss:$28 sps:$4 sm:$0xff]  }
0x10ba   :  { %15200 = vmatprep.subr.bf16.mxu0 %v17486_v9  ;;  %v17541_v44 = vld [vmem:[%s23566_s19 + $0x6e0] ss:$28 sps:$4 sm:$0xff]   ;;  %v17538_v9 = vld [vmem:[%s23566_s19 + $0x358] ss:$28 sps:$4 sm:$0xff]  }
0x10bc   :  { %12801 = vmatpush1.bf16.msra.mxu1 %v17483_v57  ;;  %v17542_v57 = vld [vmem:[%s23566_s19 + $0x520] ss:$28 sps:$4 sm:$0xff]  }
0x10bd   :  { %15201 = vmatpush3.bf16.msra.mxu0 %v17487_v63  ;;  %12802 = vmatprep.subr.bf16.mxu1 %v17490_v56  ;;  %v17545_v63 = vld [vmem:[%s23566_s19 + $0x394] ss:$28 sps:$4 sm:$0xff]  }
0x10be   :  { %15202 = vmatprep.subr.bf16.mxu0 %v17491_v21  ;;  %v17546_v56 = vld [vmem:[%s23566_s19 + $0x8d8] ss:$28 sps:$4 sm:$0xff]   ;;  %v17543_v21 = vld [vmem:[%s23566_s19 + $0x390] ss:$28 sps:$4 sm:$0xff]  }
0x10c0   :  { %12803 = vmatpush1.bf16.msra.mxu1 %v17488_v30  ;;  %v17547_v30 = vld [vmem:[%s23566_s19 + $0x718] ss:$28 sps:$4 sm:$0xff]  }
0x10c1   :  { %15203 = vmatpush3.bf16.msra.mxu0 %v17492_v28  ;;  %12804 = vmatprep.subr.bf16.mxu1 %v17495_v7  ;;  %v17550_v28 = vld [vmem:[%s23566_s19 + $0x3cc] ss:$28 sps:$4 sm:$0xff]  }
0x10c2   :  { %15204 = vmatprep.subr.bf16.mxu0 %v17496_v10  ;;  %v17551_v7 = vld [vmem:[%s23566_s19 + $0x910] ss:$28 sps:$4 sm:$0xff]   ;;  %v17548_v10 = vld [vmem:[%s23566_s19 + $0x3c8] ss:$28 sps:$4 sm:$0xff]  }
0x10c4   :  { %12805 = vmatpush1.bf16.msra.mxu1 %v17493_v58  ;;  %v17552_v58 = vld [vmem:[%s23566_s19 + $0x750] ss:$28 sps:$4 sm:$0xff]  }
0x10c5   :  { %15205 = vmatpush3.bf16.msra.mxu0 %v17497_v52  ;;  %12806 = vmatprep.subr.bf16.mxu1 %v17500_v22  ;;  %v17556_v52 = vld [vmem:[%s23566_s19 + $0x948] ss:$28 sps:$4 sm:$0xff]  }
0x10c6   :  { %15206 = vmatprep.subr.bf16.mxu0 %v17501_v59  ;;  %v17557_v22 = vld [vmem:[%s23566_s19 + $0x788] ss:$28 sps:$4 sm:$0xff]   ;;  %v17560_v59 = vld [vmem:[%s23566_s19 + $0x43c] ss:$28 sps:$4 sm:$0xff]  }
0x10c8   :  { %12807 = vmatpush1.bf16.msra.mxu1 %v17498_v40  ;;  %v17561_v40 = vld [vmem:[%s23566_s19 + $0x980] ss:$28 sps:$4 sm:$0xff]  }
0x10c9   :  { %15207 = vmatpush3.bf16.msra.mxu0 %v17502_v45  ;;  %12808 = vmatprep.subr.bf16.mxu1 %v17505_v54  ;;  %v17558_v45 = vld [vmem:[%s23566_s19 + $0x438] ss:$28 sps:$4 sm:$0xff]   ;;  %v17562_v54 = vld [vmem:[%s23566_s19 + $0x7c0] ss:$28 sps:$4 sm:$0xff]  }
0x10ca   :  { %15214 = vmatprep.subr.bf16.mxu0 %v17506_v14  ;;  %v17565_v14 = vld [vmem:[%s23566_s19 + $0x474] ss:$28 sps:$4 sm:$0xff]  }
0x10cc   :  { %13071 = vmatmul.mubr.bf16.vlgmr.msra.gmra.mrb[72].mxu0 %v21830_v18  ;;  %12809 = vmatpush1.bf16.msra.mxu1 %v17503_v42  ;;  %v17566_v42 = vld [vmem:[%s23566_s19 + $0x9b8] ss:$28 sps:$4 sm:$0xff]  }
0x10cd   :  { %15215 = vmatpush3.bf16.msra.mxu0 %v17507_v36  ;;  %13110 = vmatprep.mubr.bf16.mxu0 %v21857_v29  ;;  %v17563_v36 = vld [vmem:[%s23566_s19 + $0x470] ss:$28 sps:$4 sm:$0xff]  }
0x10ce   :  { %12810 = vmatprep.subr.bf16.mxu1 %v17510_v5  ;;  %15216 = vmatprep.subr.bf16.mxu0 %v17511_v15  ;;  %v17567_v5 = vld [vmem:[%s23566_s19 + $0x7f8] ss:$28 sps:$4 sm:$0xff]   ;;  %v17570_v15 = vld [vmem:[%s23566_s19 + $0x4ac] ss:$28 sps:$4 sm:$0xff]  }
0x10d0   :  { %12811 = vmatpush1.bf16.msra.mxu1 %v17508_v32  ;;  %v17571_v32 = vld [vmem:[%s23566_s19 + $0x9f0] ss:$28 sps:$4 sm:$0xff]  }
0x10d1   :  { %15217 = vmatpush3.bf16.msra.mxu0 %v17512_v3  ;;  %12812 = vmatprep.subr.bf16.mxu1 %v17515_v47  ;;  %v17568_v3 = vld [vmem:[%s23566_s19 + $0x4a8] ss:$28 sps:$4 sm:$0xff]   ;;  %v17572_v47 = vld [vmem:[%s23566_s19 + $0x830] ss:$28 sps:$4 sm:$0xff]  }
0x10d2   :  { %15218 = vmatprep.subr.bf16.mxu0 %v17516_v33  ;;  %v17575_v33 = vld [vmem:[%s23566_s19 + $0x4e4] ss:$28 sps:$4 sm:$0xff]  }
0x10d4   :  { %12813 = vmatpush1.bf16.msra.mxu1 %v17513_v38  ;;  %v17576_v38 = vld [vmem:[%s23566_s19 + $0xa28] ss:$28 sps:$4 sm:$0xff]  }
0x10d5   :  { %15219 = vmatpush3.bf16.msra.mxu0 %v17517_v8  ;;  %12814 = vmatprep.subr.bf16.mxu1 %v17520_v43  ;;  %v17573_v8 = vld [vmem:[%s23566_s19 + $0x4e0] ss:$28 sps:$4 sm:$0xff]   ;;  %v17577_v43 = vld [vmem:[%s23566_s19 + $0x868] ss:$28 sps:$4 sm:$0xff]  }
0x10d6   :  { %15220 = vmatprep.subr.bf16.mxu0 %v17521_v37  ;;  %v17580_v37 = vld [vmem:[%s23566_s19 + $0x51c] ss:$28 sps:$4 sm:$0xff]  }
0x10d8   :  { %12815 = vmatpush1.bf16.msra.mxu1 %v17518_v61  ;;  %v17581_v61 = vld [vmem:[%s23566_s19 + $0xa60] ss:$28 sps:$4 sm:$0xff]  }
0x10d9   :  { %15221 = vmatpush3.bf16.msra.mxu0 %v17522_v27  ;;  %12816 = vmatprep.subr.bf16.mxu1 %v17525_v34  ;;  %v17578_v27 = vld [vmem:[%s23566_s19 + $0x518] ss:$28 sps:$4 sm:$0xff]   ;;  %v17582_v34 = vld [vmem:[%s23566_s19 + $0x8a0] ss:$28 sps:$4 sm:$0xff]  }
0x10da   :  { %15222 = vmatprep.subr.bf16.mxu0 %v17526_v62  ;;  %v17585_v62 = vld [vmem:[%s23566_s19 + $0x554] ss:$28 sps:$4 sm:$0xff]  }
0x10dc   :  { %12817 = vmatpush1.bf16.msra.mxu1 %v17523_v51  ;;  %v17586_v51 = vld [vmem:[%s23566_s19 + $0xc58] ss:$28 sps:$4 sm:$0xff]  }
0x10dd   :  { %15223 = vmatpush3.bf16.msra.mxu0 %v17527_v48  ;;  %12818 = vmatprep.subr.bf16.mxu1 %v17530_v12  ;;  %v17583_v48 = vld [vmem:[%s23566_s19 + $0x550] ss:$28 sps:$4 sm:$0xff]   ;;  %v17587_v12 = vld [vmem:[%s23566_s19 + $0xa98] ss:$28 sps:$4 sm:$0xff]  }
0x10de   :  { %15224 = vmatprep.subr.bf16.mxu0 %v17531_v11  ;;  %v17590_v11 = vld [vmem:[%s23566_s19 + $0x58c] ss:$28 sps:$4 sm:$0xff]  }
0x10e0   :  { %12819 = vmatpush1.bf16.msra.mxu1 %v17528_v26  ;;  %v17591_v26 = vld [vmem:[%s23566_s19 + $0xc90] ss:$28 sps:$4 sm:$0xff]  }
0x10e1   :  { %15225 = vmatpush3.bf16.msra.mxu0 %v17532_v39  ;;  %12820 = vmatprep.subr.bf16.mxu1 %v17535_v50  ;;  %v17588_v39 = vld [vmem:[%s23566_s19 + $0x588] ss:$28 sps:$4 sm:$0xff]   ;;  %v17592_v50 = vld [vmem:[%s23566_s19 + $0xad0] ss:$28 sps:$4 sm:$0xff]  }
0x10e2   :  { %15226 = vmatprep.subr.bf16.mxu0 %v17536_v17  ;;  %v17595_v17 = vld [vmem:[%s23566_s19 + $0x5c4] ss:$28 sps:$4 sm:$0xff]  }
0x10e4   :  { %12821 = vmatpush1.bf16.msra.mxu1 %v17533_v46  ;;  %v17596_v46 = vld [vmem:[%s23566_s19 + $0xcc8] ss:$28 sps:$4 sm:$0xff]  }
0x10e5   :  { %15227 = vmatpush3.bf16.msra.mxu0 %v17537_v23  ;;  %12822 = vmatprep.subr.bf16.mxu1 %v17540_v31  ;;  %v17593_v23 = vld [vmem:[%s23566_s19 + $0x5c0] ss:$28 sps:$4 sm:$0xff]   ;;  %v17597_v31 = vld [vmem:[%s23566_s19 + $0xb08] ss:$28 sps:$4 sm:$0xff]  }
0x10e6   :  { %15228 = vmatprep.subr.bf16.mxu0 %v17541_v44  ;;  %v17600_v44 = vld [vmem:[%s23566_s19 + $0x5fc] ss:$28 sps:$4 sm:$0xff]  }
0x10e8   :  { %12823 = vmatpush1.bf16.msra.mxu1 %v17538_v9  ;;  %v17601_v9 = vld [vmem:[%s23566_s19 + $0xd00] ss:$28 sps:$4 sm:$0xff]  }
0x10e9   :  { %15229 = vmatpush3.bf16.msra.mxu0 %v17542_v57  ;;  %12833 = vmatprep.subr.bf16.mxu1 %v17545_v63  ;;  %v17598_v57 = vld [vmem:[%s23566_s19 + $0x5f8] ss:$28 sps:$4 sm:$0xff]   ;;  %v17602_v63 = vld [vmem:[%s23566_s19 + $0xb40] ss:$28 sps:$4 sm:$0xff]  }
0x10ea   :  { %15236 = vmatprep.subr.bf16.mxu0 %v17546_v56  ;;  %v17605_v56 = vld [vmem:[%s23566_s19 + $0x634] ss:$28 sps:$4 sm:$0xff]  }
0x10eb   :  { %12825 = vmatmul.mubr.bf16.vlgmr.msra.gmra.mrb[88].mxu1 %v21830_v18  ;;  %v17555_v18 = vld [vmem:[%s23566_s19 + $0x404] ss:$28 sps:$4 sm:$0xff]  }
0x10ec   :  { %13111 = vmatmul.mubr.bf16.vlgmr.msra.gmra.mrb[76].mxu0 %v22052_v25  ;;  %12834 = vmatpush1.bf16.msra.mxu1 %v17543_v21  ;;  %v17606_v21 = vld [vmem:[%s23566_s19 + $0xd38] ss:$28 sps:$4 sm:$0xff]  }
0x10ed   :  { %12865 = vmatprep.mubr.bf16.mxu1 %v21857_v29  ;;  %15237 = vmatpush3.bf16.msra.mxu0 %v17547_v30  ;;  %v17553_v29 = vld [vmem:[%s23566_s19 + $0x400] ss:$28 sps:$4 sm:$0xff]   ;;  %v17603_v30 = vld [vmem:[%s23566_s19 + $0x630] ss:$28 sps:$4 sm:$0xff]  }
0x10ee   :  { %13150 = vmatprep.mubr.bf16.mxu0 %v22057_v6  ;;  %12835 = vmatprep.subr.bf16.mxu1 %v17550_v28  ;;  %v17607_v28 = vld [vmem:[%s23566_s19 + $0xb78] ss:$28 sps:$4 sm:$0xff]  }
0x10ef   :  { %15238 = vmatprep.subr.bf16.mxu0 %v17551_v7  ;;  %v17610_v7 = vld [vmem:[%s23566_s19 + $0x66c] ss:$28 sps:$4 sm:$0xff]  }
0x10f0   :  { %12836 = vmatpush1.bf16.msra.mxu1 %v17548_v10  ;;  %v17611_v10 = vld [vmem:[%s23566_s19 + $0xd70] ss:$28 sps:$4 sm:$0xff]  }
0x10f1   :  { %15239 = vmatpush3.bf16.msra.mxu0 %v17552_v58  ;;  %12837 = vmatprep.subr.bf16.mxu1 %v17555_v18  ;;  %v17608_v58 = vld [vmem:[%s23566_s19 + $0x668] ss:$28 sps:$4 sm:$0xff]   ;;  %v17612_v18 = vld [vmem:[%s23566_s19 + $0xbb0] ss:$28 sps:$4 sm:$0xff]  }
0x10f2   :  { %15240 = vmatprep.subr.bf16.mxu0 %v17556_v52  ;;  %v17615_v52 = vld [vmem:[%s23566_s19 + $0x6a4] ss:$28 sps:$4 sm:$0xff]  }
0x10f4   :  { %12838 = vmatpush1.bf16.msra.mxu1 %v17553_v29  ;;  %v17616_v29 = vld [vmem:[%s23566_s19 + $0xda8] ss:$28 sps:$4 sm:$0xff]  }
0x10f5   :  { %15241 = vmatpush3.bf16.msra.mxu0 %v17557_v22  ;;  %12839 = vmatprep.subr.bf16.mxu1 %v17560_v59  ;;  %v17613_v22 = vld [vmem:[%s23566_s19 + $0x6a0] ss:$28 sps:$4 sm:$0xff]   ;;  %v17617_v59 = vld [vmem:[%s23566_s19 + $0xbe8] ss:$28 sps:$4 sm:$0xff]  }
0x10f6   :  { %15242 = vmatprep.subr.bf16.mxu0 %v17561_v40  ;;  %v17620_v40 = vld [vmem:[%s23566_s19 + $0x6dc] ss:$28 sps:$4 sm:$0xff]  }
0x10f8   :  { %12840 = vmatpush1.bf16.msra.mxu1 %v17558_v45  ;;  %v17621_v45 = vld [vmem:[%s23566_s19 + $0xde0] ss:$28 sps:$4 sm:$0xff]  }
0x10f9   :  { %15243 = vmatpush3.bf16.msra.mxu0 %v17562_v54  ;;  %12841 = vmatprep.subr.bf16.mxu1 %v17565_v14  ;;  %v17618_v54 = vld [vmem:[%s23566_s19 + $0x6d8] ss:$28 sps:$4 sm:$0xff]   ;;  %v17622_v14 = vld [vmem:[%s23566_s19 + $0xc20] ss:$28 sps:$4 sm:$0xff]  }
0x10fa   :  { %15244 = vmatprep.subr.bf16.mxu0 %v17566_v42  ;;  %v17625_v42 = vld [vmem:[%s23566_s19 + $0x714] ss:$28 sps:$4 sm:$0xff]  }
0x10fc   :  { %12842 = vmatpush1.bf16.msra.mxu1 %v17563_v36  ;;  %v17626_v36 = vld [vmem:[%s23566_s19 + $0xfd8] ss:$28 sps:$4 sm:$0xff]  }
0x10fd   :  { %15245 = vmatpush3.bf16.msra.mxu0 %v17567_v5  ;;  %12843 = vmatprep.subr.bf16.mxu1 %v17570_v15  ;;  %v17623_v5 = vld [vmem:[%s23566_s19 + $0x710] ss:$28 sps:$4 sm:$0xff]   ;;  %v17627_v15 = vld [vmem:[%s23566_s19 + $0xe18] ss:$28 sps:$4 sm:$0xff]  }
0x10fe   :  { %15246 = vmatprep.subr.bf16.mxu0 %v17571_v32  ;;  %v17630_v32 = vld [vmem:[%s23566_s19 + $0x74c] ss:$28 sps:$4 sm:$0xff]  }
0x1100   :  { %12844 = vmatpush1.bf16.msra.mxu1 %v17568_v3  ;;  %v17631_v3 = vld [vmem:[%s23566_s19 + $0x1010] ss:$28 sps:$4 sm:$0xff]  }
0x1101   :  { %15247 = vmatpush3.bf16.msra.mxu0 %v17572_v47  ;;  %12845 = vmatprep.subr.bf16.mxu1 %v17575_v33  ;;  %v17628_v47 = vld [vmem:[%s23566_s19 + $0x748] ss:$28 sps:$4 sm:$0xff]   ;;  %v17632_v33 = vld [vmem:[%s23566_s19 + $0xe50] ss:$28 sps:$4 sm:$0xff]  }
0x1102   :  { %15248 = vmatprep.subr.bf16.mxu0 %v17576_v38  ;;  %v17636_v38 = vld [vmem:[%s23566_s19 + $0x1048] ss:$28 sps:$4 sm:$0xff]  }
0x1104   :  { %12846 = vmatpush1.bf16.msra.mxu1 %v17573_v8  ;;  %v17637_v8 = vld [vmem:[%s23566_s19 + $0xe88] ss:$28 sps:$4 sm:$0xff]  }
0x1105   :  { %15249 = vmatpush3.bf16.msra.mxu0 %v17577_v43  ;;  %12847 = vmatprep.subr.bf16.mxu1 %v17580_v37  ;;  %v17640_v43 = vld [vmem:[%s23566_s19 + $0x7bc] ss:$28 sps:$4 sm:$0xff]  }
0x1106   :  { %15250 = vmatprep.subr.bf16.mxu0 %v17581_v61  ;;  %v17641_v37 = vld [vmem:[%s23566_s19 + $0x1080] ss:$28 sps:$4 sm:$0xff]   ;;  %v17638_v61 = vld [vmem:[%s23566_s19 + $0x7b8] ss:$28 sps:$4 sm:$0xff]  }
0x1108   :  { %12848 = vmatpush1.bf16.msra.mxu1 %v17578_v27  ;;  %v17642_v27 = vld [vmem:[%s23566_s19 + $0xec0] ss:$28 sps:$4 sm:$0xff]  }
0x1109   :  { %15251 = vmatpush3.bf16.msra.mxu0 %v17582_v34  ;;  %12849 = vmatprep.subr.bf16.mxu1 %v17585_v62  ;;  %v17645_v34 = vld [vmem:[%s23566_s19 + $0x7f4] ss:$28 sps:$4 sm:$0xff]  }
0x110a   :  { %15258 = vmatprep.subr.bf16.mxu0 %v17586_v51  ;;  %v17646_v62 = vld [vmem:[%s23566_s19 + $0x10b8] ss:$28 sps:$4 sm:$0xff]   ;;  %v17643_v51 = vld [vmem:[%s23566_s19 + $0x7f0] ss:$28 sps:$4 sm:$0xff]  }
0x110c   :  { %13151 = vmatmul.mubr.bf16.vlgmr.msra.gmra.mrb[80].mxu0 %v22254_v2  ;;  %12850 = vmatpush1.bf16.msra.mxu1 %v17583_v48  ;;  %v17647_v48 = vld [vmem:[%s23566_s19 + $0xef8] ss:$28 sps:$4 sm:$0xff]  }
0x110d   :  { %15259 = vmatpush3.bf16.msra.mxu0 %v17587_v12  ;;  %13190 = vmatprep.mubr.bf16.mxu0 %v22263_v53  ;;  %v17650_v12 = vld [vmem:[%s23566_s19 + $0x82c] ss:$28 sps:$4 sm:$0xff]  }
0x110e   :  { %12851 = vmatprep.subr.bf16.mxu1 %v17590_v11  ;;  %15260 = vmatprep.subr.bf16.mxu0 %v17591_v26  ;;  %v17651_v11 = vld [vmem:[%s23566_s19 + $0x10f0] ss:$28 sps:$4 sm:$0xff]   ;;  %v17648_v26 = vld [vmem:[%s23566_s19 + $0x828] ss:$28 sps:$4 sm:$0xff]  }
0x1110   :  { %12852 = vmatpush1.bf16.msra.mxu1 %v17588_v39  ;;  %v17652_v39 = vld [vmem:[%s23566_s19 + $0xf30] ss:$28 sps:$4 sm:$0xff]  }
0x1111   :  { %15261 = vmatpush3.bf16.msra.mxu0 %v17592_v50  ;;  %12853 = vmatprep.subr.bf16.mxu1 %v17595_v17  ;;  %v17655_v50 = vld [vmem:[%s23566_s19 + $0x864] ss:$28 sps:$4 sm:$0xff]  }
0x1112   :  { %15262 = vmatprep.subr.bf16.mxu0 %v17596_v46  ;;  %v17656_v17 = vld [vmem:[%s23566_s19 + $0x1128] ss:$28 sps:$4 sm:$0xff]   ;;  %v17653_v46 = vld [vmem:[%s23566_s19 + $0x860] ss:$28 sps:$4 sm:$0xff]  }
0x1114   :  { %12854 = vmatpush1.bf16.msra.mxu1 %v17593_v23  ;;  %v17657_v23 = vld [vmem:[%s23566_s19 + $0xf68] ss:$28 sps:$4 sm:$0xff]  }
0x1115   :  { %15263 = vmatpush3.bf16.msra.mxu0 %v17597_v31  ;;  %12855 = vmatprep.subr.bf16.mxu1 %v17600_v44  ;;  %v17660_v31 = vld [vmem:[%s23566_s19 + $0x89c] ss:$28 sps:$4 sm:$0xff]  }
0x1116   :  { %15264 = vmatprep.subr.bf16.mxu0 %v17601_v9  ;;  %v17661_v44 = vld [vmem:[%s23566_s19 + $0x1160] ss:$28 sps:$4 sm:$0xff]   ;;  %v17658_v9 = vld [vmem:[%s23566_s19 + $0x898] ss:$28 sps:$4 sm:$0xff]  }
0x1118   :  { %12856 = vmatpush1.bf16.msra.mxu1 %v17598_v57  ;;  %v17662_v57 = vld [vmem:[%s23566_s19 + $0xfa0] ss:$28 sps:$4 sm:$0xff]  }
0x1119   :  { %15265 = vmatpush3.bf16.msra.mxu0 %v17602_v63  ;;  %12857 = vmatprep.subr.bf16.mxu1 %v17605_v56  ;;  %v17665_v63 = vld [vmem:[%s23566_s19 + $0x8d4] ss:$28 sps:$4 sm:$0xff]  }
0x111a   :  { %15266 = vmatprep.subr.bf16.mxu0 %v17606_v21  ;;  %v17663_v56 = vld [vmem:[%s23566_s19 + $0x8d0] ss:$28 sps:$4 sm:$0xff]   ;;  %v17666_v21 = vld [vmem:[%s23566_s19 + $0x1198] ss:$28 sps:$4 sm:$0xff]  }
0x111c   :  { %12858 = vmatpush1.bf16.msra.mxu1 %v17603_v30  ;;  %v17669_v30 = vld [vmem:[%s23566_s19 + $0x90c] ss:$28 sps:$4 sm:$0xff]  }
0x111d   :  { %15267 = vmatpush3.bf16.msra.mxu0 %v17607_v28  ;;  %12859 = vmatprep.subr.bf16.mxu1 %v17610_v7  ;;  %v17667_v28 = vld [vmem:[%s23566_s19 + $0x908] ss:$28 sps:$4 sm:$0xff]   ;;  %v17670_v7 = vld [vmem:[%s23566_s19 + $0x11d0] ss:$28 sps:$4 sm:$0xff]  }
0x111e   :  { %15268 = vmatprep.subr.bf16.mxu0 %v17611_v10  ;;  %v17673_v10 = vld [vmem:[%s23566_s19 + $0x944] ss:$28 sps:$4 sm:$0xff]  }
0x1120   :  { %12860 = vmatpush1.bf16.msra.mxu1 %v17608_v58  ;;  %v17671_v58 = vld [vmem:[%s23566_s19 + $0x940] ss:$28 sps:$4 sm:$0xff]  }
0x1121   :  { %15269 = vmatpush3.bf16.msra.mxu0 %v17612_v18  ;;  %12861 = vmatprep.subr.bf16.mxu1 %v17615_v52  ;;  %v17674_v18 = vld [vmem:[%s23566_s19 + $0x1208] ss:$28 sps:$4 sm:$0xff]   ;;  %v17677_v52 = vld [vmem:[%s23566_s19 + $0x97c] ss:$28 sps:$4 sm:$0xff]  }
0x1122   :  { %15270 = vmatprep.subr.bf16.mxu0 %v17616_v29  ;;  %v17675_v29 = vld [vmem:[%s23566_s19 + $0x978] ss:$28 sps:$4 sm:$0xff]  }
0x1124   :  { %12862 = vmatpush1.bf16.msra.mxu1 %v17613_v22  ;;  %v17678_v22 = vld [vmem:[%s23566_s19 + $0x1240] ss:$28 sps:$4 sm:$0xff]  }
0x1125   :  { %15271 = vmatpush3.bf16.msra.mxu0 %v17617_v59  ;;  %12863 = vmatprep.subr.bf16.mxu1 %v17620_v40  ;;  %v17681_v59 = vld [vmem:[%s23566_s19 + $0x9b4] ss:$28 sps:$4 sm:$0xff]   ;;  %v17682_v40 = vld [vmem:[%s23566_s19 + $0x1278] ss:$0 sps:$4 sm:$0xff]  }
0x1126   :  { %15272 = vmatprep.subr.bf16.mxu0 %v17621_v45  ;;  %v17679_v45 = vld [vmem:[%s23566_s19 + $0x9b0] ss:$28 sps:$4 sm:$0xff]  }
0x1128   :  { %12864 = vmatpush1.bf16.msra.mxu1 %v17618_v54  ;;  %v17685_v54 = vld [vmem:[%s23566_s19 + $0x9ec] ss:$28 sps:$4 sm:$0xff]  }
0x1129   :  { %15273 = vmatpush3.bf16.msra.mxu0 %v17622_v14  ;;  %12874 = vmatprep.subr.bf16.mxu1 %v17625_v42  ;;  %v12298_v14 = vsel %vm12278_vm10, %v17682_v40, 0  ;;  %v17683_v42 = vld [vmem:[%s23566_s19 + $0x9e8] ss:$28 sps:$4 sm:$0xff]  }
0x112a   :  { %15280 = vmatprep.subr.bf16.mxu0 %v17626_v36  ;;  %v17688_v36 = vld [vmem:[%s23566_s19 + $0xa24] ss:$28 sps:$4 sm:$0xff]  }
0x112b   :  { %12866 = vmatmul.mubr.bf16.vlgmr.msra.gmra.mrb[88].mxu1 %v22052_v25  ;;  %v17635_v25 = vld [vmem:[%s23566_s19 + $0x784] ss:$28 sps:$4 sm:$0xff]  }
0x112c   :  { %13191 = vmatmul.mubr.bf16.vlgmr.msra.gmra.mrb[84].mxu0 %v22456_v16  ;;  %12875 = vmatpush1.bf16.msra.mxu1 %v17623_v5  ;;  %v17691_v5 = vld [vmem:[%s23566_s19 + $0xa5c] ss:$28 sps:$4 sm:$0xff]  }
0x112d   :  { %12906 = vmatprep.mubr.bf16.mxu1 %v22057_v6  ;;  %15281 = vmatpush3.bf16.msra.mxu0 %v17627_v15  ;;  %v17633_v6 = vld [vmem:[%s23566_s19 + $0x780] ss:$28 sps:$4 sm:$0xff]   ;;  %v17689_v15 = vld [vmem:[%s23566_s19 + $0xa58] ss:$28 sps:$4 sm:$0xff]  }
0x112e   :  { %13230 = vmatprep.mubr.bf16.mxu0 %v22465_v49  ;;  %12876 = vmatprep.subr.bf16.mxu1 %v17630_v32  ;;  %v17694_v32 = vld [vmem:[%s23566_s19 + $0xa94] ss:$28 sps:$4 sm:$0xff]  }
0x112f   :  { %15282 = vmatprep.subr.bf16.mxu0 %v17631_v3  ;;  %v17692_v3 = vld [vmem:[%s23566_s19 + $0xa90] ss:$28 sps:$4 sm:$0xff]  }
0x1130   :  { %12877 = vmatpush1.bf16.msra.mxu1 %v17628_v47  ;;  %v17697_v47 = vld [vmem:[%s23566_s19 + $0xacc] ss:$28 sps:$4 sm:$0xff]  }
0x1131   :  { %15283 = vmatpush3.bf16.msra.mxu0 %v17632_v33  ;;  %12878 = vmatprep.subr.bf16.mxu1 %v17635_v25  ;;  %v17695_v33 = vld [vmem:[%s23566_s19 + $0xac8] ss:$28 sps:$4 sm:$0xff]  }
0x1132   :  { %15284 = vmatprep.subr.bf16.mxu0 %v17636_v38  ;;  %v17700_v25 = vld [vmem:[%s23566_s19 + $0xb04] ss:$28 sps:$4 sm:$0xff]  }
0x1133   :  { %v17698_v38 = vld [vmem:[%s23566_s19 + $0xb00] ss:$28 sps:$4 sm:$0xff]  }
0x1134   :  { %12879 = vmatpush1.bf16.msra.mxu1 %v17633_v6  ;;  %v17706_v6 = vld [vmem:[%s23566_s19 + $0xb74] ss:$28 sps:$4 sm:$0xff]  }
0x1135   :  { %15285 = vmatpush3.bf16.msra.mxu0 %v17637_v8  ;;  %12880 = vmatprep.subr.bf16.mxu1 %v17640_v43  ;;  %v17704_v8 = vld [vmem:[%s23566_s19 + $0xb70] ss:$28 sps:$4 sm:$0xff]   ;;  %v23322_v43 = vld [vmem:[%s23569_s20] sm:$0x7f] }
0x1136   :  { %15286 = vmatprep.subr.bf16.mxu0 %v17641_v37  ;;  %v17709_v37 = vld [vmem:[%s23566_s19 + $0xbac] ss:$28 sps:$4 sm:$0xff]  }
0x1138   :  { %12881 = vmatpush1.bf16.msra.mxu1 %v17638_v61  ;;  %v9201_v61 = vrot.slane %v23322_v43, %v18169_v4 }
0x1139   :  { %15287 = vmatpush3.bf16.msra.mxu0 %v17642_v27  ;;  %12882 = vmatprep.subr.bf16.mxu1 %v17645_v34  ;;  %v9209_v27 = vrot.slane %v23322_v43, %v23794_v1  ;;  %v9205_v34 = vrot.slane %v23322_v43, %v23791_v24 }
0x113a   :  { %15288 = vmatprep.subr.bf16.mxu0 %v17646_v62  ;;  %v17707_v62 = vld [vmem:[%s23566_s19 + $0xba8] ss:$28 sps:$4 sm:$0xff]  }
0x113c   :  { %12883 = vmatpush1.bf16.msra.mxu1 %v17643_v51  ;;  %v9213_v51 = vrot.slane %v23322_v43, %v23793_v20 }
0x113d   :  { %15289 = vmatpush3.bf16.msra.mxu0 %v17647_v48  ;;  %12884 = vmatprep.subr.bf16.mxu1 %v17650_v12  ;;  %v17712_v48 = vld [vmem:[%s23566_s19 + $0xbe4] ss:$28 sps:$4 sm:$0xff]  }
0x113e   :  { %15290 = vmatprep.subr.bf16.mxu0 %v17651_v11 }
0x1140   :  { %12885 = vmatpush1.bf16.msra.mxu1 %v17648_v26 }
0x1141   :  { %15291 = vmatpush3.bf16.msra.mxu0 %v17652_v39  ;;  %12886 = vmatprep.subr.bf16.mxu1 %v17655_v50 }
0x1142   :  { %15292 = vmatprep.subr.bf16.mxu0 %v17656_v17  ;;  %v17710_v17 = vld [vmem:[%s23566_s19 + $0xbe0] ss:$28 sps:$4 sm:$0xff]  }
0x1144   :  { %12887 = vmatpush1.bf16.msra.mxu1 %v17653_v46 }
0x1145   :  { %15293 = vmatpush3.bf16.msra.mxu0 %v17657_v23  ;;  %12888 = vmatprep.subr.bf16.mxu1 %v17660_v31 }
0x1146   :  { %15294 = vmatprep.subr.bf16.mxu0 %v17661_v44  ;;  %v17715_v44 = vld [vmem:[%s23566_s19 + $0xc1c] ss:$28 sps:$4 sm:$0xff]  }
0x1148   :  { %12889 = vmatpush1.bf16.msra.mxu1 %v17658_v9 }
0x1149   :  { %15295 = vmatpush3.bf16.msra.mxu0 %v17662_v57  ;;  %12890 = vmatprep.subr.bf16.mxu1 %v17665_v63 }
0x114a   :  { %15482 = vmatprep.subr.bf16.mxu0 %v23671_v41 }
0x114c   :  { %13231 = vmatmul.mubr.bf16.vlgmr.msra.gmra.mrb[88].mxu0 %v22657_v19  ;;  %12891 = vmatpush1.bf16.msra.mxu1 %v17663_v56 }
0x114d   :  { %15483 = vmatpush3.bf16.msra.mxu0 %v17666_v21  ;;  %12892 = vmatprep.subr.bf16.mxu1 %v17669_v30  ;;  %v17713_v21 = vld [vmem:[%s23566_s19 + $0xc18] ss:$28 sps:$4 sm:$0xff]  }
0x114e   :  { %15484 = vmatprep.subr.bf16.mxu0 %v23671_v41  ;;  %15492 = vmatprep.mubr.msk.bf16.mxu0 %vm17861_vm0, %v23671_v41  ;;  %v17718_v30 = vld [vmem:[%s23566_s19 + $0xc54] ss:$28 sps:$4 sm:$0xff]  }
0x1150   :  { %12893 = vmatpush1.bf16.msra.mxu1 %v17667_v28  ;;  %v17716_v28 = vld [vmem:[%s23566_s19 + $0xc50] ss:$28 sps:$4 sm:$0xff]  }
0x1151   :  { %15485 = vmatpush3.bf16.msra.mxu0 %v17670_v7  ;;  %12894 = vmatprep.subr.bf16.mxu1 %v17673_v10  ;;  %v17721_v7 = vld [vmem:[%s23566_s19 + $0xc8c] ss:$28 sps:$4 sm:$0xff]   ;;  %v17864_v10 = vmov 1983009808  }
0x1152   :  { %15486 = vmatprep.subr.bf16.mxu0 %v23671_v41 }
0x1154   :  { %12895 = vmatpush1.bf16.msra.mxu1 %v17671_v58  ;;  %v13316_v58 = vunpack.c.l.s4 %v17864_v10 }
0x1155   :  { %15487 = vmatpush3.bf16.msra.mxu0 %v17674_v18  ;;  %12896 = vmatprep.subr.bf16.mxu1 %v17677_v52  ;;  %v17719_v18 = vld [vmem:[%s23566_s19 + $0xc88] ss:$28 sps:$4 sm:$0xff]  }
0x1156   :  { %15488 = vmatprep.subr.bf16.mxu0 %v23671_v41  ;;  %v13317_v40 = vunpack.c.0.s8 %v13316_v58 }
0x1158   :  { %12897 = vmatpush1.bf16.msra.mxu1 %v17675_v29  ;;  %v17724_v29 = vld [vmem:[%s23566_s19 + $0xcc4] ss:$28 sps:$4 sm:$0xff]  }
0x1159   :  { %15489 = vmatpush3.bf16.msra.mxu0 %v17678_v22  ;;  %12898 = vmatprep.subr.bf16.mxu1 %v17681_v59 }
0x115a   :  { %15490 = vmatprep.subr.bf16.mxu0 %v23671_v41  ;;  %v17686_v41 = vld [vmem:[%s23566_s19 + $0xa20] ss:$28 sps:$4 sm:$0xff]  }
0x115c   :  { %12899 = vmatpush1.bf16.msra.mxu1 %v17679_v45 }
0x115d   :  { %15491 = vmatpush3.bf16.msra.mxu0 %v12298_v14  ;;  %12900 = vmatprep.subr.bf16.mxu1 %v17685_v54 }
0x1160   :  { %15493 = vmatmul.mubr.msk.bf16.vlgmr.msra.gmra.mrb[92].mxu0 %vm6432_vm8, %v22722_v60  ;;  %12901 = vmatpush1.bf16.msra.mxu1 %v17683_v42 }
0x1161   :  { %12902 = vmatprep.subr.bf16.mxu1 %v17688_v36 }
0x1164   :  { %12903 = vmatpush1.bf16.msra.mxu1 %v17686_v41  ;;  %v17722_v41 = vld [vmem:[%s23566_s19 + $0xcc0] ss:$28 sps:$4 sm:$0xff]  }
0x1165   :  { %12904 = vmatprep.subr.bf16.mxu1 %v17691_v5 }
0x1168   :  { %12905 = vmatpush1.bf16.msra.mxu1 %v17689_v15 }
0x1169   :  { %12915 = vmatprep.subr.bf16.mxu1 %v17694_v32  ;;  %v17727_v32 = vld [vmem:[%s23566_s19 + $0xcfc] ss:$28 sps:$4 sm:$0xff]  }
0x116b   :  { %12907 = vmatmul.mubr.bf16.vlgmr.msra.gmra.mrb[88].mxu1 %v22254_v2  ;;  %v17703_v2 = vld [vmem:[%s23566_s19 + $0xb3c] ss:$28 sps:$4 sm:$0xff]  }
0x116c   :  { %12916 = vmatpush1.bf16.msra.mxu1 %v17692_v3  ;;  %12947 = vmatprep.mubr.bf16.mxu1 %v22263_v53  ;;  %v17701_v53 = vld [vmem:[%s23566_s19 + $0xb38] ss:$28 sps:$4 sm:$0xff]  }
0x116d   :  { %12917 = vmatprep.subr.bf16.mxu1 %v17697_v47  ;;  %v23798_v47 = vld [vmem:[#allocation2_spill] sm:$0xff] }
0x1170   :  { %12918 = vmatpush1.bf16.msra.mxu1 %v17695_v33  ;;  %v23372_v33 = vsub.s32 %v13317_v40, %v23798_v47  ;;  %v17764_v40 = vld [vmem:[%s23566_s19 + $0xfd0] ss:$28 sps:$4 sm:$0xff]   ;;  %v17784_v47 = vld [vmem:[%s23566_s19 + $0x1124] ss:$28 sps:$4 sm:$0xff]  }
0x1171   :  { %12919 = vmatprep.subr.bf16.mxu1 %v17700_v25 }
0x1174   :  { %12920 = vmatpush1.bf16.msra.mxu1 %v17698_v38 }
0x1175   :  { %12921 = vmatprep.subr.bf16.mxu1 %v17703_v2  ;;  %v17725_v2 = vld [vmem:[%s23566_s19 + $0xcf8] ss:$28 sps:$4 sm:$0xff]  }
0x1178   :  { %12922 = vmatpush1.bf16.msra.mxu1 %v17701_v53 }
0x1179   :  { %12923 = vmatprep.subr.bf16.mxu1 %v17706_v6  ;;  %v17730_v6 = vld [vmem:[%s23566_s19 + $0xd34] ss:$28 sps:$4 sm:$0xff]  }
0x117c   :  { %12924 = vmatpush1.bf16.msra.mxu1 %v17704_v8 }
0x117d   :  { %12925 = vmatprep.subr.bf16.mxu1 %v17709_v37 }
0x117e   :  { %v12539_v4 = vpop.f32.mrb[84].mxu1 }
0x117f   :  { %v16134_v12 = vadd.f32 %v12539_v4, %v9201_v61  ;;  %v12785_v11 = vpop.f32.mrb[68].mxu0  ;;  %v12541_v26 = vpop.f32.mrb[85].mxu1  ;;  %v17728_v61 = vld [vmem:[%s23566_s19 + $0xd30] ss:$28 sps:$4 sm:$0xff]  }
0x1180   :  { %v16136_v1 = vadd.f32 %v12785_v11, %v9209_v27  ;;  %v16135_v39 = vadd.f32 %v12541_v26, %v9205_v34  ;;  %v12787_v50 = vpop.f32.mrb[69].mxu0  ;;  %v12543_v24 = vpop.f32.mrb[86].mxu1  ;;  %12926 = vmatpush1.bf16.msra.mxu1 %v17707_v62  ;;  %v17733_v34 = vld [vmem:[%s23566_s19 + $0xd6c] ss:$28 sps:$4 sm:$0xff]  }
0x1181   :  { %v13278_v46 = vmul.f32 0.5, %v16134_v12  ;;  %v16137_v20 = vadd.f32 %v12787_v50, %v9213_v51  ;;  %v12789_v23 = vpop.f32.mrb[70].mxu0  ;;  %v12544_v31 = vpop.f32.mrb[87].mxu1  ;;  %12927 = vmatprep.subr.bf16.mxu1 %v17712_v48  ;;  %v17731_v62 = vld [vmem:[%s23566_s19 + $0xd68] ss:$28 sps:$4 sm:$0xff]  }
0x1182   :  { %v13280_v9 = vmul.f32 0.5, %v16136_v1  ;;  %v13279_v57 = vmul.f32 0.5, %v16135_v39  ;;  %v12790_v63 = vpop.f32.mrb[71].mxu0  ;;  %v17736_v51 = vld [vmem:[%s23566_s19 + $0xda4] ss:$28 sps:$4 sm:$0xff]  }
0x1183   :  { %17840 = vtanh.f32 %v13278_v46  ;;  %v13281_v56 = vmul.f32 0.5, %v16137_v20  ;;  %v17734_v12 = vld [vmem:[%s23566_s19 + $0xda0] ss:$28 sps:$4 sm:$0xff]   ;;  %v17737_v50 = vld [vmem:[%s23566_s19 + $0xdd8] ss:$28 sps:$4 sm:$0xff]  }
0x1184   :  { %17842 = vtanh.f32 %v13280_v9  ;;  %12928 = vmatpush1.bf16.msra.mxu1 %v17710_v17  ;;  %v17739_v1 = vld [vmem:[%s23566_s19 + $0xddc] ss:$28 sps:$4 sm:$0xff]   ;;  %v17742_v24 = vld [vmem:[%s23566_s19 + $0xe14] ss:$28 sps:$4 sm:$0xff]   ;;  %v17745_v46 = vld [vmem:[%s23566_s19 + $0xe4c] ss:$28 sps:$4 sm:$0xff]  }
0x1185   :  { %17844 = vtanh.f32 %v13279_v57  ;;  %12929 = vmatprep.subr.bf16.mxu1 %v17715_v44  ;;  %v17740_v17 = vld [vmem:[%s23566_s19 + $0xe10] ss:$28 sps:$4 sm:$0xff]   ;;  %v17743_v20 = vld [vmem:[%s23566_s19 + $0xe48] ss:$28 sps:$4 sm:$0xff]   ;;  %v17746_v31 = vld [vmem:[%s23566_s19 + $0xe80] ss:$28 sps:$4 sm:$0xff]  }
0x1186   :  { %17846 = vtanh.f32 %v13281_v56  ;;  %v17748_v23 = vld [vmem:[%s23566_s19 + $0xe84] ss:$28 sps:$4 sm:$0xff]   ;;  %v17754_v44 = vld [vmem:[%s23566_s19 + $0xef4] ss:$28 sps:$4 sm:$0xff]   ;;  %v17757_v57 = vld [vmem:[%s23566_s19 + $0xf2c] ss:$28 sps:$4 sm:$0xff]   ;;  %v9225_v56 = vrot.slane %v23322_v43, %v23792_v35 }
0x1187   :  { %v17752_v9 = vld [vmem:[%s23566_s19 + $0xef0] ss:$28 sps:$4 sm:$0xff]   ;;  %v17755_v63 = vld [vmem:[%s23566_s19 + $0xf28] ss:$28 sps:$4 sm:$0xff]   ;;  %v17763_v35 = vld [vmem:[%s23566_s19 + $0xf9c] ss:$28 sps:$4 sm:$0xff]  }
0x1188   :  { %12930 = vmatpush1.bf16.msra.mxu1 %v17713_v21  ;;  %v17760_v21 = vld [vmem:[%s23566_s19 + $0xf64] ss:$28 sps:$4 sm:$0xff]  }
0x1189   :  { %12931 = vmatprep.subr.bf16.mxu1 %v17718_v30 }
0x118c   :  { %12932 = vmatpush1.bf16.msra.mxu1 %v17716_v28 }
0x118d   :  { %v17841_v52 = vpop.eup %17840  ;;  %12933 = vmatprep.subr.bf16.mxu1 %v17721_v7  ;;  %v17758_v7 = vld [vmem:[%s23566_s19 + $0xf60] ss:$28 sps:$4 sm:$0xff]  }
0x118e   :  { %v17843_v22 = vpop.eup %17842  ;;  %v13292_v59 = vadd.f32 1.0, %v17841_v52 }
0x118f   :  { %v17845_v45 = vpop.eup %17844  ;;  %v13294_v54 = vadd.f32 1.0, %v17843_v22  ;;  %v17761_v22 = vld [vmem:[%s23566_s19 + $0xf98] ss:$28 sps:$4 sm:$0xff]  }
0x1190   :  { %v17847_v14 = vpop.eup %17846  ;;  %v13299_v42 = vmul.f32 0.5, %v13292_v59  ;;  %v13293_v36 = vadd.f32 1.0, %v17845_v45  ;;  %12934 = vmatpush1.bf16.msra.mxu1 %v17719_v18  ;;  %v17766_v59 = vld [vmem:[%s23566_s19 + $0xfd4] ss:$28 sps:$4 sm:$0xff]   ;;  %v17769_v45 = vld [vmem:[%s23566_s19 + $0x100c] ss:$28 sps:$4 sm:$0xff]  }
0x1191   :  { %v13301_v5 = vmul.f32 0.5, %v13294_v54  ;;  %v13295_v15 = vadd.f32 1.0, %v17847_v14  ;;  %12935 = vmatprep.subr.bf16.mxu1 %v17724_v29  ;;  %v17767_v54 = vld [vmem:[%s23566_s19 + $0x1008] ss:$28 sps:$4 sm:$0xff]  }
0x1192   :  { %v13300_v3 = vmul.f32 0.5, %v13293_v36  ;;  %v17772_v14 = vld [vmem:[%s23566_s19 + $0x1044] ss:$28 sps:$4 sm:$0xff]   ;;  %v17775_v36 = vld [vmem:[%s23566_s19 + $0x107c] ss:$28 sps:$4 sm:$0xff]  }
0x1193   :  { %v13302_v25 = vmul.f32 0.5, %v13295_v15  ;;  %v17776_v15 = vld [vmem:[%s23566_s19 + $0x10b0] ss:$28 sps:$4 sm:$0xff]  }
0x1194   :  { %v13313_v38 = vcombine.low %v13299_v42, %v13300_v3  ;;  %12936 = vmatpush1.bf16.msra.mxu1 %v17722_v41  ;;  %v17770_v42 = vld [vmem:[%s23566_s19 + $0x1040] ss:$28 sps:$4 sm:$0xff]   ;;  %v17773_v41 = vld [vmem:[%s23566_s19 + $0x1078] ss:$28 sps:$4 sm:$0xff]   ;;  %v17779_v3 = vld [vmem:[%s23566_s19 + $0x10e8] ss:$28 sps:$4 sm:$0xff]  }
0x1195   :  { %v13314_v53 = vcombine.low %v13301_v5, %v13302_v25  ;;  %12937 = vmatprep.subr.bf16.mxu1 %v17727_v32  ;;  %v17778_v5 = vld [vmem:[%s23566_s19 + $0x10b4] ss:$28 sps:$4 sm:$0xff]   ;;  %v17781_v32 = vld [vmem:[%s23566_s19 + $0x10ec] ss:$28 sps:$4 sm:$0xff]  }
0x1196   :  { %v13321_v8 = vrot.slane %v13313_v38, %v23372_v33 }
0x1197   :  { %v13328_v37 = vrot.slane %v13314_v53, %v23372_v33 }
0x1198   :  { %12938 = vmatpush1.bf16.msra.mxu1 %v17725_v2  ;;  %v17782_v2 = vld [vmem:[%s23566_s19 + $0x1120] ss:$28 sps:$4 sm:$0xff]  }
0x1199   :  { %v13329_v27 = vcombine.low %v13321_v8, %v13328_v37  ;;  %12939 = vmatprep.subr.bf16.mxu1 %v17730_v6  ;;  %v17787_v8 = vld [vmem:[%s23566_s19 + $0x115c] ss:$28 sps:$4 sm:$0xff]  }
0x119b   :  { %13348 = vst [vmem:[%s23570_s21] sm:$0xff] %v13329_v27  ;;  %v17785_v27 = vld [vmem:[%s23566_s19 + $0x1158] ss:$28 sps:$4 sm:$0xff]  }
0x119c   :  { %12940 = vmatpush1.bf16.msra.mxu1 %v17728_v61 }
0x119d   :  { %12941 = vmatprep.subr.bf16.mxu1 %v17733_v34  ;;  %v17790_v34 = vld [vmem:[%s23566_s19 + $0x1194] ss:$28 sps:$4 sm:$0xff]  }
0x119f   :  { %v15208_v48 = vpop.f32.mrb[72].mxu0 }
0x11a0   :  { %v15209_v4 = vpop.f32.mrb[73].mxu0  ;;  %12942 = vmatpush1.bf16.msra.mxu1 %v17731_v62  ;;  %v17788_v62 = vld [vmem:[%s23566_s19 + $0x1190] ss:$28 sps:$4 sm:$0xff]  }
0x11a1   :  { %v15210_v11 = vadd.f32 %v15209_v4, %v15208_v48  ;;  %v15211_v26 = vpop.f32.mrb[74].mxu0  ;;  %12943 = vmatprep.subr.bf16.mxu1 %v17736_v51  ;;  %v17793_v51 = vld [vmem:[%s23566_s19 + $0x11cc] ss:$28 sps:$4 sm:$0xff]   ;;  %v17796_v4 = vld [vmem:[%s23566_s19 + $0x1204] ss:$28 sps:$4 sm:$0xff]  }
0x11a2   :  { %v15212_v39 = vpop.f32.mrb[75].mxu0  ;;  %v17791_v48 = vld [vmem:[%s23566_s19 + $0x11c8] ss:$28 sps:$4 sm:$0xff]  }
0x11a3   :  { %v13073_v10 = vadd.f32 %v15210_v11, %v9225_v56  ;;  %v9194_v11 = vld [vmem:[%s23566_s19 + $0x1270] sm:$0xff] }
0x11a4   :  { %12944 = vmatpush1.bf16.msra.mxu1 %v17734_v12  ;;  %v17794_v12 = vld [vmem:[%s23566_s19 + $0x1200] ss:$28 sps:$4 sm:$0xff]   ;;  %v14479_v26 = vcombine.high %v9194_v11, %v9194_v11 }
0x11a5   :  { %12945 = vmatprep.subr.bf16.mxu1 %v17739_v1  ;;  %v14478_v1 = vcombine.low %v9194_v11, %v9194_v11 }
0x11a7   :  { %v12292_v39 = vsel %vm12278_vm10, %v14478_v1, 0 }
0x11a8   :  { %12946 = vmatpush1.bf16.msra.mxu1 %v17737_v50 }
0x11a9   :  { %12956 = vmatprep.subr.bf16.mxu1 %v17742_v24 }
0x11ab   :  { %12948 = vmatmul.mubr.bf16.vlgmr.msra.gmra.mrb[88].mxu1 %v22456_v16  ;;  %v17751_v16 = vld [vmem:[%s23566_s19 + $0xebc] ss:$28 sps:$4 sm:$0xff]  }
0x11ac   :  { %12957 = vmatpush1.bf16.msra.mxu1 %v17740_v17  ;;  %12988 = vmatprep.mubr.bf16.mxu1 %v22465_v49  ;;  %v17749_v49 = vld [vmem:[%s23566_s19 + $0xeb8] ss:$28 sps:$4 sm:$0xff]  }
0x11ad   :  { %12958 = vmatprep.subr.bf16.mxu1 %v17745_v46 }
0x11b0   :  { %12959 = vmatpush1.bf16.msra.mxu1 %v17743_v20 }
0x11b1   :  { %12960 = vmatprep.subr.bf16.mxu1 %v17748_v23 }
0x11b4   :  { %12961 = vmatpush1.bf16.msra.mxu1 %v17746_v31 }
0x11b5   :  { %12962 = vmatprep.subr.bf16.mxu1 %v17751_v16 }
0x11b8   :  { %12963 = vmatpush1.bf16.msra.mxu1 %v17749_v49 }
0x11b9   :  { %12964 = vmatprep.subr.bf16.mxu1 %v17754_v44 }
0x11bc   :  { %12965 = vmatpush1.bf16.msra.mxu1 %v17752_v9 }
0x11bd   :  { %12966 = vmatprep.subr.bf16.mxu1 %v17757_v57 }
0x11bf   :  { %v15230_v30 = vpop.f32.mrb[76].mxu0 }
0x11c0   :  { %v15231_v28 = vpop.f32.mrb[77].mxu0  ;;  %12967 = vmatpush1.bf16.msra.mxu1 %v17755_v63 }
0x11c1   :  { %v15232_v58 = vadd.f32 %v15231_v28, %v15230_v30  ;;  %v15233_v18 = vpop.f32.mrb[78].mxu0  ;;  %12968 = vmatprep.subr.bf16.mxu1 %v17760_v21 }
0x11c2   :  { %v15234_v52 = vpop.f32.mrb[79].mxu0 }
0x11c3   :  { %v13113_v29 = vadd.f32 %v15232_v58, %v13073_v10  ;;  %v9221_v10 = vrot.slane %v23322_v43, %v23796_v55 }
0x11c4   :  { %12969 = vmatpush1.bf16.msra.mxu1 %v17758_v7  ;;  %v9217_v7 = vrot.slane %v23322_v43, %v23795_v0 }
0x11c5   :  { %12970 = vmatprep.subr.bf16.mxu1 %v17763_v35 }
0x11c8   :  { %12971 = vmatpush1.bf16.msra.mxu1 %v17761_v22 }
0x11c9   :  { %12972 = vmatprep.subr.bf16.mxu1 %v17766_v59 }
0x11cc   :  { %12973 = vmatpush1.bf16.msra.mxu1 %v17764_v40 }
0x11cd   :  { %12974 = vmatprep.subr.bf16.mxu1 %v17769_v45 }
0x11d0   :  { %12975 = vmatpush1.bf16.msra.mxu1 %v17767_v54 }
0x11d1   :  { %12976 = vmatprep.subr.bf16.mxu1 %v17772_v14 }
0x11d4   :  { %12977 = vmatpush1.bf16.msra.mxu1 %v17770_v42 }
0x11d5   :  { %12978 = vmatprep.subr.bf16.mxu1 %v17775_v36 }
0x11d8   :  { %12979 = vmatpush1.bf16.msra.mxu1 %v17773_v41 }
0x11d9   :  { %12980 = vmatprep.subr.bf16.mxu1 %v17778_v5 }
0x11dc   :  { %12981 = vmatpush1.bf16.msra.mxu1 %v17776_v15 }
0x11dd   :  { %12982 = vmatprep.subr.bf16.mxu1 %v17781_v32 }
0x11df   :  { %v15252_v25 = vpop.f32.mrb[80].mxu0 }
0x11e0   :  { %v15253_v38 = vpop.f32.mrb[81].mxu0  ;;  %12983 = vmatpush1.bf16.msra.mxu1 %v17779_v3 }
0x11e1   :  { %v15254_v53 = vadd.f32 %v15253_v38, %v15252_v25  ;;  %v15255_v6 = vpop.f32.mrb[82].mxu0  ;;  %12984 = vmatprep.subr.bf16.mxu1 %v17784_v47 }
0x11e2   :  { %v15256_v37 = vpop.f32.mrb[83].mxu0 }
0x11e3   :  { %v13153_v61 = vadd.f32 %v15254_v53, %v13113_v29 }
0x11e4   :  { %12985 = vmatpush1.bf16.msra.mxu1 %v17782_v2 }
0x11e5   :  { %12986 = vmatprep.subr.bf16.mxu1 %v17787_v8 }
0x11e8   :  { %12987 = vmatpush1.bf16.msra.mxu1 %v17785_v27 }
0x11e9   :  { %12997 = vmatprep.subr.bf16.mxu1 %v17790_v34 }
0x11eb   :  { %12989 = vmatmul.mubr.bf16.vlgmr.msra.gmra.mrb[88].mxu1 %v22657_v19  ;;  %v17799_v19 = vld [vmem:[%s23566_s19 + $0x123c] ss:$28 sps:$4 sm:$0xff]  }
0x11ec   :  { %12998 = vmatpush1.bf16.msra.mxu1 %v17788_v62  ;;  %13029 = vmatprep.mubr.bf16.mxu1 %v23797_v13  ;;  %v17797_v13 = vld [vmem:[%s23566_s19 + $0x1238] ss:$28 sps:$4 sm:$0xff]  }
0x11ed   :  { %12999 = vmatprep.subr.bf16.mxu1 %v17793_v51 }
0x11f0   :  { %13000 = vmatpush1.bf16.msra.mxu1 %v17791_v48 }
0x11f1   :  { %13001 = vmatprep.subr.bf16.mxu1 %v17796_v4 }
0x11f4   :  { %13002 = vmatpush1.bf16.msra.mxu1 %v17794_v12 }
0x11f5   :  { %13003 = vmatprep.subr.bf16.mxu1 %v17799_v19 }
0x11f8   :  { %13004 = vmatpush1.bf16.msra.mxu1 %v17797_v13 }
0x11f9   :  { %14485 = vmatprep.subr.msk.bf16.mxu1 %vm12278_vm10, %v14479_v26 }
0x11fc   :  { %13006 = vmatpush1.bf16.msra.mxu1 %v12292_v39 }
0x11ff   :  { %v15274_v50 = vpop.f32.mrb[84].mxu0  ;;  %14486 = vmatmul.mubr.msk.bf16.vlgmr.msra.gmra.mrb[88].mxu1 %vm6432_vm8, %v22722_v60 }
0x1200   :  { %v15275_v24 = vpop.f32.mrb[85].mxu0 }
0x1201   :  { %v15276_v17 = vadd.f32 %v15275_v24, %v15274_v50  ;;  %v15277_v46 = vpop.f32.mrb[86].mxu0 }
0x1202   :  { %v15278_v20 = vpop.f32.mrb[87].mxu0 }
0x1203   :  { %v13193_v23 = vadd.f32 %v15276_v17, %v13153_v61 }
0x121f   :  { %v15296_v31 = vpop.f32.mrb[88].mxu0 }
0x1220   :  { %v15297_v16 = vpop.f32.mrb[89].mxu0 }
0x1221   :  { %v15298_v49 = vadd.f32 %v15297_v16, %v15296_v31  ;;  %v15299_v44 = vpop.f32.mrb[90].mxu0 }
0x1222   :  { %v15300_v9 = vpop.f32.mrb[91].mxu0 }
0x1223   :  { %v13233_v57 = vadd.f32 %v15298_v49, %v13193_v23 }
0x1233   :  { %v13272_v63 = vpop.f32.mrb[92].mxu0 }
0x1234   :  { %v13273_v56 = vadd.f32 %v13272_v63, %v13233_v57  ;;  %v15494_v21 = vpop.f32.mrb[93].mxu0 }
0x1235   :  { %v13275_v30 = vpop.f32.mrb[94].mxu0 }
0x1236   :  { %v15495_v28 = vpop.f32.mrb[95].mxu0  ;;  %v13284_v60 = vmul.f32 0.5, %v13273_v56 }
0x1238   :  { %17848 = vtanh.f32 %v13284_v60 }
0x1242   :  { %v17849_v45 = vpop.eup %17848 }
0x1243   :  { %v13298_v14 = vadd.f32 1.0, %v17849_v45 }
0x1245   :  { %v13305_v55 = vmul.f32 0.5, %v13298_v14 }
0x1247   :  { %v13344_v15 = vrot.slane %v13305_v55, %v23372_v33 }
0x12d2   :  { %v13031_v58 = vpop.f32.mrb[88].mxu1 }
0x12d3   :  { %v16138_v18 = vadd.f32 %v13031_v58, %v9217_v7  ;;  %v13033_v35 = vpop.f32.mrb[89].mxu1 }
0x12d4   :  { %v16139_v52 = vadd.f32 %v13033_v35, %v9221_v10  ;;  %v13035_v29 = vpop.f32.mrb[90].mxu1 }
0x12d5   :  { %v13282_v22 = vmul.f32 0.5, %v16138_v18  ;;  %v13036_v59 = vpop.f32.mrb[91].mxu1 }
0x12d6   :  { %v13283_v40 = vmul.f32 0.5, %v16139_v52 }
0x12d7   :  { %17850 = vtanh.f32 %v13282_v22 }
0x12d8   :  { %17852 = vtanh.f32 %v13283_v40 }
0x12e1   :  { %v17851_v54 = vpop.eup %17850 }
0x12e2   :  { %v17853_v42 = vpop.eup %17852  ;;  %v13296_v0 = vadd.f32 1.0, %v17851_v54 }
0x12e3   :  { %v13297_v36 = vadd.f32 1.0, %v17853_v42 }
0x12e4   :  { %v13303_v41 = vmul.f32 0.5, %v13296_v0 }
0x12e5   :  { %v13304_v43 = vmul.f32 0.5, %v13297_v36 }
0x12e7   :  { %v13330_v5 = vcombine.low %v13303_v41, %v13304_v43 }
0x12e9   :  { %v13337_v32 = vrot.slane %v13330_v5, %v23372_v33 }
0x12eb   :  { %v13345_v3 = vcombine.low %v13337_v32, %v13344_v15 }
0x12ed   :  { %13353 = vst.msk [vmem:[%s23570_s21 + $0x8] sm:$0x3f] %vm13352_vm14, %v13345_v3 }

</bundles_post_ra>
